<compile_context>
chip_gen: v5e
topology: v5e:2x2
jax: 0.10.0
libtpu: 0.0.40
codegen_flags: <defaults>
</compile_context>

<pallas_src>
import jax
import jax.numpy as jnp
import numpy as np
from jax import lax
from jax.experimental import pallas as pl
from jax.experimental.pallas import tpu as pltpu

LANE = 128


def _basic_block_kernel(x_ref, w1_ref, t1_ref, w2_ref, t2_ref, out_ref,
                        pad1_ref, pad2_ref):
    # x_ref    : (1, H, W, Cp)   f32   channel-padded NHWC input (one batch elem)
    # w1/w2_ref: (9*Cp, Cp)      bf16  im2col weights, BN scale pre-folded
    # t1/t2_ref: (1, Cp)         f32   conv_bias * bn_scale + bn_shift
    # out_ref  : (1, H*W, Cp)    f32   lane-dense output slab
    # pad1/pad2: (H+2, W+2, Cp)  bf16  VMEM scratch: spatially padded activations
    H = x_ref.shape[1]
    W = x_ref.shape[2]
    Cp = x_ref.shape[3]

    def zero_border(ref):
        # Interior is fully overwritten every step; only the 1-px halo needs zeros.
        zrow = jnp.zeros((1, W + 2, Cp), ref.dtype)
        zcol = jnp.zeros((H, 1, Cp), ref.dtype)
        ref[0:1, :, :] = zrow
        ref[H + 1:H + 2, :, :] = zrow
        ref[1:H + 1, 0:1, :] = zcol
        ref[1:H + 1, W + 1:W + 2, :] = zcol

    def im2col(ref):
        v = ref[...]                                          # (H+2, W+2, Cp) bf16
        cols = [v[kh:kh + H, kw:kw + W, :].reshape(H * W, Cp)
                for kh in range(3) for kw in range(3)]
        return jnp.concatenate(cols, axis=-1)                 # (H*W, 9*Cp)

    x_f32 = x_ref[0]                                          # (H, W, Cp) f32

    # ---- conv1 (3x3, s=1, p=1) + bn1 + relu1 : one MXU matmul ----
    zero_border(pad1_ref)
    pad1_ref[1:H + 1, 1:W + 1, :] = x_f32.astype(pad1_ref.dtype)
    y1 = jnp.dot(im2col(pad1_ref), w1_ref[...],
                 preferred_element_type=jnp.float32)          # (H*W, Cp) f32
    y1 = jnp.maximum(y1 + t1_ref[...], 0.0)

    # ---- conv2 (3x3, s=1, p=1) + bn2 + residual + relu2 ----
    zero_border(pad2_ref)
    pad2_ref[1:H + 1, 1:W + 1, :] = y1.reshape(H, W, Cp).astype(pad2_ref.dtype)
    y2 = jnp.dot(im2col(pad2_ref), w2_ref[...],
                 preferred_element_type=jnp.float32)          # (H*W, Cp) f32
    y2 = y2 + t2_ref[...] + x_f32.reshape(H * W, Cp)          # residual add in f32
    out_ref[0] = jnp.maximum(y2, 0.0).astype(out_ref.dtype)


def basic_block_forward(x_nchw, params, eps=1e-5):
    """BasicBlock forward (eval-mode BN).  x_nchw: (N, C, H, W) f32 -> (N, C, H, W)."""
    x = jnp.transpose(x_nchw, (0, 2, 3, 1)).astype(jnp.float32)   # NHWC
    N, H, W, C = x.shape
    Cp = ((C + LANE - 1) // LANE) * LANE                          # lane-dense channels

    # Single channel-padded copy of x; the kernel reads it once per batch element
    # and uses it for both the conv input and the identity branch.
    xp = jnp.pad(x, ((0, 0), (0, 0), (0, 0), (0, Cp - C)))        # (N, H, W, Cp)

    def fold_bn(prefix):
        s = params[f'{prefix}_gamma'] / jnp.sqrt(params[f'{prefix}_var'] + eps)
        t = params[f'{prefix}_beta'] - params[f'{prefix}_mean'] * s
        return s, t

    s1, t1 = fold_bn('bn1')
    s2, t2 = fold_bn('bn2')

    def prep_w(w_oihw, scale):
        # (O, I, 3, 3) -> (9*Cp, Cp) with BN scale folded into output channels,
        # row index = (kh*3+kw)*Cp + ci  (matches kernel im2col column order).
        O, I = w_oihw.shape[0], w_oihw.shape[1]
        w = w_oihw * scale[:, None, None, None]
        w = jnp.transpose(w, (2, 3, 1, 0))                        # (3, 3, I, O)
        w = jnp.pad(w, ((0, 0), (0, 0), (0, Cp - I), (0, Cp - O)))
        return w.reshape(9 * Cp, Cp).astype(jnp.bfloat16)

    def prep_t(bias, scale, shift):
        t = bias * scale + shift                                   # fold conv bias
        return jnp.pad(t, (0, Cp - t.shape[0])).reshape(1, Cp).astype(jnp.float32)

    w1 = prep_w(params['conv1_w'], s1)
    w2 = prep_w(params['conv2_w'], s2)
    t1p = prep_t(params['conv1_b'], s1, t1)
    t2p = prep_t(params['conv2_b'], s2, t2)

    out = pl.pallas_call(
        _basic_block_kernel,
        out_shape=jax.ShapeDtypeStruct((N, H * W, Cp), jnp.float32),
        grid_spec=pltpu.PrefetchScalarGridSpec(
            num_scalar_prefetch=0,
            grid=(N,),
            in_specs=[
                pl.BlockSpec((1, H, W, Cp), lambda n: (n, 0, 0, 0)),
                pl.BlockSpec((9 * Cp, Cp), lambda n: (0, 0)),
                pl.BlockSpec((1, Cp), lambda n: (0, 0)),
                pl.BlockSpec((9 * Cp, Cp), lambda n: (0, 0)),
                pl.BlockSpec((1, Cp), lambda n: (0, 0)),
            ],
            out_specs=pl.BlockSpec((1, H * W, Cp), lambda n: (n, 0, 0)),
            scratch_shapes=[pltpu.VMEM((H + 2, W + 2, Cp), jnp.bfloat16),
                            pltpu.VMEM((H + 2, W + 2, Cp), jnp.bfloat16)],
        ),
        compiler_params=pltpu.CompilerParams(
            dimension_semantics=("parallel",)),
    )(xp, w1, t1p, w2, t2p)

    out = out.reshape(N, H, W, Cp)[:, :, :, :C]
    return jnp.transpose(out, (0, 3, 1, 2))


def reference_forward(x_nchw, params, eps=1e-5):
    """Plain-JAX reference of BasicBlock.forward (eval-mode BN, f32)."""
    x = jnp.transpose(x_nchw, (0, 2, 3, 1)).astype(jnp.float32)

    def conv(inp, w_oihw, b):
        w = jnp.transpose(w_oihw, (2, 3, 1, 0))   # HWIO
        y = lax.conv_general_dilated(inp, w, (1, 1), ((1, 1), (1, 1)),
                                     dimension_numbers=('NHWC', 'HWIO', 'NHWC'))
        return y + b

    def bn(inp, g, b, m, v):
        return (inp - m) / jnp.sqrt(v + eps) * g + b

    o = conv(x, params['conv1_w'], params['conv1_b'])
    o = jnp.maximum(bn(o, params['bn1_gamma'], params['bn1_beta'],
                       params['bn1_mean'], params['bn1_var']), 0.0)
    o = conv(o, params['conv2_w'], params['conv2_b'])
    o = bn(o, params['bn2_gamma'], params['bn2_beta'],
           params['bn2_mean'], params['bn2_var'])
    o = jnp.maximum(o + x, 0.0)
    return jnp.transpose(o, (0, 3, 1, 2))


if __name__ == "__main__":
    N, C, Hs, Ws = 2, 4, 16, 16            # inplanes == planes == 4, stride=1
    keys = jax.random.split(jax.random.PRNGKey(0), 13)
    params = {
        'conv1_w': 0.1 * jax.random.normal(keys[0], (C, C, 3, 3), jnp.float32),
        'conv1_b': 0.1 * jax.random.normal(keys[1], (C,), jnp.float32),
        'bn1_gamma': 1.0 + 0.1 * jax.random.normal(keys[2], (C,), jnp.float32),
        'bn1_beta': 0.1 * jax.random.normal(keys[3], (C,), jnp.float32),
        'bn1_mean': 0.1 * jax.random.normal(keys[4], (C,), jnp.float32),
        'bn1_var': jnp.abs(jax.random.normal(keys[5], (C,), jnp.float32)) + 0.5,
        'conv2_w': 0.1 * jax.random.normal(keys[6], (C, C, 3, 3), jnp.float32),
        'conv2_b': 0.1 * jax.random.normal(keys[7], (C,), jnp.float32),
        'bn2_gamma': 1.0 + 0.1 * jax.random.normal(keys[8], (C,), jnp.float32),
        'bn2_beta': 0.1 * jax.random.normal(keys[9], (C,), jnp.float32),
        'bn2_mean': 0.1 * jax.random.normal(keys[10], (C,), jnp.float32),
        'bn2_var': jnp.abs(jax.random.normal(keys[11], (C,), jnp.float32)) + 0.5,
    }
    x = jax.random.normal(keys[12], (N, C, Hs, Ws), jnp.float32)

    out = basic_block_forward(x, params)
    jax.block_until_ready(out)

    ref = reference_forward(x, params)
    assert out.shape == (N, C, Hs, Ws)
    # bf16 matmul operands (f32 accumulation) -> looser tolerance than pure-f32.
    np.testing.assert_allclose(np.asarray(out), np.asarray(ref),
                               rtol=3e-2, atol=3e-2)
    print("KERNEL_OK")
</pallas_src>

<mosaic_0001>
module attributes {stable_mosaic.version = 11 : i64} {
  func.func @_basic_block_kernel(%arg0: i32, %arg1: memref<1x16x16x128xf32, #tpu.memory_space<vmem>>, %arg2: memref<1152x128xbf16, #tpu.memory_space<vmem>>, %arg3: memref<1x128xf32, #tpu.memory_space<vmem>>, %arg4: memref<1152x128xbf16, #tpu.memory_space<vmem>>, %arg5: memref<1x128xf32, #tpu.memory_space<vmem>>, %arg6: memref<1x256x128xf32, #tpu.memory_space<vmem>>, %arg7: memref<18x18x128xbf16, #tpu.memory_space<vmem>>, %arg8: memref<18x18x128xbf16, #tpu.memory_space<vmem>>) attributes {dimension_semantics = [#tpu.dimension_semantics<parallel>], iteration_bounds = array<i64: 2>, scalar_prefetch = 0 : i64, scratch_operands = 2 : i64, tpu.core_type = #tpu.core_type<tc>, window_params = [{transform_indices = @transform_0, window_bounds = array<i64: 1, 16, 16, 128>}, {pipeline_mode = #tpu.pipeline_mode<synchronous>, transform_indices = @transform_1, window_bounds = array<i64: 1152, 128>}, {pipeline_mode = #tpu.pipeline_mode<synchronous>, transform_indices = @transform_2, window_bounds = array<i64: 1, 128>}, {pipeline_mode = #tpu.pipeline_mode<synchronous>, transform_indices = @transform_3, window_bounds = array<i64: 1152, 128>}, {pipeline_mode = #tpu.pipeline_mode<synchronous>, transform_indices = @transform_4, window_bounds = array<i64: 1, 128>}, {transform_indices = @transform_5, window_bounds = array<i64: 1, 256, 128>}]} {
    %c0 = arith.constant 0 : index
    %c0_0 = arith.constant 0 : index
    %c0_1 = arith.constant 0 : index
    %c0_2 = arith.constant 0 : index
    %0 = vector.load %arg1[%c0, %c0_0, %c0_1, %c0_2] : memref<1x16x16x128xf32, #tpu.memory_space<vmem>>, vector<1x16x16x128xf32>
    %1 = vector.shape_cast %0 : vector<1x16x16x128xf32> to vector<16x16x128xf32>
    %cst = arith.constant 0.000000e+00 : bf16
    %2 = vector.broadcast %cst : bf16 to vector<1x18x128xbf16>
    %cst_3 = arith.constant 0.000000e+00 : bf16
    %3 = vector.broadcast %cst_3 : bf16 to vector<16x1x128xbf16>
    %c0_4 = arith.constant 0 : index
    %c0_5 = arith.constant 0 : index
    %c0_6 = arith.constant 0 : index
    %4 = vector.load %arg7[%c0_4, %c0_5, %c0_6] : memref<18x18x128xbf16, #tpu.memory_space<vmem>>, vector<1x18x128xbf16>
    tpu.vector_store %arg7[%c0_4, %c0_5, %c0_6], %2 {strides = array<i32>} : memref<18x18x128xbf16, #tpu.memory_space<vmem>>, vector<1x18x128xbf16>,
    %c17 = arith.constant 17 : index
    %c0_7 = arith.constant 0 : index
    %c0_8 = arith.constant 0 : index
    %5 = vector.load %arg7[%c17, %c0_7, %c0_8] : memref<18x18x128xbf16, #tpu.memory_space<vmem>>, vector<1x18x128xbf16>
    tpu.vector_store %arg7[%c17, %c0_7, %c0_8], %2 {strides = array<i32>} : memref<18x18x128xbf16, #tpu.memory_space<vmem>>, vector<1x18x128xbf16>,
    %c1 = arith.constant 1 : index
    %c0_9 = arith.constant 0 : index
    %c0_10 = arith.constant 0 : index
    %6 = vector.load %arg7[%c1, %c0_9, %c0_10] : memref<18x18x128xbf16, #tpu.memory_space<vmem>>, vector<16x1x128xbf16>
    tpu.vector_store %arg7[%c1, %c0_9, %c0_10], %3 {strides = array<i32>} : memref<18x18x128xbf16, #tpu.memory_space<vmem>>, vector<16x1x128xbf16>,
    %c1_11 = arith.constant 1 : index
    %c17_12 = arith.constant 17 : index
    %c0_13 = arith.constant 0 : index
    %7 = vector.load %arg7[%c1_11, %c17_12, %c0_13] : memref<18x18x128xbf16, #tpu.memory_space<vmem>>, vector<16x1x128xbf16>
    tpu.vector_store %arg7[%c1_11, %c17_12, %c0_13], %3 {strides = array<i32>} : memref<18x18x128xbf16, #tpu.memory_space<vmem>>, vector<16x1x128xbf16>,
    %8 = arith.truncf %1 : vector<16x16x128xf32> to vector<16x16x128xbf16>
    %c1_14 = arith.constant 1 : index
    %c1_15 = arith.constant 1 : index
    %c0_16 = arith.constant 0 : index
    %9 = vector.load %arg7[%c1_14, %c1_15, %c0_16] : memref<18x18x128xbf16, #tpu.memory_space<vmem>>, vector<16x16x128xbf16>
    tpu.vector_store %arg7[%c1_14, %c1_15, %c0_16], %8 {strides = array<i32>} : memref<18x18x128xbf16, #tpu.memory_space<vmem>>, vector<16x16x128xbf16>,
    %c0_17 = arith.constant 0 : index
    %c0_18 = arith.constant 0 : index
    %c0_19 = arith.constant 0 : index
    %10 = vector.load %arg7[%c0_17, %c0_18, %c0_19] : memref<18x18x128xbf16, #tpu.memory_space<vmem>>, vector<18x18x128xbf16>
    %11 = vector.extract_strided_slice %10 {offsets = [0, 0, 0], sizes = [16, 16, 128], strides = [1, 1, 1]} : vector<18x18x128xbf16> to vector<16x16x128xbf16>
    %12 = vector.shape_cast %11 : vector<16x16x128xbf16> to vector<256x128xbf16>
    %13 = vector.extract_strided_slice %10 {offsets = [0, 1, 0], sizes = [16, 16, 128], strides = [1, 1, 1]} : vector<18x18x128xbf16> to vector<16x16x128xbf16>
    %14 = vector.shape_cast %13 : vector<16x16x128xbf16> to vector<256x128xbf16>
    %15 = vector.extract_strided_slice %10 {offsets = [0, 2, 0], sizes = [16, 16, 128], strides = [1, 1, 1]} : vector<18x18x128xbf16> to vector<16x16x128xbf16>
    %16 = vector.shape_cast %15 : vector<16x16x128xbf16> to vector<256x128xbf16>
    %17 = vector.extract_strided_slice %10 {offsets = [1, 0, 0], sizes = [16, 16, 128], strides = [1, 1, 1]} : vector<18x18x128xbf16> to vector<16x16x128xbf16>
    %18 = vector.shape_cast %17 : vector<16x16x128xbf16> to vector<256x128xbf16>
    %19 = vector.extract_strided_slice %10 {offsets = [1, 1, 0], sizes = [16, 16, 128], strides = [1, 1, 1]} : vector<18x18x128xbf16> to vector<16x16x128xbf16>
    %20 = vector.shape_cast %19 : vector<16x16x128xbf16> to vector<256x128xbf16>
    %21 = vector.extract_strided_slice %10 {offsets = [1, 2, 0], sizes = [16, 16, 128], strides = [1, 1, 1]} : vector<18x18x128xbf16> to vector<16x16x128xbf16>
    %22 = vector.shape_cast %21 : vector<16x16x128xbf16> to vector<256x128xbf16>
    %23 = vector.extract_strided_slice %10 {offsets = [2, 0, 0], sizes = [16, 16, 128], strides = [1, 1, 1]} : vector<18x18x128xbf16> to vector<16x16x128xbf16>
    %24 = vector.shape_cast %23 : vector<16x16x128xbf16> to vector<256x128xbf16>
    %25 = vector.extract_strided_slice %10 {offsets = [2, 1, 0], sizes = [16, 16, 128], strides = [1, 1, 1]} : vector<18x18x128xbf16> to vector<16x16x128xbf16>
    %26 = vector.shape_cast %25 : vector<16x16x128xbf16> to vector<256x128xbf16>
    %27 = vector.extract_strided_slice %10 {offsets = [2, 2, 0], sizes = [16, 16, 128], strides = [1, 1, 1]} : vector<18x18x128xbf16> to vector<16x16x128xbf16>
    %28 = vector.shape_cast %27 : vector<16x16x128xbf16> to vector<256x128xbf16>
    %29 = tpu.concatenate %12, %14, %16, %18, %20, %22, %24, %26, %28 in 1 : vector<256x128xbf16>, vector<256x128xbf16>, vector<256x128xbf16>, vector<256x128xbf16>, vector<256x128xbf16>, vector<256x128xbf16>, vector<256x128xbf16>, vector<256x128xbf16>, vector<256x128xbf16> -> vector<256x1152xbf16>
    %c0_20 = arith.constant 0 : index
    %c0_21 = arith.constant 0 : index
    %30 = vector.load %arg2[%c0_20, %c0_21] : memref<1152x128xbf16, #tpu.memory_space<vmem>>, vector<1152x128xbf16>
    %cst_22 = arith.constant dense<0.000000e+00> : vector<256x128xf32>
    %31 = tpu.matmul %29, %30, %cst_22 {dimension_numbers = #tpu.dot_dimension_numbers<[1], [0], [0], [1], [0, 0, 1, 1], [], []>} : vector<256x1152xbf16>, vector<1152x128xbf16>, vector<256x128xf32> -> vector<256x128xf32>
    %c0_23 = arith.constant 0 : index
    %c0_24 = arith.constant 0 : index
    %32 = vector.load %arg3[%c0_23, %c0_24] : memref<1x128xf32, #tpu.memory_space<vmem>>, vector<1x128xf32>
    %33 = vector.broadcast %32 : vector<1x128xf32> to vector<256x128xf32>
    %34 = arith.addf %31, %33 : vector<256x128xf32>
    %cst_25 = arith.constant 0.000000e+00 : f32
    %35 = vector.broadcast %cst_25 : f32 to vector<256x128xf32>
    %36 = arith.maximumf %34, %35 : vector<256x128xf32>
    %cst_26 = arith.constant 0.000000e+00 : bf16
    %37 = vector.broadcast %cst_26 : bf16 to vector<1x18x128xbf16>
    %cst_27 = arith.constant 0.000000e+00 : bf16
    %38 = vector.broadcast %cst_27 : bf16 to vector<16x1x128xbf16>
    %c0_28 = arith.constant 0 : index
    %c0_29 = arith.constant 0 : index
    %c0_30 = arith.constant 0 : index
    %39 = vector.load %arg8[%c0_28, %c0_29, %c0_30] : memref<18x18x128xbf16, #tpu.memory_space<vmem>>, vector<1x18x128xbf16>
    tpu.vector_store %arg8[%c0_28, %c0_29, %c0_30], %37 {strides = array<i32>} : memref<18x18x128xbf16, #tpu.memory_space<vmem>>, vector<1x18x128xbf16>,
    %c17_31 = arith.constant 17 : index
    %c0_32 = arith.constant 0 : index
    %c0_33 = arith.constant 0 : index
    %40 = vector.load %arg8[%c17_31, %c0_32, %c0_33] : memref<18x18x128xbf16, #tpu.memory_space<vmem>>, vector<1x18x128xbf16>
    tpu.vector_store %arg8[%c17_31, %c0_32, %c0_33], %37 {strides = array<i32>} : memref<18x18x128xbf16, #tpu.memory_space<vmem>>, vector<1x18x128xbf16>,
    %c1_34 = arith.constant 1 : index
    %c0_35 = arith.constant 0 : index
    %c0_36 = arith.constant 0 : index
    %41 = vector.load %arg8[%c1_34, %c0_35, %c0_36] : memref<18x18x128xbf16, #tpu.memory_space<vmem>>, vector<16x1x128xbf16>
    tpu.vector_store %arg8[%c1_34, %c0_35, %c0_36], %38 {strides = array<i32>} : memref<18x18x128xbf16, #tpu.memory_space<vmem>>, vector<16x1x128xbf16>,
    %c1_37 = arith.constant 1 : index
    %c17_38 = arith.constant 17 : index
    %c0_39 = arith.constant 0 : index
    %42 = vector.load %arg8[%c1_37, %c17_38, %c0_39] : memref<18x18x128xbf16, #tpu.memory_space<vmem>>, vector<16x1x128xbf16>
    tpu.vector_store %arg8[%c1_37, %c17_38, %c0_39], %38 {strides = array<i32>} : memref<18x18x128xbf16, #tpu.memory_space<vmem>>, vector<16x1x128xbf16>,
    %43 = vector.shape_cast %36 : vector<256x128xf32> to vector<16x16x128xf32>
    %44 = arith.truncf %43 : vector<16x16x128xf32> to vector<16x16x128xbf16>
    %c1_40 = arith.constant 1 : index
    %c1_41 = arith.constant 1 : index
    %c0_42 = arith.constant 0 : index
    %45 = vector.load %arg8[%c1_40, %c1_41, %c0_42] : memref<18x18x128xbf16, #tpu.memory_space<vmem>>, vector<16x16x128xbf16>
    tpu.vector_store %arg8[%c1_40, %c1_41, %c0_42], %44 {strides = array<i32>} : memref<18x18x128xbf16, #tpu.memory_space<vmem>>, vector<16x16x128xbf16>,
    %c0_43 = arith.constant 0 : index
    %c0_44 = arith.constant 0 : index
    %c0_45 = arith.constant 0 : index
    %46 = vector.load %arg8[%c0_43, %c0_44, %c0_45] : memref<18x18x128xbf16, #tpu.memory_space<vmem>>, vector<18x18x128xbf16>
    %47 = vector.extract_strided_slice %46 {offsets = [0, 0, 0], sizes = [16, 16, 128], strides = [1, 1, 1]} : vector<18x18x128xbf16> to vector<16x16x128xbf16>
    %48 = vector.shape_cast %47 : vector<16x16x128xbf16> to vector<256x128xbf16>
    %49 = vector.extract_strided_slice %46 {offsets = [0, 1, 0], sizes = [16, 16, 128], strides = [1, 1, 1]} : vector<18x18x128xbf16> to vector<16x16x128xbf16>
    %50 = vector.shape_cast %49 : vector<16x16x128xbf16> to vector<256x128xbf16>
    %51 = vector.extract_strided_slice %46 {offsets = [0, 2, 0], sizes = [16, 16, 128], strides = [1, 1, 1]} : vector<18x18x128xbf16> to vector<16x16x128xbf16>
    %52 = vector.shape_cast %51 : vector<16x16x128xbf16> to vector<256x128xbf16>
    %53 = vector.extract_strided_slice %46 {offsets = [1, 0, 0], sizes = [16, 16, 128], strides = [1, 1, 1]} : vector<18x18x128xbf16> to vector<16x16x128xbf16>
    %54 = vector.shape_cast %53 : vector<16x16x128xbf16> to vector<256x128xbf16>
    %55 = vector.extract_strided_slice %46 {offsets = [1, 1, 0], sizes = [16, 16, 128], strides = [1, 1, 1]} : vector<18x18x128xbf16> to vector<16x16x128xbf16>
    %56 = vector.shape_cast %55 : vector<16x16x128xbf16> to vector<256x128xbf16>
    %57 = vector.extract_strided_slice %46 {offsets = [1, 2, 0], sizes = [16, 16, 128], strides = [1, 1, 1]} : vector<18x18x128xbf16> to vector<16x16x128xbf16>
    %58 = vector.shape_cast %57 : vector<16x16x128xbf16> to vector<256x128xbf16>
    %59 = vector.extract_strided_slice %46 {offsets = [2, 0, 0], sizes = [16, 16, 128], strides = [1, 1, 1]} : vector<18x18x128xbf16> to vector<16x16x128xbf16>
    %60 = vector.shape_cast %59 : vector<16x16x128xbf16> to vector<256x128xbf16>
    %61 = vector.extract_strided_slice %46 {offsets = [2, 1, 0], sizes = [16, 16, 128], strides = [1, 1, 1]} : vector<18x18x128xbf16> to vector<16x16x128xbf16>
    %62 = vector.shape_cast %61 : vector<16x16x128xbf16> to vector<256x128xbf16>
    %63 = vector.extract_strided_slice %46 {offsets = [2, 2, 0], sizes = [16, 16, 128], strides = [1, 1, 1]} : vector<18x18x128xbf16> to vector<16x16x128xbf16>
    %64 = vector.shape_cast %63 : vector<16x16x128xbf16> to vector<256x128xbf16>
    %65 = tpu.concatenate %48, %50, %52, %54, %56, %58, %60, %62, %64 in 1 : vector<256x128xbf16>, vector<256x128xbf16>, vector<256x128xbf16>, vector<256x128xbf16>, vector<256x128xbf16>, vector<256x128xbf16>, vector<256x128xbf16>, vector<256x128xbf16>, vector<256x128xbf16> -> vector<256x1152xbf16>
    %c0_46 = arith.constant 0 : index
    %c0_47 = arith.constant 0 : index
    %66 = vector.load %arg4[%c0_46, %c0_47] : memref<1152x128xbf16, #tpu.memory_space<vmem>>, vector<1152x128xbf16>
    %cst_48 = arith.constant dense<0.000000e+00> : vector<256x128xf32>
    %67 = tpu.matmul %65, %66, %cst_48 {dimension_numbers = #tpu.dot_dimension_numbers<[1], [0], [0], [1], [0, 0, 1, 1], [], []>} : vector<256x1152xbf16>, vector<1152x128xbf16>, vector<256x128xf32> -> vector<256x128xf32>
    %c0_49 = arith.constant 0 : index
    %c0_50 = arith.constant 0 : index
    %68 = vector.load %arg5[%c0_49, %c0_50] : memref<1x128xf32, #tpu.memory_space<vmem>>, vector<1x128xf32>
    %69 = vector.broadcast %68 : vector<1x128xf32> to vector<256x128xf32>
    %70 = arith.addf %67, %69 : vector<256x128xf32>
    %71 = vector.shape_cast %1 : vector<16x16x128xf32> to vector<256x128xf32>
    %72 = arith.addf %70, %71 : vector<256x128xf32>
    %cst_51 = arith.constant 0.000000e+00 : f32
    %73 = vector.broadcast %cst_51 : f32 to vector<256x128xf32>
    %74 = arith.maximumf %72, %73 : vector<256x128xf32>
    %c0_52 = arith.constant 0 : index
    %c0_53 = arith.constant 0 : index
    %c0_54 = arith.constant 0 : index
    %75 = vector.load %arg6[%c0_52, %c0_53, %c0_54] : memref<1x256x128xf32, #tpu.memory_space<vmem>>, vector<1x256x128xf32>
    %76 = vector.shape_cast %75 : vector<1x256x128xf32> to vector<256x128xf32>
    %77 = vector.shape_cast %74 : vector<256x128xf32> to vector<1x256x128xf32>
    tpu.vector_store %arg6[%c0_52, %c0_53, %c0_54], %77 {strides = array<i32>} : memref<1x256x128xf32, #tpu.memory_space<vmem>>, vector<1x256x128xf32>,
    return
  }
  func.func @transform_0(%arg0: i32) -> (i32, i32, i32, i32) {
    %c0_i32 = arith.constant 0 : i32
    %c0_i32_0 = arith.constant 0 : i32
    %c0_i32_1 = arith.constant 0 : i32
    %c0_i32_2 = arith.constant 0 : i32
    return %arg0, %c0_i32, %c0_i32_0, %c0_i32_1 : i32, i32, i32, i32
  }
  func.func @transform_1(%arg0: i32) -> (i32, i32) {
    %c0_i32 = arith.constant 0 : i32
    %c0_i32_0 = arith.constant 0 : i32
    %c0_i32_1 = arith.constant 0 : i32
    return %c0_i32, %c0_i32_0 : i32, i32
  }
  func.func @transform_2(%arg0: i32) -> (i32, i32) {
    %c0_i32 = arith.constant 0 : i32
    %c0_i32_0 = arith.constant 0 : i32
    %c0_i32_1 = arith.constant 0 : i32
    return %c0_i32, %c0_i32_0 : i32, i32
  }
  func.func @transform_3(%arg0: i32) -> (i32, i32) {
    %c0_i32 = arith.constant 0 : i32
    %c0_i32_0 = arith.constant 0 : i32
    %c0_i32_1 = arith.constant 0 : i32
    return %c0_i32, %c0_i32_0 : i32, i32
  }
  func.func @transform_4(%arg0: i32) -> (i32, i32) {
    %c0_i32 = arith.constant 0 : i32
    %c0_i32_0 = arith.constant 0 : i32
    %c0_i32_1 = arith.constant 0 : i32
    return %c0_i32, %c0_i32_0 : i32, i32
  }
  func.func @transform_5(%arg0: i32) -> (i32, i32, i32) {
    %c0_i32 = arith.constant 0 : i32
    %c0_i32_0 = arith.constant 0 : i32
    %c0_i32_1 = arith.constant 0 : i32
    return %arg0, %c0_i32, %c0_i32_0 : i32, i32, i32
  }
}

</mosaic_0001>

<bundles_post_ra>
// kernel: tpu_custom_call.1
= control target key start
LH: loop header
LB: loop body
LE: loop exit
PB: predicated region body
PF: predicated region fallthrough
CT: control target
= control target key end

     0   :  { %10 = vsyncpa [#allocation5], 0  ;;  %s10273_s0 = inlined_call_operand.hbm [shape: f32[2,16,16,128], index: 0, kind: input, shape index: {}]   ;;  %s10274_s1 = inlined_call_operand.hbm [shape: bf16[1152,128], index: 1, kind: input, shape index: {}]   ;;  %s10275_s2 = inlined_call_operand.vmem [shape: f32[1,128], index: 2, kind: input, shape index: {}]   ;;  %s10276_s3 = inlined_call_operand.hbm [shape: bf16[1152,128], index: 3, kind: input, shape index: {}]   ;;  %s10277_s4 = inlined_call_operand.vmem [shape: f32[1,128], index: 4, kind: input, shape index: {}]   ;;  %s10278_s5 = inlined_call_operand.hbm [shape: f32[2,256,128], index: 5, kind: output, shape index: {}]  }
   0x1   :  { %12 = vsyncpa [#allocation5 + $0x1], 0 }
   0x2   :  { %13 = vsyncpa [#allocation8], 0 }
   0x3   :  { %14 = vsyncpa [#allocation6], 0 }
   0x4   :  { %16 = vsyncpa [#allocation6 + $0x1], 0  ;;  %s7572_s18 = smov 0   ;;  %s7574_s19 = smov 0  }
   0x5   :  { %s7576_s20 = smov 0   ;;  %s7578_s21 = smov 0  }
   0x6 LB: > { %s7593_s22 = sadd.s32 4294967295, %s7531_s21   ;;  %s6224_s23 = sadd.s32 4294967294, %s7531_s21   ;;  %s7531_s21 = sphi %s7578_s21, %s10534_s21   ;;  %s7527_s20 = sphi %s7576_s20, %s10533_s20   ;;  %s7523_s19 = sphi %s7574_s19, %s10532_s19   ;;  %s7519_s18 = sphi %s7572_s18, %s10531_s18  }
   0x7   : > { %p42_p0 = scmp.ne.s32.totalorder %s7523_s19, %s7519_s18  ;;  %p43_p1 = scmp.eq.s32.totalorder %s7593_s22, 0 }
   0x8   : > { %p150_p2 = scmp.eq.s32.totalorder %s7593_s22, 1  ;;  %p156_p3 = scmp.eq.s32.totalorder %s6224_s23, 1 }
   0x9   : > { %p7602_p4 = por %p43_p1, %p42_p0  ;;  %p6225_p5 = scmp.ge.s32.totalorder %s7531_s21, 1 }
   0xa   : > { %p7607_p6 = por %p156_p3, %p42_p0  ;;  %p163_p7 = scmp.lt.s32.totalorder %s7531_s21, 3 }
   0xb   : > { %s174_s28 = sshll.u32 %s10274_s1, 4  ;;  %s7533_s30 = smov [#allocation7]   ;;  %s175_s28 = int_to_ptr.hbm [resolvable:$true] %s174_s28 }
   0xc   : > { %p7615_p8 = pnand %p6225_p5, %p163_p7  ;;  %s176_s6 = sshll.u32 %s7533_s30, 4  ;;  %s177_s6 = int_to_ptr.vmem [resolvable:$true] %s176_s6 }
   0xd   : > { %s191_s9 = sshll.u32 %s10276_s3, 4  ;;  %s7534_s10 = smov 64   ;;  %s192_s9 = int_to_ptr.hbm [resolvable:$true] %s191_s9 }
   0xe   : > { %p7208_p9 = pneg %p7615_p8  ;;  %s7535_s11 = smov 4  }
   0xf   : > { %s7536_s12 = smov [#allocation9]   ;;  %s7628_s14 = sadd.s32 1, %s7531_s21  }
  0x10   : > { %p7209_p10 = pnand %p7208_p9, %p43_p1  ;;  %s193_s13 = sshll.u32 %s7536_s12, 4  ;;  %s194_s13 = int_to_ptr.vmem [resolvable:$true] %s193_s13 }
  0x11   : > { %s29_s15 = sadd.s32 1, %s7527_s20  ;;  %s26_s16 = ssub.s32 %s7531_s21, %s7628_s14 }
  0x12   : > { %7211 = dma.hbm_to_vmem [thread:$0]  (!%p7209_p10), %s175_s28, 9216, %s177_s6, [#allocation8], %s7534_s10, %s7534_s10, %s7535_s11  }
  0x13   : > { %7214 = dma.hbm_to_vmem [thread:$0]  (!%p7209_p10), %s192_s9, 9216, %s194_s13, [#allocation8], %s7534_s10, %s7534_s10, %s7535_s11  }
  0x14   : > { %p36_p12 = scmp.ne.s32.totalorder %s7527_s20, %s7523_s19  ;;  %p27_p13 = scmp.eq.s32.totalorder %s26_s16, 0 }
  0x15   : > { %p37_p0 = scmp.eq.s32.totalorder %s7531_s21, 0  ;;  %p7225_p5 = scmp.lt.s32.totalorder %s7531_s21, 2 }
  0x16   : > { %p7638_p3 = por %p150_p2, %p36_p12  ;;  %s210_s26 = sand.u32 1, %s7527_s20  }
  0x17   : > { %s7644_s23 = scalar_select %p27_p13, %s7527_s20, %s29_s15  }
  0x18   : > { %p38_p7 = por %p37_p0, %p36_p12  ;;  %s6229_s27 = sshll.u32 %s210_s26, 8 }
  0x19   : > { %s6998_s28 = sshll.u32 %s7531_s21, 8  ;;  %s214_s8 = scalar_lea.vmem [#allocation4], %s6229_s27 }
  0x1a   : > { %s219_s7 = scalar_lea.hbm %s10273_s0, %s6998_s28  ;;  %s222_s9 = sshll.u32 %s214_s8, 4  ;;  %s223_s9 = int_to_ptr.vmem [resolvable:$true] %s222_s9 }
  0x1b   : > { %s220_s10 = sshll.u32 %s219_s7, 4  ;;  %p7651_p2 = pnand %p7225_p5, %p38_p7  ;;  %s221_s10 = int_to_ptr.hbm [resolvable:$true] %s220_s10 }
  0x1c   : > { %s211_s12 = scalar_lea.sflag [#allocation5], %s210_s26  ;;  %s7431_s13 = sshra.s32 %s221_s10, 4  ;;  %s7432_s13 = int_to_ptr.hbm [resolvable:$true] %s7431_s13 }
  0x1d   : > { %s7433_s15 = scalar_lea.hbm %s7432_s13, 256  ;;  %p7435_p10 = pneg %p7651_p2 }
  0x1e   : > { %p7434_p9 = scmp.ne.s32.totalorder %s7432_s13, %s7433_s15  ;;  %s7438_s28 = scalar_lea.hbm %s10273_s0, 512 }
  0x1f   : > { %p7439_p0 = scmp.lt.s32.totalorder %s7432_s13, %s10273_s0  ;;  %p7440_p5 = scmp.lt.s32.totalorder %s7438_s28, %s7433_s15 }
  0x20   : > { %p7436_p12 = pnand %p7435_p10, %p7434_p9 }
  0x21   : > { %p7441_p7 = por %p7440_p5, %p7439_p0 }
  0x22   : > { %p7437_p13 = pneg %p7436_p12 }
  0x24   : > { %p7442_p11 = pnand %p7441_p7, %p7437_p13 }
  0x26   : > { %7445 = shalt.err (!%p7442_p11)
}
  0x27   : > { %s7537_s26 = smov 128   ;;  %s7538_s7 = smov 8  }
  0x28   : > { %7218 = dma.hbm_to_vmem [thread:$0]  (!%p7651_p2), %s221_s10, 4096, %s223_s9, %s211_s12, %s7537_s26, %s7537_s26, %s7538_s7  }
  0x29   : > { %234 = sbr.rel (%p7615_p8) target bundleno = 1533 (0x5fd), region = 40 }
  0x2e   : > { %s7668_s8 = sand.u32 1, %s7523_s19  }
  0x2f   : > { %s6233_s13 = sshll.u32 %s7668_s8, 8  ;;  %s237_s15 = scalar_lea.sflag [#allocation5], %s7668_s8 }
  0x30   : > { %s7674_s16 = scalar_lea.vmem [#allocation4], %s6233_s13 }
  0x31   : > { %7506 = dma.done.wait (%p7602_p4), %s237_s15, 4096  }
  0x32   : > { %7508 = vsyncadd (%p7602_p4), %s237_s15, 4294963200 }
  0x33   : > { %7510 = dma.done.wait (%p43_p1), [#allocation8], 18432  }
  0x34   : > { %7512 = vsyncadd (%p43_p1), [#allocation8], 4294948864  ;;  %v7539_v0 = vmov 0   ;;  %vm319_vm0 = vcmask 1040384   ;;  %v7024_v1 = vld [vmem:[#allocation7 + $0x38] sm:$0xff]  ;;  %v7023_v3 = vld [vmem:[#allocation7 + $0x30] sm:$0xff] }
  0x35   : > { %311 = vst [vmem:[#allocation2] sm:$0xf] %v7539_v0  ;;  %v7032_v2 = vld [vmem:[#allocation7 + $0x78] sm:$0xff]  ;;  %vm320_vm1 = vsmask.f32 256  ;;  %2356 = vmatpush.bf16.msra.mxu0 %v7024_v1  ;;  %7180 = vmatpush.bf16.msra.mxu2 %v7024_v1  ;;  %v7031_v4 = vld [vmem:[#allocation7 + $0x70] sm:$0xff] }
  0x36   : > { %312 = vst [vmem:[#allocation2 + $0x4] sm:$0xf] %v7539_v0  ;;  %vm370_vm2 = vsmask.f32 7938  ;;  %7188 = vmatpush.bf16.msra.mxu3 %v7032_v2  ;;  %2445 = vmatpush.bf16.msra.mxu1 %v7032_v2  ;;  %vm7686_vm3 = vmand %vm319_vm0, %vm320_vm1  ;;  %v7022_v7 = vld [vmem:[#allocation7 + $0x28] sm:$0xff]  ;;  %v293_v8 = vld [vmem:[%s7674_s16 + $0x70] sm:$0xff] }
  0x37   : > { %313 = vst [vmem:[#allocation2 + $0x8] sm:$0x1] %v7539_v0  ;;  %vm7692_vm4 = vmand %vm319_vm0, %vm370_vm2  ;;  %vm452_vm5 = vsmask.f32 4368  ;;  %v294_v9 = vld [vmem:[%s7674_s16 + $0x78] sm:$0xff]  ;;  %v434_v11 = vpack.c.bf16 %v293_v8, %v293_v8  ;;  %vm774_vm6 = vcmask 1043456  }
  0x38   : > { %315 = vst [vmem:[#allocation2 + $0xcc] sm:$0xf] %v7539_v0  ;;  %v343_v10 = vld [vmem:[#allocation2 + $0x60] sm:$0x1]  ;;  %v393_v12 = vld [vmem:[#allocation2 + $0x68] sm:$0x1]  ;;  %v435_v15 = vpack.c.bf16 %v294_v9, %v294_v9  ;;  %vm7705_vm9 = vmor %vm320_vm1, %vm452_vm5 }
  0x39   : > { %316 = vst [vmem:[#allocation2 + $0xd0] sm:$0xf] %v7539_v0  ;;  %2357 = vmatpush.bf16.msra.mxu0 %v7023_v3  ;;  %7181 = vmatpush.bf16.msra.mxu2 %v7023_v3  ;;  %vm942_vm7 = vsmask.f32 3328  ;;  %v7030_v13 = vld [vmem:[#allocation7 + $0x68] sm:$0xff]  ;;  %v344_v14 = vsel %vm7686_vm3, 0, %v343_v10  ;;  %vm7712_vm10 = vmand %vm774_vm6, %vm370_vm2 }
  0x3a   : > { %317 = vst [vmem:[#allocation2 + $0xd4] sm:$0x1] %v7539_v0  ;;  %7189 = vmatpush.bf16.msra.mxu3 %v7031_v4  ;;  %2446 = vmatpush.bf16.msra.mxu1 %v7031_v4  ;;  %v394_v16 = vsel %vm7692_vm4, 0, %v393_v12  ;;  %vm943_vm8 = vsmask.f32 7440  ;;  %v7021_v17 = vld [vmem:[#allocation7 + $0x20] sm:$0xff] }
  0x3b   : > { %3189 = vst [vmem:[#allocation3] sm:$0xf] %v7539_v0  ;;  %v574_v18 = vshrl.u32 %v434_v11, 16  ;;  %v577_v19 = vshll.u32 %v434_v11, 16  ;;  %v582_v21 = vshrl.u32 %v435_v15, 16  ;;  %v585_v22 = vshll.u32 %v435_v15, 16  ;;  %vm7728_vm11 = vmor %vm942_vm7, %vm943_vm8 }
  0x3c   : > { %3190 = vst [vmem:[#allocation3 + $0x4] sm:$0xf] %v7539_v0  ;;  %v888_v20 = vld [vmem:[#allocation2] sm:$0xf]  ;;  %v7029_v29 = vld [vmem:[#allocation7 + $0x60] sm:$0xff]  ;;  %v280_v39 = vld [vmem:[%s7674_s16 + $0x8] sm:$0xff] }
  0x3d   : > { %3191 = vst [vmem:[#allocation3 + $0x8] sm:$0x1] %v7539_v0  ;;  %v889_v23 = vld [vmem:[#allocation2 + $0x4] sm:$0xf]  ;;  %2358 = vmatpush.bf16.msra.mxu0 %v7022_v7  ;;  %7182 = vmatpush.bf16.msra.mxu2 %v7022_v7  ;;  %v576_v24 = vrot.slane %v574_v18, 7  ;;  %v946_v26 = vshrl.u32 %v888_v20, 16  ;;  %v421_v57 = vpack.c.bf16 %v280_v39, %v280_v39 }
  0x3e   : > { %3193 = vst [vmem:[#allocation3 + $0xcc] sm:$0xf] %v7539_v0  ;;  %v890_v25 = vld [vmem:[#allocation2 + $0x8] sm:$0x1]  ;;  %v949_v27 = vshll.u32 %v888_v20, 16  ;;  %v955_v28 = vshll.u32 %v889_v23, 16  ;;  %7190 = vmatpush.bf16.msra.mxu3 %v7030_v13  ;;  %2447 = vmatpush.bf16.msra.mxu1 %v7030_v13 }
  0x3f   : > { %3194 = vst [vmem:[#allocation3 + $0xd0] sm:$0xf] %v7539_v0  ;;  %v584_v30 = vrot.slane %v582_v21, 7  ;;  %v959_v31 = vshrl.u32 %v889_v23, 16  ;;  %v965_v32 = vshll.u32 %v890_v25, 16  ;;  %v279_v33 = vld [vmem:[%s7674_s16] sm:$0xff]  ;;  %v579_v35 = vor.u32 %v577_v19, %v576_v24 }
  0x40   : > { %3195 = vst [vmem:[#allocation3 + $0xd4] sm:$0x1] %v7539_v0  ;;  %v580_v36 = vrot.slane %v576_v24, 4  ;;  %v948_v37 = vrot.slane %v946_v26, 4  ;;  %v951_v38 = vrot.slane %v949_v27, 5  ;;  %v957_v44 = vrot.slane %v955_v28, 5 }
  0x41   : > { %345 = vst [vmem:[#allocation2 + $0x60] sm:$0x1] %v344_v14  ;;  %v322_v40 = vld [vmem:[#allocation2 + $0xc] sm:$0x1]  ;;  %v587_v41 = vor.u32 %v585_v22, %v584_v30  ;;  %v589_v42 = vrot.slane %v584_v30, 4  ;;  %v961_v45 = vrot.slane %v959_v31, 4  ;;  %2359 = vmatpush.bf16.msra.mxu0 %v7021_v17  ;;  %7183 = vmatpush.bf16.msra.mxu2 %v7021_v17  ;;  %v420_v52 = vpack.c.bf16 %v279_v33, %v279_v33 }
  0x42   : > { %395 = vst [vmem:[#allocation2 + $0x68] sm:$0x1] %v394_v16  ;;  %v295_v46 = vld [vmem:[%s7674_s16 + $0x80] sm:$0xff]  ;;  %v7020_v47 = vld [vmem:[#allocation7 + $0x18] sm:$0xff]  ;;  %v952_v49 = vor.u32 %v951_v38, %v948_v37  ;;  %v967_v50 = vrot.slane %v965_v32, 5  ;;  %v323_v51 = vsel %vm7686_vm3, 0, %v322_v40  ;;  %7191 = vmatpush.bf16.msra.mxu3 %v7029_v29  ;;  %2448 = vmatpush.bf16.msra.mxu1 %v7029_v29 }
  0x43   : > { %v7028_v48 = vld [vmem:[#allocation7 + $0x58] sm:$0xff]  ;;  %v296_v53 = vld [vmem:[%s7674_s16 + $0x88] sm:$0xff]  ;;  %v588_v54 = vsel %vm7705_vm9, %v580_v36, %v587_v41  ;;  %v962_v56 = vor.u32 %v961_v45, %v957_v44  ;;  %324 = vst [vmem:[#allocation2 + $0xc] sm:$0x1] %v323_v51  ;;  %v455_v62 = vshrl.u32 %v420_v52, 16  ;;  %v436_v63 = vpack.c.bf16 %v295_v46, %v295_v46  ;;  %v7019_v7 = vld [vmem:[#allocation7 + $0x10] sm:$0xff] }
  0x44   : > { %v346_v58 = vld [vmem:[#allocation2 + $0x6c] sm:$0x1]  ;;  %828 = vst [vmem:[#allocation2 + $0x64] sm:$0xf] %v588_v54  ;;  %v953_v61 = vrot.slane %v952_v49, 4  ;;  %v10360_v1 = vmov 0  ;;  %v437_v16 = vpack.c.bf16 %v296_v53, %v296_v53 }
  0x45   : > { %v10361_v1 = vsel %vm7728_vm11, 4294967295, %v10360_v1  ;;  %v963_v2 = vrot.slane %v962_v56, 4  ;;  %v458_v3 = vshll.u32 %v420_v52, 16  ;;  %v463_v4 = vshrl.u32 %v421_v57, 16  ;;  %2360 = vmatpush.bf16.msra.mxu0 %v7020_v47  ;;  %7184 = vmatpush.bf16.msra.mxu2 %v7020_v47  ;;  %v7027_v12 = vld [vmem:[#allocation7 + $0x50] sm:$0xff]  ;;  %v7018_v22 = vld [vmem:[#allocation7 + $0x8] sm:$0xff] }
  0x46   : > { %10362 = vst [vmem:[#allocation14_spill] sm:$0xff] %v10361_v1  ;;  %v958_v8 = vsel %vm7728_vm11, %v953_v61, %v957_v44  ;;  %v457_v9 = vrot.slane %v455_v62, 7  ;;  %v466_v10 = vshll.u32 %v421_v57, 16  ;;  %v347_v11 = vsel %vm7686_vm3, 0, %v346_v58  ;;  %7192 = vmatpush.bf16.msra.mxu3 %v7028_v48  ;;  %2449 = vmatpush.bf16.msra.mxu1 %v7028_v48  ;;  %v396_v17 = vld [vmem:[#allocation2 + $0x74] sm:$0x1] }
  0x47   : > { %v968_v13 = vsel %vm7728_vm11, %v963_v2, %v967_v50  ;;  %v7738_v14 = vunpack.c.l.b16 %v958_v8  ;;  %v7740_v15 = vrot.slane %v463_v4, 7  ;;  %348 = vst [vmem:[#allocation2 + $0x6c] sm:$0x1] %v347_v11  ;;  %v591_v21 = vshrl.u32 %v436_v63, 16  ;;  %v7026_v23 = vld [vmem:[#allocation7 + $0x48] sm:$0xff]  ;;  %v281_v33 = vld [vmem:[%s7674_s16 + $0x10] sm:$0xff] }
  0x48   : > { %v825_v55 = vld [vmem:[#allocation2 + $0x60] sm:$0xf]  ;;  %v7742_v18 = vunpack.c.l.b16 %v968_v13  ;;  %v460_v19 = vor.u32 %v458_v3, %v457_v9  ;;  %v461_v20 = vrot.slane %v457_v9, 4  ;;  %v594_v25 = vshll.u32 %v436_v63, 16  ;;  %v7749_v32 = vld [vmem:[#allocation2 + $0x14] sm:$0x1] }
  0x49   : > { %v826_v59 = vsel %vm7712_vm10, %v579_v35, %v825_v55  ;;  %v829_v60 = vld [vmem:[#allocation2 + $0x68] sm:$0x1]  ;;  %v468_v24 = vor.u32 %v466_v10, %v7740_v15  ;;  %v599_v26 = vshrl.u32 %v437_v16, 16  ;;  %2361 = vmatpush.bf16.msra.mxu0 %v7019_v7  ;;  %7185 = vmatpush.bf16.msra.mxu2 %v7019_v7  ;;  %v593_v29 = vrot.slane %v591_v21, 7  ;;  %v325_v40 = vld [vmem:[#allocation2 + $0x18] sm:$0x1] }
  0x4a   : > { %827 = vst [vmem:[#allocation2 + $0x60] sm:$0xf] %v826_v59  ;;  %v830_v0 = vsel %vm7686_vm3, %v589_v42, %v829_v60  ;;  %v1656_v27 = vpack.c.b16 %v7742_v18, %v7738_v14  ;;  %v776_v28 = vld [vmem:[#allocation2 + $0xc] sm:$0xf]  ;;  %v602_v30 = vshll.u32 %v437_v16, 16  ;;  %v397_v31 = vsel %vm7692_vm4, 0, %v396_v17  ;;  %7193 = vmatpush.bf16.msra.mxu3 %v7027_v12  ;;  %2450 = vmatpush.bf16.msra.mxu1 %v7027_v12 }
  0x4b   : > { %831 = vst [vmem:[#allocation2 + $0x68] sm:$0x1] %v830_v0  ;;  %v913_v35 = vld [vmem:[#allocation2 + $0x64] sm:$0xf]  ;;  %v469_v36 = vsel %vm7705_vm9, %v461_v20, %v468_v24  ;;  %v470_v37 = vrot.slane %v7740_v15, 4  ;;  %v777_v38 = vsel %vm7712_vm10, %v460_v19, %v776_v28  ;;  %v7757_v39 = vrot.slane %v599_v26, 7 }
  0x4c   : > { %398 = vst [vmem:[#allocation2 + $0x74] sm:$0x1] %v397_v31  ;;  %v7017_v41 = vld [vmem:[#allocation7] sm:$0xff]  ;;  %v1147_v44 = vshll.u32 %v913_v35, 16  ;;  %v1151_v45 = vshrl.u32 %v913_v35, 16  ;;  %v596_v46 = vor.u32 %v594_v25, %v593_v29  ;;  %v597_v47 = vrot.slane %v593_v29, 4 }
  0x4d   : > { %v282_v48 = vld [vmem:[%s7674_s16 + $0x18] sm:$0xff]  ;;  %v7025_v49 = vld [vmem:[#allocation7 + $0x40] sm:$0xff]  ;;  %778 = vst [vmem:[#allocation2 + $0xc] sm:$0xf] %v777_v38  ;;  %v604_v54 = vor.u32 %v602_v30, %v7757_v39  ;;  %v7761_v55 = vpack.c.bf16 %v281_v33, %v281_v33  ;;  %v297_v56 = vld [vmem:[%s7674_s16 + $0x90] sm:$0xff]  ;;  %2362 = vmatpush.bf16.msra.mxu0 %v7018_v22  ;;  %7186 = vmatpush.bf16.msra.mxu2 %v7018_v22  ;;  %v606_v61 = vrot.slane %v7757_v39, 4 }
  0x4e   : > { %v7040_v53 = vld [vmem:[#allocation7 + $0xb8] sm:$0xff]  ;;  %v7764_v57 = vld [vmem:[#allocation2 + $0x78] sm:$0x1]  ;;  %v1149_v58 = vrot.slane %v1147_v44, 5  ;;  %v1153_v59 = vrot.slane %v1151_v45, 4  ;;  %7194 = vmatpush.bf16.msra.mxu3 %v7026_v23  ;;  %2451 = vmatpush.bf16.msra.mxu1 %v7026_v23  ;;  %v6999_v62 = vld [vmem:[#allocation2] sm:$0xff]  ;;  %v7777_v20 = vpack.c.bf16 %v282_v48, %v282_v48  ;;  %v7785_v28 = vpack.c.bf16 %v297_v56, %v297_v56 }
  0x4f   : > { %779 = vst [vmem:[#allocation2 + $0x10] sm:$0xf] %v469_v36  ;;  %v605_v2 = vsel %vm7705_vm9, %v597_v47, %v604_v54  ;;  %v832_v3 = vld [vmem:[#allocation2 + $0x6c] sm:$0xf]  ;;  %v373_v4 = vsel %vm7692_vm4, 0, %v7749_v32  ;;  %v326_v13 = vsel %vm7686_vm3, 0, %v325_v40 }
  0x50   : > { %v298_v7 = vld [vmem:[%s7674_s16 + $0x98] sm:$0xff]  ;;  %v1154_v8 = vor.u32 %v1153_v59, %v1149_v58  ;;  %v833_v12 = vsel %vm7712_vm10, %v596_v46, %v832_v3  ;;  %835 = vst [vmem:[#allocation2 + $0x70] sm:$0xf] %v605_v2  ;;  %v7039_v19 = vld [vmem:[#allocation7 + $0xb0] sm:$0xff]  ;;  %v472_v21 = vshrl.u32 %v7761_v55, 16  ;;  %v475_v22 = vshll.u32 %v7761_v55, 16 }
  0x51   : > { %v912_v42 = vld [vmem:[#allocation2 + $0x60] sm:$0xf]  ;;  %v7048_v10 = vld [vmem:[#allocation7 + $0xf8] sm:$0xff]  ;;  %834 = vst [vmem:[#allocation2 + $0x6c] sm:$0xf] %v833_v12  ;;  %v283_v23 = vld [vmem:[%s7674_s16 + $0x20] sm:$0xff]  ;;  %2363 = vmatpush.bf16.msra.mxu0 %v7017_v41  ;;  %7187 = vmatpush.bf16.msra.mxu2 %v7017_v41  ;;  %v7787_v29 = vpack.c.bf16 %v298_v7, %v298_v7 }
  0x52   : > { %v914_v50 = vld [vmem:[#allocation2 + $0x68] sm:$0x1]  ;;  %v1138_v51 = vshrl.u32 %v912_v42, 16  ;;  %v1141_v52 = vshll.u32 %v912_v42, 16  ;;  %v7007_v16 = vld [vmem:[#allocation2 + $0x60] sm:$0xff]  ;;  %v1155_v24 = vrot.slane %v1154_v8, 4  ;;  %7195 = vmatpush.bf16.msra.mxu3 %v7025_v49  ;;  %2452 = vmatpush.bf16.msra.mxu1 %v7025_v49  ;;  %v7796_v41 = vpack.c.bf16 %v283_v23, %v283_v23 }
  0x53   : > { %v1157_v60 = vshll.u32 %v914_v50, 16  ;;  %v7056_v11 = vld [vmem:[#allocation7 + $0x138] sm:$0xff]  ;;  %v836_v25 = vld [vmem:[#allocation2 + $0x74] sm:$0x1]  ;;  %374 = vst [vmem:[#allocation2 + $0x14] sm:$0x1] %v373_v4 }
  0x54   : > { %v1140_v63 = vrot.slane %v1138_v51, 4  ;;  %v1143_v0 = vrot.slane %v1141_v52, 5  ;;  %v350_v26 = vsel %vm7686_vm3, 0, %v7764_v57  ;;  %v837_v31 = vsel %vm7686_vm3, %v606_v61, %v836_v25  ;;  %v7047_v32 = vld [vmem:[#allocation7 + $0xf0] sm:$0xff]  ;;  %327 = vst [vmem:[#allocation2 + $0x18] sm:$0x1] %v326_v13  ;;  %2364 = vmatmul.bf16.vlgmr.msra.gmra.mxu0 %v6999_v62  ;;  %2404 = vmatmul.bf16.vlgmr.msra.gmra.mxu2 %v7007_v16 }
  0x55   : > { %v1159_v9 = vrot.slane %v1157_v60, 5  ;;  %2534 = vmatpush.bf16.msrb.mxu2 %v7040_v53  ;;  %v474_v33 = vrot.slane %v472_v21, 7  ;;  %v480_v35 = vshrl.u32 %v7777_v20, 16  ;;  %838 = vst [vmem:[#allocation2 + $0x74] sm:$0x1] %v837_v31  ;;  %v483_v39 = vshll.u32 %v7777_v20, 16  ;;  %2712 = vmatpush.bf16.msrb.mxu0 %v7056_v11 }
  0x56   : > { %v1144_v17 = vor.u32 %v1143_v0, %v1140_v63  ;;  %2623 = vmatpush.bf16.msrb.mxu3 %v7048_v10  ;;  %v891_v38 = vld [vmem:[#allocation2 + $0xc] sm:$0xf]  ;;  %v608_v40 = vshrl.u32 %v7785_v28, 16  ;;  %v892_v45 = vld [vmem:[#allocation2 + $0x10] sm:$0xf]  ;;  %v7055_v51 = vld [vmem:[#allocation7 + $0x130] sm:$0xff]  ;;  %2453 = vmatmul.bf16.vlgmr.msra.gmra.mxu1 %v1656_v27 }
  0x57   : > { %v1160_v36 = vsel %vm7728_vm11, %v1155_v24, %v1159_v9  ;;  %v970_v46 = vshrl.u32 %v891_v38, 16  ;;  %v973_v47 = vshll.u32 %v891_v38, 16  ;;  %v979_v49 = vshll.u32 %v892_v45, 16  ;;  %351 = vst [vmem:[#allocation2 + $0x78] sm:$0x1] %v350_v26  ;;  %v7046_v21 = vld [vmem:[#allocation7 + $0xe8] sm:$0xff] }
  0x58   : > { %v1145_v30 = vrot.slane %v1144_v17, 4  ;;  %v1641_v44 = vunpack.c.l.b16 %v1160_v36  ;;  %v983_v50 = vshrl.u32 %v892_v45, 16  ;;  %v477_v52 = vor.u32 %v475_v22, %v474_v33  ;;  %v916_v53 = vld [vmem:[#allocation2 + $0x70] sm:$0xf]  ;;  %v915_v59 = vld [vmem:[#allocation2 + $0x6c] sm:$0xf] }
  0x59   : > { %2535 = vmatpush.bf16.msrb.mxu2 %v7039_v19  ;;  %v972_v54 = vrot.slane %v970_v46, 4  ;;  %v975_v55 = vrot.slane %v973_v47, 5  ;;  %v478_v56 = vrot.slane %v474_v33, 4  ;;  %v7803_v57 = vrot.slane %v480_v35, 7  ;;  %2713 = vmatpush.bf16.msrb.mxu0 %v7055_v51  ;;  %v399_v16 = vld [vmem:[#allocation2 + $0x80] sm:$0x1] }
  0x5a   : > { %v1150_v42 = vsel %vm7728_vm11, %v1145_v30, %v1149_v58  ;;  %v1171_v60 = vshll.u32 %v916_v53, 16  ;;  %v1175_v61 = vshrl.u32 %v916_v53, 16  ;;  %2624 = vmatpush.bf16.msrb.mxu3 %v7047_v32  ;;  %v981_v62 = vrot.slane %v979_v49, 5  ;;  %v780_v2 = vld [vmem:[#allocation2 + $0x14] sm:$0x1]  ;;  %v7054_v30 = vld [vmem:[#allocation7 + $0x128] sm:$0xff] }
  0x5b   : > { %v1640_v48 = vunpack.c.l.b16 %v1150_v42  ;;  %v1162_v63 = vshrl.u32 %v915_v59, 16  ;;  %v1165_v0 = vshll.u32 %v915_v59, 16  ;;  %v976_v3 = vor.u32 %v975_v55, %v972_v54  ;;  %v783_v8 = vld [vmem:[#allocation2 + $0x18] sm:$0xf]  ;;  %v375_v22 = vld [vmem:[#allocation2 + $0x20] sm:$0x1] }
  0x5c   : > { %v985_v14 = vrot.slane %v983_v50, 4  ;;  %v1173_v18 = vrot.slane %v1171_v60, 5  ;;  %v1177_v27 = vrot.slane %v1175_v61, 4  ;;  %v781_v4 = vsel %vm7686_vm3, %v470_v37, %v780_v2  ;;  %v917_v9 = vld [vmem:[#allocation2 + $0x74] sm:$0x1]  ;;  %v7038_v37 = vld [vmem:[#allocation7 + $0xa8] sm:$0xff] }
  0x5d   : > { %v7805_v58 = vpack.c.b16 %v1641_v44, %v1640_v48  ;;  %v485_v7 = vor.u32 %v483_v39, %v7803_v57  ;;  %v1164_v10 = vrot.slane %v1162_v63, 4  ;;  %v1167_v11 = vrot.slane %v1165_v0, 5  ;;  %782 = vst [vmem:[#allocation2 + $0x14] sm:$0x1] %v781_v4  ;;  %2536 = vmatpush.bf16.msrb.mxu2 %v7038_v37  ;;  %v328_v36 = vld [vmem:[#allocation2 + $0x24] sm:$0x1]  ;;  %2714 = vmatpush.bf16.msrb.mxu0 %v7054_v30 }
  0x5e   : > { %v986_v12 = vor.u32 %v985_v14, %v981_v62  ;;  %v784_v13 = vsel %vm7712_vm10, %v477_v52, %v783_v8  ;;  %v1178_v17 = vor.u32 %v1177_v27, %v1173_v18  ;;  %v1181_v19 = vshll.u32 %v917_v9, 16  ;;  %2625 = vmatpush.bf16.msrb.mxu3 %v7046_v21  ;;  %v839_v45 = vld [vmem:[#allocation2 + $0x78] sm:$0xf]  ;;  %v299_v49 = vld [vmem:[%s7674_s16 + $0xa0] sm:$0xff]  ;;  %v352_v21 = vld [vmem:[#allocation2 + $0x84] sm:$0x1] }
  0x5f   : > { %10363 = vst [vmem:[#allocation15_spill] sm:$0xff] %v7805_v58  ;;  %2493 = vmatmul.bf16.vlgmr.msra.gmra.mxu3 %v7805_v58  ;;  %v977_v20 = vrot.slane %v976_v3, 4  ;;  %v486_v15 = vsel %vm7705_vm9, %v478_v56, %v485_v7  ;;  %v1168_v23 = vor.u32 %v1167_v11, %v1164_v10  ;;  %v487_v25 = vrot.slane %v7803_v57, 4  ;;  %v7000_v50 = vld [vmem:[#allocation2 + $0xc] sm:$0xff]  ;;  %s10130_s27 = scalar_lea.vmem [#allocation10], %s6233_s13  ;;  %s7179_s28 = sshll.u32 %s7593_s22, 8 }
  0x60   : > { %785 = vst [vmem:[#allocation2 + $0x18] sm:$0xf] %v784_v13  ;;  %v7817_v24 = vrot.slane %v986_v12, 4  ;;  %v610_v26 = vrot.slane %v608_v40, 7  ;;  %v1179_v31 = vrot.slane %v1178_v17, 4  ;;  %v1183_v32 = vrot.slane %v1181_v19, 5  ;;  %s6128_s26 = scalar_lea.hbm %s10278_s5, %s7179_s28 }
  0x61   : > { %786 = vst [vmem:[#allocation2 + $0x1c] sm:$0xf] %v486_v15  ;;  %v982_v33 = vsel %vm7728_vm11, %v977_v20, %v981_v62  ;;  %v611_v35 = vshll.u32 %v7785_v28, 16  ;;  %v1169_v38 = vrot.slane %v1168_v23, 4  ;;  %v616_v44 = vshrl.u32 %v7787_v29, 16  ;;  %v284_v40 = vld [vmem:[%s7674_s16 + $0x28] sm:$0xff] }
  0x62   : > { %v7823_v39 = vunpack.c.l.b16 %v982_v33  ;;  %v614_v42 = vrot.slane %v610_v26, 4  ;;  %v1184_v46 = vsel %vm7728_vm11, %v1179_v31, %v1183_v32  ;;  %v619_v48 = vshll.u32 %v7787_v29, 16  ;;  %v7008_v51 = vld [vmem:[#allocation2 + $0x6c] sm:$0xff]  ;;  %v300_v32 = vld [vmem:[%s7674_s16 + $0xa8] sm:$0xff]  ;;  %s6129_s7 = sshll.u32 %s10130_s27, 4  ;;  %s6131_s13 = sshll.u32 %s6128_s26, 4  ;;  %s6130_s7 = int_to_ptr.vmem [resolvable:$true] %s6129_s7  ;;  %s6132_s13 = int_to_ptr.hbm [resolvable:$true] %s6131_s13 }
  0x63   : > { %v613_v47 = vor.u32 %v611_v35, %v610_v26  ;;  %v400_v28 = vsel %vm7692_vm4, 0, %v399_v16  ;;  %v1174_v52 = vsel %vm7728_vm11, %v1169_v38, %v1173_v18  ;;  %v1643_v53 = vunpack.c.l.b16 %v1184_v46  ;;  %s6117_s22 = scalar_lea.sflag [#allocation6], %s7668_s8  ;;  %s7475_s15 = sshra.s32 %s6132_s13, 4  ;;  %s7476_s15 = int_to_ptr.hbm [resolvable:$true] %s7475_s15 }
  0x64   : > { %v618_v54 = vrot.slane %v616_v44, 7  ;;  %401 = vst [vmem:[#allocation2 + $0x80] sm:$0x1] %v400_v28  ;;  %v376_v55 = vsel %vm7692_vm4, 0, %v375_v22  ;;  %v1642_v56 = vunpack.c.l.b16 %v1174_v52  ;;  %v893_v59 = vld [vmem:[#allocation2 + $0x14] sm:$0x1]  ;;  %v425_v61 = vpack.c.bf16 %v284_v40, %v284_v40  ;;  %2369 = vmatmul.bf16.gmra.mxu0 %v7000_v50  ;;  %2409 = vmatmul.bf16.gmra.mxu2 %v7008_v51  ;;  %p7482_p11 = scmp.lt.s32.totalorder %s7476_s15, %s10278_s5 }
  0x65   : > { %v840_v29 = vsel %vm7712_vm10, %v613_v47, %v839_v45  ;;  %377 = vst [vmem:[#allocation2 + $0x20] sm:$0x1] %v376_v55  ;;  %v329_v60 = vsel %vm7686_vm3, 0, %v328_v36  ;;  %v989_v62 = vshll.u32 %v893_v59, 16  ;;  %v7841_v3 = vpack.c.bf16 %v299_v49, %v299_v49  ;;  %v402_v28 = vld [vmem:[#allocation2 + $0x8c] sm:$0x1] }
  0x66   : > { %v621_v63 = vor.u32 %v619_v48, %v618_v54  ;;  %v623_v0 = vrot.slane %v618_v54, 4  ;;  %841 = vst [vmem:[#allocation2 + $0x78] sm:$0xf] %v840_v29  ;;  %v7843_v14 = vpack.c.b16 %v1643_v53, %v1642_v56  ;;  %v489_v7 = vshrl.u32 %v7796_v41, 16  ;;  %v7045_v56 = vld [vmem:[#allocation7 + $0xe0] sm:$0xff]  ;;  %v285_v29 = vld [vmem:[%s7674_s16 + $0x30] sm:$0xff] }
  0x67   : > { %v894_v2 = vld [vmem:[#allocation2 + $0x18] sm:$0xf]  ;;  %v991_v8 = vrot.slane %v989_v62, 5  ;;  %330 = vst [vmem:[#allocation2 + $0x24] sm:$0x1] %v329_v60  ;;  %v492_v17 = vshll.u32 %v7796_v41, 16  ;;  %2626 = vmatpush.bf16.msrb.mxu3 %v7045_v56 }
  0x68   : > { %10364 = vst [vmem:[#allocation16_spill] sm:$0xff] %v7843_v14  ;;  %v895_v18 = vld [vmem:[#allocation2 + $0x1c] sm:$0xf]  ;;  %v994_v27 = vshrl.u32 %v894_v2, 16  ;;  %v997_v4 = vshll.u32 %v894_v2, 16  ;;  %v622_v9 = vsel %vm7705_vm9, %v614_v42, %v621_v63  ;;  %v491_v16 = vrot.slane %v489_v7, 7 }
  0x69   : > { %v1003_v10 = vshll.u32 %v895_v18, 16  ;;  %v1007_v11 = vshrl.u32 %v895_v18, 16  ;;  %842 = vst [vmem:[#allocation2 + $0x7c] sm:$0xf] %v622_v9  ;;  %v992_v19 = vsel %vm7728_vm11, %v7817_v24, %v991_v8  ;;  %v497_v37 = vshrl.u32 %v425_v61, 16  ;;  %v7053_v2 = vld [vmem:[#allocation7 + $0x120] sm:$0xff] }
  0x6a   : > { %v996_v12 = vrot.slane %v994_v27, 4  ;;  %v999_v13 = vrot.slane %v997_v4, 5  ;;  %v1627_v22 = vunpack.c.l.b16 %v992_v19  ;;  %v494_v30 = vor.u32 %v492_v17, %v491_v16  ;;  %v378_v59 = vld [vmem:[#allocation2 + $0x2c] sm:$0x1]  ;;  %v331_v60 = vld [vmem:[#allocation2 + $0x30] sm:$0x1]  ;;  %2715 = vmatpush.bf16.msrb.mxu0 %v7053_v2 }
  0x6b   : > { %v7852_v20 = vrot.slane %v1003_v10, 5  ;;  %v1009_v15 = vrot.slane %v1007_v11, 4  ;;  %v843_v23 = vld [vmem:[#allocation2 + $0x80] sm:$0x1]  ;;  %v495_v31 = vrot.slane %v491_v16, 4  ;;  %v7858_v36 = vrot.slane %v497_v37, 7 }
  0x6c   : > { %v1000_v26 = vor.u32 %v999_v13, %v996_v12  ;;  %v844_v33 = vsel %vm7686_vm3, %v623_v0, %v843_v23  ;;  %v787_v35 = vld [vmem:[#allocation2 + $0x20] sm:$0x1]  ;;  %v500_v24 = vshll.u32 %v425_v61, 16  ;;  %v7862_v38 = vpack.c.b16 %v1627_v22, %v7823_v39  ;;  %v7037_v39 = vld [vmem:[#allocation7 + $0xa0] sm:$0xff]  ;;  %v7001_v8 = vld [vmem:[#allocation2 + $0x18] sm:$0xff]  ;;  %s7477_s24 = scalar_lea.hbm %s7476_s15, 256 }
  0x6d   : > { %v1010_v41 = vor.u32 %v1009_v15, %v7852_v20  ;;  %845 = vst [vmem:[#allocation2 + $0x80] sm:$0x1] %v844_v33  ;;  %v918_v42 = vld [vmem:[#allocation2 + $0x78] sm:$0xf]  ;;  %v788_v44 = vsel %vm7686_vm3, %v487_v25, %v787_v35  ;;  %v353_v40 = vsel %vm7686_vm3, 0, %v352_v21  ;;  %v441_v25 = vpack.c.bf16 %v300_v32, %v300_v32  ;;  %2537 = vmatpush.bf16.msrb.mxu2 %v7037_v39  ;;  %v286_v23 = vld [vmem:[%s7674_s16 + $0x38] sm:$0xff]  ;;  %p7478_p1 = scmp.ne.s32.totalorder %s7476_s15, %s7477_s24 }
  0x6e   : > { %v7868_v45 = vrot.slane %v1000_v26, 4  ;;  %v1186_v46 = vshrl.u32 %v918_v42, 16  ;;  %v1189_v47 = vshll.u32 %v918_v42, 16  ;;  %789 = vst [vmem:[#allocation2 + $0x20] sm:$0x1] %v788_v44  ;;  %v502_v48 = vor.u32 %v500_v24, %v7858_v36  ;;  %2458 = vmatmul.bf16.gmra.mxu1 %v7862_v38  ;;  %s7481_s10 = scalar_lea.hbm %s10278_s5, 512 }
  0x6f   : > { %2498 = vmatmul.bf16.gmra.mxu3 %v7843_v14  ;;  %v7874_v49 = vrot.slane %v1010_v41, 4  ;;  %v790_v57 = vld [vmem:[#allocation2 + $0x24] sm:$0xf]  ;;  %354 = vst [vmem:[#allocation2 + $0x84] sm:$0x1] %v353_v40  ;;  %v625_v50 = vshrl.u32 %v7841_v3, 16  ;;  %v7889_v15 = vpack.c.bf16 %v285_v29, %v285_v29  ;;  %p7479_p4 = pnand %p7478_p1, %p7638_p3  ;;  %p7483_p2 = scmp.lt.s32.totalorder %s7481_s10, %s7477_s24 }
  0x70   : > { %v919_v51 = vld [vmem:[#allocation2 + $0x7c] sm:$0xf]  ;;  %v1188_v52 = vrot.slane %v1186_v46, 4  ;;  %v1191_v53 = vrot.slane %v1189_v47, 5  ;;  %v1006_v54 = vsel %vm7728_vm11, %v7868_v45, %v7852_v20  ;;  %v503_v55 = vsel %vm7705_vm9, %v495_v31, %v502_v48 }
  0x71   : > { %v1195_v61 = vshll.u32 %v919_v51, 16  ;;  %v1199_v62 = vshrl.u32 %v919_v51, 16  ;;  %v791_v63 = vsel %vm7712_vm10, %v494_v30, %v790_v57  ;;  %793 = vst [vmem:[#allocation2 + $0x28] sm:$0xf] %v503_v55  ;;  %v627_v0 = vrot.slane %v625_v50, 7  ;;  %v7009_v9 = vld [vmem:[#allocation2 + $0x78] sm:$0xff]  ;;  %p7480_p8 = pneg %p7479_p4  ;;  %p7484_p9 = por %p7483_p2, %p7482_p11 }
  0x72   : > { %v1192_v18 = vor.u32 %v1191_v53, %v1188_v52  ;;  %792 = vst [vmem:[#allocation2 + $0x24] sm:$0xf] %v791_v63  ;;  %v628_v27 = vshll.u32 %v7841_v3, 16  ;;  %v633_v4 = vshrl.u32 %v441_v25, 16  ;;  %v636_v7 = vshll.u32 %v441_v25, 16  ;;  %v301_v55 = vld [vmem:[%s7674_s16 + $0xb0] sm:$0xff] }
  0x73   : > { %v1197_v10 = vrot.slane %v1195_v61, 5  ;;  %v1201_v11 = vrot.slane %v1199_v62, 4  ;;  %v631_v12 = vrot.slane %v627_v0, 4  ;;  %v403_v13 = vsel %vm7692_vm4, 0, %v402_v28  ;;  %p7485_p10 = pnand %p7484_p9, %p7480_p8 }
  0x74   : > { %v920_v16 = vld [vmem:[#allocation2 + $0x80] sm:$0x1]  ;;  %v1193_v17 = vrot.slane %v1192_v18, 4  ;;  %v630_v19 = vor.u32 %v628_v27, %v627_v0  ;;  %v635_v20 = vrot.slane %v633_v4, 7  ;;  %404 = vst [vmem:[#allocation2 + $0x8c] sm:$0x1] %v403_v13  ;;  %2374 = vmatmul.bf16.gmra.mxu0 %v7001_v8  ;;  %2414 = vmatmul.bf16.gmra.mxu2 %v7009_v9  ;;  %v1628_v28 = vunpack.c.l.b16 %v1006_v54 }
  0x75   : > { %v1202_v3 = vor.u32 %v1201_v11, %v1197_v10  ;;  %v1205_v37 = vshll.u32 %v920_v16, 16  ;;  %v896_v21 = vld [vmem:[#allocation2 + $0x20] sm:$0x1]  ;;  %v379_v22 = vsel %vm7692_vm4, 0, %v378_v59  ;;  %v332_v26 = vsel %vm7686_vm3, 0, %v331_v60  ;;  %v302_v54 = vld [vmem:[%s7674_s16 + $0xb8] sm:$0xff] }
  0x76   : > { %v1198_v30 = vsel %vm7728_vm11, %v1193_v17, %v1197_v10  ;;  %v1013_v31 = vshll.u32 %v896_v21, 16  ;;  %v504_v32 = vrot.slane %v7858_v36, 4  ;;  %v638_v33 = vor.u32 %v636_v7, %v635_v20  ;;  %v846_v35 = vld [vmem:[#allocation2 + $0x84] sm:$0xf]  ;;  %380 = vst [vmem:[#allocation2 + $0x2c] sm:$0x1] %v379_v22 }
  0x77   : > { %v1203_v41 = vrot.slane %v1202_v3, 4  ;;  %v1207_v24 = vrot.slane %v1205_v37, 5  ;;  %v640_v42 = vrot.slane %v635_v20, 4  ;;  %v847_v44 = vsel %vm7712_vm10, %v630_v19, %v846_v35  ;;  %333 = vst [vmem:[#allocation2 + $0x30] sm:$0x1] %v332_v26  ;;  %v287_v27 = vld [vmem:[%s7674_s16 + $0x40] sm:$0xff] }
  0x78   : > { %v1644_v45 = vunpack.c.l.b16 %v1198_v30  ;;  %v1015_v40 = vrot.slane %v1013_v31, 5  ;;  %v639_v46 = vsel %vm7705_vm9, %v631_v12, %v638_v33  ;;  %848 = vst [vmem:[#allocation2 + $0x84] sm:$0xf] %v847_v44  ;;  %v898_v36 = vld [vmem:[#allocation2 + $0x28] sm:$0xf]  ;;  %v506_v47 = vshrl.u32 %v7889_v15, 16 }
  0x79   : > { %v1208_v48 = vsel %vm7728_vm11, %v1203_v41, %v1207_v24  ;;  %849 = vst [vmem:[#allocation2 + $0x88] sm:$0xf] %v639_v46  ;;  %v897_v39 = vld [vmem:[#allocation2 + $0x24] sm:$0xf]  ;;  %v1027_v57 = vshll.u32 %v898_v36, 16  ;;  %v427_v25 = vpack.c.bf16 %v286_v23, %v286_v23  ;;  %v1031_v60 = vshrl.u32 %v898_v36, 16 }
  0x7a   : > { %v1645_v50 = vunpack.c.l.b16 %v1208_v48  ;;  %v1016_v51 = vsel %vm7728_vm11, %v7874_v49, %v1015_v40  ;;  %v1018_v52 = vshrl.u32 %v897_v39, 16  ;;  %v1021_v53 = vshll.u32 %v897_v39, 16  ;;  %v355_v18 = vld [vmem:[#allocation2 + $0x90] sm:$0x1]  ;;  %v7002_v44 = vld [vmem:[#allocation2 + $0x24] sm:$0xff] }
  0x7b   : > { %v1629_v56 = vunpack.c.l.b16 %v1016_v51  ;;  %v850_v59 = vld [vmem:[#allocation2 + $0x8c] sm:$0x1]  ;;  %v7910_v29 = vrot.slane %v1027_v57, 5  ;;  %v508_v61 = vrot.slane %v506_v47, 7  ;;  %v1033_v7 = vrot.slane %v1031_v60, 4  ;;  %v288_v47 = vld [vmem:[%s7674_s16 + $0x48] sm:$0xff] }
  0x7c   : > { %v7913_v62 = vpack.c.b16 %v1645_v50, %v1644_v45  ;;  %v851_v63 = vsel %vm7686_vm3, %v640_v42, %v850_v59  ;;  %v1020_v0 = vrot.slane %v1018_v52, 4  ;;  %v1023_v2 = vrot.slane %v1021_v53, 5  ;;  %v303_v59 = vld [vmem:[%s7674_s16 + $0xc0] sm:$0xff] }
  0x7d   : > { %v7918_v49 = vpack.c.b16 %v1629_v56, %v1628_v28  ;;  %852 = vst [vmem:[#allocation2 + $0x8c] sm:$0x1] %v851_v63  ;;  %v794_v4 = vld [vmem:[#allocation2 + $0x2c] sm:$0x1]  ;;  %v509_v8 = vshll.u32 %v7889_v15, 16  ;;  %v7921_v9 = vpack.c.bf16 %v301_v55, %v301_v55  ;;  %v514_v12 = vshrl.u32 %v427_v25, 16 }
  0x7e   : > { %10365 = vst [vmem:[#allocation17_spill] sm:$0xff] %v7913_v62  ;;  %v795_v10 = vsel %vm7686_vm3, %v504_v32, %v794_v4  ;;  %v1024_v11 = vor.u32 %v1023_v2, %v1020_v0  ;;  %v797_v13 = vld [vmem:[#allocation2 + $0x30] sm:$0xf]  ;;  %v7926_v16 = vpack.c.bf16 %v302_v54, %v302_v54  ;;  %v1034_v19 = vor.u32 %v1033_v7, %v7910_v29  ;;  %v405_v56 = vld [vmem:[#allocation2 + $0x98] sm:$0x1]  ;;  %v7036_v4 = vld [vmem:[#allocation7 + $0x98] sm:$0xff] }
  0x7f   : > { %2503 = vmatmul.bf16.gmra.mxu3 %v7913_v62  ;;  %2463 = vmatmul.bf16.gmra.mxu1 %v7918_v49  ;;  %v921_v17 = vld [vmem:[#allocation2 + $0x84] sm:$0xf]  ;;  %796 = vst [vmem:[#allocation2 + $0x2c] sm:$0x1] %v795_v10  ;;  %v511_v20 = vor.u32 %v509_v8, %v508_v61  ;;  %v517_v15 = vshll.u32 %v427_v25, 16  ;;  %v356_v3 = vsel %vm7686_vm3, 0, %v355_v18  ;;  %v7932_v26 = vpack.c.bf16 %v287_v27, %v287_v27 }
  0x80   : > { %v922_v37 = vld [vmem:[#allocation2 + $0x88] sm:$0xf]  ;;  %v1210_v21 = vshrl.u32 %v921_v17, 16  ;;  %v1213_v22 = vshll.u32 %v921_v17, 16  ;;  %v1025_v23 = vrot.slane %v1024_v11, 4  ;;  %v512_v32 = vrot.slane %v508_v61, 4  ;;  %2538 = vmatpush.bf16.msrb.mxu2 %v7036_v4 }
  0x81   : > { %v1219_v30 = vshll.u32 %v922_v37, 16  ;;  %v1223_v31 = vshrl.u32 %v922_v37, 16  ;;  %v7934_v33 = vrot.slane %v514_v12, 7  ;;  %357 = vst [vmem:[#allocation2 + $0x90] sm:$0x1] %v356_v3  ;;  %v7936_v24 = vrot.slane %v1034_v19, 4 }
  0x82   : > { %v1212_v35 = vrot.slane %v1210_v21, 4  ;;  %v1215_v41 = vrot.slane %v1213_v22, 5  ;;  %v798_v42 = vsel %vm7712_vm10, %v511_v20, %v797_v13  ;;  %v1030_v46 = vsel %vm7728_vm11, %v1025_v23, %v7910_v29  ;;  %v7010_v48 = vld [vmem:[#allocation2 + $0x84] sm:$0xff]  ;;  %v381_v13 = vld [vmem:[#allocation2 + $0x38] sm:$0x1] }
  0x83   : > { %v1221_v45 = vrot.slane %v1219_v30, 5  ;;  %v1225_v40 = vrot.slane %v1223_v31, 4  ;;  %v519_v36 = vor.u32 %v517_v15, %v7934_v33  ;;  %799 = vst [vmem:[#allocation2 + $0x30] sm:$0xf] %v798_v42  ;;  %v521_v57 = vrot.slane %v7934_v33, 4  ;;  %v7044_v7 = vld [vmem:[#allocation7 + $0xd8] sm:$0xff] }
  0x84   : > { %v923_v28 = vld [vmem:[#allocation2 + $0x8c] sm:$0x1]  ;;  %v1216_v39 = vor.u32 %v1215_v41, %v1212_v35  ;;  %v642_v25 = vshrl.u32 %v7921_v9, 16  ;;  %v645_v50 = vshll.u32 %v7921_v9, 16  ;;  %v650_v55 = vshrl.u32 %v7926_v16, 16  ;;  %2379 = vmatmul.bf16.gmra.mxu0 %v7002_v44  ;;  %2419 = vmatmul.bf16.gmra.mxu2 %v7010_v48  ;;  %v304_v31 = vld [vmem:[%s7674_s16 + $0xc8] sm:$0xff] }
  0x85   : > { %v1226_v51 = vor.u32 %v1225_v40, %v1221_v45  ;;  %v1229_v52 = vshll.u32 %v923_v28, 16  ;;  %v520_v53 = vsel %vm7705_vm9, %v512_v32, %v519_v36  ;;  %v1630_v61 = vunpack.c.l.b16 %v1030_v46  ;;  %2627 = vmatpush.bf16.msrb.mxu3 %v7044_v7  ;;  %v7052_v15 = vld [vmem:[#allocation7 + $0x118] sm:$0xff]  ;;  %v334_v3 = vld [vmem:[#allocation2 + $0x3c] sm:$0x1]  ;;  %v289_v44 = vld [vmem:[%s7674_s16 + $0x50] sm:$0xff] }
  0x86   : > { %v1217_v29 = vrot.slane %v1216_v39, 4  ;;  %v899_v60 = vld [vmem:[#allocation2 + $0x2c] sm:$0x1]  ;;  %800 = vst [vmem:[#allocation2 + $0x34] sm:$0xf] %v520_v53  ;;  %v644_v54 = vrot.slane %v642_v25, 7  ;;  %v7952_v63 = vpack.c.bf16 %v288_v47, %v288_v47  ;;  %v7961_v37 = vpack.c.bf16 %v303_v59, %v303_v59  ;;  %2716 = vmatpush.bf16.msrb.mxu0 %v7052_v15 }
  0x87   : > { %v1227_v0 = vrot.slane %v1226_v51, 4  ;;  %v1231_v2 = vrot.slane %v1229_v52, 5  ;;  %v1037_v18 = vshll.u32 %v899_v60, 16  ;;  %v7954_v27 = vrot.slane %v650_v55, 7  ;;  %v305_v47 = vld [vmem:[%s7674_s16 + $0xd0] sm:$0xff] }
  0x88   : > { %v1222_v8 = vsel %vm7728_vm11, %v1217_v29, %v1221_v45  ;;  %v647_v9 = vor.u32 %v645_v50, %v644_v54  ;;  %v648_v10 = vrot.slane %v644_v54, 4  ;;  %v653_v11 = vshll.u32 %v7926_v16, 16  ;;  %v853_v12 = vld [vmem:[#allocation2 + $0x90] sm:$0xf] }
  0x89   : > { %v1232_v17 = vsel %vm7728_vm11, %v1227_v0, %v1231_v2  ;;  %v1646_v19 = vunpack.c.l.b16 %v1222_v8  ;;  %v1039_v20 = vrot.slane %v1037_v18, 5  ;;  %v406_v23 = vsel %vm7692_vm4, 0, %v405_v56  ;;  %v290_v56 = vld [vmem:[%s7674_s16 + $0x58] sm:$0xff] }
  0x8a   : > { %v1647_v21 = vunpack.c.l.b16 %v1232_v17  ;;  %v655_v22 = vor.u32 %v653_v11, %v7954_v27  ;;  %v854_v16 = vsel %vm7712_vm10, %v647_v9, %v853_v12  ;;  %v900_v30 = vld [vmem:[#allocation2 + $0x30] sm:$0xf]  ;;  %v382_v35 = vsel %vm7692_vm4, 0, %v381_v13  ;;  %407 = vst [vmem:[#allocation2 + $0x98] sm:$0x1] %v406_v23 }
  0x8b   : > { %v1040_v32 = vsel %vm7728_vm11, %v7936_v24, %v1039_v20  ;;  %855 = vst [vmem:[#allocation2 + $0x90] sm:$0xf] %v854_v16  ;;  %v1042_v41 = vshrl.u32 %v900_v30, 16  ;;  %v1045_v42 = vshll.u32 %v900_v30, 16  ;;  %v335_v36 = vsel %vm7686_vm3, 0, %v334_v3 }
  0x8c   : > { %v7975_v45 = vpack.c.b16 %v1647_v21, %v1646_v19  ;;  %v1631_v40 = vunpack.c.l.b16 %v1040_v32  ;;  %v656_v46 = vsel %vm7705_vm9, %v648_v10, %v655_v22  ;;  %v358_v24 = vld [vmem:[#allocation2 + $0x9c] sm:$0x1]  ;;  %v657_v48 = vrot.slane %v7954_v27, 4  ;;  %383 = vst [vmem:[#allocation2 + $0x38] sm:$0x1] %v382_v35 }
  0x8d   : > { %856 = vst [vmem:[#allocation2 + $0x94] sm:$0xf] %v656_v46  ;;  %v7983_v28 = vld [vmem:[#allocation2 + $0x34] sm:$0xf]  ;;  %v1044_v39 = vrot.slane %v1042_v41, 4  ;;  %v7985_v25 = vpack.c.bf16 %v304_v31, %v304_v31  ;;  %v7987_v50 = vpack.c.bf16 %v289_v44, %v289_v44  ;;  %v1047_v52 = vrot.slane %v1045_v42, 5 }
  0x8e   : > { %10366 = vst [vmem:[#allocation18_spill] sm:$0xff] %v7975_v45  ;;  %v7990_v51 = vpack.c.b16 %v1631_v40, %v1630_v61  ;;  %v1051_v53 = vshll.u32 %v7983_v28, 16  ;;  %v1055_v55 = vshrl.u32 %v7983_v28, 16  ;;  %v523_v59 = vshrl.u32 %v7932_v26, 16  ;;  %v8016_v15 = vld [vmem:[#allocation2 + $0x30] sm:$0xff] }
  0x8f   : > { %2508 = vmatmul.bf16.gmra.mxu3 %v7975_v45  ;;  %336 = vst [vmem:[#allocation2 + $0x3c] sm:$0x1] %v335_v36  ;;  %v526_v29 = vshll.u32 %v7932_v26, 16  ;;  %v531_v60 = vshrl.u32 %v7952_v63, 16  ;;  %v534_v54 = vshll.u32 %v7952_v63, 16  ;;  %v1048_v61 = vor.u32 %v1047_v52, %v1044_v39 }
  0x90   : > { %10367 = vst [vmem:[#allocation19_spill] sm:$0xff] %v7990_v51  ;;  %2468 = vmatmul.bf16.gmra.mxu1 %v7990_v51  ;;  %v8000_v0 = vrot.slane %v1051_v53, 5  ;;  %v1057_v2 = vrot.slane %v1055_v55, 4  ;;  %v359_v18 = vsel %vm7686_vm3, 0, %v358_v24  ;;  %v525_v27 = vrot.slane %v523_v59, 7  ;;  %v7035_v55 = vld [vmem:[#allocation7 + $0x90] sm:$0xff] }
  0x91   : > { %v8004_v4 = vrot.slane %v531_v60, 7  ;;  %360 = vst [vmem:[#allocation2 + $0x9c] sm:$0x1] %v359_v18  ;;  %v8006_v7 = vpack.c.bf16 %v290_v56, %v290_v56  ;;  %v8008_v26 = vpack.c.bf16 %v305_v47, %v305_v47  ;;  %v8010_v9 = vrot.slane %v1048_v61, 4  ;;  %v857_v12 = vld [vmem:[#allocation2 + $0x98] sm:$0x1]  ;;  %2539 = vmatpush.bf16.msrb.mxu2 %v7035_v55 }
  0x92   : > { %v924_v8 = vld [vmem:[#allocation2 + $0x90] sm:$0xf]  ;;  %v1058_v63 = vor.u32 %v1057_v2, %v8000_v0  ;;  %v659_v10 = vshrl.u32 %v7961_v37, 16  ;;  %v662_v11 = vshll.u32 %v7961_v37, 16  ;;  %v529_v19 = vrot.slane %v525_v27, 4  ;;  %v7043_v56 = vld [vmem:[#allocation7 + $0xd0] sm:$0xff] }
  0x93   : > { %v1234_v13 = vshrl.u32 %v924_v8, 16  ;;  %v1237_v17 = vshll.u32 %v924_v8, 16  ;;  %v667_v20 = vshrl.u32 %v7985_v25, 16  ;;  %v858_v21 = vsel %vm7686_vm3, %v657_v48, %v857_v12  ;;  %v408_v31 = vld [vmem:[#allocation2 + $0xa4] sm:$0x1]  ;;  %2628 = vmatpush.bf16.msrb.mxu3 %v7043_v56 }
  0x94   : > { %v7011_v3 = vld [vmem:[#allocation2 + $0x90] sm:$0xff]  ;;  %v528_v16 = vor.u32 %v526_v29, %v525_v27  ;;  %v536_v23 = vor.u32 %v534_v54, %v8004_v4  ;;  %v670_v30 = vshll.u32 %v7985_v25, 16  ;;  %v384_v37 = vld [vmem:[#allocation2 + $0x44] sm:$0x1]  ;;  %859 = vst [vmem:[#allocation2 + $0x98] sm:$0x1] %v858_v21  ;;  %v1054_v40 = vsel %vm7728_vm11, %v8010_v9, %v8000_v0  ;;  %2384 = vmatmul.bf16.gmra.mxu0 %v8016_v15 }
  0x95   : > { %v925_v22 = vld [vmem:[#allocation2 + $0x94] sm:$0xf]  ;;  %v1236_v32 = vrot.slane %v1234_v13, 4  ;;  %v1239_v35 = vrot.slane %v1237_v17, 5  ;;  %v801_v44 = vld [vmem:[#allocation2 + $0x38] sm:$0x1]  ;;  %2424 = vmatmul.bf16.gmra.mxu2 %v7011_v3  ;;  %v8051_v21 = vunpack.c.l.b16 %v1054_v40 }
  0x96   : > { %v1243_v41 = vshll.u32 %v925_v22, 16  ;;  %v1247_v42 = vshrl.u32 %v925_v22, 16  ;;  %v8026_v46 = vrot.slane %v1058_v63, 4  ;;  %v537_v36 = vsel %vm7705_vm9, %v529_v19, %v536_v23  ;;  %v804_v24 = vld [vmem:[#allocation2 + $0x3c] sm:$0xf]  ;;  %v7051_v18 = vld [vmem:[#allocation7 + $0x110] sm:$0xff] }
  0x97   : > { %v661_v47 = vrot.slane %v659_v10, 7  ;;  %v337_v48 = vld [vmem:[#allocation2 + $0x48] sm:$0x1]  ;;  %v1240_v39 = vor.u32 %v1239_v35, %v1236_v32  ;;  %v802_v53 = vsel %vm7686_vm3, %v521_v57, %v801_v44  ;;  %807 = vst [vmem:[#allocation2 + $0x40] sm:$0xf] %v537_v36  ;;  %v805_v59 = vsel %vm7712_vm10, %v528_v16, %v804_v24  ;;  %2717 = vmatpush.bf16.msrb.mxu0 %v7051_v18 }
  0x98   : > { %v1245_v25 = vrot.slane %v1243_v41, 5  ;;  %v1249_v52 = vrot.slane %v1247_v42, 4  ;;  %803 = vst [vmem:[#allocation2 + $0x38] sm:$0x1] %v802_v53  ;;  %v669_v54 = vrot.slane %v667_v20, 7  ;;  %v409_v57 = vsel %vm7692_vm4, 0, %v408_v31 }
  0x99   : > { %v664_v29 = vor.u32 %v662_v11, %v661_v47  ;;  %v665_v60 = vrot.slane %v661_v47, 4  ;;  %v860_v61 = vld [vmem:[#allocation2 + $0x9c] sm:$0xf]  ;;  %v1241_v0 = vrot.slane %v1240_v39, 4  ;;  %806 = vst [vmem:[#allocation2 + $0x3c] sm:$0xf] %v805_v59 }
  0x9a   : > { %v1250_v33 = vor.u32 %v1249_v52, %v1245_v25  ;;  %v385_v2 = vsel %vm7692_vm4, 0, %v384_v37  ;;  %v306_v27 = vld [vmem:[%s7674_s16 + $0xd8] sm:$0xff]  ;;  %v538_v8 = vrot.slane %v8004_v4, 4  ;;  %v672_v9 = vor.u32 %v670_v30, %v669_v54  ;;  %410 = vst [vmem:[#allocation2 + $0xa4] sm:$0x1] %v409_v57  ;;  %v291_v20 = vld [vmem:[%s7674_s16 + $0x60] sm:$0xff] }
  0x9b   : > { %v674_v63 = vrot.slane %v669_v54, 4  ;;  %v861_v10 = vsel %vm7712_vm10, %v664_v29, %v860_v61  ;;  %v361_v11 = vld [vmem:[#allocation2 + $0xa8] sm:$0x1]  ;;  %v1246_v12 = vsel %vm7728_vm11, %v1241_v0, %v1245_v25  ;;  %v338_v17 = vsel %vm7686_vm3, 0, %v337_v48  ;;  %v926_v3 = vld [vmem:[#allocation2 + $0x98] sm:$0x1] }
  0x9c   : > { %v1251_v13 = vrot.slane %v1250_v33, 4  ;;  %862 = vst [vmem:[#allocation2 + $0x9c] sm:$0xf] %v861_v10  ;;  %v540_v19 = vshrl.u32 %v7987_v50, 16  ;;  %v673_v22 = vsel %vm7705_vm9, %v665_v60, %v672_v9  ;;  %v548_v16 = vshrl.u32 %v8006_v7, 16  ;;  %v292_v54 = vld [vmem:[%s7674_s16 + $0x68] sm:$0xff] }
  0x9d   : > { %386 = vst [vmem:[#allocation2 + $0x44] sm:$0x1] %v385_v2  ;;  %v551_v23 = vshll.u32 %v8006_v7, 16  ;;  %v1253_v30 = vshll.u32 %v926_v3, 16  ;;  %v543_v37 = vshll.u32 %v7987_v50, 16  ;;  %v362_v32 = vsel %vm7686_vm3, 0, %v361_v11 }
  0x9e   : > { %863 = vst [vmem:[#allocation2 + $0xa0] sm:$0xf] %v673_v22  ;;  %v542_v31 = vrot.slane %v540_v19, 7  ;;  %v1648_v35 = vunpack.c.l.b16 %v1246_v12  ;;  %v8060_v41 = vld [vmem:[#allocation2 + $0x40] sm:$0xf]  ;;  %v8062_v42 = vrot.slane %v548_v16, 7  ;;  %v8064_v44 = vpack.c.bf16 %v306_v27, %v306_v27 }
  0x9f   : > { %339 = vst [vmem:[#allocation2 + $0x48] sm:$0x1] %v338_v17  ;;  %v676_v40 = vshrl.u32 %v8008_v26, 16  ;;  %v1255_v7 = vrot.slane %v1253_v30, 5  ;;  %v8067_v36 = vld [vmem:[#allocation2 + $0x38] sm:$0x1]  ;;  %v8071_v47 = vpack.c.bf16 %v291_v20, %v291_v20 }
  0xa0   : > { %v1075_v24 = vshll.u32 %v8060_v41, 16  ;;  %v1079_v50 = vshrl.u32 %v8060_v41, 16  ;;  %v1061_v48 = vshll.u32 %v8067_v36, 16  ;;  %v8074_v39 = vld [vmem:[#allocation2 + $0x3c] sm:$0xf]  ;;  %v546_v25 = vrot.slane %v542_v31, 4 }
  0xa1   : > { %v553_v52 = vor.u32 %v551_v23, %v8062_v42  ;;  %v555_v53 = vrot.slane %v8062_v42, 4  ;;  %v1256_v55 = vsel %vm7728_vm11, %v1251_v13, %v1255_v7  ;;  %v864_v56 = vld [vmem:[#allocation2 + $0xa4] sm:$0x1]  ;;  %v1066_v59 = vshrl.u32 %v8074_v39, 16  ;;  %v8085_v33 = vld [vmem:[#allocation2 + $0x3c] sm:$0xff] }
  0xa2   : > { %v1069_v29 = vshll.u32 %v8074_v39, 16  ;;  %v8082_v60 = vrot.slane %v1075_v24, 5  ;;  %v1649_v61 = vunpack.c.l.b16 %v1256_v55  ;;  %v1063_v0 = vrot.slane %v1061_v48, 5  ;;  %363 = vst [vmem:[#allocation2 + $0xa8] sm:$0x1] %v362_v32 }
  0xa3   : > { %v865_v57 = vsel %vm7686_vm3, %v674_v63, %v864_v56  ;;  %v927_v2 = vld [vmem:[#allocation2 + $0x9c] sm:$0xf]  ;;  %v8089_v18 = vrot.slane %v1079_v50, 4  ;;  %v545_v11 = vor.u32 %v543_v37, %v542_v31  ;;  %v554_v12 = vsel %vm7705_vm9, %v546_v25, %v553_v52  ;;  %v411_v48 = vld [vmem:[#allocation2 + $0xb0] sm:$0x1] }
  0xa4   : > { %866 = vst [vmem:[#allocation2 + $0xa4] sm:$0x1] %v865_v57  ;;  %v1258_v27 = vshrl.u32 %v927_v2, 16  ;;  %v1261_v9 = vshll.u32 %v927_v2, 16  ;;  %v808_v10 = vld [vmem:[#allocation2 + $0x44] sm:$0x1]  ;;  %v8093_v13 = vpack.c.b16 %v1649_v61, %v1648_v35  ;;  %v1064_v17 = vsel %vm7728_vm11, %v8026_v46, %v1063_v0  ;;  %2389 = vmatmul.bf16.gmra.mxu0 %v8085_v33 }
  0xa5   : > { %v7012_v19 = vld [vmem:[#allocation2 + $0x9c] sm:$0xff]  ;;  %v809_v20 = vsel %vm7686_vm3, %v538_v8, %v808_v10  ;;  %v1068_v3 = vrot.slane %v1066_v59, 4  ;;  %814 = vst [vmem:[#allocation2 + $0x4c] sm:$0xf] %v554_v12  ;;  %v1633_v22 = vunpack.c.l.b16 %v1064_v17  ;;  %v1071_v37 = vrot.slane %v1069_v29, 5 }
  0xa6   : > { %10368 = vst [vmem:[#allocation20_spill] sm:$0xff] %v8093_v13  ;;  %v928_v63 = vld [vmem:[#allocation2 + $0xa0] sm:$0xf]  ;;  %v1260_v16 = vrot.slane %v1258_v27, 4  ;;  %v1263_v23 = vrot.slane %v1261_v9, 5  ;;  %2513 = vmatmul.bf16.gmra.mxu3 %v8093_v13  ;;  %v678_v46 = vrot.slane %v676_v40, 7  ;;  %v8103_v7 = vpack.c.bf16 %v292_v54, %v292_v54  ;;  %2429 = vmatmul.bf16.gmra.mxu2 %v7012_v19 }
  0xa7   : > { %v1267_v30 = vshll.u32 %v928_v63, 16  ;;  %810 = vst [vmem:[#allocation2 + $0x44] sm:$0x1] %v809_v20  ;;  %v1271_v31 = vshrl.u32 %v928_v63, 16  ;;  %v811_v32 = vld [vmem:[#allocation2 + $0x48] sm:$0xf]  ;;  %v8106_v4 = vpack.c.b16 %v1633_v22, %v8051_v21  ;;  %v1072_v55 = vor.u32 %v1071_v37, %v1068_v3 }
  0xa8   : > { %v7034_v35 = vld [vmem:[#allocation7 + $0x88] sm:$0xff]  ;;  %v1264_v8 = vor.u32 %v1263_v23, %v1260_v16  ;;  %v812_v50 = vsel %vm7712_vm10, %v545_v11, %v811_v32  ;;  %v1082_v40 = vor.u32 %v8089_v18, %v8082_v60  ;;  %v679_v56 = vshll.u32 %v8008_v26, 16  ;;  %v387_v21 = vld [vmem:[#allocation2 + $0x50] sm:$0x1]  ;;  %v340_v57 = vld [vmem:[#allocation2 + $0x54] sm:$0x1] }
  0xa9   : > { %10369 = vst [vmem:[#allocation21_spill] sm:$0xff] %v8106_v4  ;;  %v1269_v24 = vrot.slane %v1267_v30, 5  ;;  %v7042_v25 = vld [vmem:[#allocation7 + $0xc8] sm:$0xff]  ;;  %v1273_v52 = vrot.slane %v1271_v31, 4  ;;  %2473 = vmatmul.bf16.gmra.mxu1 %v8106_v4  ;;  %v682_v29 = vrot.slane %v678_v46, 4  ;;  %v684_v54 = vshrl.u32 %v8064_v44, 16  ;;  %2540 = vmatpush.bf16.msrb.mxu2 %v7034_v35 }
  0xaa   : > { %813 = vst [vmem:[#allocation2 + $0x48] sm:$0xf] %v812_v50  ;;  %v1265_v59 = vrot.slane %v1264_v8, 4  ;;  %v687_v61 = vshll.u32 %v8064_v44, 16  ;;  %v867_v0 = vld [vmem:[#allocation2 + $0xa8] sm:$0xf]  ;;  %v681_v10 = vor.u32 %v679_v56, %v678_v46  ;;  %2629 = vmatpush.bf16.msrb.mxu3 %v7042_v25 }
  0xab   : > { %v929_v2 = vld [vmem:[#allocation2 + $0xa4] sm:$0x1]  ;;  %v1274_v27 = vor.u32 %v1273_v52, %v1269_v24  ;;  %v1073_v9 = vrot.slane %v1072_v55, 4  ;;  %v412_v18 = vsel %vm7692_vm4, 0, %v411_v48  ;;  %v7050_v26 = vld [vmem:[#allocation7 + $0x108] sm:$0xff]  ;;  %v7064_v11 = vld [vmem:[#allocation7 + $0x178] sm:$0xff] }
  0xac   : > { %v1270_v12 = vsel %vm7728_vm11, %v1265_v59, %v1269_v24  ;;  %v1277_v17 = vshll.u32 %v929_v2, 16  ;;  %v686_v19 = vrot.slane %v684_v54, 7  ;;  %413 = vst [vmem:[#allocation2 + $0xb0] sm:$0x1] %v412_v18  ;;  %v388_v44 = vsel %vm7692_vm4, 0, %v387_v21  ;;  %2718 = vmatpush.bf16.msrb.mxu0 %v7050_v26  ;;  %2801 = vmatpush.bf16.msrb.mxu1 %v7064_v11  ;;  %v307_v59 = vld [vmem:[%s7674_s16 + $0xe0] sm:$0xff] }
  0xad   : > { %v1275_v63 = vrot.slane %v1274_v27, 4  ;;  %v1078_v3 = vsel %vm7728_vm11, %v1073_v9, %v8082_v60  ;;  %v1083_v22 = vrot.slane %v1082_v40, 4  ;;  %v868_v16 = vsel %vm7712_vm10, %v681_v10, %v867_v0  ;;  %389 = vst [vmem:[#allocation2 + $0x50] sm:$0x1] %v388_v44  ;;  %v8131_v32 = vld [vmem:[#allocation2 + $0x4c] sm:$0xf] }
  0xae   : > { %v8123_v20 = vld [vmem:[#allocation2 + $0x44] sm:$0x1]  ;;  %v1279_v23 = vrot.slane %v1277_v17, 5  ;;  %v1650_v30 = vunpack.c.l.b16 %v1270_v12  ;;  %v689_v37 = vor.u32 %v687_v61, %v686_v19  ;;  %869 = vst [vmem:[#allocation2 + $0xa8] sm:$0xf] %v868_v16  ;;  %v1634_v46 = vunpack.c.l.b16 %v1078_v3 }
  0xaf   : > { %v1085_v31 = vshll.u32 %v8123_v20, 16  ;;  %v1099_v35 = vshll.u32 %v8131_v32, 16  ;;  %v1103_v60 = vshrl.u32 %v8131_v32, 16  ;;  %v341_v8 = vsel %vm7686_vm3, 0, %v340_v57  ;;  %v364_v17 = vld [vmem:[#allocation2 + $0xb4] sm:$0x1] }
  0xb0   : > { %v1280_v24 = vsel %vm7728_vm11, %v1275_v63, %v1279_v23  ;;  %v690_v48 = vsel %vm7705_vm9, %v682_v29, %v689_v37  ;;  %v691_v25 = vrot.slane %v686_v19, 4  ;;  %342 = vst [vmem:[#allocation2 + $0x54] sm:$0x1] %v341_v8  ;;  %v557_v29 = vshrl.u32 %v8071_v47, 16 }
  0xb1   : > { %v1087_v50 = vrot.slane %v1085_v31, 5  ;;  %v8141_v52 = vld [vmem:[#allocation2 + $0x48] sm:$0xf]  ;;  %v1651_v55 = vunpack.c.l.b16 %v1280_v24  ;;  %870 = vst [vmem:[#allocation2 + $0xac] sm:$0xf] %v690_v48  ;;  %v8145_v21 = vrot.slane %v1099_v35, 5  ;;  %v448_v19 = vpack.c.bf16 %v307_v59, %v307_v59 }
  0xb2   : > { %v1090_v40 = vshrl.u32 %v8141_v52, 16  ;;  %v1093_v56 = vshll.u32 %v8141_v52, 16  ;;  %v8150_v61 = vrot.slane %v1103_v60, 4  ;;  %v560_v0 = vshll.u32 %v8071_v47, 16  ;;  %v8159_v44 = vld [vmem:[#allocation2 + $0x48] sm:$0xff]  ;;  %v308_v35 = vld [vmem:[%s7674_s16 + $0xe8] sm:$0xff] }
  0xb3   : > { %v1088_v54 = vsel %vm7728_vm11, %v1083_v22, %v1087_v50  ;;  %v8154_v57 = vpack.c.b16 %v1651_v55, %v1650_v30  ;;  %v871_v27 = vld [vmem:[#allocation2 + $0xb0] sm:$0x1]  ;;  %v559_v11 = vrot.slane %v557_v29, 7  ;;  %v565_v12 = vshrl.u32 %v8103_v7, 16  ;;  %v7063_v29 = vld [vmem:[#allocation7 + $0x170] sm:$0xff] }
  0xb4   : > { %v1635_v2 = vunpack.c.l.b16 %v1088_v54  ;;  %v1092_v9 = vrot.slane %v1090_v40, 4  ;;  %v1095_v10 = vrot.slane %v1093_v56, 5  ;;  %v872_v18 = vsel %vm7686_vm3, %v691_v25, %v871_v27  ;;  %v815_v26 = vld [vmem:[#allocation2 + $0x50] sm:$0x1]  ;;  %2394 = vmatmul.bf16.gmra.mxu0 %v8159_v44  ;;  %v414_v27 = vld [vmem:[#allocation2 + $0xbc] sm:$0x1]  ;;  %2802 = vmatpush.bf16.msrb.mxu1 %v7063_v29 }
  0xb5   : > { %10370 = vst [vmem:[#allocation22_spill] sm:$0xff] %v8154_v57  ;;  %v930_v47 = vld [vmem:[#allocation2 + $0xa8] sm:$0xf]  ;;  %v816_v63 = vsel %vm7686_vm3, %v555_v53, %v815_v26  ;;  %v1106_v22 = vor.u32 %v8150_v61, %v8145_v21  ;;  %v568_v16 = vshll.u32 %v8103_v7, 16  ;;  %v562_v37 = vor.u32 %v560_v0, %v559_v11  ;;  %v7033_v61 = vld [vmem:[#allocation7 + $0x80] sm:$0xff] }
  0xb6   : > { %873 = vst [vmem:[#allocation2 + $0xb0] sm:$0x1] %v872_v18  ;;  %v1096_v3 = vor.u32 %v1095_v10, %v1092_v9  ;;  %v8168_v23 = vpack.c.b16 %v1635_v2, %v1634_v46  ;;  %v1282_v30 = vshrl.u32 %v930_v47, 16  ;;  %v1285_v31 = vshll.u32 %v930_v47, 16  ;;  %2518 = vmatmul.bf16.gmra.mxu3 %v8154_v57  ;;  %v7041_v9 = vld [vmem:[#allocation7 + $0xc0] sm:$0xff]  ;;  %2541 = vmatpush.bf16.msrb.mxu2 %v7033_v61 }
  0xb7   : > { %817 = vst [vmem:[#allocation2 + $0x50] sm:$0x1] %v816_v63  ;;  %v563_v42 = vrot.slane %v559_v11, 4  ;;  %v8174_v8 = vrot.slane %v565_v12, 7  ;;  %v818_v53 = vld [vmem:[#allocation2 + $0x54] sm:$0xf]  ;;  %v449_v54 = vpack.c.bf16 %v308_v35, %v308_v35  ;;  %2630 = vmatpush.bf16.msrb.mxu3 %v7041_v9 }
  0xb8   : > { %10371 = vst [vmem:[#allocation23_spill] sm:$0xff] %v8168_v23  ;;  %v8172_v60 = vrot.slane %v1096_v3, 4  ;;  %v365_v24 = vsel %vm7686_vm3, 0, %v364_v17  ;;  %v7013_v50 = vld [vmem:[#allocation2 + $0xa8] sm:$0xff]  ;;  %v1284_v46 = vrot.slane %v1282_v30, 4  ;;  %v1287_v48 = vrot.slane %v1285_v31, 5 }
  0xb9   : > { %v931_v7 = vld [vmem:[#allocation2 + $0xac] sm:$0xf]  ;;  %v819_v25 = vsel %vm7712_vm10, %v562_v37, %v818_v53  ;;  %v693_v55 = vshrl.u32 %v448_v19, 16  ;;  %v570_v59 = vor.u32 %v568_v16, %v8174_v8  ;;  %2478 = vmatmul.bf16.gmra.mxu1 %v8168_v23  ;;  %2434 = vmatmul.bf16.gmra.mxu2 %v7013_v50  ;;  %366 = vst [vmem:[#allocation2 + $0xb4] sm:$0x1] %v365_v24  ;;  %v696_v11 = vshll.u32 %v448_v19, 16 }
  0xba   : > { %v1291_v40 = vshll.u32 %v931_v7, 16  ;;  %v1295_v56 = vshrl.u32 %v931_v7, 16  ;;  %820 = vst [vmem:[#allocation2 + $0x54] sm:$0xf] %v819_v25  ;;  %v1288_v0 = vor.u32 %v1287_v48, %v1284_v46  ;;  %v7062_v12 = vld [vmem:[#allocation7 + $0x168] sm:$0xff]  ;;  %v7049_v17 = vld [vmem:[#allocation7 + $0x100] sm:$0xff]  ;;  %v1102_v3 = vsel %vm7728_vm11, %v8172_v60, %v8145_v21 }
  0xbb   : > { %v695_v2 = vrot.slane %v693_v55, 7  ;;  %v571_v26 = vsel %vm7705_vm9, %v563_v42, %v570_v59  ;;  %v1107_v16 = vrot.slane %v1106_v22, 4  ;;  %v701_v19 = vshrl.u32 %v449_v54, 16  ;;  %v390_v42 = vld [vmem:[#allocation2 + $0x5c] sm:$0x1]  ;;  %2719 = vmatpush.bf16.msrb.mxu0 %v7049_v17  ;;  %v7061_v22 = vld [vmem:[#allocation7 + $0x160] sm:$0xff]  ;;  %2803 = vmatpush.bf16.msrb.mxu1 %v7062_v12 }
  0xbc   : > { %v1293_v10 = vrot.slane %v1291_v40, 5  ;;  %v1297_v18 = vrot.slane %v1295_v56, 4  ;;  %v1289_v63 = vrot.slane %v1288_v0, 4  ;;  %821 = vst [vmem:[#allocation2 + $0x58] sm:$0xf] %v571_v26  ;;  %v704_v50 = vshll.u32 %v449_v54, 16 }
  0xbd   : > { %v932_v47 = vld [vmem:[#allocation2 + $0xb0] sm:$0x1]  ;;  %v698_v35 = vor.u32 %v696_v11, %v695_v2  ;;  %v415_v21 = vsel %vm7692_vm4, 0, %v414_v27  ;;  %v699_v46 = vrot.slane %v695_v2, 4  ;;  %v703_v48 = vrot.slane %v701_v19, 7  ;;  %v7060_v17 = vld [vmem:[#allocation7 + $0x158] sm:$0xff] }
  0xbe   : > { %v1298_v30 = vor.u32 %v1297_v18, %v1293_v10  ;;  %v1301_v31 = vshll.u32 %v932_v47, 16  ;;  %v8189_v37 = vld [vmem:[#allocation2 + $0x50] sm:$0x1]  ;;  %v1294_v53 = vsel %vm7728_vm11, %v1289_v63, %v1293_v10  ;;  %416 = vst [vmem:[#allocation2 + $0xbc] sm:$0x1] %v415_v21  ;;  %v391_v40 = vsel %vm7692_vm4, 0, %v390_v42 }
  0xbf   : > { %v1109_v24 = vshll.u32 %v8189_v37, 16  ;;  %v1652_v25 = vunpack.c.l.b16 %v1294_v53  ;;  %v1636_v54 = vunpack.c.l.b16 %v1102_v3  ;;  %v706_v61 = vor.u32 %v704_v50, %v703_v48  ;;  %392 = vst [vmem:[#allocation2 + $0x5c] sm:$0x1] %v391_v40  ;;  %2804 = vmatpush.bf16.msrb.mxu1 %v7061_v22  ;;  %v7058_v40 = vld [vmem:[#allocation7 + $0x148] sm:$0xff] }
  0xc0   : > { %v1299_v60 = vrot.slane %v1298_v30, 4  ;;  %v1303_v7 = vrot.slane %v1301_v31, 5  ;;  %v874_v29 = vld [vmem:[#allocation2 + $0xb4] sm:$0xf]  ;;  %v708_v11 = vrot.slane %v703_v48, 4  ;;  %v572_v63 = vrot.slane %v8174_v8, 4 }
  0xc1   : > { %v1111_v55 = vrot.slane %v1109_v24, 5  ;;  %v8198_v56 = vld [vmem:[#allocation2 + $0x54] sm:$0xf]  ;;  %v875_v9 = vsel %vm7712_vm10, %v698_v35, %v874_v29  ;;  %v707_v26 = vsel %vm7705_vm9, %v699_v46, %v706_v61  ;;  %vm1377_vm12 = vcmask 1042432   ;;  %v7059_v24 = vld [vmem:[#allocation7 + $0x150] sm:$0xff]  ;;  %v7072_v46 = vld [vmem:[#allocation7 + $0x1b8] sm:$0xff] }
  0xc2   : > { %v1304_v59 = vsel %vm7728_vm11, %v1299_v60, %v1303_v7  ;;  %v1114_v0 = vshrl.u32 %v8198_v56, 16  ;;  %v1117_v10 = vshll.u32 %v8198_v56, 16  ;;  %876 = vst [vmem:[#allocation2 + $0xb4] sm:$0xf] %v875_v9  ;;  %vm1378_vm13 = vcmask 1046532   ;;  %v7080_v48 = vld [vmem:[#allocation7 + $0x1f8] sm:$0xff]  ;;  %2890 = vmatpush.bf16.msra.mxu2 %v7072_v46 }
  0xc3   : > { %v1653_v2 = vunpack.c.l.b16 %v1304_v59  ;;  %v1112_v27 = vsel %vm7728_vm11, %v1107_v16, %v1111_v55  ;;  %v8210_v12 = vld [vmem:[#allocation2 + $0x58] sm:$0xf]  ;;  %877 = vst [vmem:[#allocation2 + $0xb8] sm:$0xf] %v707_v26  ;;  %2805 = vmatpush.bf16.msrb.mxu1 %v7060_v17  ;;  %v7272_v60 = vld [vmem:[#allocation2 + $0x4] sm:$0xf]  ;;  %2979 = vmatpush.bf16.msra.mxu3 %v7080_v48  ;;  %vm8230_vm14 = vmor %vm1377_vm12, %vm1378_vm13 }
  0xc4   : > { %v1637_v18 = vunpack.c.l.b16 %v1112_v27  ;;  %v8215_v3 = vld [vmem:[#allocation2 + $0x54] sm:$0xff]  ;;  %v1116_v16 = vrot.slane %v1114_v0, 4  ;;  %v1119_v30 = vrot.slane %v1117_v10, 5  ;;  %v1123_v31 = vshll.u32 %v8210_v12, 16  ;;  %v7088_v0 = vld [vmem:[#allocation7 + $0x238] sm:$0xff] }
  0xc5   : > { %v8212_v47 = vpack.c.b16 %v1653_v2, %v1652_v25  ;;  %v878_v19 = vld [vmem:[#allocation2 + $0xbc] sm:$0x1]  ;;  %v1127_v42 = vshrl.u32 %v8210_v12, 16  ;;  %2399 = vmatmul.bf16.gmra.mxu0 %v8215_v3  ;;  %v1382_v7 = vrot.slane %v7272_v60, 5  ;;  %v7273_v9 = vld [vmem:[#allocation2] sm:$0xf] }
  0xc6   : > { %v8218_v35 = vpack.c.b16 %v1637_v18, %v1636_v54  ;;  %v879_v53 = vsel %vm7686_vm3, %v708_v11, %v878_v19  ;;  %v822_v8 = vld [vmem:[#allocation2 + $0x5c] sm:$0x1]  ;;  %v1120_v21 = vor.u32 %v1119_v30, %v1116_v16  ;;  %v1125_v22 = vrot.slane %v1123_v31, 5  ;;  %v7274_v18 = vld [vmem:[#allocation2 + $0x8] sm:$0x1]  ;;  %3068 = vmatpush.bf16.msra.mxu0 %v7088_v0 }
  0xc7   : > { %10372 = vst [vmem:[#allocation24_spill] sm:$0xff] %v8212_v47  ;;  %2523 = vmatmul.bf16.gmra.mxu3 %v8212_v47  ;;  %v823_v50 = vsel %vm7686_vm3, %v572_v63, %v822_v8  ;;  %v1129_v55 = vrot.slane %v1127_v42, 4  ;;  %2806 = vmatpush.bf16.msrb.mxu1 %v7059_v24  ;;  %v6237_v10 = vrot.slane %v7273_v9, 9  ;;  %v1385_v26 = vrot.slane %v7274_v18, 5  ;;  %v7057_v24 = vld [vmem:[#allocation7 + $0x140] sm:$0xff] }
  0xc8   : > { %10373 = vst [vmem:[#allocation25_spill] sm:$0xff] %v8218_v35  ;;  %v1121_v63 = vrot.slane %v1120_v21, 4  ;;  %v1384_v16 = vrot.slane %v1382_v7, 4  ;;  %v10374_v42 = vmov 0 }
  0xc9   : > { %880 = vst [vmem:[#allocation2 + $0xbc] sm:$0x1] %v879_v53  ;;  %2483 = vmatmul.bf16.gmra.mxu1 %v8218_v35  ;;  %v933_v25 = vld [vmem:[#allocation2 + $0xb4] sm:$0xf]  ;;  %v1130_v19 = vor.u32 %v1129_v55, %v1125_v22  ;;  %v10375_v42 = vsel %vm8230_vm14, 4294967295, %v10374_v42 }
  0xca   : > { %824 = vst [vmem:[#allocation2 + $0x5c] sm:$0x1] %v823_v50  ;;  %v7014_v59 = vld [vmem:[#allocation2 + $0xb4] sm:$0xff]  ;;  %v1306_v61 = vshrl.u32 %v933_v25, 16  ;;  %v1309_v29 = vshll.u32 %v933_v25, 16  ;;  %v1126_v21 = vsel %vm7728_vm11, %v1121_v63, %v1125_v22  ;;  %v1383_v25 = vsel %vm8230_vm14, %v6237_v10, %v1382_v7 }
  0xcb   : > { %v934_v54 = vld [vmem:[#allocation2 + $0xb8] sm:$0xf]  ;;  %2439 = vmatmul.bf16.gmra.mxu2 %v7014_v59  ;;  %10376 = vst [vmem:[#allocation26_spill] sm:$0xff] %v10375_v42  ;;  %2807 = vmatpush.bf16.msrb.mxu1 %v7058_v40  ;;  %v1386_v55 = vsel %vm8230_vm14, %v1384_v16, %v1385_v26  ;;  %v1638_v9 = vunpack.c.l.b16 %v1126_v21  ;;  %v8250_v7 = vld [vmem:[%s10275_s2] ss:$0 sm:$0xff]  ;;  %v1688_v10 = vunpack.c.l.b16 %v1383_v25 }
  0xcc   : > { %v1315_v2 = vshll.u32 %v934_v54, 16  ;;  %v1319_v27 = vshrl.u32 %v934_v54, 16  ;;  %v1308_v11 = vrot.slane %v1306_v61, 4  ;;  %v1311_v17 = vrot.slane %v1309_v29, 5  ;;  %v7277_v25 = vld [vmem:[#allocation2 + $0x14] sm:$0x1] }
  0xcd   : > { %v1131_v61 = vrot.slane %v1130_v19, 4  ;;  %v1689_v18 = vunpack.c.l.b16 %v1386_v55  ;;  %v1392_v55 = vrot.slane %v7277_v25, 5 }
  0xce   : > { %v1317_v30 = vrot.slane %v1315_v2, 5  ;;  %v1321_v31 = vrot.slane %v1319_v27, 4  ;;  %v1312_v8 = vor.u32 %v1311_v17, %v1308_v11 }
  0xcf   : > { %2808 = vmatpush.bf16.msrb.mxu1 %v7057_v24 }
  0xd0   : > { %v935_v53 = vld [vmem:[#allocation2 + $0xbc] sm:$0x1]  ;;  %v1322_v50 = vor.u32 %v1321_v31, %v1317_v30  ;;  %v1313_v46 = vrot.slane %v1312_v8, 4  ;;  %v7275_v31 = vld [vmem:[#allocation2 + $0x10] sm:$0xf]  ;;  %v1720_v8 = vpack.c.b16 %v1689_v18, %v1688_v10 }
  0xd1   : > { %v1325_v60 = vshll.u32 %v935_v53, 16  ;;  %v8234_v48 = vld [vmem:[#allocation2 + $0x5c] sm:$0x1]  ;;  %v2365_v11 = vpop.f32.mrf.mxu0  ;;  %v1389_v19 = vrot.slane %v7275_v31, 5  ;;  %v7079_v31 = vld [vmem:[#allocation7 + $0x1f0] sm:$0xff] }
  0xd2   : > { %v1323_v59 = vrot.slane %v1322_v50, 4  ;;  %v1133_v40 = vshll.u32 %v8234_v48, 16  ;;  %v1318_v29 = vsel %vm7728_vm11, %v1313_v46, %v1317_v30  ;;  %v2366_v16 = vadd.f32 %v8250_v7, %v2365_v11  ;;  %2980 = vmatpush.bf16.msra.mxu3 %v7079_v31 }
  0xd3   : > { %v1327_v54 = vrot.slane %v1325_v60, 5  ;;  %v1654_v2 = vunpack.c.l.b16 %v1318_v29  ;;  %v2454_v30 = vpop.f32.mrf.mxu1  ;;  %v7276_v60 = vld [vmem:[#allocation2 + $0xc] sm:$0xf]  ;;  %v1391_v21 = vrot.slane %v1389_v19, 4 }
  0xd4   : > { %v1135_v22 = vrot.slane %v1133_v40, 5  ;;  %v8261_v24 = vadd.f32 %v2454_v30, %v2366_v16  ;;  %v6238_v46 = vrot.slane %v7276_v60, 9  ;;  %v7071_v30 = vld [vmem:[#allocation7 + $0x1b0] sm:$0xff] }
  0xd5   : > { %v1328_v0 = vsel %vm7728_vm11, %v1323_v59, %v1327_v54  ;;  %2720 = vmatmul.bf16.vlgmr.msrb.gmra.mxu0 %v7862_v38  ;;  %v1393_v38 = vsel %vm8230_vm14, %v1391_v21, %v1392_v55  ;;  %2891 = vmatpush.bf16.msra.mxu2 %v7071_v30  ;;  %v7281_v55 = vld [vmem:[#allocation2 + $0x20] sm:$0x1] }
  0xd6   : > { %v1655_v27 = vunpack.c.l.b16 %v1328_v0  ;;  %v1136_v26 = vsel %vm7728_vm11, %v1131_v61, %v1135_v22  ;;  %v1390_v61 = vsel %vm8230_vm14, %v6238_v46, %v1389_v19  ;;  %v1691_v22 = vunpack.c.l.b16 %v1393_v38  ;;  %v7087_v19 = vld [vmem:[#allocation7 + $0x230] sm:$0xff]  ;;  %v7280_v46 = vld [vmem:[#allocation2 + $0x18] sm:$0xf] }
  0xd7   : > { %v1639_v63 = vunpack.c.l.b16 %v1136_v26  ;;  %v2405_v50 = vpop.f32.mrf.mxu2  ;;  %v7278_v26 = vld [vmem:[#allocation2 + $0x1c] sm:$0xf]  ;;  %v6239_v21 = vrot.slane %v7280_v46, 9  ;;  %3069 = vmatpush.bf16.msra.mxu0 %v7087_v19 }
  0xd8   : > { %v8254_v17 = vpack.c.b16 %v1655_v27, %v1654_v2  ;;  %v2406_v59 = vadd.f32 %v8250_v7, %v2405_v50  ;;  %v1690_v2 = vunpack.c.l.b16 %v1390_v61  ;;  %v1396_v11 = vrot.slane %v7278_v26, 5  ;;  %v8296_v46 = vld [vmem:[#allocation2 + $0x18] sm:$0xff] }
  0xd9   : > { %v8258_v53 = vpack.c.b16 %v1639_v63, %v1638_v9  ;;  %v8265_v54 = vpop.f32.mrf.mxu0  ;;  %v7279_v63 = vld [vmem:[#allocation2 + $0xc] sm:$0xff] }
  0xda   : > { %2528 = vmatmul.bf16.gmra.mxu3 %v8254_v17  ;;  %v1721_v18 = vpack.c.b16 %v1691_v22, %v1690_v2  ;;  %v1398_v25 = vrot.slane %v1396_v11, 4  ;;  %v1397_v22 = vsel %vm8230_vm14, %v6239_v21, %v1396_v11 }
  0xdb   : > { %10377 = vst [vmem:[#allocation27_spill] sm:$0xff] %v8258_v53  ;;  %2488 = vmatmul.bf16.gmra.mxu1 %v8258_v53  ;;  %2542 = vmatmul.bf16.vlgmr.msrb.gmra.mxu2 %v1720_v8  ;;  %v8273_v0 = vpop.f32.mrf.mxu1  ;;  %v1692_v26 = vunpack.c.l.b16 %v1397_v22  ;;  %v7285_v22 = vld [vmem:[#allocation2 + $0x2c] sm:$0x1] }
  0xdf   : > { %v2407_v27 = vpop.f32.mrf.mxu2 }
  0xe0   : > { %v2408_v9 = vadd.f32 %v8250_v7, %v2407_v27 }
  0xe1   : > { %v2370_v10 = vpop.f32.mrf.mxu0 }
  0xe2   : > { %v2494_v40 = vpop.f32.mrf.mxu3  ;;  %v2371_v50 = vadd.f32 %v8250_v7, %v2370_v10 }
  0xe3   : > { %v8271_v29 = vadd.f32 %v2494_v40, %v2406_v59  ;;  %v1399_v59 = vrot.slane %v7281_v55, 5 }
  0xe5   : > { %2725 = vmatmul.bf16.gmra.mxu0 %v7918_v49  ;;  %v1400_v27 = vsel %vm8230_vm14, %v1398_v25, %v1399_v59  ;;  %v7284_v59 = vld [vmem:[#allocation2 + $0x24] sm:$0xf] }
  0xe7   : > { %v2410_v60 = vpop.f32.mrf.mxu2 }
  0xe8   : > { %v2411_v40 = vadd.f32 %v8250_v7, %v2410_v60 }
  0xe9   : > { %v8283_v2 = vpop.f32.mrf.mxu0 }
  0xea   : > { %2631 = vmatmul.bf16.vlgmr.msrb.gmra.mxu3 %v7279_v63  ;;  %v2496_v16 = vpop.f32.mrf.mxu3  ;;  %v1693_v63 = vunpack.c.l.b16 %v1400_v27  ;;  %v1406_v27 = vrot.slane %v7285_v22, 5 }
  0xeb   : > { %v8277_v8 = vadd.f32 %v2496_v16, %v2408_v9  ;;  %2809 = vmatmul.bf16.vlgmr.msrb.gmra.mxu1 %v1721_v18  ;;  %2547 = vmatmul.bf16.gmra.mxu2 %v1721_v18  ;;  %v2459_v61 = vpop.f32.mrf.mxu1 }
  0xec   : > { %v8280_v38 = vadd.f32 %v2459_v61, %v2371_v50  ;;  %v8294_v19 = vpack.c.b16 %v1693_v63, %v1692_v26  ;;  %v7282_v50 = vld [vmem:[#allocation2 + $0x28] sm:$0xf]  ;;  %v6240_v61 = vrot.slane %v7284_v59, 9 }
  0xed   : > { %10378 = vst [vmem:[#allocation28_spill] sm:$0xff] %v8277_v8  ;;  %v1403_v60 = vrot.slane %v7282_v50, 5  ;;  %v8322_v8 = vld [vmem:[#allocation2 + $0x24] sm:$0xff] }
  0xee   : > { %10382 = vst [vmem:[#allocation32_spill] sm:$0xff] %v8322_v8 }
  0xef   : > { %v2412_v16 = vpop.f32.mrf.mxu2 }
  0xf0   : > { %v2413_v30 = vadd.f32 %v8250_v7, %v2412_v16 }
  0xf1   : > { %v2375_v31 = vpop.f32.mrf.mxu0 }
  0xf2   : > { %v2499_v9 = vpop.f32.mrf.mxu3  ;;  %v2376_v25 = vadd.f32 %v8250_v7, %v2375_v31 }
  0xf3   : > { %v8289_v10 = vadd.f32 %v2499_v9, %v2411_v40  ;;  %v8291_v18 = vpop.f32.mrf.mxu1  ;;  %v1405_v40 = vrot.slane %v1403_v60, 4 }
  0xf5   : > { %10379 = vst [vmem:[#allocation29_spill] sm:$0xff] %v8289_v10  ;;  %2730 = vmatmul.bf16.gmra.mxu0 %v7990_v51  ;;  %v1407_v31 = vsel %vm8230_vm14, %v1405_v40, %v1406_v27 }
  0xf6   : > { %v1695_v22 = vunpack.c.l.b16 %v1407_v31 }
  0xf7   : > { %v2415_v55 = vpop.f32.mrf.mxu2 }
  0xf8   : > { %v2416_v16 = vadd.f32 %v8250_v7, %v2415_v55  ;;  %v1410_v55 = vrot.slane %v7983_v28, 5 }
  0xf9   : > { %v8307_v63 = vpop.f32.mrf.mxu0 }
  0xfa   : > { %2636 = vmatmul.bf16.gmra.mxu3 %v8296_v46  ;;  %v2501_v11 = vpop.f32.mrf.mxu3  ;;  %v1412_v28 = vrot.slane %v1410_v55, 4 }
  0xfb   : > { %v8300_v21 = vadd.f32 %v2501_v11, %v2413_v30  ;;  %2814 = vmatmul.bf16.gmra.mxu1 %v8294_v19  ;;  %2552 = vmatmul.bf16.gmra.mxu2 %v8294_v19  ;;  %v1404_v30 = vsel %vm8230_vm14, %v6240_v61, %v1403_v60  ;;  %v7070_v60 = vld [vmem:[#allocation7 + $0x1a8] sm:$0xff] }
  0xfc   : > { %v2464_v9 = vpop.f32.mrf.mxu1  ;;  %v1694_v59 = vunpack.c.l.b16 %v1404_v30  ;;  %v7078_v61 = vld [vmem:[#allocation7 + $0x1e8] sm:$0xff]  ;;  %2892 = vmatpush.bf16.msra.mxu2 %v7070_v60  ;;  %v7287_v30 = vld [vmem:[#allocation2 + $0x30] sm:$0xf] }
  0xfd   : > { %10380 = vst [vmem:[#allocation30_spill] sm:$0xff] %v8300_v21  ;;  %v8305_v26 = vadd.f32 %v2464_v9, %v2376_v25  ;;  %v6241_v31 = vrot.slane %v7287_v30, 9  ;;  %2981 = vmatpush.bf16.msra.mxu3 %v7078_v61 }
  0xfe   : > { %v8319_v10 = vpack.c.b16 %v1695_v22, %v1694_v59 }
  0xff   : > { %v2417_v21 = vpop.f32.mrf.mxu2 }
 0x100   : > { %v2418_v9 = vadd.f32 %v8250_v7, %v2417_v21 }
 0x101   : > { %v2380_v25 = vpop.f32.mrf.mxu0 }
 0x102   : > { %v2504_v50 = vpop.f32.mrf.mxu3 }
 0x103   : > { %v8314_v11 = vadd.f32 %v2504_v50, %v2416_v16  ;;  %v2381_v16 = vadd.f32 %v8250_v7, %v2380_v25  ;;  %v1413_v50 = vrot.slane %v8067_v36, 5  ;;  %v1411_v25 = vsel %vm8230_vm14, %v6241_v31, %v1410_v55 }
 0x104   : > { %v8316_v51 = vpop.f32.mrf.mxu1  ;;  %v1696_v61 = vunpack.c.l.b16 %v1411_v25  ;;  %v1420_v25 = vrot.slane %v8123_v20, 5 }
 0x105   : > { %10381 = vst [vmem:[#allocation31_spill] sm:$0xff] %v8314_v11  ;;  %2735 = vmatmul.bf16.gmra.mxu0 %v8106_v4  ;;  %v1414_v60 = vsel %vm8230_vm14, %v1412_v28, %v1413_v50  ;;  %v6242_v50 = vrot.slane %v8074_v39, 9 }
 0x107   : > { %v2420_v21 = vpop.f32.mrf.mxu2 }
 0x109   : > { %v8332_v22 = vpop.f32.mrf.mxu0 }
 0x10a   : > { %2641 = vmatmul.bf16.gmra.mxu3 %v8322_v8  ;;  %v2506_v40 = vpop.f32.mrf.mxu3 }
 0x10b   : > { %v8326_v27 = vadd.f32 %v2506_v40, %v2418_v9  ;;  %2819 = vmatmul.bf16.gmra.mxu1 %v8319_v10  ;;  %2557 = vmatmul.bf16.gmra.mxu2 %v8319_v10  ;;  %v2421_v9 = vadd.f32 %v8250_v7, %v2420_v21  ;;  %v7086_v40 = vld [vmem:[#allocation7 + $0x228] sm:$0xff]  ;;  %v1417_v21 = vrot.slane %v8060_v41, 5 }
 0x10c   : > { %3070 = vmatpush.bf16.msra.mxu0 %v7086_v40 }
 0x10d   : > { %10383 = vst [vmem:[#allocation33_spill] sm:$0xff] %v8326_v27  ;;  %v2469_v59 = vpop.f32.mrf.mxu1  ;;  %v1697_v27 = vunpack.c.l.b16 %v1414_v60 }
 0x10e   : > { %v8334_v4 = vadd.f32 %v2469_v59, %v2381_v16 }
 0x10f   : > { %v2422_v11 = vpop.f32.mrf.mxu2  ;;  %v8344_v59 = vpack.c.b16 %v1697_v27, %v1696_v61 }
 0x110   : > { %v2423_v16 = vadd.f32 %v8250_v7, %v2422_v11 }
 0x111   : > { %v2385_v8 = vpop.f32.mrf.mxu0 }
 0x112   : > { %v2509_v30 = vpop.f32.mrf.mxu3 }
 0x113   : > { %v8341_v36 = vadd.f32 %v2509_v30, %v2421_v9  ;;  %v1419_v9 = vrot.slane %v1417_v21, 4  ;;  %v2386_v30 = vadd.f32 %v8250_v7, %v2385_v8 }
 0x115   : > { %2740 = vmatmul.bf16.gmra.mxu0 %v8168_v23  ;;  %v8354_v11 = vpop.f32.mrf.mxu1  ;;  %v1421_v27 = vsel %vm8230_vm14, %v1419_v9, %v1420_v25  ;;  %v1424_v23 = vrot.slane %v8131_v32, 5  ;;  %v1427_v32 = vrot.slane %v8189_v37, 5 }
 0x116   : > { %v1699_v40 = vunpack.c.l.b16 %v1421_v27 }
 0x117   : > { %v1426_v27 = vrot.slane %v1424_v23, 4 }
 0x118   : > { %v2425_v28 = vpop.f32.mrf.mxu2 }
 0x119   : > { %v2387_v41 = vpop.f32.mrf.mxu0  ;;  %v2426_v20 = vadd.f32 %v8250_v7, %v2425_v28 }
 0x11a   : > { %2646 = vmatmul.bf16.gmra.mxu3 %v8016_v15  ;;  %v2511_v55 = vpop.f32.mrf.mxu3  ;;  %v1418_v15 = vsel %vm8230_vm14, %v6242_v50, %v1417_v21  ;;  %v7069_v21 = vld [vmem:[#allocation7 + $0x1a0] sm:$0xff]  ;;  %v2388_v8 = vadd.f32 %v8250_v7, %v2387_v41  ;;  %v1428_v41 = vsel %vm8230_vm14, %v1426_v27, %v1427_v32 }
 0x11b   : > { %v8349_v31 = vadd.f32 %v2511_v55, %v2423_v16  ;;  %2824 = vmatmul.bf16.gmra.mxu1 %v8344_v59  ;;  %2562 = vmatmul.bf16.gmra.mxu2 %v8344_v59  ;;  %v1698_v60 = vunpack.c.l.b16 %v1418_v15  ;;  %v7077_v50 = vld [vmem:[#allocation7 + $0x1e0] sm:$0xff]  ;;  %v6243_v15 = vrot.slane %v8141_v52, 9 }
 0x11c   : > { %2893 = vmatpush.bf16.msra.mxu2 %v7069_v21  ;;  %2982 = vmatpush.bf16.msra.mxu3 %v7077_v50  ;;  %v1701_v50 = vunpack.c.l.b16 %v1428_v41 }
 0x11d   : > { %10384 = vst [vmem:[#allocation34_spill] sm:$0xff] %v8349_v31  ;;  %v8363_v55 = vpack.c.b16 %v1699_v40, %v1698_v60 }
 0x120   : > { %v2427_v61 = vpop.f32.mrf.mxu2 }
 0x121   : > { %v2390_v39 = vpop.f32.mrf.mxu0  ;;  %v2428_v40 = vadd.f32 %v8250_v7, %v2427_v61 }
 0x125   : > { %2745 = vmatmul.bf16.gmra.mxu0 %v8218_v35 }
 0x126   : > { %v2474_v16 = vpop.f32.mrf.mxu1 }
 0x127   : > { %v8365_v31 = vadd.f32 %v2474_v16, %v2386_v30  ;;  %v1425_v16 = vsel %vm8230_vm14, %v6243_v15, %v1424_v23  ;;  %v1431_v15 = vrot.slane %v8210_v12, 5 }
 0x128   : > { %v1700_v37 = vunpack.c.l.b16 %v1425_v16  ;;  %v1434_v16 = vrot.slane %v8234_v48, 5 }
 0x129   : > { %v2514_v9 = vpop.f32.mrf.mxu3  ;;  %v2430_v28 = vpop.f32.mrf.mxu2 }
 0x12a   : > { %2651 = vmatmul.bf16.gmra.mxu3 %v8085_v33  ;;  %v8370_v25 = vadd.f32 %v2514_v9, %v2426_v20  ;;  %v2392_v33 = vpop.f32.mrf.mxu0  ;;  %v7085_v20 = vld [vmem:[#allocation7 + $0x220] sm:$0xff]  ;;  %v2391_v9 = vadd.f32 %v8250_v7, %v2390_v39 }
 0x12b   : > { %2829 = vmatmul.bf16.gmra.mxu1 %v8363_v55  ;;  %2567 = vmatmul.bf16.gmra.mxu2 %v8363_v55  ;;  %v2393_v39 = vadd.f32 %v8250_v7, %v2392_v33 }
 0x12c   : > { %10385 = vst [vmem:[#allocation35_spill] sm:$0xff] %v8370_v25  ;;  %3071 = vmatpush.bf16.msra.mxu0 %v7085_v20 }
 0x12e   : > { %v2476_v60 = vpop.f32.mrf.mxu1 }
 0x12f   : > { %v8378_v30 = vadd.f32 %v2476_v60, %v2388_v8  ;;  %v2431_v8 = vadd.f32 %v8250_v7, %v2430_v28  ;;  %v8388_v60 = vpack.c.b16 %v1701_v50, %v1700_v37  ;;  %v1433_v28 = vrot.slane %v1431_v15, 4 }
 0x131   : > { %v2516_v52 = vpop.f32.mrf.mxu3  ;;  %v2432_v35 = vpop.f32.mrf.mxu2  ;;  %v1435_v33 = vsel %vm8230_vm14, %v1433_v28, %v1434_v16  ;;  %v7068_v28 = vld [vmem:[#allocation7 + $0x198] sm:$0xff] }
 0x132   : > { %v8384_v21 = vadd.f32 %v2516_v52, %v2428_v40  ;;  %v2395_v25 = vpop.f32.mrf.mxu0  ;;  %v6244_v40 = vrot.slane %v8198_v56, 9  ;;  %v1703_v48 = vunpack.c.l.b16 %v1435_v33  ;;  %v7076_v16 = vld [vmem:[#allocation7 + $0x1d8] sm:$0xff]  ;;  %2894 = vmatpush.bf16.msra.mxu2 %v7068_v28 }
 0x133   : > { %2983 = vmatpush.bf16.msra.mxu3 %v7076_v16 }
 0x134   : > { %v1432_v37 = vsel %vm8230_vm14, %v6244_v40, %v1431_v15  ;;  %v7288_v15 = vld [vmem:[#allocation2 + $0x64] sm:$0xf] }
 0x135   : > { %2750 = vmatmul.bf16.gmra.mxu0 %v8258_v53  ;;  %v1438_v40 = vrot.slane %v7288_v15, 5 }
 0x136   : > { %v2479_v61 = vpop.f32.mrf.mxu1 }
 0x137   : > { %v8390_v23 = vadd.f32 %v2479_v61, %v2391_v9  ;;  %v1702_v9 = vunpack.c.l.b16 %v1432_v37  ;;  %v2396_v61 = vadd.f32 %v8250_v7, %v2395_v25 }
 0x139   : > { %v2519_v27 = vpop.f32.mrf.mxu3 }
 0x13a   : > { %2656 = vmatmul.bf16.gmra.mxu3 %v8159_v44  ;;  %v8395_v32 = vadd.f32 %v2519_v27, %v2431_v8  ;;  %v2397_v12 = vpop.f32.mrf.mxu0  ;;  %v2433_v44 = vadd.f32 %v8250_v7, %v2432_v35 }
 0x13b   : > { %2834 = vmatmul.bf16.gmra.mxu1 %v8388_v60  ;;  %2572 = vmatmul.bf16.gmra.mxu2 %v8388_v60  ;;  %v2398_v25 = vadd.f32 %v8250_v7, %v2397_v12 }
 0x13c   : > { %10386 = vst [vmem:[#allocation36_spill] sm:$0xff] %v8395_v32  ;;  %v2435_v41 = vpop.f32.mrf.mxu2  ;;  %v7291_v32 = vld [vmem:[#allocation2 + $0x70] sm:$0xf] }
 0x13d   : > { %v2436_v35 = vadd.f32 %v8250_v7, %v2435_v41  ;;  %v7289_v41 = vld [vmem:[#allocation2 + $0x60] sm:$0xf] }
 0x13e   : > { %v2481_v20 = vpop.f32.mrf.mxu1  ;;  %v6245_v33 = vrot.slane %v7289_v41, 9 }
 0x13f   : > { %v8403_v52 = vadd.f32 %v2481_v20, %v2393_v39  ;;  %v8413_v39 = vpack.c.b16 %v1703_v48, %v1702_v9 }
 0x140   : > { %v1439_v28 = vsel %vm8230_vm14, %v6245_v33, %v1438_v40 }
 0x141   : > { %v2521_v50 = vpop.f32.mrf.mxu3  ;;  %10388 = vst [vmem:[#allocation38_spill] sm:$0xff] %v8413_v39  ;;  %v1704_v16 = vunpack.c.l.b16 %v1439_v28 }
 0x142   : > { %v8409_v56 = vadd.f32 %v2521_v50, %v2433_v44  ;;  %v2400_v27 = vpop.f32.mrf.mxu0  ;;  %v7290_v50 = vld [vmem:[#allocation2 + $0x68] sm:$0x1] }
 0x143   : > { %v1441_v9 = vrot.slane %v7290_v50, 5 }
 0x144   : > { %10387 = vst [vmem:[#allocation37_spill] sm:$0xff] %v8409_v56  ;;  %v2437_v8 = vpop.f32.mrf.mxu2 }
 0x145   : > { %2755 = vmatmul.bf16.gmra.mxu0 %v7805_v58 }
 0x146   : > { %v2484_v53 = vpop.f32.mrf.mxu1 }
 0x147   : > { %v8415_v20 = vadd.f32 %v2484_v53, %v2396_v61  ;;  %v1440_v53 = vrot.slane %v1438_v40, 4  ;;  %v2438_v61 = vadd.f32 %v8250_v7, %v2437_v8  ;;  %v8436_v40 = vld [vmem:[#allocation2 + $0x60] sm:$0xff] }
 0x148   : > { %10391 = vst [vmem:[#allocation41_spill] sm:$0xff] %v8436_v40 }
 0x149   : > { %v1442_v12 = vsel %vm8230_vm14, %v1440_v53, %v1441_v9  ;;  %v7293_v9 = vld [vmem:[#allocation2 + $0x6c] sm:$0xf] }
 0x14a   : > { %2661 = vmatmul.bf16.gmra.mxu3 %v8215_v3  ;;  %v2524_v44 = vpop.f32.mrf.mxu3  ;;  %v2402_v3 = vpop.f32.mrf.mxu0  ;;  %v1705_v50 = vunpack.c.l.b16 %v1442_v12  ;;  %v7294_v12 = vld [vmem:[#allocation2 + $0x74] sm:$0x1] }
 0x14b   : > { %v8419_v37 = vadd.f32 %v2524_v44, %v2436_v35  ;;  %2839 = vmatmul.bf16.gmra.mxu1 %v8413_v39  ;;  %2577 = vmatmul.bf16.gmra.mxu2 %v8413_v39  ;;  %v7084_v44 = vld [vmem:[#allocation7 + $0x218] sm:$0xff]  ;;  %v1445_v39 = vrot.slane %v7291_v32, 5  ;;  %v2403_v32 = vadd.f32 %v8250_v7, %v2402_v3  ;;  %v2368_v3 = vadd.f32 %v8250_v7, %v8265_v54  ;;  %v7067_v54 = vld [vmem:[#allocation7 + $0x190] sm:$0xff] }
 0x14c   : > { %3072 = vmatpush.bf16.msra.mxu0 %v7084_v44  ;;  %v8434_v8 = vpack.c.b16 %v1705_v50, %v1704_v16  ;;  %v1448_v44 = vrot.slane %v7294_v12, 5  ;;  %2895 = vmatpush.bf16.msra.mxu2 %v7067_v54 }
 0x14d   : > { %10389 = vst [vmem:[#allocation39_spill] sm:$0xff] %v8419_v37  ;;  %v2401_v37 = vadd.f32 %v8250_v7, %v2400_v27  ;;  %v1447_v28 = vrot.slane %v1445_v39, 4 }
 0x14e   : > { %v2486_v48 = vpop.f32.mrf.mxu1  ;;  %v2440_v35 = vpop.f32.mrf.mxu2 }
 0x14f   : > { %v8425_v15 = vadd.f32 %v2486_v48, %v2398_v25  ;;  %v2441_v53 = vadd.f32 %v8250_v7, %v2440_v35 }
 0x152   : > { %v2526_v41 = vpop.f32.mrf.mxu3  ;;  %v2721_v56 = vpop.f32.mrf.mxu0 }
 0x153   : > { %v8431_v58 = vadd.f32 %v2526_v41, %v2438_v61  ;;  %v6246_v61 = vrot.slane %v7293_v9, 9  ;;  %v1449_v9 = vsel %vm8230_vm14, %v1447_v28, %v1448_v44 }
 0x155   : > { %10390 = vst [vmem:[#allocation40_spill] sm:$0xff] %v8431_v58  ;;  %2760 = vmatmul.bf16.gmra.mxu0 %v7843_v14 }
 0x156   : > { %v2442_v48 = vpop.f32.mrf.mxu2 }
 0x158   : > { %v2489_v25 = vpop.f32.mrf.mxu1 }
 0x159   : > { %v8439_v33 = vadd.f32 %v2489_v25, %v2401_v37  ;;  %v7114_v37 = vld [vmem:[#allocation9 + $0x38] sm:$0xff]  ;;  %v1446_v25 = vsel %vm8230_vm14, %v6246_v61, %v1445_v39  ;;  %v2457_v39 = vadd.f32 %v8273_v0, %v2368_v3  ;;  %v7297_v0 = vld [vmem:[#allocation2 + $0x78] sm:$0xf] }
 0x15a   : > { %2666 = vmatmul.bf16.gmra.mxu3 %v8436_v40  ;;  %v2723_v16 = vpop.f32.mrf.mxu0  ;;  %5219 = vmatpush.bf16.msra.mxu1 %v7114_v37  ;;  %v1706_v12 = vunpack.c.l.b16 %v1446_v25 }
 0x15b   : > { %2844 = vmatmul.bf16.gmra.mxu1 %v8434_v8  ;;  %2582 = vmatmul.bf16.gmra.mxu2 %v8434_v8 }
 0x15d   : > { %v2529_v27 = vpop.f32.mrf.mxu3 }
 0x15e   : > { %v8444_v41 = vadd.f32 %v2529_v27, %v2441_v53  ;;  %v2543_v50 = vpop.f32.mrf.mxu2  ;;  %v2443_v53 = vadd.f32 %v8250_v7, %v2442_v48 }
 0x15f   : > { %v2544_v27 = vadd.f32 %v2543_v50, %v8261_v24  ;;  %v7075_v50 = vld [vmem:[#allocation7 + $0x1d0] sm:$0xff] }
 0x160   : > { %10392 = vst [vmem:[#allocation42_spill] sm:$0xff] %v8444_v41  ;;  %v2491_v35 = vpop.f32.mrf.mxu1  ;;  %v1707_v41 = vunpack.c.l.b16 %v1449_v9  ;;  %2984 = vmatpush.bf16.msra.mxu3 %v7075_v50 }
 0x161   : > { %v8452_v14 = vadd.f32 %v2491_v35, %v2403_v32  ;;  %v7295_v32 = vld [vmem:[#allocation2 + $0x7c] sm:$0xf]  ;;  %v8465_v35 = vld [vmem:[#allocation2 + $0x6c] sm:$0xff] }
 0x162   : > { %v8460_v40 = vpop.f32.mrf.mxu0  ;;  %v8463_v61 = vpack.c.b16 %v1707_v41, %v1706_v12  ;;  %v1452_v48 = vrot.slane %v7295_v32, 5  ;;  %10395 = vst [vmem:[#allocation45_spill] sm:$0xff] %v8465_v35  ;;  %v6247_v41 = vrot.slane %v7297_v0, 9 }
 0x164   : > { %10394 = vst [vmem:[#allocation44_spill] sm:$0xff] %v8463_v61  ;;  %v1454_v9 = vrot.slane %v1452_v48, 4 }
 0x165   : > { %v2531_v37 = vpop.f32.mrf.mxu3  ;;  %2765 = vmatmul.bf16.gmra.mxu0 %v7913_v62  ;;  %v1453_v62 = vsel %vm8230_vm14, %v6247_v41, %v1452_v48 }
 0x166   : > { %v8458_v58 = vadd.f32 %v2531_v37, %v2443_v53  ;;  %v2545_v44 = vpop.f32.mrf.mxu2  ;;  %v7298_v53 = vld [vmem:[#allocation2 + $0x80] sm:$0x1]  ;;  %v1708_v50 = vunpack.c.l.b16 %v1453_v62 }
 0x167   : > { %v2546_v24 = vadd.f32 %v2545_v44, %v2457_v39  ;;  %v1455_v3 = vrot.slane %v7298_v53, 5 }
 0x168   : > { %10393 = vst [vmem:[#allocation43_spill] sm:$0xff] %v8458_v58  ;;  %v2810_v28 = vpop.f32.mrf.mxu1 }
 0x169   : > { %v1456_v54 = vsel %vm8230_vm14, %v1454_v9, %v1455_v3  ;;  %v7299_v3 = vld [vmem:[#allocation2 + $0x88] sm:$0xf] }
 0x16a   : > { %2671 = vmatmul.bf16.gmra.mxu3 %v8465_v35  ;;  %v2728_v37 = vpop.f32.mrf.mxu0  ;;  %v7083_v35 = vld [vmem:[#allocation7 + $0x210] sm:$0xff] }
 0x16b   : > { %2849 = vmatmul.bf16.gmra.mxu1 %v8463_v61  ;;  %2587 = vmatmul.bf16.gmra.mxu2 %v8463_v61 }
 0x16c   : > { %3073 = vmatpush.bf16.msra.mxu0 %v7083_v35 }
 0x16d   : > { %v2632_v25 = vpop.f32.mrf.mxu3 }
 0x16e   : > { %v2633_v12 = vadd.f32 %v2632_v25, %v2544_v27  ;;  %v2548_v44 = vpop.f32.mrf.mxu2  ;;  %v2373_v27 = vadd.f32 %v8250_v7, %v8283_v2  ;;  %v1709_v25 = vunpack.c.l.b16 %v1456_v54 }
 0x16f   : > { %v2549_v0 = vadd.f32 %v2548_v44, %v8280_v38  ;;  %v1459_v38 = vrot.slane %v7299_v3, 5  ;;  %v7302_v44 = vld [vmem:[#allocation2 + $0x8c] sm:$0x1] }
 0x170   : > { %v2722_v32 = vadd.f32 %v2721_v56, %v2633_v12  ;;  %v2812_v39 = vpop.f32.mrf.mxu1  ;;  %v2462_v48 = vadd.f32 %v8291_v18, %v2373_v27  ;;  %v8483_v61 = vpack.c.b16 %v1709_v25, %v1708_v50  ;;  %v7301_v18 = vld [vmem:[#allocation2 + $0x84] sm:$0xf]  ;;  %v1462_v54 = vrot.slane %v7302_v44, 5 }
 0x171   : > { %v7113_v50 = vld [vmem:[#allocation9 + $0x30] sm:$0xff] }
 0x172   : > { %v8475_v58 = vadd.f32 %v2810_v28, %v2722_v32  ;;  %v8480_v12 = vpop.f32.mrf.mxu0  ;;  %v8485_v32 = vld [vmem:[#allocation2 + $0x78] sm:$0xff]  ;;  %5220 = vmatpush.bf16.msra.mxu1 %v7113_v50 }
 0x175   : > { %v2634_v56 = vpop.f32.mrf.mxu3  ;;  %2770 = vmatmul.bf16.gmra.mxu0 %v7975_v45 }
 0x176   : > { %v2635_v53 = vadd.f32 %v2634_v56, %v2546_v24  ;;  %v2550_v9 = vpop.f32.mrf.mxu2  ;;  %v1461_v24 = vrot.slane %v1459_v38, 4 }
 0x177   : > { %v2551_v2 = vadd.f32 %v2550_v9, %v2462_v48 }
 0x178   : > { %v2724_v41 = vadd.f32 %v2723_v16, %v2635_v53  ;;  %v2815_v28 = vpop.f32.mrf.mxu1  ;;  %v6248_v16 = vrot.slane %v7301_v18, 9 }
 0x17a   : > { %2676 = vmatmul.bf16.gmra.mxu3 %v8485_v32  ;;  %v8488_v62 = vadd.f32 %v2812_v39, %v2724_v41  ;;  %v2733_v25 = vpop.f32.mrf.mxu0  ;;  %v1460_v48 = vsel %vm8230_vm14, %v6248_v16, %v1459_v38  ;;  %v1463_v41 = vsel %vm8230_vm14, %v1461_v24, %v1462_v54 }
 0x17b   : > { %2854 = vmatmul.bf16.gmra.mxu1 %v8483_v61  ;;  %2592 = vmatmul.bf16.gmra.mxu2 %v8483_v61  ;;  %v1711_v18 = vunpack.c.l.b16 %v1463_v41 }
 0x17d   : > { %v2637_v35 = vpop.f32.mrf.mxu3 }
 0x17e   : > { %v2638_v27 = vadd.f32 %v2637_v35, %v2549_v0  ;;  %v2553_v53 = vpop.f32.mrf.mxu2  ;;  %v2378_v0 = vadd.f32 %v8250_v7, %v8307_v63  ;;  %v1710_v35 = vunpack.c.l.b16 %v1460_v48 }
 0x17f   : > { %v2554_v3 = vadd.f32 %v2553_v53, %v8305_v26  ;;  %v7074_v53 = vld [vmem:[#allocation7 + $0x1c8] sm:$0xff] }
 0x180   : > { %v2727_v56 = vadd.f32 %v8460_v40, %v2638_v27  ;;  %v2817_v39 = vpop.f32.mrf.mxu1  ;;  %v2467_v50 = vadd.f32 %v8316_v51, %v2378_v0  ;;  %v8506_v38 = vpack.c.b16 %v1711_v18, %v1710_v35  ;;  %v7306_v0 = vld [vmem:[#allocation2 + $0x98] sm:$0x1]  ;;  %2985 = vmatpush.bf16.msra.mxu3 %v7074_v53 }
 0x181   : > { %v1469_v35 = vrot.slane %v7306_v0, 5  ;;  %v7082_v53 = vld [vmem:[#allocation7 + $0x208] sm:$0xff] }
 0x182   : > { %v8498_v9 = vadd.f32 %v2815_v28, %v2727_v56  ;;  %v8503_v27 = vpop.f32.mrf.mxu0  ;;  %v7303_v28 = vld [vmem:[#allocation2 + $0x94] sm:$0xf]  ;;  %v8508_v56 = vld [vmem:[#allocation2 + $0x84] sm:$0xff]  ;;  %3074 = vmatpush.bf16.msra.mxu0 %v7082_v53 }
 0x183   : > { %v1466_v54 = vrot.slane %v7303_v28, 5 }
 0x185   : > { %v2639_v44 = vpop.f32.mrf.mxu3  ;;  %2775 = vmatmul.bf16.gmra.mxu0 %v8093_v13  ;;  %v1468_v41 = vrot.slane %v1466_v54, 4 }
 0x186   : > { %v2640_v40 = vadd.f32 %v2639_v44, %v2551_v2  ;;  %v2555_v24 = vpop.f32.mrf.mxu2  ;;  %v7066_v2 = vld [vmem:[#allocation7 + $0x188] sm:$0xff] }
 0x187   : > { %v2556_v63 = vadd.f32 %v2555_v24, %v2467_v50  ;;  %2896 = vmatpush.bf16.msra.mxu2 %v7066_v2  ;;  %v1470_v24 = vsel %vm8230_vm14, %v1468_v41, %v1469_v35  ;;  %v7307_v35 = vld [vmem:[#allocation2 + $0xa0] sm:$0xf] }
 0x188   : > { %v2729_v45 = vadd.f32 %v2728_v37, %v2640_v40  ;;  %v2820_v16 = vpop.f32.mrf.mxu1  ;;  %v7305_v37 = vld [vmem:[#allocation2 + $0x90] sm:$0xf] }
 0x189   : > { %v6249_v48 = vrot.slane %v7305_v37, 9  ;;  %v1713_v37 = vunpack.c.l.b16 %v1470_v24  ;;  %v310_v24 = vld [vmem:[%s7674_s16 + $0xf8] sm:$0xff] }
 0x18a   : > { %2681 = vmatmul.bf16.gmra.mxu3 %v8508_v56  ;;  %v8511_v26 = vadd.f32 %v2817_v39, %v2729_v45  ;;  %v8516_v45 = vpop.f32.mrf.mxu0  ;;  %v451_v53 = vpack.c.bf16 %v310_v24, %v310_v24 }
 0x18b   : > { %2859 = vmatmul.bf16.gmra.mxu1 %v8506_v38  ;;  %2597 = vmatmul.bf16.gmra.mxu2 %v8506_v38  ;;  %v1467_v50 = vsel %vm8230_vm14, %v6249_v48, %v1466_v54 }
 0x18c   : > { %10396 = vst [vmem:[#allocation46_spill] sm:$0xff] %v8511_v26  ;;  %v721_v13 = vshll.u32 %v451_v53, 16 }
 0x18d   : > { %v2642_v51 = vpop.f32.mrf.mxu3 }
 0x18e   : > { %v2643_v18 = vadd.f32 %v2642_v51, %v2554_v3  ;;  %v2558_v40 = vpop.f32.mrf.mxu2  ;;  %v2383_v3 = vadd.f32 %v8250_v7, %v8332_v22  ;;  %v1712_v51 = vunpack.c.l.b16 %v1467_v50  ;;  %v309_v50 = vld [vmem:[%s7674_s16 + $0xf0] sm:$0xff] }
 0x18f   : > { %v2559_v2 = vadd.f32 %v2558_v40, %v8334_v4  ;;  %v8533_v40 = vld [vmem:[#allocation2 + $0x90] sm:$0xff] }
 0x190   : > { %v2732_v39 = vadd.f32 %v8480_v12, %v2643_v18  ;;  %v2822_v44 = vpop.f32.mrf.mxu1  ;;  %v2472_v54 = vadd.f32 %v8354_v11, %v2383_v3  ;;  %10398 = vst [vmem:[#allocation48_spill] sm:$0xff] %v8533_v40 }
 0x192   : > { %v8523_v28 = vadd.f32 %v2820_v16, %v2732_v39  ;;  %v8528_v18 = vpop.f32.mrf.mxu0  ;;  %v8531_v16 = vpack.c.b16 %v1713_v37, %v1712_v51  ;;  %v1473_v39 = vrot.slane %v7307_v35, 5  ;;  %v7309_v51 = vld [vmem:[#allocation2 + $0x9c] sm:$0xf]  ;;  %v718_v35 = vshrl.u32 %v451_v53, 16 }
 0x193   : > { %v6250_v37 = vrot.slane %v7309_v51, 9 }
 0x194   : > { %10397 = vst [vmem:[#allocation47_spill] sm:$0xff] %v8523_v28  ;;  %v720_v51 = vrot.slane %v718_v35, 7 }
 0x195   : > { %v2644_v12 = vpop.f32.mrf.mxu3  ;;  %2780 = vmatmul.bf16.gmra.mxu0 %v8154_v57  ;;  %v417_v57 = vld [vmem:[#allocation2 + $0xc8] sm:$0x1] }
 0x196   : > { %v2645_v0 = vadd.f32 %v2644_v12, %v2556_v63  ;;  %v2560_v4 = vpop.f32.mrf.mxu2  ;;  %v367_v63 = vld [vmem:[#allocation2 + $0xc0] sm:$0x1]  ;;  %v1475_v12 = vrot.slane %v1473_v39, 4 }
 0x197   : > { %v2561_v22 = vadd.f32 %v2560_v4, %v2472_v54  ;;  %v368_v11 = vsel %vm7686_vm3, 0, %v367_v63  ;;  %v418_v63 = vsel %vm7692_vm4, 0, %v417_v57 }
 0x198   : > { %v2734_v48 = vadd.f32 %v2733_v25, %v2645_v0  ;;  %v2825_v41 = vpop.f32.mrf.mxu1  ;;  %369 = vst [vmem:[#allocation2 + $0xc0] sm:$0x1] %v368_v11  ;;  %v450_v25 = vpack.c.bf16 %v309_v50, %v309_v50 }
 0x199   : > { %419 = vst [vmem:[#allocation2 + $0xc8] sm:$0x1] %v418_v63 }
 0x19a   : > { %2686 = vmatmul.bf16.gmra.mxu3 %v8533_v40  ;;  %v8536_v7 = vadd.f32 %v2822_v44, %v2734_v48  ;;  %v7310_v44 = vld [vmem:[#allocation2 + $0xa4] sm:$0x1]  ;;  %v7112_v48 = vld [vmem:[#allocation9 + $0x28] sm:$0xff]  ;;  %v710_v4 = vshrl.u32 %v450_v25, 16  ;;  %v713_v11 = vshll.u32 %v450_v25, 16 }
 0x19b   : > { %2864 = vmatmul.bf16.gmra.mxu1 %v8531_v16  ;;  %v1476_v0 = vrot.slane %v7310_v44, 5  ;;  %2602 = vmatmul.bf16.gmra.mxu2 %v8531_v16 }
 0x19c   : > { %10399 = vst [vmem:[#allocation49_spill] sm:$0xff] %v8536_v7  ;;  %v8545_v7 = vpop.f32.mrf.mxu0  ;;  %5221 = vmatpush.bf16.msra.mxu1 %v7112_v48  ;;  %v712_v24 = vrot.slane %v710_v4, 7 }
 0x19d   : > { %v2647_v3 = vpop.f32.mrf.mxu3  ;;  %v1477_v28 = vsel %vm8230_vm14, %v1475_v12, %v1476_v0  ;;  %v725_v12 = vrot.slane %v720_v51, 4 }
 0x19e   : > { %v2648_v54 = vadd.f32 %v2647_v3, %v2559_v2  ;;  %v2563_v2 = vpop.f32.mrf.mxu2  ;;  %v1474_v3 = vsel %vm8230_vm14, %v6250_v37, %v1473_v39  ;;  %v715_v40 = vor.u32 %v713_v11, %v712_v24  ;;  %v1715_v4 = vunpack.c.l.b16 %v1477_v28 }
 0x19f   : > { %v2564_v57 = vadd.f32 %v2563_v2, %v8365_v31  ;;  %v881_v48 = vld [vmem:[#allocation2 + $0xc0] sm:$0xf]  ;;  %v1714_v25 = vunpack.c.l.b16 %v1474_v3  ;;  %v7073_v2 = vld [vmem:[#allocation7 + $0x1c0] sm:$0xff] }
 0x1a0   : > { %v2737_v50 = vadd.f32 %v8503_v27, %v2648_v54  ;;  %v2827_v44 = vpop.f32.mrf.mxu1  ;;  %v716_v27 = vrot.slane %v712_v24, 4  ;;  %v723_v54 = vor.u32 %v721_v13, %v720_v51  ;;  %v882_v39 = vsel %vm7712_vm10, %v715_v40, %v881_v48  ;;  %v885_v31 = vld [vmem:[#allocation2 + $0xc8] sm:$0x1]  ;;  %v7311_v24 = vld [vmem:[#allocation2 + $0xac] sm:$0xf]  ;;  %v8568_v40 = vld [vmem:[#allocation2 + $0x9c] sm:$0xff]  ;;  %2986 = vmatpush.bf16.msra.mxu3 %v7073_v2 }
 0x1a1   : > { %883 = vst [vmem:[#allocation2 + $0xc0] sm:$0xf] %v882_v39  ;;  %v8564_v13 = vpack.c.b16 %v1715_v4, %v1714_v25  ;;  %v886_v28 = vsel %vm7686_vm3, %v725_v12, %v885_v31  ;;  %v1480_v11 = vrot.slane %v7311_v24, 5  ;;  %v7314_v25 = vld [vmem:[#allocation2 + $0xb0] sm:$0x1] }
 0x1a2   : > { %v8554_v26 = vadd.f32 %v2825_v41, %v2737_v50  ;;  %v724_v63 = vsel %vm7705_vm9, %v716_v27, %v723_v54  ;;  %887 = vst [vmem:[#allocation2 + $0xc8] sm:$0x1] %v886_v28  ;;  %v7313_v27 = vld [vmem:[#allocation2 + $0xa8] sm:$0xf]  ;;  %v1483_v4 = vrot.slane %v7314_v25, 5 }
 0x1a3   : > { %884 = vst [vmem:[#allocation2 + $0xc4] sm:$0xf] %v724_v63  ;;  %v6251_v54 = vrot.slane %v7313_v27, 9  ;;  %v1482_v48 = vrot.slane %v1480_v11, 4 }
 0x1a4   : > { %10400 = vst [vmem:[#allocation50_spill] sm:$0xff] %v8554_v26  ;;  %v8561_v41 = vpop.f32.mrf.mxu0 }
 0x1a5   : > { %v2649_v35 = vpop.f32.mrf.mxu3  ;;  %10401 = vst [vmem:[#allocation51_spill] sm:$0xff] %v8568_v40  ;;  %2785 = vmatmul.bf16.gmra.mxu0 %v8212_v47  ;;  %v1484_v24 = vsel %vm8230_vm14, %v1482_v48, %v1483_v4 }
 0x1a6   : > { %v2650_v37 = vadd.f32 %v2649_v35, %v2561_v22  ;;  %v2565_v50 = vpop.f32.mrf.mxu2 }
 0x1a7   : > { %v2566_v51 = vadd.f32 %v2565_v50, %v8378_v30 }
 0x1a8   : > { %v2739_v53 = vadd.f32 %v8516_v45, %v2650_v37  ;;  %v2830_v0 = vpop.f32.mrf.mxu1  ;;  %v7065_v45 = vld [vmem:[#allocation7 + $0x180] sm:$0xff]  ;;  %v8576_v35 = vld [vmem:[#allocation2 + $0xc0] sm:$0xf] }
 0x1a9   : > { %2897 = vmatpush.bf16.msra.mxu2 %v7065_v45  ;;  %v1493_v39 = vshrl.u32 %v8576_v35, 16  ;;  %v1496_v37 = vshll.u32 %v8576_v35, 16 }
 0x1aa   : > { %2691 = vmatmul.bf16.gmra.mxu3 %v8568_v40  ;;  %v8571_v22 = vadd.f32 %v2827_v44, %v2739_v53  ;;  %v8579_v30 = vld [vmem:[#allocation2 + $0xc4] sm:$0xf] }
 0x1ab   : > { %2869 = vmatmul.bf16.gmra.mxu1 %v8564_v13  ;;  %2607 = vmatmul.bf16.gmra.mxu2 %v8564_v13  ;;  %v1502_v12 = vshll.u32 %v8579_v30, 16  ;;  %v1506_v53 = vshrl.u32 %v8579_v30, 16  ;;  %v1495_v27 = vrot.slane %v1493_v39, 4  ;;  %v1498_v25 = vrot.slane %v1496_v37, 5 }
 0x1ac   : > { %10402 = vst [vmem:[#allocation52_spill] sm:$0xff] %v8571_v22  ;;  %v8581_v63 = vpop.f32.mrf.mxu0  ;;  %v1717_v22 = vunpack.c.l.b16 %v1484_v24 }
 0x1ad   : > { %v2652_v3 = vpop.f32.mrf.mxu3  ;;  %v1504_v47 = vrot.slane %v1502_v12, 5  ;;  %v7315_v12 = vld [vmem:[#allocation2 + $0xb8] sm:$0xf] }
 0x1ae   : > { %v2653_v44 = vadd.f32 %v2652_v3, %v2564_v57  ;;  %v2568_v50 = vpop.f32.mrf.mxu2  ;;  %v1481_v57 = vsel %vm8230_vm14, %v6251_v54, %v1480_v11  ;;  %v7081_v3 = vld [vmem:[#allocation7 + $0x200] sm:$0xff]  ;;  %v1499_v54 = vor.u32 %v1498_v25, %v1495_v27 }
 0x1af   : > { %v2569_v2 = vadd.f32 %v2568_v50, %v8390_v23  ;;  %3075 = vmatpush.bf16.msra.mxu0 %v7081_v3  ;;  %v7318_v3 = vld [vmem:[#allocation2 + $0xbc] sm:$0x1] }
 0x1b0   : > { %v2742_v31 = vadd.f32 %v8528_v18, %v2653_v44  ;;  %v8588_v28 = vpop.f32.mrf.mxu1  ;;  %v1508_v18 = vrot.slane %v1506_v53, 4  ;;  %v1716_v44 = vunpack.c.l.b16 %v1481_v57  ;;  %v8607_v53 = vld [vmem:[#allocation2 + $0xa8] sm:$0xff]  ;;  %v1490_v27 = vrot.slane %v7318_v3, 5 }
 0x1b1   : > { %10403 = vst [vmem:[#allocation53_spill] sm:$0xff] %v8588_v28  ;;  %v8597_v28 = vld [vmem:[#allocation2 + $0xc8] sm:$0x1] }
 0x1b2   : > { %v8594_v45 = vadd.f32 %v2830_v0, %v2742_v31  ;;  %v1509_v48 = vor.u32 %v1508_v18, %v1504_v47  ;;  %v1512_v0 = vshll.u32 %v8597_v28, 16  ;;  %v8605_v4 = vpack.c.b16 %v1717_v22, %v1716_v44  ;;  %v7111_v18 = vld [vmem:[#allocation9 + $0x20] sm:$0xff] }
 0x1b3   : > { %v1487_v31 = vrot.slane %v7315_v12, 5  ;;  %5222 = vmatpush.bf16.msra.mxu1 %v7111_v18 }
 0x1b4   : > { %v8599_v11 = vpop.f32.mrf.mxu0  ;;  %v1510_v50 = vrot.slane %v1509_v48, 4  ;;  %v1514_v57 = vrot.slane %v1512_v0, 5 }
 0x1b5   : > { %v2654_v26 = vpop.f32.mrf.mxu3  ;;  %2790 = vmatmul.bf16.gmra.mxu0 %v8254_v17  ;;  %v1489_v24 = vrot.slane %v1487_v31, 4 }
 0x1b6   : > { %v2655_v40 = vadd.f32 %v2654_v26, %v2566_v51  ;;  %v2570_v37 = vpop.f32.mrf.mxu2  ;;  %v1500_v51 = vrot.slane %v1499_v54, 4  ;;  %v1515_v54 = vsel %vm7728_vm11, %v1510_v50, %v1514_v57 }
 0x1b7   : > { %v2571_v26 = vadd.f32 %v2570_v37, %v8403_v52 }
 0x1b8   : > { %v8603_v23 = vadd.f32 %v8545_v7, %v2655_v40  ;;  %v2835_v39 = vpop.f32.mrf.mxu1  ;;  %v7317_v40 = vld [vmem:[#allocation2 + $0xb4] sm:$0xf]  ;;  %v1505_v52 = vsel %vm7728_vm11, %v1500_v51, %v1504_v47  ;;  %v1757_v51 = vunpack.c.l.b16 %v1515_v54  ;;  %v1524_v54 = vrot.slane %v8597_v28, 5 }
 0x1b9   : > { %v6252_v22 = vrot.slane %v7317_v40, 9  ;;  %v1756_v47 = vunpack.c.l.b16 %v1505_v52 }
 0x1ba   : > { %2696 = vmatmul.bf16.gmra.mxu3 %v8607_v53 }
 0x1bb   : > { %2874 = vmatmul.bf16.gmra.mxu1 %v8605_v4  ;;  %2612 = vmatmul.bf16.gmra.mxu2 %v8605_v4  ;;  %v1488_v12 = vsel %vm8230_vm14, %v6252_v22, %v1487_v31 }
 0x1bc   : > { %v2753_v44 = vpop.f32.mrf.mxu0  ;;  %v1718_v3 = vunpack.c.l.b16 %v1488_v12 }
 0x1bd   : > { %v2657_v7 = vpop.f32.mrf.mxu3 }
 0x1be   : > { %v2658_v25 = vadd.f32 %v2657_v7, %v2569_v2  ;;  %v2573_v37 = vpop.f32.mrf.mxu2  ;;  %v1491_v2 = vsel %vm8230_vm14, %v1489_v24, %v1490_v27  ;;  %v8636_v27 = vld [vmem:[#allocation2 + $0xb4] sm:$0xff] }
 0x1bf   : > { %v2574_v40 = vadd.f32 %v2573_v37, %v8415_v20  ;;  %v1719_v50 = vunpack.c.l.b16 %v1491_v2 }
 0x1c0   : > { %v2747_v48 = vadd.f32 %v8561_v41, %v2658_v25  ;;  %v8619_v0 = vpop.f32.mrf.mxu1  ;;  %v8628_v25 = vpack.c.b16 %v1757_v51, %v1756_v47 }
 0x1c1   : > { %v8633_v31 = vpack.c.b16 %v1719_v50, %v1718_v3 }
 0x1c2   : > { %v8625_v7 = vadd.f32 %v2835_v39, %v2747_v48  ;;  %v1521_v39 = vrot.slane %v8579_v30, 5 }
 0x1c4   : > { %v2756_v18 = vpop.f32.mrf.mxu0  ;;  %v1523_v52 = vrot.slane %v1521_v39, 4 }
 0x1c5   : > { %v2659_v57 = vpop.f32.mrf.mxu3  ;;  %2795 = vmatmul.bf16.gmra.mxu0 %v8628_v25 }
 0x1c6   : > { %v2660_v41 = vadd.f32 %v2659_v57, %v2571_v26  ;;  %v2575_v24 = vpop.f32.mrf.mxu2  ;;  %v1525_v47 = vsel %vm8230_vm14, %v1523_v52, %v1524_v54  ;;  %v8655_v57 = vld [vmem:[#allocation2 + $0xc0] sm:$0xff] }
 0x1c7   : > { %v2576_v20 = vadd.f32 %v2575_v24, %v8425_v15 }
 0x1c8   : > { %v8631_v1 = vadd.f32 %v8581_v63, %v2660_v41  ;;  %v2840_v22 = vpop.f32.mrf.mxu1  ;;  %v6253_v63 = vrot.slane %v8576_v35, 9 }
 0x1ca   : > { %2701 = vmatmul.bf16.gmra.mxu3 %v8636_v27  ;;  %v1522_v15 = vsel %vm8230_vm14, %v6253_v63, %v1521_v39 }
 0x1cb   : > { %2879 = vmatmul.bf16.gmra.mxu1 %v8633_v31  ;;  %2617 = vmatmul.bf16.gmra.mxu2 %v8633_v31  ;;  %v1760_v28 = vunpack.c.l.b16 %v1522_v15 }
 0x1cc   : > { %v2758_v30 = vpop.f32.mrf.mxu0 }
 0x1cd   : > { %v2662_v26 = vpop.f32.mrf.mxu3 }
 0x1ce   : > { %v2663_v48 = vadd.f32 %v2662_v26, %v2574_v40  ;;  %v2578_v2 = vpop.f32.mrf.mxu2  ;;  %v1761_v40 = vunpack.c.l.b16 %v1525_v47 }
 0x1cf   : > { %v2579_v35 = vadd.f32 %v2578_v2, %v8439_v33 }
 0x1d0   : > { %v2752_v37 = vadd.f32 %v8599_v11, %v2663_v48  ;;  %v8646_v12 = vpop.f32.mrf.mxu1  ;;  %v8659_v24 = vpack.c.b16 %v1761_v40, %v1760_v28 }
 0x1d2   : > { %v8652_v51 = vadd.f32 %v2840_v22, %v2752_v37 }
 0x1d4   : > { %v2761_v11 = vpop.f32.mrf.mxu0 }
 0x1d5   : > { %v2664_v3 = vpop.f32.mrf.mxu3  ;;  %3076 = vmatmul.bf16.vlgmr.msra.gmra.mxu0 %v8294_v19 }
 0x1d6   : > { %v2665_v50 = vadd.f32 %v2664_v3, %v2576_v20  ;;  %v2580_v39 = vpop.f32.mrf.mxu2  ;;  %v7110_v20 = vld [vmem:[#allocation9 + $0x18] sm:$0xff] }
 0x1d7   : > { %v2581_v22 = vadd.f32 %v2580_v39, %v8452_v14  ;;  %5223 = vmatpush.bf16.msra.mxu1 %v7110_v20 }
 0x1d8   : > { %v8657_v41 = vadd.f32 %v2753_v44, %v2665_v50  ;;  %v2845_v26 = vpop.f32.mrf.mxu1  ;;  %v10405_v50 = vld [vmem:[#allocation32_spill] sm:$0xff] }
 0x1da   : > { %2706 = vmatmul.bf16.gmra.mxu3 %v8655_v57 }
 0x1db   : > { %2884 = vmatmul.bf16.gmra.mxu1 %v8659_v24  ;;  %2898 = vmatmul.bf16.vlgmr.msra.gmra.mxu2 %v8296_v46  ;;  %v10404_v46 = vld [vmem:[#allocation28_spill] sm:$0xff] }
 0x1dc   : > { %v2763_v52 = vpop.f32.mrf.mxu0 }
 0x1dd   : > { %v2667_v33 = vpop.f32.mrf.mxu3 }
 0x1de   : > { %v2668_v63 = vadd.f32 %v2667_v33, %v2579_v35  ;;  %v2583_v48 = vpop.f32.mrf.mxu2 }
 0x1df   : > { %v2584_v2 = vadd.f32 %v2583_v48, %v8271_v29 }
 0x1e0   : > { %v2757_v44 = vadd.f32 %v2756_v18, %v2668_v63  ;;  %v8666_v54 = vpop.f32.mrf.mxu1 }
 0x1e2   : > { %v8668_v37 = vadd.f32 %v2845_v26, %v2757_v44 }
 0x1e4   : > { %v2766_v19 = vpop.f32.mrf.mxu0 }
 0x1e5   : > { %v2669_v14 = vpop.f32.mrf.mxu3  ;;  %3081 = vmatmul.bf16.gmra.mxu0 %v8319_v10 }
 0x1e6   : > { %v2670_v15 = vadd.f32 %v2669_v14, %v2581_v22  ;;  %v2585_v35 = vpop.f32.mrf.mxu2 }
 0x1e7   : > { %v2586_v40 = vadd.f32 %v2585_v35, %v10404_v46 }
 0x1e8   : > { %v8671_v47 = vadd.f32 %v2758_v30, %v2670_v15  ;;  %v2850_v28 = vpop.f32.mrf.mxu1  ;;  %v10406_v30 = vld [vmem:[#allocation29_spill] sm:$0xff]  ;;  %v10407_v15 = vld [vmem:[#allocation19_spill] sm:$0xff] }
 0x1ea   : > { %2987 = vmatmul.bf16.vlgmr.msra.gmra.mxu3 %v7918_v49 }
 0x1eb   : > { %2903 = vmatmul.bf16.gmra.mxu2 %v10405_v50 }
 0x1ec   : > { %v2768_v26 = vpop.f32.mrf.mxu0 }
 0x1ed   : > { %v2672_v18 = vpop.f32.mrf.mxu3 }
 0x1ee   : > { %v2673_v3 = vadd.f32 %v2672_v18, %v2584_v2  ;;  %v2588_v22 = vpop.f32.mrf.mxu2  ;;  %v10408_v2 = vld [vmem:[#allocation30_spill] sm:$0xff] }
 0x1ef   : > { %v2589_v63 = vadd.f32 %v2588_v22, %v10406_v30  ;;  %v7320_v18 = vld [vmem:[#allocation2 + $0x30] sm:$0xff]  ;;  %v10410_v22 = vld [vmem:[#allocation31_spill] sm:$0xff] }
 0x1f0   : > { %v2762_v39 = vadd.f32 %v2761_v11, %v2673_v3  ;;  %v8677_v29 = vpop.f32.mrf.mxu1 }
 0x1f2   : > { %v8679_v33 = vadd.f32 %v2850_v28, %v2762_v39  ;;  %v7109_v28 = vld [vmem:[#allocation9 + $0x10] sm:$0xff] }
 0x1f3   : > { %5224 = vmatpush.bf16.msra.mxu1 %v7109_v28  ;;  %v7321_v28 = vld [vmem:[#allocation2 + $0x3c] sm:$0xff] }
 0x1f4   : > { %v2771_v49 = vpop.f32.mrf.mxu0 }
 0x1f5   : > { %v2674_v20 = vpop.f32.mrf.mxu3  ;;  %3086 = vmatmul.bf16.gmra.mxu0 %v8344_v59 }
 0x1f6   : > { %v2675_v44 = vadd.f32 %v2674_v20, %v2586_v40  ;;  %v2590_v10 = vpop.f32.mrf.mxu2 }
 0x1f7   : > { %v2591_v35 = vadd.f32 %v2590_v10, %v10408_v2  ;;  %v10411_v2 = vld [vmem:[#allocation21_spill] sm:$0xff] }
 0x1f8   : > { %v8682_v48 = vadd.f32 %v2763_v52, %v2675_v44  ;;  %v2855_v14 = vpop.f32.mrf.mxu1 }
 0x1fa   : > { %2992 = vmatmul.bf16.gmra.mxu3 %v10407_v15 }
 0x1fb   : > { %2908 = vmatmul.bf16.gmra.mxu2 %v7320_v18 }
 0x1fc   : > { %v2773_v3 = vpop.f32.mrf.mxu0 }
 0x1fd   : > { %v2677_v11 = vpop.f32.mrf.mxu3 }
 0x1fe   : > { %v2678_v46 = vadd.f32 %v2677_v11, %v2589_v63  ;;  %v2593_v52 = vpop.f32.mrf.mxu2  ;;  %v10412_v11 = vld [vmem:[#allocation33_spill] sm:$0xff] }
 0x1ff   : > { %v2594_v30 = vadd.f32 %v2593_v52, %v10410_v22 }
 0x200   : > { %v2767_v50 = vadd.f32 %v2766_v19, %v2678_v46  ;;  %v8687_v40 = vpop.f32.mrf.mxu1 }
 0x201   : > { %10409 = vst [vmem:[#allocation28_spill] sm:$0xff] %v8687_v40 }
 0x202   : > { %v8689_v39 = vadd.f32 %v2855_v14, %v2767_v50 }
 0x204   : > { %v2776_v10 = vpop.f32.mrf.mxu0 }
 0x205   : > { %v2679_v20 = vpop.f32.mrf.mxu3  ;;  %3091 = vmatmul.bf16.gmra.mxu0 %v8363_v55 }
 0x206   : > { %v2680_v44 = vadd.f32 %v2679_v20, %v2591_v35  ;;  %v2595_v63 = vpop.f32.mrf.mxu2 }
 0x207   : > { %v2596_v18 = vadd.f32 %v2595_v63, %v10412_v11  ;;  %v10414_v11 = vld [vmem:[#allocation23_spill] sm:$0xff] }
 0x208   : > { %v8692_v15 = vadd.f32 %v2768_v26, %v2680_v44  ;;  %v2860_v59 = vpop.f32.mrf.mxu1 }
 0x20a   : > { %2997 = vmatmul.bf16.gmra.mxu3 %v10411_v2 }
 0x20b   : > { %2913 = vmatmul.bf16.gmra.mxu2 %v7321_v28  ;;  %v7322_v28 = vld [vmem:[#allocation2 + $0x48] sm:$0xff] }
 0x20c   : > { %v2778_v14 = vpop.f32.mrf.mxu0 }
 0x20d   : > { %v2682_v19 = vpop.f32.mrf.mxu3 }
 0x20e   : > { %v2683_v46 = vadd.f32 %v2682_v19, %v2594_v30  ;;  %v2598_v35 = vpop.f32.mrf.mxu2  ;;  %v10415_v30 = vld [vmem:[#allocation34_spill] sm:$0xff] }
 0x20f   : > { %v2599_v26 = vadd.f32 %v2598_v35, %v8341_v36 }
 0x210   : > { %v2772_v50 = vadd.f32 %v2771_v49, %v2683_v46  ;;  %v8697_v52 = vpop.f32.mrf.mxu1 }
 0x211   : > { %10413 = vst [vmem:[#allocation32_spill] sm:$0xff] %v8697_v52 }
 0x212   : > { %v8699_v22 = vadd.f32 %v2860_v59, %v2772_v50  ;;  %v7108_v59 = vld [vmem:[#allocation9 + $0x8] sm:$0xff] }
 0x213   : > { %5225 = vmatpush.bf16.msra.mxu1 %v7108_v59 }
 0x214   : > { %v2781_v2 = vpop.f32.mrf.mxu0 }
 0x215   : > { %v2684_v20 = vpop.f32.mrf.mxu3  ;;  %3096 = vmatmul.bf16.gmra.mxu0 %v8388_v60 }
 0x216   : > { %v2685_v44 = vadd.f32 %v2684_v20, %v2596_v18  ;;  %v2600_v55 = vpop.f32.mrf.mxu2  ;;  %v10418_v20 = vld [vmem:[#allocation35_spill] sm:$0xff] }
 0x217   : > { %v2601_v19 = vadd.f32 %v2600_v55, %v10415_v30 }
 0x218   : > { %v8702_v40 = vadd.f32 %v2773_v3, %v2685_v44  ;;  %v2865_v63 = vpop.f32.mrf.mxu1 }
 0x21a   : > { %3002 = vmatmul.bf16.gmra.mxu3 %v10414_v11 }
 0x21b   : > { %2918 = vmatmul.bf16.gmra.mxu2 %v7322_v28 }
 0x21c   : > { %v2783_v50 = vpop.f32.mrf.mxu0 }
 0x21d   : > { %v2687_v49 = vpop.f32.mrf.mxu3 }
 0x21e   : > { %v2688_v46 = vadd.f32 %v2687_v49, %v2599_v26  ;;  %v2603_v3 = vpop.f32.mrf.mxu2  ;;  %v10420_v49 = vld [vmem:[#allocation25_spill] sm:$0xff] }
 0x21f   : > { %v2604_v44 = vadd.f32 %v2603_v3, %v10418_v20 }
 0x220   : > { %v2777_v36 = vadd.f32 %v2776_v10, %v2688_v46  ;;  %v8707_v18 = vpop.f32.mrf.mxu1  ;;  %v10421_v10 = vld [vmem:[#allocation38_spill] sm:$0xff] }
 0x221   : > { %10416 = vst [vmem:[#allocation29_spill] sm:$0xff] %v8707_v18  ;;  %v7323_v18 = vld [vmem:[#allocation2 + $0x54] sm:$0xff] }
 0x222   : > { %v8709_v35 = vadd.f32 %v2865_v63, %v2777_v36 }
 0x224   : > { %10417 = vst [vmem:[#allocation19_spill] sm:$0xff] %v8709_v35  ;;  %v2786_v55 = vpop.f32.mrf.mxu0 }
 0x225   : > { %v2689_v11 = vpop.f32.mrf.mxu3  ;;  %3101 = vmatmul.bf16.gmra.mxu0 %v10421_v10  ;;  %v10425_v10 = vld [vmem:[#allocation27_spill] sm:$0xff] }
 0x226   : > { %v2690_v52 = vadd.f32 %v2689_v11, %v2601_v19  ;;  %v2605_v26 = vpop.f32.mrf.mxu2 }
 0x227   : > { %v2606_v28 = vadd.f32 %v2605_v26, %v8384_v21 }
 0x228   : > { %v8712_v30 = vadd.f32 %v2778_v14, %v2690_v52  ;;  %v2870_v60 = vpop.f32.mrf.mxu1  ;;  %v10423_v14 = vld [vmem:[#allocation36_spill] sm:$0xff] }
 0x22a   : > { %10419 = vst [vmem:[#allocation30_spill] sm:$0xff] %v8712_v30  ;;  %3007 = vmatmul.bf16.gmra.mxu3 %v10420_v49 }
 0x22b   : > { %2923 = vmatmul.bf16.gmra.mxu2 %v7323_v18 }
 0x22c   : > { %v2788_v63 = vpop.f32.mrf.mxu0 }
 0x22d   : > { %v2692_v46 = vpop.f32.mrf.mxu3 }
 0x22e   : > { %v2693_v59 = vadd.f32 %v2692_v46, %v2604_v44  ;;  %v2608_v19 = vpop.f32.mrf.mxu2  ;;  %v10426_v44 = vld [vmem:[#allocation37_spill] sm:$0xff] }
 0x22f   : > { %v2609_v52 = vadd.f32 %v2608_v19, %v10423_v14  ;;  %v10429_v14 = vld [vmem:[#allocation39_spill] sm:$0xff] }
 0x230   : > { %v2782_v36 = vadd.f32 %v2781_v2, %v2693_v59  ;;  %v8717_v3 = vpop.f32.mrf.mxu1  ;;  %v10427_v59 = vld [vmem:[#allocation41_spill] sm:$0xff] }
 0x231   : > { %10422 = vst [vmem:[#allocation31_spill] sm:$0xff] %v8717_v3 }
 0x232   : > { %v8719_v20 = vadd.f32 %v2870_v60, %v2782_v36  ;;  %v7107_v60 = vld [vmem:[#allocation9] sm:$0xff] }
 0x233   : > { %5226 = vmatpush.bf16.msra.mxu1 %v7107_v60 }
 0x234   : > { %v2791_v49 = vpop.f32.mrf.mxu0 }
 0x235   : > { %v2694_v11 = vpop.f32.mrf.mxu3  ;;  %3106 = vmatmul.bf16.gmra.mxu0 %v8434_v8 }
 0x236   : > { %v2695_v30 = vadd.f32 %v2694_v11, %v2606_v28  ;;  %v2610_v26 = vpop.f32.mrf.mxu2 }
 0x237   : > { %v2611_v18 = vadd.f32 %v2610_v26, %v10426_v44 }
 0x238   : > { %v8722_v35 = vadd.f32 %v2783_v50, %v2695_v30  ;;  %v2875_v21 = vpop.f32.mrf.mxu1 }
 0x23a   : > { %10424 = vst [vmem:[#allocation21_spill] sm:$0xff] %v8722_v35  ;;  %3012 = vmatmul.bf16.gmra.mxu3 %v10425_v10  ;;  %v10432_v35 = vld [vmem:[#allocation44_spill] sm:$0xff] }
 0x23b   : > { %2928 = vmatmul.bf16.gmra.mxu2 %v10427_v59 }
 0x23c   : > { %v2793_v36 = vpop.f32.mrf.mxu0 }
 0x23d   : > { %v2697_v2 = vpop.f32.mrf.mxu3 }
 0x23e   : > { %v2698_v46 = vadd.f32 %v2697_v2, %v2609_v52  ;;  %v2613_v50 = vpop.f32.mrf.mxu2  ;;  %v10430_v52 = vld [vmem:[#allocation15_spill] sm:$0xff]  ;;  %v10431_v2 = vld [vmem:[#allocation40_spill] sm:$0xff] }
 0x23f   : > { %v2614_v11 = vadd.f32 %v2613_v50, %v10429_v14 }
 0x240   : > { %v2787_v19 = vadd.f32 %v2786_v55, %v2698_v46  ;;  %v8728_v28 = vpop.f32.mrf.mxu1 }
 0x241   : > { %10428 = vst [vmem:[#allocation33_spill] sm:$0xff] %v8728_v28  ;;  %v10433_v28 = vld [vmem:[#allocation45_spill] sm:$0xff] }
 0x242   : > { %v8730_v30 = vadd.f32 %v2875_v21, %v2787_v19 }
 0x244   : > { %v2796_v26 = vpop.f32.mrf.mxu0 }
 0x245   : > { %v2699_v10 = vpop.f32.mrf.mxu3  ;;  %3111 = vmatmul.bf16.gmra.mxu0 %v10432_v35 }
 0x246   : > { %v2700_v3 = vadd.f32 %v2699_v10, %v2611_v18  ;;  %v2615_v8 = vpop.f32.mrf.mxu2  ;;  %v10434_v18 = vld [vmem:[#allocation42_spill] sm:$0xff] }
 0x247   : > { %v2616_v59 = vadd.f32 %v2615_v8, %v10431_v2  ;;  %v7089_v2 = vld [vmem:[#allocation3] sm:$0xff] }
 0x248   : > { %v8733_v44 = vadd.f32 %v2788_v63, %v2700_v3  ;;  %v2880_v55 = vpop.f32.mrf.mxu1  ;;  %v3197_v3 = vld [vmem:[#allocation3 + $0xc] sm:$0x1]  ;;  %5227 = vmatmul.bf16.vlgmr.msra.gmra.mxu1 %v7089_v2  ;;  %v3200_v2 = vld [vmem:[#allocation3 + $0x18] sm:$0x1] }
 0x249   : > { %v3198_v10 = vsel %vm7686_vm3, 0, %v3197_v3 }
 0x24a   : > { %3017 = vmatmul.bf16.gmra.mxu3 %v10430_v52  ;;  %3199 = vst [vmem:[#allocation3 + $0xc] sm:$0x1] %v3198_v10 }
 0x24b   : > { %2933 = vmatmul.bf16.gmra.mxu2 %v10433_v28  ;;  %v10436_v28 = vld [vmem:[#allocation16_spill] sm:$0xff] }
 0x24c   : > { %v2798_v21 = vpop.f32.mrf.mxu0 }
 0x24d   : > { %v2702_v46 = vpop.f32.mrf.mxu3 }
 0x24e   : > { %v2703_v60 = vadd.f32 %v2702_v46, %v2614_v11  ;;  %v2618_v50 = vpop.f32.mrf.mxu2 }
 0x24f   : > { %v2619_v63 = vadd.f32 %v2618_v50, %v10434_v18 }
 0x250   : > { %v2792_v19 = vadd.f32 %v2791_v49, %v2703_v60  ;;  %v8744_v52 = vpop.f32.mrf.mxu1 }
 0x251   : > { %10435 = vst [vmem:[#allocation23_spill] sm:$0xff] %v8744_v52  ;;  %v7130_v52 = vld [vmem:[#allocation9 + $0xb8] sm:$0xff] }
 0x252   : > { %v8739_v14 = vadd.f32 %v2880_v55, %v2792_v19  ;;  %v10437_v55 = vld [vmem:[#allocation43_spill] sm:$0xff]  ;;  %v3245_v19 = vld [vmem:[#allocation3 + $0x14] sm:$0x1]  ;;  %5397 = vmatpush.bf16.msrb.mxu3 %v7130_v52 }
 0x253   : > { %v3246_v18 = vsel %vm7692_vm4, 0, %v3245_v19 }
 0x254   : > { %v3077_v11 = vpop.f32.mrf.mxu0  ;;  %3247 = vst [vmem:[#allocation3 + $0x14] sm:$0x1] %v3246_v18  ;;  %v3248_v18 = vld [vmem:[#allocation3 + $0x20] sm:$0x1] }
 0x255   : > { %v2704_v8 = vpop.f32.mrf.mxu3  ;;  %3116 = vmatmul.bf16.gmra.mxu0 %v8483_v61  ;;  %v3201_v61 = vsel %vm7686_vm3, 0, %v3200_v2 }
 0x256   : > { %v2705_v35 = vadd.f32 %v2704_v8, %v2616_v59  ;;  %v2620_v49 = vpop.f32.mrf.mxu2  ;;  %3202 = vst [vmem:[#allocation3 + $0x18] sm:$0x1] %v3201_v61 }
 0x257   : > { %v2621_v60 = vadd.f32 %v2620_v49, %v10437_v55  ;;  %v7122_v55 = vld [vmem:[#allocation9 + $0x78] sm:$0xff] }
 0x258   : > { %v8746_v46 = vadd.f32 %v2793_v36, %v2705_v35  ;;  %v2885_v59 = vpop.f32.mrf.mxu1  ;;  %5308 = vmatpush.bf16.msrb.mxu2 %v7122_v55 }
 0x25a   : > { %3022 = vmatmul.bf16.gmra.mxu3 %v10436_v28 }
 0x25b   : > { %2938 = vmatmul.bf16.gmra.mxu2 %v8485_v32 }
 0x25c   : > { %v3079_v36 = vpop.f32.mrf.mxu0 }
 0x25d   : > { %v2707_v50 = vpop.f32.mrf.mxu3 }
 0x25e   : > { %v2708_v3 = vadd.f32 %v2707_v50, %v2619_v63  ;;  %v2899_v8 = vpop.f32.mrf.mxu2  ;;  %v10440_v50 = vld [vmem:[#allocation17_spill] sm:$0xff] }
 0x260   : > { %v2797_v10 = vadd.f32 %v2796_v26, %v2708_v3  ;;  %v2900_v26 = vadd.f32 %v2899_v8, %v8475_v58  ;;  %v3203_v8 = vld [vmem:[#allocation3 + $0x24] sm:$0x1] }
 0x261   : > { %v3204_v55 = vsel %vm7686_vm3, 0, %v3203_v8 }
 0x262   : > { %v8754_v35 = vadd.f32 %v2885_v59, %v2797_v10  ;;  %v7138_v59 = vld [vmem:[#allocation9 + $0xf8] sm:$0xff]  ;;  %3205 = vst [vmem:[#allocation3 + $0x24] sm:$0x1] %v3204_v55  ;;  %v10442_v55 = vld [vmem:[#allocation48_spill] sm:$0xff] }
 0x263   : > { %v7146_v10 = vld [vmem:[#allocation9 + $0x138] sm:$0xff]  ;;  %5486 = vmatpush.bf16.msrb.mxu0 %v7138_v59 }
 0x264   : > { %10438 = vst [vmem:[#allocation34_spill] sm:$0xff] %v8754_v35  ;;  %v3082_v19 = vpop.f32.mrf.mxu0  ;;  %5575 = vmatpush.bf16.msrb.mxu1 %v7146_v10  ;;  %v3645_v10 = vld [vmem:[#allocation3 + $0xc] sm:$0xf] }
 0x265   : > { %v2709_v28 = vpop.f32.mrf.mxu3  ;;  %3121 = vmatmul.bf16.gmra.mxu0 %v8506_v38 }
 0x266   : > { %v2710_v49 = vadd.f32 %v2709_v28, %v2621_v60  ;;  %v2901_v32 = vpop.f32.mrf.mxu2  ;;  %v3249_v60 = vsel %vm7692_vm4, 0, %v3248_v18 }
 0x267   : > { %3250 = vst [vmem:[#allocation3 + $0x20] sm:$0x1] %v3249_v60  ;;  %v2902_v58 = vadd.f32 %v2901_v32, %v8488_v62 }
 0x268   : > { %v8758_v63 = vadd.f32 %v2798_v21, %v2710_v49 }
 0x26a   : > { %10439 = vst [vmem:[#allocation35_spill] sm:$0xff] %v8758_v63  ;;  %3027 = vmatmul.bf16.gmra.mxu3 %v10440_v50  ;;  %v7124_v63 = vld [vmem:[#allocation9 + $0x88] sm:$0xff] }
 0x26b   : > { %2943 = vmatmul.bf16.gmra.mxu2 %v8508_v56 }
 0x26c   : > { %v3084_v21 = vpop.f32.mrf.mxu0 }
 0x26d   : > { %v2988_v3 = vpop.f32.mrf.mxu3 }
 0x26e   : > { %v2989_v2 = vadd.f32 %v2988_v3, %v2900_v26  ;;  %v2904_v28 = vpop.f32.mrf.mxu2 }
 0x26f   : > { %v2905_v62 = vadd.f32 %v2904_v28, %v8498_v9 }
 0x270   : > { %v3078_v52 = vadd.f32 %v3077_v11, %v2989_v2 }
 0x272   : > { %v3157_v61 = vmax.f32 %v3078_v52, 0.0  ;;  %v10441_v52 = vld [vmem:[#allocation18_spill] sm:$0xff] }
 0x274   : > { %v3293_v38 = vpack.c.bf16 %v3157_v61, %v3157_v61  ;;  %v8769_v26 = vpop.f32.mrf.mxu0 }
 0x275   : > { %v2990_v49 = vpop.f32.mrf.mxu3  ;;  %3126 = vmatmul.bf16.gmra.mxu0 %v8531_v16 }
 0x276   : > { %v3326_v50 = vshrl.u32 %v3293_v38, 16  ;;  %v2991_v18 = vadd.f32 %v2990_v49, %v2902_v58  ;;  %v3329_v3 = vshll.u32 %v3293_v38, 16  ;;  %v2906_v11 = vpop.f32.mrf.mxu2  ;;  %v3251_v58 = vld [vmem:[#allocation3 + $0x2c] sm:$0x1] }
 0x278   : > { %v3328_v56 = vrot.slane %v3326_v50, 7  ;;  %v3080_v59 = vadd.f32 %v3079_v36, %v2991_v18  ;;  %v3252_v36 = vsel %vm7692_vm4, 0, %v3251_v58 }
 0x279   : > { %3253 = vst [vmem:[#allocation3 + $0x2c] sm:$0x1] %v3252_v36  ;;  %v3206_v36 = vld [vmem:[#allocation3 + $0x30] sm:$0x1] }
 0x27a   : > { %v3331_v60 = vor.u32 %v3329_v3, %v3328_v56  ;;  %v3158_v2 = vmax.f32 %v3080_v59, 0.0  ;;  %3032 = vmatmul.bf16.gmra.mxu3 %v10441_v52  ;;  %v3332_v18 = vrot.slane %v3328_v56, 4  ;;  %v3649_v3 = vld [vmem:[#allocation3 + $0x14] sm:$0x1]  ;;  %v10443_v52 = vld [vmem:[#allocation46_spill] sm:$0xff] }
 0x27b   : > { %2948 = vmatmul.bf16.gmra.mxu2 %v10442_v55  ;;  %v7129_v55 = vld [vmem:[#allocation9 + $0xb0] sm:$0xff] }
 0x27c   : > { %v3646_v32 = vsel %vm7712_vm10, %v3331_v60, %v3645_v10  ;;  %v3294_v61 = vpack.c.bf16 %v3158_v2, %v3158_v2  ;;  %v8779_v50 = vpop.f32.mrf.mxu0  ;;  %5398 = vmatpush.bf16.msrb.mxu3 %v7129_v55 }
 0x27d   : > { %3647 = vst [vmem:[#allocation3 + $0xc] sm:$0xf] %v3646_v32  ;;  %v2993_v8 = vpop.f32.mrf.mxu3  ;;  %v2907_v32 = vadd.f32 %v2906_v11, %v10443_v52  ;;  %v10445_v52 = vld [vmem:[#allocation47_spill] sm:$0xff] }
 0x27e   : > { %v3334_v38 = vshrl.u32 %v3294_v61, 16  ;;  %v2994_v49 = vadd.f32 %v2993_v8, %v2905_v62  ;;  %v3337_v28 = vshll.u32 %v3294_v61, 16  ;;  %v2909_v59 = vpop.f32.mrf.mxu2 }
 0x280   : > { %v3336_v9 = vrot.slane %v3334_v38, 7  ;;  %v3083_v16 = vadd.f32 %v3082_v19, %v2994_v49  ;;  %v3207_v19 = vsel %vm7686_vm3, 0, %v3206_v36  ;;  %v7121_v49 = vld [vmem:[#allocation9 + $0x70] sm:$0xff] }
 0x281   : > { %3208 = vst [vmem:[#allocation3 + $0x30] sm:$0x1] %v3207_v19  ;;  %5309 = vmatpush.bf16.msrb.mxu2 %v7121_v49  ;;  %v7145_v19 = vld [vmem:[#allocation9 + $0x130] sm:$0xff] }
 0x282   : > { %v3339_v10 = vor.u32 %v3337_v28, %v3336_v9  ;;  %v3341_v60 = vrot.slane %v3336_v9, 4  ;;  %v3159_v2 = vmax.f32 %v3083_v16, 0.0  ;;  %5576 = vmatpush.bf16.msrb.mxu1 %v7145_v19  ;;  %v3209_v19 = vld [vmem:[#allocation3 + $0x3c] sm:$0x1] }
 0x284   : > { %v3340_v58 = vsel %vm7705_vm9, %v3332_v18, %v3339_v10  ;;  %v3650_v62 = vsel %vm7686_vm3, %v3341_v60, %v3649_v3  ;;  %v3295_v8 = vpack.c.bf16 %v3159_v2, %v3159_v2  ;;  %v8788_v9 = vpop.f32.mrf.mxu0  ;;  %v3652_v18 = vld [vmem:[#allocation3 + $0x18] sm:$0xf]  ;;  %v10444_v2 = vld [vmem:[#allocation20_spill] sm:$0xff] }
 0x285   : > { %3648 = vst [vmem:[#allocation3 + $0x10] sm:$0xf] %v3340_v58  ;;  %v2995_v38 = vpop.f32.mrf.mxu3  ;;  %v2910_v58 = vadd.f32 %v2909_v59, %v10445_v52  ;;  %3131 = vmatmul.bf16.gmra.mxu0 %v8564_v13  ;;  %v10446_v59 = vld [vmem:[#allocation51_spill] sm:$0xff] }
 0x286   : > { %3651 = vst [vmem:[#allocation3 + $0x14] sm:$0x1] %v3650_v62  ;;  %v3343_v56 = vshrl.u32 %v3295_v8, 16  ;;  %v2996_v61 = vadd.f32 %v2995_v38, %v2907_v32  ;;  %v3346_v28 = vshll.u32 %v3295_v8, 16  ;;  %v2911_v3 = vpop.f32.mrf.mxu2  ;;  %v3254_v8 = vld [vmem:[#allocation3 + $0x38] sm:$0x1] }
 0x287   : > { %v7137_v38 = vld [vmem:[#allocation9 + $0xf0] sm:$0xff] }
 0x288   : > { %v3345_v11 = vrot.slane %v3343_v56, 7  ;;  %v3085_v16 = vadd.f32 %v3084_v21, %v2996_v61  ;;  %v3255_v56 = vsel %vm7692_vm4, 0, %v3254_v8  ;;  %5487 = vmatpush.bf16.msrb.mxu0 %v7137_v38 }
 0x289   : > { %3256 = vst [vmem:[#allocation3 + $0x38] sm:$0x1] %v3255_v56 }
 0x28a   : > { %v3348_v10 = vor.u32 %v3346_v28, %v3345_v11  ;;  %v3160_v60 = vmax.f32 %v3085_v16, 0.0  ;;  %3037 = vmatmul.bf16.gmra.mxu3 %v10444_v2 }
 0x28b   : > { %2953 = vmatmul.bf16.gmra.mxu2 %v10446_v59 }
 0x28c   : > { %v3653_v32 = vsel %vm7712_vm10, %v3348_v10, %v3652_v18  ;;  %v3296_v62 = vpack.c.bf16 %v3160_v60, %v3160_v60  ;;  %v8795_v36 = vld [vmem:[#allocation3 + $0xc] sm:$0xff]  ;;  %v8801_v13 = vpop.f32.mrf.mxu0  ;;  %v3349_v18 = vrot.slane %v3345_v11, 4  ;;  %v3656_v10 = vld [vmem:[#allocation3 + $0x20] sm:$0x1] }
 0x28d   : > { %3654 = vst [vmem:[#allocation3 + $0x18] sm:$0xf] %v3653_v32  ;;  %v2998_v21 = vpop.f32.mrf.mxu3  ;;  %5232 = vmatmul.bf16.gmra.mxu1 %v8795_v36 }
 0x28e   : > { %v3351_v61 = vshrl.u32 %v3296_v62, 16  ;;  %v2999_v49 = vadd.f32 %v2998_v21, %v2910_v58  ;;  %v3354_v28 = vshll.u32 %v3296_v62, 16  ;;  %v2914_v60 = vpop.f32.mrf.mxu2  ;;  %v10447_v58 = vld [vmem:[#allocation49_spill] sm:$0xff] }
 0x28f   : > { %v2912_v8 = vadd.f32 %v2911_v3, %v10447_v58 }
 0x290   : > { %v3353_v55 = vrot.slane %v3351_v61, 7  ;;  %v3088_v16 = vadd.f32 %v8769_v26, %v2999_v49  ;;  %v3210_v26 = vsel %vm7686_vm3, 0, %v3209_v19 }
 0x291   : > { %3211 = vst [vmem:[#allocation3 + $0x3c] sm:$0x1] %v3210_v26 }
 0x292   : > { %v3356_v2 = vor.u32 %v3354_v28, %v3353_v55  ;;  %v3358_v52 = vrot.slane %v3353_v55, 4  ;;  %v3161_v32 = vmax.f32 %v3088_v16, 0.0  ;;  %v3659_v28 = vld [vmem:[#allocation3 + $0x24] sm:$0xf] }
 0x294   : > { %v3357_v21 = vsel %vm7705_vm9, %v3349_v18, %v3356_v2  ;;  %v3657_v56 = vsel %vm7686_vm3, %v3358_v52, %v3656_v10  ;;  %v3297_v38 = vpack.c.bf16 %v3161_v32, %v3161_v32  ;;  %v8811_v49 = vpop.f32.mrf.mxu0  ;;  %v10448_v2 = vld [vmem:[#allocation22_spill] sm:$0xff] }
 0x295   : > { %3655 = vst [vmem:[#allocation3 + $0x1c] sm:$0xf] %v3357_v21  ;;  %v3000_v62 = vpop.f32.mrf.mxu3  ;;  %v10449_v52 = vld [vmem:[#allocation50_spill] sm:$0xff]  ;;  %3136 = vmatmul.bf16.gmra.mxu0 %v8605_v4 }
 0x296   : > { %3658 = vst [vmem:[#allocation3 + $0x20] sm:$0x1] %v3657_v56  ;;  %v3360_v11 = vshrl.u32 %v3297_v38, 16  ;;  %v3001_v61 = vadd.f32 %v3000_v62, %v2912_v8  ;;  %v3363_v59 = vshll.u32 %v3297_v38, 16  ;;  %v2916_v16 = vpop.f32.mrf.mxu2  ;;  %v2915_v32 = vadd.f32 %v2914_v60, %v10449_v52  ;;  %v3257_v56 = vld [vmem:[#allocation3 + $0x44] sm:$0x1] }
 0x298   : > { %v3362_v3 = vrot.slane %v3360_v11, 7  ;;  %v3090_v55 = vadd.f32 %v8779_v50, %v3001_v61  ;;  %v3258_v50 = vsel %vm7692_vm4, 0, %v3257_v56  ;;  %v3212_v56 = vld [vmem:[#allocation3 + $0x48] sm:$0x1] }
 0x299   : > { %3259 = vst [vmem:[#allocation3 + $0x44] sm:$0x1] %v3258_v50  ;;  %v7120_v50 = vld [vmem:[#allocation9 + $0x68] sm:$0xff] }
 0x29a   : > { %v3365_v18 = vor.u32 %v3363_v59, %v3362_v3  ;;  %v3162_v10 = vmax.f32 %v3090_v55, 0.0  ;;  %3042 = vmatmul.bf16.gmra.mxu3 %v10448_v2  ;;  %v3366_v61 = vrot.slane %v3362_v3, 4  ;;  %v3663_v59 = vld [vmem:[#allocation3 + $0x2c] sm:$0x1]  ;;  %5310 = vmatpush.bf16.msrb.mxu2 %v7120_v50 }
 0x29b   : > { %2958 = vmatmul.bf16.gmra.mxu2 %v8607_v53  ;;  %v10450_v2 = vld [vmem:[#allocation52_spill] sm:$0xff] }
 0x29c   : > { %v3660_v58 = vsel %vm7712_vm10, %v3365_v18, %v3659_v28  ;;  %v3298_v8 = vpack.c.bf16 %v3162_v10, %v3162_v10  ;;  %v8819_v21 = vld [vmem:[#allocation3 + $0x18] sm:$0xff]  ;;  %v8825_v4 = vpop.f32.mrf.mxu0  ;;  %v2917_v52 = vadd.f32 %v2916_v16, %v10450_v2 }
 0x29d   : > { %3661 = vst [vmem:[#allocation3 + $0x24] sm:$0xf] %v3660_v58  ;;  %v3003_v38 = vpop.f32.mrf.mxu3  ;;  %5237 = vmatmul.bf16.gmra.mxu1 %v8819_v21 }
 0x29e   : > { %v3368_v19 = vshrl.u32 %v3298_v8, 16  ;;  %v3004_v62 = vadd.f32 %v3003_v38, %v2915_v32  ;;  %v3371_v26 = vshll.u32 %v3298_v8, 16  ;;  %v2919_v55 = vpop.f32.mrf.mxu2 }
 0x2a0   : > { %v3370_v60 = vrot.slane %v3368_v19, 7  ;;  %v3093_v11 = vadd.f32 %v8788_v9, %v3004_v62  ;;  %v3213_v9 = vsel %vm7686_vm3, 0, %v3212_v56  ;;  %v7128_v19 = vld [vmem:[#allocation9 + $0xa8] sm:$0xff] }
 0x2a1   : > { %3214 = vst [vmem:[#allocation3 + $0x48] sm:$0x1] %v3213_v9  ;;  %5399 = vmatpush.bf16.msrb.mxu3 %v7128_v19  ;;  %v7144_v56 = vld [vmem:[#allocation9 + $0x128] sm:$0xff] }
 0x2a2   : > { %v3373_v28 = vor.u32 %v3371_v26, %v3370_v60  ;;  %v3375_v18 = vrot.slane %v3370_v60, 4  ;;  %v3163_v10 = vmax.f32 %v3093_v11, 0.0  ;;  %v3666_v11 = vld [vmem:[#allocation3 + $0x30] sm:$0xf]  ;;  %5577 = vmatpush.bf16.msrb.mxu1 %v7144_v56 }
 0x2a4   : > { %v3374_v32 = vsel %vm7705_vm9, %v3366_v61, %v3373_v28  ;;  %v3664_v53 = vsel %vm7686_vm3, %v3375_v18, %v3663_v59  ;;  %v3299_v58 = vpack.c.bf16 %v3163_v10, %v3163_v10  ;;  %v8835_v62 = vpop.f32.mrf.mxu0  ;;  %v10451_v18 = vld [vmem:[#allocation24_spill] sm:$0xff]  ;;  %v2920_v10 = vadd.f32 %v2919_v55, %v8594_v45 }
 0x2a5   : > { %3662 = vst [vmem:[#allocation3 + $0x28] sm:$0xf] %v3374_v32  ;;  %v3005_v8 = vpop.f32.mrf.mxu3  ;;  %3141 = vmatmul.bf16.gmra.mxu0 %v8633_v31  ;;  %v10452_v31 = vld [vmem:[#allocation53_spill] sm:$0xff] }
 0x2a6   : > { %3665 = vst [vmem:[#allocation3 + $0x2c] sm:$0x1] %v3664_v53  ;;  %v3377_v3 = vshrl.u32 %v3299_v58, 16  ;;  %v3006_v38 = vadd.f32 %v3005_v8, %v2917_v52  ;;  %v3380_v60 = vshll.u32 %v3299_v58, 16  ;;  %v2921_v61 = vpop.f32.mrf.mxu2  ;;  %v3260_v53 = vld [vmem:[#allocation3 + $0x50] sm:$0x1]  ;;  %v2833_v55 = vadd.f32 %v10452_v31, %v8603_v23 }
 0x2a7   : > { %v7136_v58 = vld [vmem:[#allocation9 + $0xe8] sm:$0xff]  ;;  %v3261_v8 = vsel %vm7692_vm4, 0, %v3260_v53  ;;  %v939_v23 = vld [vmem:[#allocation2 + $0xcc] sm:$0xf] }
 0x2a8   : > { %v3379_v16 = vrot.slane %v3377_v3, 7  ;;  %v3095_v26 = vadd.f32 %v8801_v13, %v3006_v38  ;;  %3262 = vst [vmem:[#allocation3 + $0x50] sm:$0x1] %v3261_v8  ;;  %5488 = vmatpush.bf16.msrb.mxu0 %v7136_v58  ;;  %v8860_v58 = vld [vmem:[#allocation2 + $0xd0] sm:$0xf] }
 0x2a9   : > { %v7127_v8 = vld [vmem:[#allocation9 + $0xa0] sm:$0xff]  ;;  %v1555_v31 = vrot.slane %v8860_v58, 5 }
 0x2aa   : > { %v3382_v59 = vor.u32 %v3380_v60, %v3379_v16  ;;  %v3164_v28 = vmax.f32 %v3095_v26, 0.0  ;;  %3047 = vmatmul.bf16.gmra.mxu3 %v10451_v18  ;;  %v3383_v60 = vrot.slane %v3379_v16, 4  ;;  %v3670_v26 = vld [vmem:[#allocation3 + $0x38] sm:$0x1] }
 0x2ab   : > { %2963 = vmatmul.bf16.gmra.mxu2 %v8636_v27  ;;  %v7119_v16 = vld [vmem:[#allocation9 + $0x60] sm:$0xff]  ;;  %5400 = vmatpush.bf16.msrb.mxu3 %v7127_v8 }
 0x2ac   : > { %v3667_v2 = vsel %vm7712_vm10, %v3382_v59, %v3666_v11  ;;  %v3300_v52 = vpack.c.bf16 %v3164_v28, %v3164_v28  ;;  %v8843_v32 = vld [vmem:[#allocation3 + $0x24] sm:$0xff]  ;;  %v8849_v45 = vpop.f32.mrf.mxu0  ;;  %5311 = vmatpush.bf16.msrb.mxu2 %v7119_v16 }
 0x2ad   : > { %3668 = vst [vmem:[#allocation3 + $0x30] sm:$0xf] %v3667_v2  ;;  %v3008_v13 = vpop.f32.mrf.mxu3  ;;  %5242 = vmatmul.bf16.gmra.mxu1 %v8843_v32 }
 0x2ae   : > { %v3385_v9 = vshrl.u32 %v3300_v52, 16  ;;  %v3009_v3 = vadd.f32 %v3008_v13, %v2920_v10  ;;  %v3388_v50 = vshll.u32 %v3300_v52, 16  ;;  %v2924_v11 = vpop.f32.mrf.mxu2  ;;  %v2922_v10 = vadd.f32 %v2921_v61, %v2833_v55  ;;  %v3215_v13 = vld [vmem:[#allocation3 + $0x54] sm:$0x1] }
 0x2b0   : > { %v3387_v38 = vrot.slane %v3385_v9, 7  ;;  %v3098_v19 = vadd.f32 %v8811_v49, %v3009_v3  ;;  %v3216_v49 = vsel %vm7686_vm3, 0, %v3215_v13  ;;  %v7135_v9 = vld [vmem:[#allocation9 + $0xe0] sm:$0xff]  ;;  %v6254_v13 = vrot.slane %v939_v23, 9 }
 0x2b1   : > { %3217 = vst [vmem:[#allocation3 + $0x54] sm:$0x1] %v3216_v49  ;;  %5489 = vmatpush.bf16.msrb.mxu0 %v7135_v9  ;;  %v1557_v49 = vrot.slane %v1555_v31, 4  ;;  %v7117_v9 = vld [vmem:[#allocation9 + $0x50] sm:$0xff] }
 0x2b2   : > { %v3390_v59 = vor.u32 %v3388_v50, %v3387_v38  ;;  %v3392_v28 = vrot.slane %v3387_v38, 4  ;;  %v3165_v18 = vmax.f32 %v3098_v19, 0.0  ;;  %v3673_v50 = vld [vmem:[#allocation3 + $0x3c] sm:$0xf] }
 0x2b4   : > { %v3391_v27 = vsel %vm7705_vm9, %v3383_v60, %v3390_v59  ;;  %v3671_v2 = vsel %vm7686_vm3, %v3392_v28, %v3670_v26  ;;  %v3301_v53 = vpack.c.bf16 %v3165_v18, %v3165_v18  ;;  %v8862_v3 = vpop.f32.mrf.mxu0  ;;  %v1527_v26 = vshrl.u32 %v939_v23, 16  ;;  %v7118_v59 = vld [vmem:[#allocation9 + $0x58] sm:$0xff] }
 0x2b5   : > { %3669 = vst [vmem:[#allocation3 + $0x34] sm:$0xf] %v3391_v27  ;;  %v3010_v52 = vpop.f32.mrf.mxu3  ;;  %v7126_v28 = vld [vmem:[#allocation9 + $0x98] sm:$0xff]  ;;  %3146 = vmatmul.bf16.gmra.mxu0 %v8659_v24  ;;  %5312 = vmatpush.bf16.msrb.mxu2 %v7118_v59  ;;  %v2838_v24 = vadd.f32 %v8619_v0, %v8631_v1 }
 0x2b6   : > { %3672 = vst [vmem:[#allocation3 + $0x38] sm:$0x1] %v3671_v2  ;;  %v3394_v56 = vshrl.u32 %v3301_v53, 16  ;;  %v3011_v61 = vadd.f32 %v3010_v52, %v2922_v10  ;;  %v3397_v38 = vshll.u32 %v3301_v53, 16  ;;  %v2926_v60 = vpop.f32.mrf.mxu2  ;;  %v7134_v18 = vld [vmem:[#allocation9 + $0xd8] sm:$0xff]  ;;  %v2925_v2 = vadd.f32 %v2924_v11, %v8625_v7  ;;  %5401 = vmatpush.bf16.msrb.mxu3 %v7126_v28 }
 0x2b7   : > { %v8872_v53 = vld [vmem:[#allocation2 + $0xd4] sm:$0x1]  ;;  %v1536_v52 = vshll.u32 %v8860_v58, 16  ;;  %v1540_v7 = vshrl.u32 %v8860_v58, 16  ;;  %5490 = vmatpush.bf16.msrb.mxu0 %v7134_v18  ;;  %v1556_v58 = vsel %vm8230_vm14, %v6254_v13, %v1555_v31  ;;  %v3677_v28 = vld [vmem:[#allocation3 + $0x44] sm:$0x1]  ;;  %v2927_v13 = vadd.f32 %v2926_v60, %v2838_v24 }
 0x2b8   : > { %v8865_v55 = vrot.slane %v3394_v56, 7  ;;  %v3100_v19 = vadd.f32 %v8825_v4, %v3011_v61  ;;  %v1530_v4 = vshll.u32 %v939_v23, 16  ;;  %v1558_v16 = vrot.slane %v8872_v53, 5  ;;  %v8900_v31 = vld [vmem:[#allocation3 + $0x4] sm:$0xf] }
 0x2b9   : > { %v8891_v0 = vrot.slane %v1527_v26, 4  ;;  %5313 = vmatpush.bf16.msrb.mxu2 %v7117_v9 }
 0x2ba   : > { %v3399_v10 = vor.u32 %v3397_v38, %v8865_v55  ;;  %v3166_v27 = vmax.f32 %v3100_v19, 0.0  ;;  %3052 = vmatmul.bf16.gmra.mxu3 %v8254_v17  ;;  %v3263_v17 = vld [vmem:[#allocation3 + $0x5c] sm:$0x1]  ;;  %v7125_v38 = vld [vmem:[#allocation9 + $0x90] sm:$0xff]  ;;  %v1532_v18 = vrot.slane %v1530_v4, 5  ;;  %v3400_v26 = vrot.slane %v8865_v55, 4 }
 0x2bb   : > { %v3264_v23 = vsel %vm7692_vm4, 0, %v3263_v17  ;;  %v7133_v19 = vld [vmem:[#allocation9 + $0xd0] sm:$0xff]  ;;  %2968 = vmatmul.bf16.gmra.mxu2 %v8655_v57  ;;  %5402 = vmatpush.bf16.msrb.mxu3 %v7125_v38  ;;  %v8898_v17 = vld [vmem:[#allocation3] sm:$0xf]  ;;  %v3825_v55 = vshrl.u32 %v8900_v31, 16 }
 0x2bc   : > { %v3674_v56 = vsel %vm7712_vm10, %v3399_v10, %v3673_v50  ;;  %v3302_v61 = vpack.c.bf16 %v3166_v27, %v3166_v27  ;;  %v8878_v8 = vld [vmem:[#allocation3 + $0x30] sm:$0xff]  ;;  %3265 = vst [vmem:[#allocation3 + $0x5c] sm:$0x1] %v3264_v23  ;;  %v8889_v1 = vpop.f32.mrf.mxu0  ;;  %v8893_v10 = vrot.slane %v1536_v52, 5  ;;  %v1559_v27 = vsel %vm8230_vm14, %v1557_v49, %v1558_v16  ;;  %5491 = vmatpush.bf16.msrb.mxu0 %v7133_v19  ;;  %v7116_v23 = vld [vmem:[#allocation9 + $0x48] sm:$0xff] }
 0x2bd   : > { %3675 = vst [vmem:[#allocation3 + $0x3c] sm:$0xf] %v3674_v56  ;;  %v3013_v11 = vpop.f32.mrf.mxu3  ;;  %5247 = vmatmul.bf16.gmra.mxu1 %v8878_v8  ;;  %v1542_v52 = vrot.slane %v1540_v7, 4  ;;  %v7132_v49 = vld [vmem:[#allocation9 + $0xc8] sm:$0xff]  ;;  %5314 = vmatpush.bf16.msrb.mxu2 %v7116_v23  ;;  %v3815_v38 = vshll.u32 %v8898_v17, 16  ;;  %v3821_v19 = vshll.u32 %v8900_v31, 16 }
 0x2be   : > { %v3402_v50 = vshrl.u32 %v3302_v61, 16  ;;  %v3014_v59 = vadd.f32 %v3013_v11, %v2925_v2  ;;  %v3405_v56 = vshll.u32 %v3302_v61, 16  ;;  %v2929_v4 = vpop.f32.mrf.mxu2  ;;  %v1772_v11 = vunpack.c.l.b16 %v1556_v58 }
 0x2bf   : > { %5403 = vmatpush.bf16.msrb.mxu3 %v7124_v63 }
 0x2c0   : > { %v3404_v2 = vrot.slane %v3402_v50, 7  ;;  %v3103_v57 = vadd.f32 %v8835_v62, %v3014_v59  ;;  %v1773_v50 = vunpack.c.l.b16 %v1559_v27  ;;  %v3812_v62 = vshrl.u32 %v8898_v17, 16  ;;  %v3218_v59 = vld [vmem:[#allocation3 + $0x60] sm:$0x1]  ;;  %5492 = vmatpush.bf16.msrb.mxu0 %v7132_v49 }
 0x2c1   : > { %v1533_v27 = vor.u32 %v1532_v18, %v8891_v0  ;;  %v3817_v0 = vrot.slane %v3815_v38, 5  ;;  %v8918_v18 = vrot.slane %v3821_v19, 5  ;;  %v7016_v38 = vld [vmem:[#allocation2 + $0xcc] sm:$0xff] }
 0x2c2   : > { %v3407_v16 = vor.u32 %v3405_v56, %v3404_v2  ;;  %v3409_v9 = vrot.slane %v3404_v2, 4  ;;  %v3167_v61 = vmax.f32 %v3103_v57, 0.0  ;;  %v1546_v2 = vshll.u32 %v8872_v53, 16  ;;  %v7115_v57 = vld [vmem:[#allocation9 + $0x40] sm:$0xff] }
 0x2c3   : > { %v3219_v56 = vsel %vm7686_vm3, 0, %v3218_v59  ;;  %5315 = vmatpush.bf16.msrb.mxu2 %v7115_v57  ;;  %v3814_v49 = vrot.slane %v3812_v62, 4  ;;  %v3827_v53 = vrot.slane %v3825_v55, 4  ;;  %v2930_v62 = vadd.f32 %v2929_v4, %v8652_v51  ;;  %v7143_v4 = vld [vmem:[#allocation9 + $0x120] sm:$0xff] }
 0x2c4   : > { %v3408_v60 = vsel %vm7705_vm9, %v3400_v26, %v3407_v16  ;;  %v3678_v7 = vsel %vm7686_vm3, %v3409_v9, %v3677_v28  ;;  %v3303_v24 = vpack.c.bf16 %v3167_v61, %v3167_v61  ;;  %v1543_v16 = vor.u32 %v1542_v52, %v8893_v10  ;;  %v7123_v9 = vld [vmem:[#allocation9 + $0x80] sm:$0xff]  ;;  %v8916_v63 = vpop.f32.mrf.mxu0  ;;  %3220 = vst [vmem:[#allocation3 + $0x60] sm:$0x1] %v3219_v56  ;;  %v3680_v52 = vld [vmem:[#allocation3 + $0x48] sm:$0xf] }
 0x2c5   : > { %3676 = vst [vmem:[#allocation3 + $0x40] sm:$0xf] %v3408_v60  ;;  %v3015_v58 = vpop.f32.mrf.mxu3  ;;  %v1774_v28 = vpack.c.b16 %v1773_v50, %v1772_v11  ;;  %v7131_v61 = vld [vmem:[#allocation9 + $0xc0] sm:$0xff]  ;;  %5404 = vmatpush.bf16.msrb.mxu3 %v7123_v9  ;;  %v1534_v50 = vrot.slane %v1533_v27, 4  ;;  %v3818_v55 = vor.u32 %v3817_v0, %v3814_v49  ;;  %5578 = vmatpush.bf16.msrb.mxu1 %v7143_v4 }
 0x2c6   : > { %3679 = vst [vmem:[#allocation3 + $0x44] sm:$0x1] %v3678_v7  ;;  %v3411_v23 = vshrl.u32 %v3303_v24, 16  ;;  %v3016_v26 = vadd.f32 %v3015_v58, %v2927_v13  ;;  %v3414_v59 = vshll.u32 %v3303_v24, 16  ;;  %5493 = vmatpush.bf16.msrb.mxu0 %v7131_v61  ;;  %v8921_v13 = vld [vmem:[#allocation3 + $0x8] sm:$0x1]  ;;  %v2931_v11 = vpop.f32.mrf.mxu2 }
 0x2c7   : > { %v1548_v58 = vrot.slane %v1546_v2, 5  ;;  %v1544_v19 = vrot.slane %v1543_v16, 4  ;;  %3151 = vmatmul.bf16.gmra.mxu0 %v1774_v28  ;;  %v3831_v24 = vshll.u32 %v8921_v13, 16  ;;  %v3266_v2 = vld [vmem:[#allocation3 + $0x68] sm:$0x1]  ;;  %v1539_v51 = vsel %vm7728_vm11, %v1534_v50, %v8893_v10 }
 0x2c8   : > { %v3413_v60 = vrot.slane %v3411_v23, 7  ;;  %v3105_v7 = vadd.f32 %v8849_v45, %v3016_v26  ;;  %v3828_v45 = vor.u32 %v3827_v53, %v8918_v18  ;;  %v3267_v16 = vsel %vm7692_vm4, 0, %v3266_v2  ;;  %v8944_v50 = vld [vmem:[#allocation3 + $0x10] sm:$0xf] }
 0x2c9   : > { %3268 = vst [vmem:[#allocation3 + $0x68] sm:$0x1] %v3267_v16  ;;  %v3819_v49 = vrot.slane %v3818_v55, 4  ;;  %v3833_v53 = vrot.slane %v3831_v24, 5  ;;  %v2843_v10 = vadd.f32 %v8646_v12, %v8657_v41  ;;  %v3845_v41 = vshll.u32 %v8944_v50, 16 }
 0x2ca   : > { %v3416_v35 = vor.u32 %v3414_v59, %v3413_v60  ;;  %v3168_v56 = vmax.f32 %v3105_v7, 0.0  ;;  %3057 = vmatmul.bf16.gmra.mxu3 %v8628_v25  ;;  %v3829_v0 = vrot.slane %v3828_v45, 4  ;;  %v4245_v16 = vrot.slane %v8900_v31, 5  ;;  %v7106_v25 = vld [vmem:[#allocation3 + $0xcc] sm:$0xff] }
 0x2cb   : > { %2973 = vmatmul.bf16.gmra.mxu2 %v7016_v38  ;;  %v1768_v38 = vunpack.c.l.b16 %v1539_v51  ;;  %v2932_v55 = vadd.f32 %v2931_v11, %v2843_v10  ;;  %v3824_v45 = vsel %vm7728_vm11, %v3819_v49, %v8918_v18  ;;  %v3221_v51 = vld [vmem:[#allocation3 + $0x6c] sm:$0x1] }
 0x2cc   : > { %v3681_v57 = vsel %vm7712_vm10, %v3416_v35, %v3680_v52  ;;  %v3304_v23 = vpack.c.bf16 %v3168_v56, %v3168_v56  ;;  %v8929_v27 = vld [vmem:[#allocation3 + $0x3c] sm:$0xff]  ;;  %v1549_v35 = vsel %vm7728_vm11, %v1544_v19, %v1548_v58  ;;  %v8939_v61 = vpop.f32.mrf.mxu0  ;;  %v3417_v56 = vrot.slane %v3413_v60, 4  ;;  %v8957_v11 = vld [vmem:[#allocation3 + $0xc] sm:$0xf] }
 0x2cd   : > { %3682 = vst [vmem:[#allocation3 + $0x48] sm:$0xf] %v3681_v57  ;;  %v3018_v26 = vpop.f32.mrf.mxu3  ;;  %5252 = vmatmul.bf16.gmra.mxu1 %v8929_v27  ;;  %v1769_v58 = vunpack.c.l.b16 %v1549_v35  ;;  %v3834_v12 = vsel %vm7728_vm11, %v3829_v0, %v3833_v53  ;;  %v4487_v49 = vunpack.c.l.b16 %v3824_v45  ;;  %v3836_v10 = vshrl.u32 %v8957_v11, 16 }
 0x2ce   : > { %v3419_v28 = vshrl.u32 %v3304_v23, 16  ;;  %v3019_v9 = vadd.f32 %v3018_v26, %v2930_v62  ;;  %v3422_v7 = vshll.u32 %v3304_v23, 16  ;;  %v3684_v62 = vld [vmem:[#allocation3 + $0x50] sm:$0x1]  ;;  %v2934_v19 = vpop.f32.mrf.mxu2  ;;  %v4488_v0 = vunpack.c.l.b16 %v3834_v12 }
 0x2cf   : > { %v1770_v18 = vpack.c.b16 %v1769_v58, %v1768_v38  ;;  %v3687_v38 = vld [vmem:[#allocation3 + $0x54] sm:$0xf]  ;;  %v2935_v12 = vadd.f32 %v2934_v19, %v8668_v37 }
 0x2d0   : > { %v3421_v59 = vrot.slane %v3419_v28, 7  ;;  %v3108_v52 = vadd.f32 %v8862_v3, %v3019_v9  ;;  %v3849_v3 = vshrl.u32 %v8944_v50, 16  ;;  %v3222_v28 = vsel %vm7686_vm3, 0, %v3221_v51 }
 0x2d1   : > { %3223 = vst [vmem:[#allocation3 + $0x6c] sm:$0x1] %v3222_v28 }
 0x2d2   : > { %v3424_v57 = vor.u32 %v3422_v7, %v3421_v59  ;;  %v3426_v2 = vrot.slane %v3421_v59, 4  ;;  %v3169_v26 = vmax.f32 %v3108_v52, 0.0  ;;  %v3839_v59 = vshll.u32 %v8957_v11, 16 }
 0x2d3   : > { %v8966_v7 = vrot.slane %v3845_v41, 5  ;;  %v3851_v52 = vrot.slane %v3849_v3, 4  ;;  %v8973_v41 = vld [vmem:[#allocation3 + $0x14] sm:$0x1]  ;;  %v3838_v3 = vrot.slane %v3836_v10, 4 }
 0x2d4   : > { %v3425_v60 = vsel %vm7705_vm9, %v3417_v56, %v3424_v57  ;;  %v3685_v24 = vsel %vm7686_vm3, %v3426_v2, %v3684_v62  ;;  %v3305_v23 = vpack.c.bf16 %v3169_v26, %v3169_v26  ;;  %v8962_v53 = vpop.f32.mrf.mxu0  ;;  %v6615_v57 = vrot.slane %v8898_v17, 9 }
 0x2d5   : > { %3683 = vst [vmem:[#allocation3 + $0x4c] sm:$0xf] %v3425_v60  ;;  %v3020_v4 = vpop.f32.mrf.mxu3  ;;  %v4247_v2 = vrot.slane %v4245_v16, 4  ;;  %v4248_v26 = vrot.slane %v8921_v13, 5  ;;  %v4519_v60 = vpack.c.b16 %v4488_v0, %v4487_v49  ;;  %v3269_v13 = vld [vmem:[#allocation3 + $0x74] sm:$0x1] }
 0x2d6   : > { %3686 = vst [vmem:[#allocation3 + $0x50] sm:$0x1] %v3685_v24  ;;  %v3428_v9 = vshrl.u32 %v3305_v23, 16  ;;  %v3021_v35 = vadd.f32 %v3020_v4, %v2932_v55  ;;  %v3431_v31 = vshll.u32 %v3305_v23, 16  ;;  %v2936_v58 = vpop.f32.mrf.mxu2  ;;  %v3841_v24 = vrot.slane %v3839_v59, 5 }
 0x2d7   : > { %5494 = vmatmul.bf16.vlgmr.msrb.gmra.mxu0 %v8795_v36  ;;  %v4246_v37 = vsel %vm8230_vm14, %v6615_v57, %v4245_v16  ;;  %v3270_v36 = vsel %vm7692_vm4, 0, %v3269_v13  ;;  %v3855_v19 = vshll.u32 %v8973_v41, 16  ;;  %v2848_v16 = vadd.f32 %v8666_v54, %v8671_v47  ;;  %v8997_v47 = vld [vmem:[#allocation3 + $0x18] sm:$0xf] }
 0x2d8   : > { %v3430_v56 = vrot.slane %v3428_v9, 7  ;;  %v3110_v62 = vadd.f32 %v8889_v1, %v3021_v35  ;;  %v3852_v1 = vor.u32 %v3851_v52, %v8966_v7  ;;  %v4249_v9 = vsel %vm8230_vm14, %v4247_v2, %v4248_v26  ;;  %3271 = vst [vmem:[#allocation3 + $0x74] sm:$0x1] %v3270_v36 }
 0x2d9   : > { %v3842_v49 = vor.u32 %v3841_v24, %v3838_v3  ;;  %v4551_v57 = vunpack.c.l.b16 %v4246_v37  ;;  %v3857_v2 = vrot.slane %v3855_v19, 5  ;;  %v2937_v3 = vadd.f32 %v2936_v58, %v2848_v16 }
 0x2da   : > { %v3433_v55 = vor.u32 %v3431_v31, %v3430_v56  ;;  %v3170_v45 = vmax.f32 %v3110_v62, 0.0  ;;  %3062 = vmatmul.bf16.gmra.mxu3 %v1770_v18  ;;  %v3853_v0 = vrot.slane %v3852_v1, 4  ;;  %v8993_v31 = vld [vmem:[#allocation3 + $0x1c] sm:$0xf]  ;;  %v3434_v62 = vrot.slane %v3430_v56, 4 }
 0x2db   : > { %5316 = vmatmul.bf16.vlgmr.msrb.gmra.mxu2 %v4519_v60  ;;  %v3843_v24 = vrot.slane %v3842_v49, 4  ;;  %v3863_v16 = vshll.u32 %v8997_v47, 16 }
 0x2dc   : > { %v3688_v17 = vsel %vm7712_vm10, %v3433_v55, %v3687_v38  ;;  %v3306_v23 = vpack.c.bf16 %v3170_v45, %v3170_v45  ;;  %v8978_v51 = vld [vmem:[#allocation3 + $0x48] sm:$0xff]  ;;  %v8988_v35 = vpop.f32.mrf.mxu0  ;;  %v3691_v38 = vld [vmem:[#allocation3 + $0x5c] sm:$0x1]  ;;  %v4552_v55 = vunpack.c.l.b16 %v4249_v9  ;;  %v3858_v54 = vsel %vm7728_vm11, %v3853_v0, %v3857_v2 }
 0x2dd   : > { %3689 = vst [vmem:[#allocation3 + $0x54] sm:$0xf] %v3688_v17  ;;  %v3023_v4 = vpop.f32.mrf.mxu3  ;;  %5257 = vmatmul.bf16.gmra.mxu1 %v8978_v51  ;;  %v3848_v58 = vsel %vm7728_vm11, %v3843_v24, %v8966_v7  ;;  %v4490_v49 = vunpack.c.l.b16 %v3858_v54  ;;  %v3865_v54 = vrot.slane %v3863_v16, 5 }
 0x2de   : > { %v3436_v18 = vshrl.u32 %v3306_v23, 16  ;;  %v3024_v28 = vadd.f32 %v3023_v4, %v2935_v12  ;;  %v3439_v59 = vshll.u32 %v3306_v23, 16  ;;  %v2939_v45 = vpop.f32.mrf.mxu2  ;;  %v3873_v23 = vshrl.u32 %v8993_v31, 16 }
 0x2df   : > { %v4252_v4 = vrot.slane %v8944_v50, 5  ;;  %v4583_v19 = vpack.c.b16 %v4552_v55, %v4551_v57 }
 0x2e0   : > { %v3438_v10 = vrot.slane %v3436_v18, 7  ;;  %v3113_v52 = vadd.f32 %v8916_v63, %v3024_v28  ;;  %v3869_v63 = vshll.u32 %v8993_v31, 16  ;;  %v3224_v18 = vld [vmem:[#allocation3 + $0x78] sm:$0x1]  ;;  %v3860_v28 = vshrl.u32 %v8997_v47, 16 }
 0x2e1   : > { %v3225_v0 = vsel %vm7686_vm3, 0, %v3224_v18  ;;  %v4254_v57 = vrot.slane %v4252_v4, 4 }
 0x2e2   : > { %v3441_v26 = vor.u32 %v3439_v59, %v3438_v10  ;;  %v3443_v12 = vrot.slane %v3438_v10, 4  ;;  %v3171_v60 = vmax.f32 %v3113_v52, 0.0  ;;  %v9015_v10 = vrot.slane %v3869_v63, 5  ;;  %3226 = vst [vmem:[#allocation3 + $0x78] sm:$0x1] %v3225_v0 }
 0x2e3   : > { %v3875_v52 = vrot.slane %v3873_v23, 4  ;;  %v3862_v24 = vrot.slane %v3860_v28, 4  ;;  %v3272_v23 = vld [vmem:[#allocation3 + $0x80] sm:$0x1] }
 0x2e4   : > { %v3442_v56 = vsel %vm7705_vm9, %v3434_v62, %v3441_v26  ;;  %v3692_v1 = vsel %vm7686_vm3, %v3443_v12, %v3691_v38  ;;  %v3307_v17 = vpack.c.bf16 %v3171_v60, %v3171_v60  ;;  %v9010_v9 = vpop.f32.mrf.mxu0  ;;  %v3694_v62 = vld [vmem:[#allocation3 + $0x60] sm:$0xf]  ;;  %v2940_v26 = vadd.f32 %v2939_v45, %v8679_v33  ;;  %v7142_v45 = vld [vmem:[#allocation9 + $0x118] sm:$0xff] }
 0x2e5   : > { %3690 = vst [vmem:[#allocation3 + $0x58] sm:$0xf] %v3442_v56  ;;  %v3025_v13 = vpop.f32.mrf.mxu3  ;;  %v4489_v12 = vunpack.c.l.b16 %v3848_v58  ;;  %v9023_v60 = vld [vmem:[#allocation3 + $0x20] sm:$0x1]  ;;  %v3876_v33 = vor.u32 %v3875_v52, %v9015_v10  ;;  %5579 = vmatpush.bf16.msrb.mxu1 %v7142_v45  ;;  %v3866_v28 = vor.u32 %v3865_v54, %v3862_v24  ;;  %v9050_v52 = vpop.f32.mrf.mxu1  ;;  %v9053_v24 = vld [vmem:[#allocation3 + $0x24] sm:$0xf] }
 0x2e6   : > { %3693 = vst [vmem:[#allocation3 + $0x5c] sm:$0x1] %v3692_v1  ;;  %v3445_v37 = vshrl.u32 %v3307_v17, 16  ;;  %v3026_v36 = vadd.f32 %v3025_v13, %v2937_v3  ;;  %v3448_v50 = vshll.u32 %v3307_v17, 16  ;;  %v2941_v38 = vpop.f32.mrf.mxu2  ;;  %v6616_v3 = vrot.slane %v8957_v11, 9 }
 0x2e7   : > { %5499 = vmatmul.bf16.gmra.mxu0 %v8819_v21  ;;  %v9031_v17 = vpack.c.b16 %v4490_v49, %v4489_v12  ;;  %v3879_v11 = vshll.u32 %v9023_v60, 16  ;;  %v4259_v45 = vrot.slane %v8993_v31, 5 }
 0x2e8   : > { %v9017_v7 = vrot.slane %v3445_v37, 7  ;;  %v3115_v59 = vadd.f32 %v8939_v61, %v3026_v36  ;;  %v4255_v61 = vrot.slane %v8973_v41, 5  ;;  %v3273_v37 = vsel %vm7692_vm4, 0, %v3272_v23 }
 0x2e9   : > { %v2853_v36 = vadd.f32 %v8677_v29, %v8682_v48  ;;  %3274 = vst [vmem:[#allocation3 + $0x80] sm:$0x1] %v3273_v37  ;;  %v3698_v29 = vld [vmem:[#allocation3 + $0x68] sm:$0x1] }
 0x2ea   : > { %v3450_v55 = vor.u32 %v3448_v50, %v9017_v7  ;;  %v3172_v2 = vmax.f32 %v3115_v59, 0.0  ;;  %5405 = vmatmul.bf16.vlgmr.msrb.gmra.mxu3 %v4583_v19  ;;  %v4256_v58 = vsel %vm8230_vm14, %v4254_v57, %v4255_v61  ;;  %v4253_v19 = vsel %vm8230_vm14, %v6616_v3, %v4252_v4  ;;  %v9048_v59 = vld [vmem:[#allocation3 + $0x28] sm:$0xf] }
 0x2eb   : > { %5321 = vmatmul.bf16.gmra.mxu2 %v9031_v17  ;;  %v3877_v50 = vrot.slane %v3876_v33, 4  ;;  %v4554_v48 = vunpack.c.l.b16 %v4256_v58  ;;  %v3881_v4 = vrot.slane %v3879_v11, 5  ;;  %v2942_v12 = vadd.f32 %v2941_v38, %v2853_v36  ;;  %v3227_v36 = vld [vmem:[#allocation3 + $0x84] sm:$0x1] }
 0x2ec   : > { %v3695_v63 = vsel %vm7712_vm10, %v3450_v55, %v3694_v62  ;;  %v3308_v56 = vpack.c.bf16 %v3172_v2, %v3172_v2  ;;  %v9029_v1 = vld [vmem:[#allocation3 + $0x54] sm:$0xff]  ;;  %v9045_v18 = vpop.f32.mrf.mxu0  ;;  %v3451_v62 = vrot.slane %v9017_v7, 4  ;;  %v4553_v3 = vunpack.c.l.b16 %v4253_v19 }
 0x2ed   : > { %3696 = vst [vmem:[#allocation3 + $0x60] sm:$0xf] %v3695_v63  ;;  %v3028_v21 = vpop.f32.mrf.mxu3  ;;  %5262 = vmatmul.bf16.gmra.mxu1 %v9029_v1  ;;  %v3867_v61 = vrot.slane %v3866_v28, 4  ;;  %v3897_v54 = vshrl.u32 %v9048_v59, 16  ;;  %v3882_v33 = vsel %vm7728_vm11, %v3877_v50, %v3881_v4  ;;  %v3887_v19 = vshll.u32 %v9053_v24, 16 }
 0x2ee   : > { %v3453_v13 = vshrl.u32 %v3308_v56, 16  ;;  %v3029_v41 = vadd.f32 %v3028_v21, %v2940_v26  ;;  %v3456_v0 = vshll.u32 %v3308_v56, 16  ;;  %v2944_v57 = vpop.f32.mrf.mxu2  ;;  %v9063_v21 = vpack.c.b16 %v4554_v48, %v4553_v3 }
 0x2ef   : > { %v4492_v37 = vunpack.c.l.b16 %v3882_v33  ;;  %v3228_v50 = vsel %vm7686_vm3, 0, %v3227_v36  ;;  %v4261_v48 = vrot.slane %v4259_v45, 4 }
 0x2f0   : > { %v3455_v49 = vrot.slane %v3453_v13, 7  ;;  %v3118_v16 = vadd.f32 %v8962_v53, %v3029_v41  ;;  %v3893_v53 = vshll.u32 %v9048_v59, 16  ;;  %10454 = vst [vmem:[#allocation25_spill] sm:$0xff] %v9063_v21  ;;  %v3872_v13 = vsel %vm7728_vm11, %v3867_v61, %v9015_v10  ;;  %v9078_v10 = vpop.f32.mrf.mxu1 }
 0x2f1   : > { %v3884_v41 = vshrl.u32 %v9053_v24, 16  ;;  %3229 = vst [vmem:[#allocation3 + $0x84] sm:$0x1] %v3228_v50  ;;  %v3889_v61 = vrot.slane %v3887_v19, 5 }
 0x2f2   : > { %v3458_v55 = vor.u32 %v3456_v0, %v3455_v49  ;;  %v3460_v2 = vrot.slane %v3455_v49, 4  ;;  %v3173_v26 = vmax.f32 %v3118_v16, 0.0  ;;  %v9073_v28 = vrot.slane %v3893_v53, 5 }
 0x2f3   : > { %v3899_v49 = vrot.slane %v3897_v54, 4  ;;  %v3886_v3 = vrot.slane %v3884_v41, 4 }
 0x2f4   : > { %v3459_v63 = vsel %vm7705_vm9, %v3451_v62, %v3458_v55  ;;  %v3699_v7 = vsel %vm7686_vm3, %v3460_v2, %v3698_v29  ;;  %v3309_v56 = vpack.c.bf16 %v3173_v26, %v3173_v26  ;;  %v9070_v58 = vpop.f32.mrf.mxu0  ;;  %v3701_v62 = vld [vmem:[#allocation3 + $0x6c] sm:$0xf]  ;;  %v2945_v2 = vadd.f32 %v2944_v57, %v8689_v39 }
 0x2f5   : > { %3697 = vst [vmem:[#allocation3 + $0x64] sm:$0xf] %v3459_v63  ;;  %v3030_v38 = vpop.f32.mrf.mxu3  ;;  %v4491_v26 = vunpack.c.l.b16 %v3872_v13  ;;  %v3900_v53 = vor.u32 %v3899_v49, %v9073_v28  ;;  %v4262_v39 = vrot.slane %v9023_v60, 5  ;;  %v3890_v41 = vor.u32 %v3889_v61, %v3886_v3 }
 0x2f6   : > { %3700 = vst [vmem:[#allocation3 + $0x68] sm:$0x1] %v3699_v7  ;;  %v3462_v23 = vshrl.u32 %v3309_v56, 16  ;;  %v3031_v11 = vadd.f32 %v3030_v38, %v2942_v12  ;;  %v3465_v31 = vshll.u32 %v3309_v56, 16  ;;  %v2946_v29 = vpop.f32.mrf.mxu2  ;;  %v9083_v12 = vld [vmem:[#allocation3 + $0x2c] sm:$0x1] }
 0x2f7   : > { %5504 = vmatmul.bf16.gmra.mxu0 %v8843_v32  ;;  %v9091_v56 = vpack.c.b16 %v4492_v37, %v4491_v26  ;;  %v3903_v33 = vshll.u32 %v9083_v12, 16  ;;  %v10455_v37 = vld [vmem:[#allocation28_spill] sm:$0xff] }
 0x2f8   : > { %v3464_v0 = vrot.slane %v3462_v23, 7  ;;  %v3120_v16 = vadd.f32 %v8988_v35, %v3031_v11  ;;  %v6617_v35 = vrot.slane %v8997_v47, 9  ;;  %v3275_v47 = vld [vmem:[#allocation3 + $0x8c] sm:$0x1]  ;;  %v4263_v11 = vsel %vm8230_vm14, %v4261_v48, %v4262_v39  ;;  %v9110_v61 = vpop.f32.mrf.mxu1 }
 0x2f9   : > { %v3276_v60 = vsel %vm7692_vm4, 0, %v3275_v47  ;;  %v2858_v36 = vadd.f32 %v10455_v37, %v8692_v15 }
 0x2fa   : > { %v3467_v4 = vor.u32 %v3465_v31, %v3464_v0  ;;  %v3174_v55 = vmax.f32 %v3120_v16, 0.0  ;;  %5410 = vmatmul.bf16.gmra.mxu3 %v9063_v21  ;;  %v4260_v57 = vsel %vm8230_vm14, %v6617_v35, %v4259_v45  ;;  %3277 = vst [vmem:[#allocation3 + $0x8c] sm:$0x1] %v3276_v60  ;;  %v3901_v45 = vrot.slane %v3900_v53, 4  ;;  %v9108_v16 = vld [vmem:[#allocation3 + $0x34] sm:$0xf] }
 0x2fb   : > { %5326 = vmatmul.bf16.gmra.mxu2 %v9091_v56  ;;  %v3468_v50 = vrot.slane %v3464_v0, 4  ;;  %v4555_v48 = vunpack.c.l.b16 %v4260_v57  ;;  %v2947_v3 = vadd.f32 %v2946_v29, %v2858_v36  ;;  %v3891_v53 = vrot.slane %v3890_v41, 4  ;;  %v9120_v57 = vld [vmem:[#allocation3 + $0x30] sm:$0xf] }
 0x2fc   : > { %v3702_v54 = vsel %vm7712_vm10, %v3467_v4, %v3701_v62  ;;  %v3310_v63 = vpack.c.bf16 %v3174_v55, %v3174_v55  ;;  %v9089_v7 = vld [vmem:[#allocation3 + $0x60] sm:$0xff]  ;;  %v9103_v13 = vpop.f32.mrf.mxu0  ;;  %v3705_v62 = vld [vmem:[#allocation3 + $0x74] sm:$0x1]  ;;  %v4556_v4 = vunpack.c.l.b16 %v4263_v11  ;;  %v4266_v60 = vrot.slane %v9048_v59, 5 }
 0x2fd   : > { %3703 = vst [vmem:[#allocation3 + $0x6c] sm:$0xf] %v3702_v54  ;;  %v3033_v32 = vpop.f32.mrf.mxu3  ;;  %5267 = vmatmul.bf16.gmra.mxu1 %v9089_v7  ;;  %v3908_v37 = vshrl.u32 %v9120_v57, 16  ;;  %v3911_v36 = vshll.u32 %v9120_v57, 16 }
 0x2fe   : > { %v3470_v38 = vshrl.u32 %v3310_v63, 16  ;;  %v3034_v23 = vadd.f32 %v3033_v32, %v2945_v2  ;;  %v3473_v49 = vshll.u32 %v3310_v63, 16  ;;  %v2949_v55 = vpop.f32.mrf.mxu2  ;;  %v3905_v2 = vrot.slane %v3903_v33, 5 }
 0x2ff   : > { %v3921_v63 = vshrl.u32 %v9108_v16, 16  ;;  %v9122_v47 = vpack.c.b16 %v4556_v4, %v4555_v48  ;;  %v3896_v33 = vsel %vm7728_vm11, %v3891_v53, %v9073_v28  ;;  %v3708_v48 = vld [vmem:[#allocation3 + $0x78] sm:$0xf] }
 0x300   : > { %v3472_v19 = vrot.slane %v3470_v38, 7  ;;  %v3123_v31 = vadd.f32 %v9010_v9, %v3034_v23  ;;  %v3906_v15 = vsel %vm7728_vm11, %v3901_v45, %v3905_v2  ;;  %v3917_v9 = vshll.u32 %v9108_v16, 16  ;;  %v3230_v45 = vld [vmem:[#allocation3 + $0x90] sm:$0x1] }
 0x301   : > { %10456 = vst [vmem:[#allocation38_spill] sm:$0xff] %v9122_v47  ;;  %v4494_v11 = vunpack.c.l.b16 %v3906_v15  ;;  %v4493_v4 = vunpack.c.l.b16 %v3896_v33  ;;  %v6618_v15 = vrot.slane %v9053_v24, 9  ;;  %v3278_v33 = vld [vmem:[#allocation3 + $0x98] sm:$0x1] }
 0x302   : > { %v3475_v26 = vor.u32 %v3473_v49, %v3472_v19  ;;  %v3477_v35 = vrot.slane %v3472_v19, 4  ;;  %v3175_v54 = vmax.f32 %v3123_v31, 0.0  ;;  %v9132_v19 = vrot.slane %v3917_v9, 5 }
 0x303   : > { %v3923_v49 = vrot.slane %v3921_v63, 4  ;;  %v9147_v53 = vpack.c.b16 %v4494_v11, %v4493_v4  ;;  %v3910_v9 = vrot.slane %v3908_v37, 4  ;;  %v3913_v63 = vrot.slane %v3911_v36, 5 }
 0x304   : > { %v3476_v0 = vsel %vm7705_vm9, %v3468_v50, %v3475_v26  ;;  %v3706_v39 = vsel %vm7686_vm3, %v3477_v35, %v3705_v62  ;;  %v3311_v32 = vpack.c.bf16 %v3175_v54, %v3175_v54  ;;  %v9128_v41 = vpop.f32.mrf.mxu0  ;;  %v3231_v62 = vsel %vm7686_vm3, 0, %v3230_v45  ;;  %v10457_v45 = vld [vmem:[#allocation32_spill] sm:$0xff] }
 0x305   : > { %3704 = vst [vmem:[#allocation3 + $0x70] sm:$0xf] %v3476_v0  ;;  %v3035_v29 = vpop.f32.mrf.mxu3  ;;  %v2950_v35 = vadd.f32 %v2949_v55, %v8699_v22  ;;  %v4268_v54 = vrot.slane %v4266_v60, 4  ;;  %v4269_v22 = vrot.slane %v9083_v12, 5  ;;  %v3279_v12 = vsel %vm7692_vm4, 0, %v3278_v33 }
 0x306   : > { %3707 = vst [vmem:[#allocation3 + $0x74] sm:$0x1] %v3706_v39  ;;  %v3479_v38 = vshrl.u32 %v3311_v32, 16  ;;  %v3036_v23 = vadd.f32 %v3035_v29, %v2947_v3  ;;  %v3482_v50 = vshll.u32 %v3311_v32, 16  ;;  %v2951_v59 = vpop.f32.mrf.mxu2  ;;  %v9143_v3 = vld [vmem:[#allocation3 + $0x38] sm:$0x1]  ;;  %v2863_v37 = vadd.f32 %v10457_v45, %v8702_v40 }
 0x307   : > { %3232 = vst [vmem:[#allocation3 + $0x90] sm:$0x1] %v3231_v62  ;;  %5509 = vmatmul.bf16.gmra.mxu0 %v8878_v8  ;;  %v3924_v8 = vor.u32 %v3923_v49, %v9132_v19  ;;  %v7141_v29 = vld [vmem:[#allocation9 + $0x110] sm:$0xff]  ;;  %v4270_v11 = vsel %vm8230_vm14, %v4268_v54, %v4269_v22  ;;  %v4267_v36 = vsel %vm8230_vm14, %v6618_v15, %v4266_v60 }
 0x308   : > { %v9134_v31 = vrot.slane %v3479_v38, 7  ;;  %v3125_v28 = vadd.f32 %v9045_v18, %v3036_v23  ;;  %v3927_v38 = vshll.u32 %v9143_v3, 16  ;;  %5580 = vmatpush.bf16.msrb.mxu1 %v7141_v29  ;;  %3280 = vst [vmem:[#allocation3 + $0x98] sm:$0x1] %v3279_v12  ;;  %v4558_v54 = vunpack.c.l.b16 %v4270_v11 }
 0x309   : > { %v3925_v4 = vrot.slane %v3924_v8, 4  ;;  %v4273_v11 = vrot.slane %v9108_v16, 5 }
 0x30a   : > { %v3484_v2 = vor.u32 %v3482_v50, %v9134_v31  ;;  %v3176_v26 = vmax.f32 %v3125_v28, 0.0  ;;  %5415 = vmatmul.bf16.gmra.mxu3 %v9122_v47  ;;  %v9145_v18 = vpop.f32.mrf.mxu1  ;;  %v3914_v50 = vor.u32 %v3913_v63, %v3910_v9  ;;  %v4557_v9 = vunpack.c.l.b16 %v4267_v36 }
 0x30b   : > { %5331 = vmatmul.bf16.gmra.mxu2 %v9147_v53 }
 0x30c   : > { %v3709_v0 = vsel %vm7712_vm10, %v3484_v2, %v3708_v48  ;;  %v3312_v39 = vpack.c.bf16 %v3176_v26, %v3176_v26  ;;  %v9152_v32 = vld [vmem:[#allocation3 + $0x6c] sm:$0xff]  ;;  %v9167_v49 = vpop.f32.mrf.mxu0  ;;  %v9170_v2 = vld [vmem:[#allocation3 + $0x40] sm:$0xf]  ;;  %v3485_v26 = vrot.slane %v9134_v31, 4  ;;  %v3915_v63 = vrot.slane %v3914_v50, 4 }
 0x30d   : > { %3710 = vst [vmem:[#allocation3 + $0x78] sm:$0xf] %v3709_v0  ;;  %v3038_v55 = vpop.f32.mrf.mxu3  ;;  %5272 = vmatmul.bf16.gmra.mxu1 %v9152_v32  ;;  %v3929_v0 = vrot.slane %v3927_v38, 5  ;;  %v3945_v8 = vshrl.u32 %v9170_v2, 16 }
 0x30e   : > { %v3487_v23 = vshrl.u32 %v3312_v39, 16  ;;  %v3039_v24 = vadd.f32 %v3038_v55, %v2950_v35  ;;  %v3490_v62 = vshll.u32 %v3312_v39, 16  ;;  %v3712_v35 = vld [vmem:[#allocation3 + $0x80] sm:$0x1]  ;;  %v2954_v40 = vpop.f32.mrf.mxu2  ;;  %v2952_v55 = vadd.f32 %v2951_v59, %v2863_v37  ;;  %v9175_v39 = vld [vmem:[#allocation3 + $0x3c] sm:$0xf] }
 0x30f   : > { %v3930_v59 = vsel %vm7728_vm11, %v3925_v4, %v3929_v0  ;;  %v3920_v37 = vsel %vm7728_vm11, %v3915_v63, %v9132_v19  ;;  %v3932_v36 = vshrl.u32 %v9175_v39, 16 }
 0x310   : > { %v3489_v28 = vrot.slane %v3487_v23, 7  ;;  %v3128_v48 = vadd.f32 %v9070_v58, %v3039_v24  ;;  %v3941_v58 = vshll.u32 %v9170_v2, 16  ;;  %v9185_v24 = vpack.c.b16 %v4558_v54, %v4557_v9  ;;  %v10459_v9 = vld [vmem:[#allocation19_spill] sm:$0xff] }
 0x311   : > { %v2955_v63 = vadd.f32 %v2954_v40, %v10459_v9 }
 0x312   : > { %v3492_v22 = vor.u32 %v3490_v62, %v3489_v28  ;;  %v3494_v60 = vrot.slane %v3489_v28, 4  ;;  %v3177_v15 = vmax.f32 %v3128_v48, 0.0  ;;  %v9173_v29 = vpop.f32.mrf.mxu1  ;;  %10458 = vst [vmem:[#allocation36_spill] sm:$0xff] %v9185_v24  ;;  %v4496_v28 = vunpack.c.l.b16 %v3930_v59  ;;  %v3233_v62 = vld [vmem:[#allocation3 + $0x9c] sm:$0x1] }
 0x313   : > { %v3935_v48 = vshll.u32 %v9175_v39, 16  ;;  %v9195_v4 = vrot.slane %v3941_v58, 5  ;;  %v3234_v0 = vsel %vm7686_vm3, 0, %v3233_v62  ;;  %v4495_v58 = vunpack.c.l.b16 %v3920_v37  ;;  %v3281_v62 = vld [vmem:[#allocation3 + $0xa4] sm:$0x1] }
 0x314   : > { %v3493_v31 = vsel %vm7705_vm9, %v3485_v26, %v3492_v22  ;;  %v3713_v33 = vsel %vm7686_vm3, %v3494_v60, %v3712_v35  ;;  %v3313_v38 = vpack.c.bf16 %v3177_v15, %v3177_v15  ;;  %v9192_v50 = vpop.f32.mrf.mxu0  ;;  %v3947_v26 = vrot.slane %v3945_v8, 4  ;;  %v3715_v22 = vld [vmem:[#allocation3 + $0x84] sm:$0xf]  ;;  %3235 = vst [vmem:[#allocation3 + $0x9c] sm:$0x1] %v3234_v0 }
 0x315   : > { %3711 = vst [vmem:[#allocation3 + $0x7c] sm:$0xf] %v3493_v31  ;;  %v3040_v23 = vpop.f32.mrf.mxu3  ;;  %v4275_v60 = vrot.slane %v4273_v11, 4  ;;  %v9203_v8 = vld [vmem:[#allocation3 + $0x44] sm:$0x1]  ;;  %v6619_v37 = vrot.slane %v9120_v57, 9 }
 0x316   : > { %3714 = vst [vmem:[#allocation3 + $0x80] sm:$0x1] %v3713_v33  ;;  %v3496_v12 = vshrl.u32 %v3313_v38, 16  ;;  %v3041_v45 = vadd.f32 %v3040_v23, %v2952_v55  ;;  %v3499_v16 = vshll.u32 %v3313_v38, 16  ;;  %v2956_v19 = vpop.f32.mrf.mxu2  ;;  %v3934_v33 = vrot.slane %v3932_v36, 4 }
 0x317   : > { %5514 = vmatmul.bf16.gmra.mxu0 %v8929_v27  ;;  %v3937_v38 = vrot.slane %v3935_v48, 5  ;;  %v3948_v40 = vor.u32 %v3947_v26, %v9195_v4  ;;  %v10460_v26 = vld [vmem:[#allocation30_spill] sm:$0xff]  ;;  %v4274_v57 = vsel %vm8230_vm14, %v6619_v37, %v4273_v11 }
 0x318   : > { %v3498_v35 = vrot.slane %v3496_v12, 7  ;;  %v3130_v54 = vadd.f32 %v9103_v13, %v3041_v45  ;;  %v4276_v13 = vrot.slane %v9143_v3, 5  ;;  %v9212_v45 = vpack.c.b16 %v4496_v28, %v4495_v58 }
 0x319   : > { %v3282_v28 = vsel %vm7692_vm4, 0, %v3281_v62  ;;  %v3949_v58 = vrot.slane %v3948_v40, 4 }
 0x31a   : > { %v3501_v15 = vor.u32 %v3499_v16, %v3498_v35  ;;  %v3178_v55 = vmax.f32 %v3130_v54, 0.0  ;;  %5420 = vmatmul.bf16.gmra.mxu3 %v9185_v24  ;;  %v9205_v31 = vpop.f32.mrf.mxu1  ;;  %v3951_v16 = vshll.u32 %v9203_v8, 16  ;;  %v4277_v48 = vsel %vm8230_vm14, %v4275_v60, %v4276_v13  ;;  %v10461_v54 = vld [vmem:[#allocation29_spill] sm:$0xff]  ;;  %3283 = vst [vmem:[#allocation3 + $0xa4] sm:$0x1] %v3282_v28 }
 0x31b   : > { %5336 = vmatmul.bf16.gmra.mxu2 %v9212_v45  ;;  %v2868_v0 = vadd.f32 %v10461_v54, %v10460_v26  ;;  %v3502_v60 = vrot.slane %v3498_v35, 4  ;;  %v3719_v13 = vld [vmem:[#allocation3 + $0x8c] sm:$0x1]  ;;  %v4559_v28 = vunpack.c.l.b16 %v4274_v57 }
 0x31c   : > { %v3716_v59 = vsel %vm7712_vm10, %v3501_v15, %v3715_v22  ;;  %v3314_v23 = vpack.c.bf16 %v3178_v55, %v3178_v55  ;;  %v9210_v12 = vld [vmem:[#allocation3 + $0x78] sm:$0xff]  ;;  %v9227_v22 = vpop.f32.mrf.mxu0  ;;  %v3938_v15 = vor.u32 %v3937_v38, %v3934_v33  ;;  %v3953_v24 = vrot.slane %v3951_v16, 5  ;;  %v9234_v38 = vld [vmem:[#allocation3 + $0x48] sm:$0xf] }
 0x31d   : > { %3717 = vst [vmem:[#allocation3 + $0x84] sm:$0xf] %v3716_v59  ;;  %v3043_v27 = vpop.f32.mrf.mxu3  ;;  %5277 = vmatmul.bf16.gmra.mxu1 %v9210_v12  ;;  %v9230_v59 = vld [vmem:[#allocation3 + $0x4c] sm:$0xf]  ;;  %v2957_v11 = vadd.f32 %v2956_v19, %v2868_v0 }
 0x31e   : > { %v3504_v3 = vshrl.u32 %v3314_v23, 16  ;;  %v3044_v36 = vadd.f32 %v3043_v27, %v2955_v63  ;;  %v3507_v9 = vshll.u32 %v3314_v23, 16  ;;  %v4560_v27 = vunpack.c.l.b16 %v4277_v48  ;;  %v2959_v62 = vpop.f32.mrf.mxu2 }
 0x31f   : > { %v3939_v33 = vrot.slane %v3938_v15, 4  ;;  %v3969_v23 = vshrl.u32 %v9230_v59, 16  ;;  %v3954_v19 = vsel %vm7728_vm11, %v3949_v58, %v3953_v24  ;;  %v4280_v48 = vrot.slane %v9170_v2, 5 }
 0x320   : > { %v3506_v55 = vrot.slane %v3504_v3, 7  ;;  %v3133_v63 = vadd.f32 %v9128_v41, %v3044_v36  ;;  %v3965_v41 = vshll.u32 %v9230_v59, 16  ;;  %v9244_v36 = vpack.c.b16 %v4560_v27, %v4559_v28 }
 0x321   : > { %v3944_v15 = vsel %vm7728_vm11, %v3939_v33, %v9195_v4  ;;  %v3959_v24 = vshll.u32 %v9234_v38, 16  ;;  %v3722_v4 = vld [vmem:[#allocation3 + $0x90] sm:$0xf] }
 0x322   : > { %v3509_v26 = vor.u32 %v3507_v9, %v3506_v55  ;;  %v3511_v54 = vrot.slane %v3506_v55, 4  ;;  %v3179_v47 = vmax.f32 %v3133_v63, 0.0  ;;  %v9232_v37 = vpop.f32.mrf.mxu1  ;;  %10462 = vst [vmem:[#allocation27_spill] sm:$0xff] %v9244_v36  ;;  %v3956_v55 = vshrl.u32 %v9234_v38, 16  ;;  %v3236_v63 = vld [vmem:[#allocation3 + $0xa8] sm:$0x1] }
 0x323   : > { %v9254_v58 = vrot.slane %v3965_v41, 5  ;;  %v2960_v41 = vadd.f32 %v2959_v62, %v8719_v20 }
 0x324   : > { %v3510_v35 = vsel %vm7705_vm9, %v3502_v60, %v3509_v26  ;;  %v3720_v40 = vsel %vm7686_vm3, %v3511_v54, %v3719_v13  ;;  %v3315_v16 = vpack.c.bf16 %v3179_v47, %v3179_v47  ;;  %v9251_v9 = vpop.f32.mrf.mxu0  ;;  %v4498_v47 = vunpack.c.l.b16 %v3954_v19 }
 0x325   : > { %3718 = vst [vmem:[#allocation3 + $0x88] sm:$0xf] %v3510_v35  ;;  %v3045_v3 = vpop.f32.mrf.mxu3  ;;  %v3971_v60 = vrot.slane %v3969_v23, 4  ;;  %v3237_v26 = vsel %vm7686_vm3, 0, %v3236_v63  ;;  %v4497_v23 = vunpack.c.l.b16 %v3944_v15  ;;  %v9265_v35 = vld [vmem:[#allocation3 + $0x50] sm:$0x1] }
 0x326   : > { %3721 = vst [vmem:[#allocation3 + $0x8c] sm:$0x1] %v3720_v40  ;;  %v3513_v0 = vshrl.u32 %v3315_v16, 16  ;;  %v3046_v57 = vadd.f32 %v3045_v3, %v2957_v11  ;;  %v3516_v2 = vshll.u32 %v3315_v16, 16  ;;  %v2961_v54 = vpop.f32.mrf.mxu2  ;;  %v4282_v11 = vrot.slane %v4280_v48, 4  ;;  %v7140_v15 = vld [vmem:[#allocation9 + $0x108] sm:$0xff] }
 0x327   : > { %3238 = vst [vmem:[#allocation3 + $0xa8] sm:$0x1] %v3237_v26  ;;  %5519 = vmatmul.bf16.gmra.mxu0 %v8978_v51  ;;  %v6620_v40 = vrot.slane %v9175_v39, 9  ;;  %v4283_v16 = vrot.slane %v9203_v8, 5  ;;  %v3958_v19 = vrot.slane %v3956_v55, 4  ;;  %v3961_v3 = vrot.slane %v3959_v24, 5  ;;  %5581 = vmatpush.bf16.msrb.mxu1 %v7140_v15 }
 0x328   : > { %v9256_v13 = vrot.slane %v3513_v0, 7  ;;  %v3135_v27 = vadd.f32 %v9167_v49, %v3046_v57  ;;  %v9275_v20 = vpack.c.b16 %v4498_v47, %v4497_v23  ;;  %v3972_v51 = vor.u32 %v3971_v60, %v9254_v58  ;;  %v10464_v24 = vld [vmem:[#allocation21_spill] sm:$0xff]  ;;  %v10465_v60 = vld [vmem:[#allocation31_spill] sm:$0xff] }
 0x329   : > { %v3975_v39 = vshll.u32 %v9265_v35, 16  ;;  %v4284_v55 = vsel %vm8230_vm14, %v4282_v11, %v4283_v16  ;;  %v2873_v26 = vadd.f32 %v10465_v60, %v10464_v24  ;;  %v9292_v11 = vld [vmem:[#allocation3 + $0x58] sm:$0xf] }
 0x32a   : > { %v3518_v28 = vor.u32 %v3516_v2, %v9256_v13  ;;  %v3180_v33 = vmax.f32 %v3135_v27, 0.0  ;;  %5425 = vmatmul.bf16.gmra.mxu3 %v9244_v36  ;;  %v9267_v49 = vpop.f32.mrf.mxu1  ;;  %10463 = vst [vmem:[#allocation37_spill] sm:$0xff] %v9275_v20  ;;  %v3284_v2 = vld [vmem:[#allocation3 + $0xb0] sm:$0x1]  ;;  %v3519_v16 = vrot.slane %v9256_v13, 4  ;;  %v4562_v36 = vunpack.c.l.b16 %v4284_v55 }
 0x32b   : > { %5341 = vmatmul.bf16.gmra.mxu2 %v9275_v20  ;;  %v3285_v47 = vsel %vm7692_vm4, 0, %v3284_v2  ;;  %v3726_v2 = vld [vmem:[#allocation3 + $0x98] sm:$0x1]  ;;  %v3977_v60 = vrot.slane %v3975_v39, 5  ;;  %v2962_v20 = vadd.f32 %v2961_v54, %v2873_v26 }
 0x32c   : > { %v3723_v0 = vsel %vm7712_vm10, %v3518_v28, %v3722_v4  ;;  %v3316_v57 = vpack.c.bf16 %v3180_v33, %v3180_v33  ;;  %v9273_v63 = vld [vmem:[#allocation3 + $0x84] sm:$0xff]  ;;  %v4281_v4 = vsel %vm8230_vm14, %v6620_v40, %v4280_v48  ;;  %v9289_v28 = vpop.f32.mrf.mxu0  ;;  %3286 = vst [vmem:[#allocation3 + $0xb0] sm:$0x1] %v3285_v47  ;;  %v3962_v33 = vor.u32 %v3961_v3, %v3958_v19 }
 0x32d   : > { %3724 = vst [vmem:[#allocation3 + $0x90] sm:$0xf] %v3723_v0  ;;  %v3048_v62 = vpop.f32.mrf.mxu3  ;;  %5282 = vmatmul.bf16.gmra.mxu1 %v9273_v63  ;;  %v4561_v19 = vunpack.c.l.b16 %v4281_v4  ;;  %v4287_v47 = vrot.slane %v9230_v59, 5 }
 0x32e   : > { %v3521_v27 = vshrl.u32 %v3316_v57, 16  ;;  %v3049_v8 = vadd.f32 %v3048_v62, %v2960_v41  ;;  %v3524_v23 = vshll.u32 %v3316_v57, 16  ;;  %v3973_v62 = vrot.slane %v3972_v51, 4  ;;  %v2964_v24 = vpop.f32.mrf.mxu2  ;;  %v9297_v57 = vld [vmem:[#allocation3 + $0x54] sm:$0xf] }
 0x32f   : > { %v3963_v3 = vrot.slane %v3962_v33, 4  ;;  %v3993_v51 = vshrl.u32 %v9292_v11, 16  ;;  %v9307_v55 = vpack.c.b16 %v4562_v36, %v4561_v19  ;;  %v3980_v33 = vshrl.u32 %v9297_v57, 16 }
 0x330   : > { %v3523_v41 = vrot.slane %v3521_v27, 7  ;;  %v3138_v0 = vadd.f32 %v9192_v50, %v3049_v8  ;;  %v3989_v50 = vshll.u32 %v9292_v11, 16  ;;  %v3978_v54 = vsel %vm7728_vm11, %v3973_v62, %v3977_v60 }
 0x331   : > { %10466 = vst [vmem:[#allocation41_spill] sm:$0xff] %v9307_v55  ;;  %v3983_v62 = vshll.u32 %v9297_v57, 16  ;;  %v3995_v36 = vrot.slane %v3993_v51, 4  ;;  %v9325_v51 = vld [vmem:[#allocation3 + $0x5c] sm:$0x1] }
 0x332   : > { %v3526_v21 = vor.u32 %v3524_v23, %v3523_v41  ;;  %v3528_v48 = vrot.slane %v3523_v41, 4  ;;  %v3181_v40 = vmax.f32 %v3138_v0, 0.0  ;;  %v9295_v15 = vpop.f32.mrf.mxu1  ;;  %v4500_v23 = vunpack.c.l.b16 %v3978_v54  ;;  %v3239_v0 = vld [vmem:[#allocation3 + $0xb4] sm:$0x1] }
 0x333   : > { %v3985_v54 = vrot.slane %v3983_v62, 5  ;;  %v3740_v6 = vld [vmem:[#allocation3 + $0xb0] sm:$0x1] }
 0x334   : > { %v3527_v13 = vsel %vm7705_vm9, %v3519_v16, %v3526_v21  ;;  %v3727_v39 = vsel %vm7686_vm3, %v3528_v48, %v3726_v2  ;;  %v3317_v27 = vpack.c.bf16 %v3181_v40, %v3181_v40  ;;  %v3968_v21 = vsel %vm7728_vm11, %v3963_v3, %v9254_v58  ;;  %v9314_v41 = vpop.f32.mrf.mxu0  ;;  %v3729_v48 = vld [vmem:[#allocation3 + $0x9c] sm:$0xf] }
 0x335   : > { %3725 = vst [vmem:[#allocation3 + $0x94] sm:$0xf] %v3527_v13  ;;  %v3050_v8 = vpop.f32.mrf.mxu3  ;;  %v9317_v16 = vrot.slane %v3989_v50, 5  ;;  %v4499_v40 = vunpack.c.l.b16 %v3968_v21  ;;  %v2965_v13 = vadd.f32 %v2964_v24, %v8730_v30  ;;  %v4289_v50 = vrot.slane %v4287_v47, 4 }
 0x336   : > { %3728 = vst [vmem:[#allocation3 + $0x98] sm:$0x1] %v3727_v39  ;;  %v3530_v26 = vshrl.u32 %v3317_v27, 16  ;;  %v3051_v4 = vadd.f32 %v3050_v8, %v2962_v20  ;;  %v3533_v59 = vshll.u32 %v3317_v27, 16  ;;  %v3240_v20 = vsel %vm7686_vm3, 0, %v3239_v0  ;;  %v2966_v58 = vpop.f32.mrf.mxu2 }
 0x337   : > { %3241 = vst [vmem:[#allocation3 + $0xb4] sm:$0x1] %v3240_v20  ;;  %5524 = vmatmul.bf16.gmra.mxu0 %v9029_v1  ;;  %v3982_v27 = vrot.slane %v3980_v33, 4  ;;  %v9334_v21 = vpack.c.b16 %v4500_v23, %v4499_v40  ;;  %v3996_v30 = vor.u32 %v3995_v36, %v9317_v16  ;;  %v6621_v24 = vrot.slane %v9234_v38, 9  ;;  %v3287_v0 = vld [vmem:[#allocation3 + $0xbc] sm:$0x1] }
 0x338   : > { %v3532_v2 = vrot.slane %v3530_v26, 7  ;;  %v3140_v60 = vadd.f32 %v9227_v22, %v3051_v4  ;;  %v4290_v22 = vrot.slane %v9265_v35, 5  ;;  %v3288_v23 = vsel %vm7692_vm4, 0, %v3287_v0  ;;  %v10468_v36 = vld [vmem:[#allocation33_spill] sm:$0xff] }
 0x339   : > { %10467 = vst [vmem:[#allocation39_spill] sm:$0xff] %v9334_v21  ;;  %v4288_v38 = vsel %vm8230_vm14, %v6621_v24, %v4287_v47 }
 0x33a   : > { %v3535_v19 = vor.u32 %v3533_v59, %v3532_v2  ;;  %v3182_v3 = vmax.f32 %v3140_v60, 0.0  ;;  %5430 = vmatmul.bf16.gmra.mxu3 %v9307_v55  ;;  %v9327_v39 = vpop.f32.mrf.mxu1  ;;  %v3999_v59 = vshll.u32 %v9325_v51, 16  ;;  %v4291_v62 = vsel %vm8230_vm14, %v4289_v50, %v4290_v22  ;;  %3289 = vst [vmem:[#allocation3 + $0xbc] sm:$0x1] %v3288_v23  ;;  %v3733_v22 = vld [vmem:[#allocation3 + $0xa4] sm:$0x1] }
 0x33b   : > { %5346 = vmatmul.bf16.gmra.mxu2 %v9334_v21  ;;  %v2878_v60 = vadd.f32 %v10468_v36, %v8733_v44  ;;  %v3536_v50 = vrot.slane %v3532_v2, 4  ;;  %v4563_v23 = vunpack.c.l.b16 %v4288_v38 }
 0x33c   : > { %v3730_v8 = vsel %vm7712_vm10, %v3535_v19, %v3729_v48  ;;  %v3318_v26 = vpack.c.bf16 %v3182_v3, %v3182_v3  ;;  %v9332_v4 = vld [vmem:[#allocation3 + $0x90] sm:$0xff]  ;;  %v9349_v20 = vpop.f32.mrf.mxu0  ;;  %v3986_v48 = vor.u32 %v3985_v54, %v3982_v27  ;;  %v4001_v55 = vrot.slane %v3999_v59, 5  ;;  %v9356_v54 = vld [vmem:[#allocation3 + $0x60] sm:$0xf] }
 0x33d   : > { %3731 = vst [vmem:[#allocation3 + $0x9c] sm:$0xf] %v3730_v8  ;;  %v3053_v1 = vpop.f32.mrf.mxu3  ;;  %5287 = vmatmul.bf16.gmra.mxu1 %v9332_v4  ;;  %v9352_v8 = vld [vmem:[#allocation3 + $0x64] sm:$0xf]  ;;  %v2967_v47 = vadd.f32 %v2966_v58, %v2878_v60 }
 0x33e   : > { %v3538_v35 = vshrl.u32 %v3318_v26, 16  ;;  %v3054_v33 = vadd.f32 %v3053_v1, %v2965_v13  ;;  %v3541_v19 = vshll.u32 %v3318_v26, 16  ;;  %v3997_v13 = vrot.slane %v3996_v30, 4  ;;  %v2969_v0 = vpop.f32.mrf.mxu2 }
 0x33f   : > { %v4564_v1 = vunpack.c.l.b16 %v4291_v62  ;;  %v3987_v27 = vrot.slane %v3986_v48, 4  ;;  %v4017_v26 = vshrl.u32 %v9352_v8, 16  ;;  %v4294_v48 = vrot.slane %v9292_v11, 5 }
 0x340   : > { %v3540_v40 = vrot.slane %v3538_v35, 7  ;;  %v3143_v3 = vadd.f32 %v9251_v9, %v3054_v33  ;;  %v4013_v9 = vshll.u32 %v9352_v8, 16  ;;  %v4002_v58 = vsel %vm7728_vm11, %v3997_v13, %v4001_v55 }
 0x341   : > { %v9366_v33 = vpack.c.b16 %v4564_v1, %v4563_v23  ;;  %v3992_v62 = vsel %vm7728_vm11, %v3987_v27, %v9317_v16  ;;  %v4007_v55 = vshll.u32 %v9356_v54, 16 }
 0x342   : > { %v3543_v44 = vor.u32 %v3541_v19, %v3540_v40  ;;  %v3545_v36 = vrot.slane %v3540_v40, 4  ;;  %v3183_v21 = vmax.f32 %v3143_v3, 0.0  ;;  %v9354_v24 = vpop.f32.mrf.mxu1  ;;  %v4004_v40 = vshrl.u32 %v9356_v54, 16  ;;  %v3242_v3 = vld [vmem:[#allocation3 + $0xc0] sm:$0x1] }
 0x343   : > { %10469 = vst [vmem:[#allocation15_spill] sm:$0xff] %v9366_v33  ;;  %v9376_v13 = vrot.slane %v4013_v9, 5  ;;  %v4296_v9 = vrot.slane %v4294_v48, 4 }
 0x344   : > { %v3544_v2 = vsel %vm7705_vm9, %v3536_v50, %v3543_v44  ;;  %v3734_v30 = vsel %vm7686_vm3, %v3545_v36, %v3733_v22  ;;  %v3319_v59 = vpack.c.bf16 %v3183_v21, %v3183_v21  ;;  %v9373_v19 = vpop.f32.mrf.mxu0  ;;  %v4502_v21 = vunpack.c.l.b16 %v4002_v58  ;;  %v3736_v36 = vld [vmem:[#allocation3 + $0xa8] sm:$0xf] }
 0x345   : > { %3732 = vst [vmem:[#allocation3 + $0xa0] sm:$0xf] %v3544_v2  ;;  %v3055_v35 = vpop.f32.mrf.mxu3  ;;  %v4019_v50 = vrot.slane %v4017_v26, 4  ;;  %v3243_v44 = vsel %vm7686_vm3, 0, %v3242_v3  ;;  %v2970_v2 = vadd.f32 %v2969_v0, %v8739_v14  ;;  %v9384_v26 = vld [vmem:[#allocation3 + $0x68] sm:$0x1] }
 0x346   : > { %3735 = vst [vmem:[#allocation3 + $0xa4] sm:$0x1] %v3734_v30  ;;  %v3547_v60 = vshrl.u32 %v3319_v59, 16  ;;  %v3056_v38 = vadd.f32 %v3055_v35, %v2967_v47  ;;  %v3550_v1 = vshll.u32 %v3319_v59, 16  ;;  %v2971_v11 = vpop.f32.mrf.mxu2  ;;  %v4501_v47 = vunpack.c.l.b16 %v3992_v62  ;;  %v7139_v3 = vld [vmem:[#allocation9 + $0x100] sm:$0xff] }
 0x347   : > { %3244 = vst [vmem:[#allocation3 + $0xc0] sm:$0x1] %v3243_v44  ;;  %5529 = vmatmul.bf16.gmra.mxu0 %v9089_v7  ;;  %v4297_v59 = vrot.slane %v9325_v51, 5  ;;  %v4006_v58 = vrot.slane %v4004_v40, 4  ;;  %v4020_v35 = vor.u32 %v4019_v50, %v9376_v13  ;;  %v4009_v7 = vrot.slane %v4007_v55, 5  ;;  %v10471_v55 = vld [vmem:[#allocation23_spill] sm:$0xff]  ;;  %5582 = vmatpush.bf16.msrb.mxu1 %v7139_v3 }
 0x348   : > { %v3549_v22 = vrot.slane %v3547_v60, 7  ;;  %v3145_v16 = vadd.f32 %v9289_v28, %v3056_v38  ;;  %v6622_v28 = vrot.slane %v9297_v57, 9  ;;  %v9395_v14 = vpack.c.b16 %v4502_v21, %v4501_v47 }
 0x349   : > { %v4023_v57 = vshll.u32 %v9384_v26, 16  ;;  %v4298_v40 = vsel %vm8230_vm14, %v4296_v9, %v4297_v59  ;;  %v2883_v50 = vadd.f32 %v10471_v55, %v8746_v46 }
 0x34a   : > { %v3552_v23 = vor.u32 %v3550_v1, %v3549_v22  ;;  %v3184_v27 = vmax.f32 %v3145_v16, 0.0  ;;  %5435 = vmatmul.bf16.gmra.mxu3 %v9366_v33  ;;  %v9386_v30 = vpop.f32.mrf.mxu1  ;;  %10470 = vst [vmem:[#allocation40_spill] sm:$0xff] %v9395_v14  ;;  %v3290_v1 = vld [vmem:[#allocation3 + $0xc8] sm:$0x1]  ;;  %v3553_v9 = vrot.slane %v3549_v22, 4  ;;  %v4566_v59 = vunpack.c.l.b16 %v4298_v40 }
 0x34b   : > { %5351 = vmatmul.bf16.gmra.mxu2 %v9395_v14  ;;  %v3291_v21 = vsel %vm7692_vm4, 0, %v3290_v1  ;;  %v4010_v1 = vor.u32 %v4009_v7, %v4006_v58  ;;  %v4025_v46 = vrot.slane %v4023_v57, 5 }
 0x34c   : > { %v3737_v62 = vsel %vm7712_vm10, %v3552_v23, %v3736_v36  ;;  %v3320_v60 = vpack.c.bf16 %v3184_v27, %v3184_v27  ;;  %v9393_v38 = vld [vmem:[#allocation3 + $0x9c] sm:$0xff]  ;;  %v9406_v44 = vpop.f32.mrf.mxu0  ;;  %3292 = vst [vmem:[#allocation3 + $0xc8] sm:$0x1] %v3291_v21  ;;  %v4021_v36 = vrot.slane %v4020_v35, 4  ;;  %v2972_v21 = vadd.f32 %v2971_v11, %v2883_v50  ;;  %v9425_v50 = vld [vmem:[#allocation3 + $0x6c] sm:$0xf] }
 0x34d   : > { %3738 = vst [vmem:[#allocation3 + $0xa8] sm:$0xf] %v3737_v62  ;;  %v3058_v0 = vpop.f32.mrf.mxu3  ;;  %5292 = vmatmul.bf16.gmra.mxu1 %v9393_v38  ;;  %v9411_v62 = vld [vmem:[#allocation3 + $0x70] sm:$0xf]  ;;  %v4011_v11 = vrot.slane %v4010_v1, 4 }
 0x34e   : > { %v3555_v16 = vshrl.u32 %v3320_v60, 16  ;;  %v3059_v51 = vadd.f32 %v3058_v0, %v2970_v2  ;;  %v3558_v23 = vshll.u32 %v3320_v60, 16  ;;  %v4295_v2 = vsel %vm8230_vm14, %v6622_v28, %v4294_v48  ;;  %v2974_v0 = vpop.f32.mrf.mxu2 }
 0x34f   : > { %v4565_v60 = vunpack.c.l.b16 %v4295_v2  ;;  %v4037_v48 = vshll.u32 %v9411_v62, 16  ;;  %v4041_v7 = vshrl.u32 %v9411_v62, 16  ;;  %v7162_v2 = vld [vmem:[#allocation9 + $0x1b8] sm:$0xff] }
 0x350   : > { %v3557_v47 = vrot.slane %v3555_v16, 7  ;;  %v3148_v27 = vadd.f32 %v9314_v41, %v3059_v51  ;;  %v4026_v41 = vsel %vm7728_vm11, %v4021_v36, %v4025_v46  ;;  %5753 = vmatpush.bf16.msra.mxu3 %v7162_v2 }
 0x351   : > { %v9423_v40 = vpack.c.b16 %v4566_v59, %v4565_v60  ;;  %v4043_v46 = vrot.slane %v4041_v7, 4  ;;  %v6623_v7 = vrot.slane %v9356_v54, 9 }
 0x352   : > { %v3560_v55 = vor.u32 %v3558_v23, %v3557_v47  ;;  %v3562_v33 = vrot.slane %v3557_v47, 4  ;;  %v3185_v3 = vmax.f32 %v3148_v27, 0.0  ;;  %v9413_v35 = vpop.f32.mrf.mxu1  ;;  %v4016_v47 = vsel %vm7728_vm11, %v4011_v11, %v9376_v13  ;;  %v7154_v27 = vld [vmem:[#allocation9 + $0x178] sm:$0xff] }
 0x353   : > { %10472 = vst [vmem:[#allocation44_spill] sm:$0xff] %v9423_v40  ;;  %v4301_v23 = vrot.slane %v9352_v8, 5  ;;  %5664 = vmatpush.bf16.msra.mxu2 %v7154_v27  ;;  %v4031_v13 = vshll.u32 %v9425_v50, 16  ;;  %v4304_v27 = vrot.slane %v9384_v26, 5 }
 0x354   : > { %v3561_v22 = vsel %vm7705_vm9, %v3553_v9, %v3560_v55  ;;  %v3741_v28 = vsel %vm7686_vm3, %v3562_v33, %v3740_v6  ;;  %v3321_v58 = vpack.c.bf16 %v3185_v3, %v3185_v3  ;;  %v9427_v36 = vpop.f32.mrf.mxu0  ;;  %v4504_v33 = vunpack.c.l.b16 %v4026_v41  ;;  %v3743_v55 = vld [vmem:[#allocation3 + $0xb4] sm:$0xf]  ;;  %v10473_v41 = vld [vmem:[#allocation34_spill] sm:$0xff] }
 0x355   : > { %3739 = vst [vmem:[#allocation3 + $0xac] sm:$0xf] %v3561_v22  ;;  %v3060_v57 = vpop.f32.mrf.mxu3  ;;  %v9433_v9 = vrot.slane %v4037_v48, 5  ;;  %v2975_v48 = vadd.f32 %v2974_v0, %v10473_v41  ;;  %v4503_v22 = vunpack.c.l.b16 %v4016_v47  ;;  %v4302_v26 = vsel %vm8230_vm14, %v6623_v7, %v4301_v23 }
 0x356   : > { %3742 = vst [vmem:[#allocation3 + $0xb0] sm:$0x1] %v3741_v28  ;;  %v3564_v16 = vshrl.u32 %v3321_v58, 16  ;;  %v3061_v51 = vadd.f32 %v3060_v57, %v2972_v21  ;;  %v3567_v1 = vshll.u32 %v3321_v58, 16  ;;  %v2976_v3 = vpop.f32.mrf.mxu2  ;;  %v4028_v21 = vshrl.u32 %v9425_v50, 16 }
 0x357   : > { %5534 = vmatmul.bf16.gmra.mxu0 %v9152_v32  ;;  %v9449_v28 = vld [vmem:[%s10277_s4] ss:$0 sm:$0xff]  ;;  %v4303_v57 = vrot.slane %v4301_v23, 4  ;;  %v4044_v32 = vor.u32 %v4043_v46, %v9433_v9 }
 0x358   : > { %v9435_v6 = vrot.slane %v3564_v16, 7  ;;  %v3150_v59 = vadd.f32 %v9349_v20, %v3061_v51  ;;  %v9444_v20 = vld [vmem:[#allocation3 + $0x74] sm:$0x1]  ;;  %v9458_v51 = vpack.c.b16 %v4504_v33, %v4503_v22  ;;  %v4030_v2 = vrot.slane %v4028_v21, 4  ;;  %v10476_v33 = vld [vmem:[#allocation35_spill] sm:$0xff] }
 0x359   : > { %v5229_v46 = vadd.f32 %v9449_v28, %v9078_v10  ;;  %v4305_v21 = vsel %vm8230_vm14, %v4303_v57, %v4304_v27  ;;  %v9477_v27 = vld [vmem:[#allocation3 + $0x7c] sm:$0xf]  ;;  %v5231_v43 = vadd.f32 %v9449_v28, %v9110_v61  ;;  %v5236_v5 = vadd.f32 %v9449_v28, %v9173_v29 }
 0x35a   : > { %v3569_v8 = vor.u32 %v3567_v1, %v9435_v6  ;;  %v3186_v60 = vmax.f32 %v3150_v59, 0.0  ;;  %5440 = vmatmul.bf16.gmra.mxu3 %v9423_v40  ;;  %v9451_v58 = vpop.f32.mrf.mxu1  ;;  %10475 = vst [vmem:[#allocation42_spill] sm:$0xff] %v9458_v51  ;;  %v4033_v1 = vrot.slane %v4031_v13, 5  ;;  %v4047_v59 = vshll.u32 %v9444_v20, 16 }
 0x35b   : > { %10474 = vst [vmem:[#allocation45_spill] sm:$0xff] %v9451_v58  ;;  %5356 = vmatmul.bf16.gmra.mxu2 %v9458_v51 }
 0x35c   : > { %v3744_v11 = vsel %vm7712_vm10, %v3569_v8, %v3743_v55  ;;  %v3322_v16 = vpack.c.bf16 %v3186_v60, %v3186_v60  ;;  %v9456_v0 = vld [vmem:[#allocation3 + $0xa8] sm:$0xff]  ;;  %v7170_v55 = vld [vmem:[#allocation9 + $0x1f8] sm:$0xff]  ;;  %v2888_v60 = vadd.f32 %v9050_v52, %v10476_v33  ;;  %v9473_v13 = vpop.f32.mrf.mxu0  ;;  %v3570_v52 = vrot.slane %v9435_v6, 4  ;;  %v3747_v33 = vld [vmem:[#allocation3 + $0xbc] sm:$0x1] }
 0x35d   : > { %3745 = vst [vmem:[#allocation3 + $0xb4] sm:$0xf] %v3744_v11  ;;  %v3063_v47 = vpop.f32.mrf.mxu3  ;;  %5297 = vmatmul.bf16.gmra.mxu1 %v9456_v0  ;;  %v7178_v8 = vld [vmem:[#allocation9 + $0x238] sm:$0xff]  ;;  %5842 = vmatpush.bf16.msra.mxu0 %v7170_v55  ;;  %v4034_v51 = vor.u32 %v4033_v1, %v4030_v2  ;;  %v4049_v14 = vrot.slane %v4047_v59, 5  ;;  %v9487_v2 = vld [vmem:[#allocation3 + $0x78] sm:$0xf]  ;;  %v4567_v59 = vunpack.c.l.b16 %v4302_v26 }
 0x35e   : > { %v3572_v54 = vshrl.u32 %v3322_v16, 16  ;;  %v3064_v41 = vadd.f32 %v3063_v47, %v2975_v48  ;;  %v3575_v22 = vshll.u32 %v3322_v16, 16  ;;  %v4045_v47 = vrot.slane %v4044_v32, 4  ;;  %5931 = vmatpush.bf16.msra.mxu1 %v7178_v8  ;;  %v5317_v10 = vpop.f32.mrf.mxu2 }
 0x35f   : > { %v2977_v40 = vadd.f32 %v2976_v3, %v2888_v60  ;;  %v5318_v57 = vadd.f32 %v5317_v10, %v5229_v46  ;;  %v4568_v16 = vunpack.c.l.b16 %v4305_v21  ;;  %v4061_v55 = vshll.u32 %v9477_v27, 16 }
 0x360   : > { %v3574_v48 = vrot.slane %v3572_v54, 7  ;;  %v3153_v11 = vadd.f32 %v9373_v19, %v3064_v41  ;;  %v4050_v3 = vsel %vm7728_vm11, %v4045_v47, %v4049_v14  ;;  %v4035_v41 = vrot.slane %v4034_v51, 4 }
 0x361   : > { %v4065_v8 = vshrl.u32 %v9477_v27, 16  ;;  %v9491_v21 = vpack.c.b16 %v4568_v16, %v4567_v59  ;;  %v4055_v47 = vshll.u32 %v9487_v2, 16  ;;  %v9502_v10 = vrot.slane %v4061_v55, 5 }
 0x362   : > { %v3577_v23 = vor.u32 %v3575_v22, %v3574_v48  ;;  %v3579_v7 = vrot.slane %v3574_v48, 4  ;;  %v3187_v58 = vmax.f32 %v3153_v11, 0.0  ;;  %v9479_v54 = vpop.f32.mrf.mxu1  ;;  %v4040_v14 = vsel %vm7728_vm11, %v4035_v41, %v9433_v9 }
 0x363   : > { %10477 = vst [vmem:[#allocation16_spill] sm:$0xff] %v9491_v21  ;;  %v4052_v22 = vshrl.u32 %v9487_v2, 16  ;;  %v4505_v9 = vunpack.c.l.b16 %v4040_v14  ;;  %v4057_v59 = vrot.slane %v4055_v47, 5 }
 0x364   : > { %v3578_v19 = vsel %vm7705_vm9, %v3570_v52, %v3577_v23  ;;  %v3748_v6 = vsel %vm7686_vm3, %v3579_v7, %v3747_v33  ;;  %v3323_v32 = vpack.c.bf16 %v3187_v58, %v3187_v58  ;;  %v9493_v48 = vpop.f32.mrf.mxu0  ;;  %v4506_v58 = vunpack.c.l.b16 %v4050_v3  ;;  %v3750_v52 = vld [vmem:[#allocation3 + $0xc0] sm:$0xf] }
 0x365   : > { %3746 = vst [vmem:[#allocation3 + $0xb8] sm:$0xf] %v3578_v19  ;;  %v3065_v1 = vpop.f32.mrf.mxu3  ;;  %v4067_v23 = vrot.slane %v4065_v8, 4 }
 0x366   : > { %3749 = vst [vmem:[#allocation3 + $0xbc] sm:$0x1] %v3748_v6  ;;  %v3581_v60 = vshrl.u32 %v3323_v32, 16  ;;  %v3066_v46 = vadd.f32 %v3065_v1, %v2977_v40  ;;  %v3584_v51 = vshll.u32 %v3323_v32, 16  ;;  %v5319_v33 = vpop.f32.mrf.mxu2  ;;  %v4308_v40 = vrot.slane %v9411_v62, 5 }
 0x367   : > { %5539 = vmatmul.bf16.gmra.mxu0 %v9210_v12  ;;  %v4054_v6 = vrot.slane %v4052_v22, 4  ;;  %v9512_v62 = vpack.c.b16 %v4506_v58, %v4505_v9  ;;  %v9514_v1 = vld [vmem:[#allocation3 + $0x80] sm:$0x1]  ;;  %v4068_v8 = vor.u32 %v4067_v23, %v9502_v10  ;;  %v5234_v22 = vadd.f32 %v9449_v28, %v9145_v18 }
 0x368   : > { %v3583_v26 = vrot.slane %v3581_v60, 7  ;;  %v3155_v11 = vadd.f32 %v9406_v44, %v3066_v46  ;;  %v4310_v55 = vrot.slane %v4308_v40, 4  ;;  %v4311_v46 = vrot.slane %v9444_v20, 5 }
 0x369   : > { %10478 = vst [vmem:[#allocation43_spill] sm:$0xff] %v9512_v62  ;;  %v4071_v58 = vshll.u32 %v9514_v1, 16  ;;  %v4058_v47 = vor.u32 %v4057_v59, %v4054_v6  ;;  %v6624_v23 = vrot.slane %v9425_v50, 9 }
 0x36a   : > { %v3586_v7 = vor.u32 %v3584_v51, %v3583_v26  ;;  %v3188_v16 = vmax.f32 %v3155_v11, 0.0  ;;  %5445 = vmatmul.bf16.gmra.mxu3 %v9491_v21  ;;  %v9506_v19 = vpop.f32.mrf.mxu1  ;;  %v9530_v21 = vld [vmem:[#allocation3 + $0x88] sm:$0xf] }
 0x36b   : > { %5361 = vmatmul.bf16.gmra.mxu2 %v9512_v62  ;;  %v4309_v18 = vsel %vm8230_vm14, %v6624_v23, %v4308_v40  ;;  %v4085_v40 = vshll.u32 %v9530_v21, 16  ;;  %v4315_v23 = vrot.slane %v9477_v27, 5 }
 0x36c   : > { %v3751_v44 = vsel %vm7712_vm10, %v3586_v7, %v3750_v52  ;;  %v3324_v32 = vpack.c.bf16 %v3188_v16, %v3188_v16  ;;  %v9510_v3 = vld [vmem:[#allocation3 + $0xb4] sm:$0xff]  ;;  %v9522_v14 = vpop.f32.mrf.mxu0  ;;  %v3754_v52 = vld [vmem:[#allocation3 + $0xc8] sm:$0x1]  ;;  %v4312_v7 = vsel %vm8230_vm14, %v4310_v55, %v4311_v46  ;;  %v4069_v16 = vrot.slane %v4068_v8, 4 }
 0x36d   : > { %3752 = vst [vmem:[#allocation3 + $0xc0] sm:$0xf] %v3751_v44  ;;  %v5406_v41 = vpop.f32.mrf.mxu3  ;;  %5302 = vmatmul.bf16.gmra.mxu1 %v9510_v3  ;;  %v5320_v44 = vadd.f32 %v5319_v33, %v5231_v43  ;;  %v4570_v59 = vunpack.c.l.b16 %v4312_v7  ;;  %v4059_v33 = vrot.slane %v4058_v47, 4  ;;  %v4569_v34 = vunpack.c.l.b16 %v4309_v18  ;;  %v7153_v43 = vld [vmem:[#allocation9 + $0x170] sm:$0xff] }
 0x36e   : > { %v3589_v12 = vshrl.u32 %v3324_v32, 16  ;;  %v5407_v60 = vadd.f32 %v5406_v41, %v5318_v57  ;;  %v3592_v11 = vshll.u32 %v3324_v32, 16  ;;  %v3587_v57 = vrot.slane %v3583_v26, 4  ;;  %v5322_v61 = vpop.f32.mrf.mxu2  ;;  %v7161_v46 = vld [vmem:[#allocation9 + $0x1b0] sm:$0xff]  ;;  %5665 = vmatpush.bf16.msra.mxu2 %v7153_v43 }
 0x36f   : > { %v5323_v41 = vadd.f32 %v5322_v61, %v5234_v22  ;;  %v4073_v26 = vrot.slane %v4071_v58, 5  ;;  %v4064_v22 = vsel %vm7728_vm11, %v4059_v33, %v9502_v10  ;;  %5754 = vmatpush.bf16.msra.mxu3 %v7161_v46  ;;  %v9561_v7 = vrot.slane %v4085_v40, 5 }
 0x370   : > { %v3591_v51 = vrot.slane %v3589_v12, 7  ;;  %v9537_v6 = vadd.f32 %v9427_v36, %v5407_v60  ;;  %v9545_v12 = vld [vmem:[#allocation3 + $0x84] sm:$0xf]  ;;  %v4089_v36 = vshrl.u32 %v9530_v21, 16 }
 0x371   : > { %v4074_v8 = vsel %vm7728_vm11, %v4069_v16, %v4073_v26  ;;  %v4076_v47 = vshrl.u32 %v9545_v12, 16  ;;  %v4507_v16 = vunpack.c.l.b16 %v4064_v22 }
 0x372   : > { %v3594_v20 = vor.u32 %v3592_v11, %v3591_v51  ;;  %v3596_v9 = vrot.slane %v3591_v51, 4  ;;  %v9532_v62 = vpop.f32.mrf.mxu1  ;;  %v9556_v51 = vpack.c.b16 %v4570_v59, %v4569_v34  ;;  %v4508_v11 = vunpack.c.l.b16 %v4074_v8 }
 0x373   : > { %v4091_v29 = vrot.slane %v4089_v36, 4  ;;  %v4078_v18 = vrot.slane %v4076_v47, 4  ;;  %v9596_v47 = vld [vmem:[#allocation3 + $0x94] sm:$0xf] }
 0x374   : > { %v3595_v50 = vsel %vm7705_vm9, %v3587_v57, %v3594_v20  ;;  %v3755_v32 = vsel %vm7686_vm3, %v3596_v9, %v3754_v52  ;;  %v9551_v58 = vpop.f32.mrf.mxu0  ;;  %10479 = vst [vmem:[#allocation17_spill] sm:$0xff] %v9556_v51  ;;  %v4079_v57 = vshll.u32 %v9545_v12, 16  ;;  %v9570_v9 = vpack.c.b16 %v4508_v11, %v4507_v16  ;;  %v9577_v33 = vld [vmem:[#allocation3 + $0xc0] sm:$0xf] }
 0x375   : > { %3753 = vst [vmem:[#allocation3 + $0xc4] sm:$0xf] %v3595_v50  ;;  %v5408_v55 = vpop.f32.mrf.mxu3  ;;  %v4317_v50 = vrot.slane %v4315_v23, 4  ;;  %v6631_v22 = vrot.slane %v9577_v33, 9 }
 0x376   : > { %3756 = vst [vmem:[#allocation3 + $0xc8] sm:$0x1] %v3755_v32  ;;  %v5409_v60 = vadd.f32 %v5408_v55, %v5320_v44  ;;  %v5324_v52 = vpop.f32.mrf.mxu2  ;;  %v9572_v44 = vld [vmem:[#allocation3 + $0x8c] sm:$0x1]  ;;  %v4081_v27 = vrot.slane %v4079_v57, 5  ;;  %v4092_v32 = vor.u32 %v4091_v29, %v9561_v7  ;;  %v4318_v55 = vrot.slane %v9514_v1, 5 }
 0x377   : > { %v5325_v61 = vadd.f32 %v5324_v52, %v5236_v5  ;;  %5544 = vmatmul.bf16.gmra.mxu0 %v9273_v63  ;;  %v7169_v63 = vld [vmem:[#allocation9 + $0x1f0] sm:$0xff]  ;;  %10480 = vst [vmem:[#allocation18_spill] sm:$0xff] %v9577_v33  ;;  %v4095_v40 = vshll.u32 %v9572_v44, 16 }
 0x378   : > { %v9566_v10 = vadd.f32 %v9473_v13, %v5409_v60  ;;  %v7177_v13 = vld [vmem:[#allocation9 + $0x230] sm:$0xff]  ;;  %v5239_v60 = vadd.f32 %v9449_v28, %v9205_v31  ;;  %5843 = vmatpush.bf16.msra.mxu0 %v7169_v63  ;;  %v4319_v1 = vsel %vm8230_vm14, %v4317_v50, %v4318_v55  ;;  %v4093_v5 = vrot.slane %v4092_v32, 4  ;;  %v9612_v55 = vld [vmem:[#allocation3 + $0x90] sm:$0xf] }
 0x379   : > { %5932 = vmatpush.bf16.msra.mxu1 %v7177_v13  ;;  %v4097_v52 = vrot.slane %v4095_v40, 5  ;;  %v4109_v32 = vshll.u32 %v9596_v47, 16 }
 0x37a   : > { %5450 = vmatmul.bf16.gmra.mxu3 %v9556_v51  ;;  %v9568_v20 = vpop.f32.mrf.mxu1 }
 0x37b   : > { %5366 = vmatmul.bf16.gmra.mxu2 %v9570_v9 }
 0x37c   : > { %v9580_v8 = vpop.f32.mrf.mxu0  ;;  %v9583_v36 = vld [vmem:[#allocation3 + $0xc4] sm:$0xf] }
 0x37d   : > { %v5411_v26 = vpop.f32.mrf.mxu3  ;;  %5583 = vmatmul.bf16.vlgmr.msrb.gmra.mxu1 %v9031_v17  ;;  %10481 = vst [vmem:[#allocation48_spill] sm:$0xff] %v9583_v36  ;;  %v4082_v17 = vor.u32 %v4081_v27, %v4078_v18  ;;  %v9588_v34 = vld [vmem:[#allocation3 + $0xc8] sm:$0x1]  ;;  %v4384_v43 = vrot.slane %v9583_v36, 5  ;;  %v4572_v27 = vunpack.c.l.b16 %v4319_v1 }
 0x37e   : > { %v5412_v59 = vadd.f32 %v5411_v26, %v5323_v41  ;;  %v6625_v41 = vrot.slane %v9487_v2, 9  ;;  %10482 = vst [vmem:[#allocation46_spill] sm:$0xff] %v9588_v34  ;;  %v5327_v46 = vpop.f32.mrf.mxu2  ;;  %v4387_v18 = vrot.slane %v9588_v34, 5 }
 0x37f   : > { %v5328_v31 = vadd.f32 %v5327_v46, %v5239_v60  ;;  %v4385_v29 = vsel %vm8230_vm14, %v6631_v22, %v4384_v43  ;;  %v4386_v16 = vrot.slane %v4384_v43, 4  ;;  %v4083_v26 = vrot.slane %v4082_v17, 4 }
 0x380   : > { %v4316_v11 = vsel %vm8230_vm14, %v6625_v41, %v4315_v23  ;;  %v9599_v2 = vadd.f32 %v9493_v48, %v5412_v59  ;;  %v4098_v23 = vsel %vm7728_vm11, %v4093_v5, %v4097_v52  ;;  %v4113_v48 = vshrl.u32 %v9596_v47, 16 }
 0x381   : > { %v4388_v59 = vsel %vm8230_vm14, %v4386_v16, %v4387_v18  ;;  %v4571_v13 = vunpack.c.l.b16 %v4316_v11  ;;  %v4623_v40 = vunpack.c.l.b16 %v4385_v29  ;;  %v5241_v41 = vadd.f32 %v9449_v28, %v9232_v37 }
 0x382   : > { %v9601_v57 = vpop.f32.mrf.mxu1  ;;  %v4624_v60 = vunpack.c.l.b16 %v4388_v59  ;;  %v4088_v43 = vsel %vm7728_vm11, %v4083_v26, %v9561_v7  ;;  %v4510_v46 = vunpack.c.l.b16 %v4098_v23  ;;  %v4322_v5 = vrot.slane %v9530_v21, 5  ;;  %v9637_v26 = vld [vmem:[#allocation3 + $0x98] sm:$0x1] }
 0x383   : > { %v9621_v1 = vpack.c.b16 %v4572_v27, %v4571_v13  ;;  %v4100_v11 = vshrl.u32 %v9612_v55, 16  ;;  %v4103_v52 = vshll.u32 %v9612_v55, 16  ;;  %v4111_v29 = vrot.slane %v4109_v32, 5 }
 0x384   : > { %v9616_v17 = vpop.f32.mrf.mxu0  ;;  %v4115_v37 = vrot.slane %v4113_v48, 4  ;;  %v4509_v18 = vunpack.c.l.b16 %v4088_v43  ;;  %v4324_v23 = vrot.slane %v4322_v5, 4 }
 0x385   : > { %v5413_v50 = vpop.f32.mrf.mxu3  ;;  %10483 = vst [vmem:[#allocation20_spill] sm:$0xff] %v9621_v1  ;;  %v4102_v59 = vrot.slane %v4100_v11, 4  ;;  %v4105_v32 = vrot.slane %v4103_v52, 5  ;;  %v9650_v11 = vld [vmem:[#allocation3 + $0xa0] sm:$0xf] }
 0x386   : > { %v5414_v63 = vadd.f32 %v5413_v50, %v5325_v61  ;;  %v9624_v61 = vpack.c.b16 %v4624_v60, %v4623_v40  ;;  %v5329_v22 = vpop.f32.mrf.mxu2  ;;  %v9635_v21 = vpack.c.b16 %v4510_v46, %v4509_v18  ;;  %v4116_v48 = vor.u32 %v4115_v37, %v4111_v29 }
 0x387   : > { %v5330_v16 = vadd.f32 %v5329_v22, %v5241_v41  ;;  %5549 = vmatmul.bf16.gmra.mxu0 %v9332_v4  ;;  %v4325_v4 = vrot.slane %v9572_v44, 5  ;;  %v5244_v40 = vadd.f32 %v9449_v28, %v9267_v49  ;;  %v6626_v60 = vrot.slane %v9545_v12, 9 }
 0x388   : > { %10484 = vst [vmem:[#allocation47_spill] sm:$0xff] %v9624_v61  ;;  %v9631_v7 = vadd.f32 %v9522_v14, %v5414_v63  ;;  %v4119_v63 = vshll.u32 %v9637_v26, 16  ;;  %v4117_v46 = vrot.slane %v4116_v48, 4 }
 0x389   : > { %v4326_v41 = vsel %vm8230_vm14, %v4324_v23, %v4325_v4  ;;  %v4323_v37 = vsel %vm8230_vm14, %v6626_v60, %v4322_v5 }
 0x38a   : > { %5455 = vmatmul.bf16.gmra.mxu3 %v9621_v1  ;;  %v9633_v27 = vpop.f32.mrf.mxu1  ;;  %v4121_v49 = vrot.slane %v4119_v63, 5  ;;  %v4574_v18 = vunpack.c.l.b16 %v4326_v41  ;;  %v4573_v4 = vunpack.c.l.b16 %v4323_v37  ;;  %v5246_v63 = vadd.f32 %v9449_v28, %v9295_v15 }
 0x38b   : > { %5371 = vmatmul.bf16.gmra.mxu2 %v9635_v21 }
 0x38c   : > { %v9642_v14 = vpop.f32.mrf.mxu0  ;;  %v4122_v23 = vsel %vm7728_vm11, %v4117_v46, %v4121_v49  ;;  %v9671_v60 = vpack.c.b16 %v4574_v18, %v4573_v4 }
 0x38d   : > { %v5416_v50 = vpop.f32.mrf.mxu3  ;;  %5588 = vmatmul.bf16.gmra.mxu1 %v9091_v56  ;;  %v4512_v41 = vunpack.c.l.b16 %v4122_v23  ;;  %v9685_v23 = vld [vmem:[#allocation3 + $0xa4] sm:$0x1] }
 0x38e   : > { %v5417_v13 = vadd.f32 %v5416_v50, %v5328_v31  ;;  %v5332_v43 = vpop.f32.mrf.mxu2  ;;  %v4106_v31 = vor.u32 %v4105_v32, %v4102_v59  ;;  %v4133_v59 = vshll.u32 %v9650_v11, 16  ;;  %v4137_v32 = vshrl.u32 %v9650_v11, 16  ;;  %10485 = vst [vmem:[#allocation51_spill] sm:$0xff] %v9671_v60 }
 0x38f   : > { %v5333_v22 = vadd.f32 %v5332_v43, %v5244_v40  ;;  %v9663_v40 = vld [vmem:[#allocation3 + $0x9c] sm:$0xf] }
 0x390   : > { %v9653_v44 = vadd.f32 %v9551_v58, %v5417_v13  ;;  %v4107_v50 = vrot.slane %v4106_v31, 4  ;;  %v7152_v58 = vld [vmem:[#allocation9 + $0x168] sm:$0xff]  ;;  %v4329_v31 = vrot.slane %v9596_v47, 5  ;;  %v4124_v46 = vshrl.u32 %v9663_v40, 16 }
 0x391   : > { %v7160_v13 = vld [vmem:[#allocation9 + $0x1a8] sm:$0xff]  ;;  %5666 = vmatpush.bf16.msra.mxu2 %v7152_v58  ;;  %v4127_v37 = vshll.u32 %v9663_v40, 16  ;;  %v4135_v49 = vrot.slane %v4133_v59, 5 }
 0x392   : > { %v9655_v52 = vpop.f32.mrf.mxu1  ;;  %v4112_v5 = vsel %vm7728_vm11, %v4107_v50, %v4111_v29  ;;  %5755 = vmatpush.bf16.msra.mxu3 %v7160_v13  ;;  %v4331_v58 = vrot.slane %v4329_v31, 4  ;;  %v4126_v13 = vrot.slane %v4124_v46, 4 }
 0x393   : > { %v4511_v50 = vunpack.c.l.b16 %v4112_v5  ;;  %v4129_v59 = vrot.slane %v4127_v37, 5  ;;  %v7176_v5 = vld [vmem:[#allocation9 + $0x228] sm:$0xff] }
 0x394   : > { %v9665_v43 = vpop.f32.mrf.mxu0  ;;  %5933 = vmatpush.bf16.msra.mxu1 %v7176_v5 }
 0x395   : > { %v5418_v12 = vpop.f32.mrf.mxu3  ;;  %v9683_v47 = vpack.c.b16 %v4512_v41, %v4511_v50  ;;  %v5249_v41 = vadd.f32 %v9449_v28, %v9327_v39  ;;  %v4130_v37 = vor.u32 %v4129_v59, %v4126_v13 }
 0x396   : > { %v5419_v48 = vadd.f32 %v5418_v12, %v5330_v16  ;;  %v5334_v16 = vpop.f32.mrf.mxu2  ;;  %v4139_v12 = vrot.slane %v4137_v32, 4 }
 0x397   : > { %v5335_v29 = vadd.f32 %v5334_v16, %v5246_v63  ;;  %5554 = vmatmul.bf16.gmra.mxu0 %v9393_v38  ;;  %v7168_v38 = vld [vmem:[#allocation9 + $0x1e8] sm:$0xff]  ;;  %v4143_v63 = vshll.u32 %v9685_v23, 16  ;;  %v6627_v16 = vrot.slane %v9612_v55, 9  ;;  %v4131_v1 = vrot.slane %v4130_v37, 4 }
 0x398   : > { %v9679_v15 = vadd.f32 %v9580_v8, %v5419_v48  ;;  %v4140_v32 = vor.u32 %v4139_v12, %v4135_v49  ;;  %v4332_v8 = vrot.slane %v9637_v26, 5  ;;  %5844 = vmatpush.bf16.msra.mxu0 %v7168_v38 }
 0x399   : > { %v4330_v39 = vsel %vm8230_vm14, %v6627_v16, %v4329_v31  ;;  %v4145_v38 = vrot.slane %v4143_v63, 5  ;;  %v4136_v31 = vsel %vm7728_vm11, %v4131_v1, %v4135_v49  ;;  %v5251_v63 = vadd.f32 %v9449_v28, %v9354_v24 }
 0x39a   : > { %5460 = vmatmul.bf16.gmra.mxu3 %v9671_v60  ;;  %v9681_v18 = vpop.f32.mrf.mxu1  ;;  %v4141_v12 = vrot.slane %v4140_v32, 4 }
 0x39b   : > { %5376 = vmatmul.bf16.gmra.mxu2 %v9683_v47 }
 0x39c   : > { %v9690_v48 = vpop.f32.mrf.mxu0 }
 0x39d   : > { %v5421_v4 = vpop.f32.mrf.mxu3  ;;  %5593 = vmatmul.bf16.gmra.mxu1 %v9147_v53 }
 0x39e   : > { %v5422_v61 = vadd.f32 %v5421_v4, %v5333_v22  ;;  %v4333_v22 = vsel %vm8230_vm14, %v4331_v58, %v4332_v8  ;;  %v5337_v46 = vpop.f32.mrf.mxu2  ;;  %v9698_v4 = vld [vmem:[#allocation3 + $0xac] sm:$0xf]  ;;  %v4146_v58 = vsel %vm7728_vm11, %v4141_v12, %v4145_v38  ;;  %v4575_v8 = vunpack.c.l.b16 %v4330_v39 }
 0x39f   : > { %v5338_v50 = vadd.f32 %v5337_v46, %v5249_v41  ;;  %v4576_v5 = vunpack.c.l.b16 %v4333_v22  ;;  %v4157_v13 = vshll.u32 %v9698_v4, 16  ;;  %v4161_v59 = vshrl.u32 %v9698_v4, 16 }
 0x3a0   : > { %v9701_v26 = vadd.f32 %v9616_v17, %v5422_v61  ;;  %v9711_v17 = vld [vmem:[#allocation3 + $0xa8] sm:$0xf]  ;;  %v4514_v16 = vunpack.c.l.b16 %v4146_v58  ;;  %v4336_v22 = vrot.slane %v9650_v11, 5  ;;  %v9733_v11 = vld [vmem:[#allocation3 + $0xb0] sm:$0x1] }
 0x3a1   : > { %v9719_v41 = vpack.c.b16 %v4576_v5, %v4575_v8  ;;  %v4148_v37 = vshrl.u32 %v9711_v17, 16  ;;  %v4159_v12 = vrot.slane %v4157_v13, 5  ;;  %v4163_v39 = vrot.slane %v4161_v59, 4 }
 0x3a2   : > { %v9703_v60 = vpop.f32.mrf.mxu1  ;;  %v4338_v58 = vrot.slane %v4336_v22, 4 }
 0x3a3   : > { %10486 = vst [vmem:[#allocation49_spill] sm:$0xff] %v9719_v41  ;;  %v4150_v8 = vrot.slane %v4148_v37, 4  ;;  %v4164_v59 = vor.u32 %v4163_v39, %v4159_v12  ;;  %v9746_v39 = vld [vmem:[#allocation3 + $0xb8] sm:$0xf] }
 0x3a4   : > { %v9713_v61 = vpop.f32.mrf.mxu0 }
 0x3a5   : > { %v5423_v55 = vpop.f32.mrf.mxu3  ;;  %v4165_v37 = vrot.slane %v4164_v59, 4  ;;  %v4185_v59 = vshrl.u32 %v9746_v39, 16 }
 0x3a6   : > { %v5424_v32 = vadd.f32 %v5423_v55, %v5335_v29  ;;  %v5339_v46 = vpop.f32.mrf.mxu2  ;;  %v4151_v29 = vshll.u32 %v9711_v17, 16  ;;  %v4513_v55 = vunpack.c.l.b16 %v4136_v31  ;;  %v5254_v31 = vadd.f32 %v9449_v28, %v9386_v30 }
 0x3a7   : > { %v5340_v38 = vadd.f32 %v5339_v46, %v5251_v63  ;;  %5559 = vmatmul.bf16.gmra.mxu0 %v9456_v0  ;;  %v4339_v0 = vrot.slane %v9685_v23, 5  ;;  %v6628_v63 = vrot.slane %v9663_v40, 9 }
 0x3a8   : > { %v9727_v24 = vadd.f32 %v9642_v14, %v5424_v32  ;;  %v9731_v49 = vpack.c.b16 %v4514_v16, %v4513_v55  ;;  %v4153_v13 = vrot.slane %v4151_v29, 5  ;;  %v4167_v32 = vshll.u32 %v9733_v11, 16 }
 0x3a9   : > { %v4340_v16 = vsel %vm8230_vm14, %v4338_v58, %v4339_v0  ;;  %v7151_v0 = vld [vmem:[#allocation9 + $0x160] sm:$0xff] }
 0x3aa   : > { %5465 = vmatmul.bf16.gmra.mxu3 %v9719_v41  ;;  %v9729_v1 = vpop.f32.mrf.mxu1  ;;  %10487 = vst [vmem:[#allocation22_spill] sm:$0xff] %v9731_v49  ;;  %v4169_v30 = vrot.slane %v4167_v32, 5  ;;  %v4578_v41 = vunpack.c.l.b16 %v4340_v16  ;;  %v5256_v32 = vadd.f32 %v9449_v28, %v9413_v35  ;;  %5667 = vmatpush.bf16.msra.mxu2 %v7151_v0 }
 0x3ab   : > { %5381 = vmatmul.bf16.gmra.mxu2 %v9731_v49 }
 0x3ac   : > { %v9738_v14 = vpop.f32.mrf.mxu0  ;;  %v4170_v58 = vsel %vm7728_vm11, %v4165_v37, %v4169_v30 }
 0x3ad   : > { %v5426_v5 = vpop.f32.mrf.mxu3  ;;  %5598 = vmatmul.bf16.gmra.mxu1 %v9212_v45  ;;  %v4516_v16 = vunpack.c.l.b16 %v4170_v58 }
 0x3ae   : > { %v5427_v34 = vadd.f32 %v5426_v5, %v5338_v50  ;;  %v5342_v46 = vpop.f32.mrf.mxu2  ;;  %v4154_v50 = vor.u32 %v4153_v13, %v4150_v8  ;;  %v4337_v5 = vsel %vm8230_vm14, %v6628_v63, %v4336_v22  ;;  %v9757_v8 = vld [vmem:[#allocation3 + $0xb4] sm:$0xf]  ;;  %v4181_v13 = vshll.u32 %v9746_v39, 16 }
 0x3af   : > { %v5343_v29 = vadd.f32 %v5342_v46, %v5254_v31  ;;  %v7159_v31 = vld [vmem:[#allocation9 + $0x1a0] sm:$0xff]  ;;  %v4172_v37 = vshrl.u32 %v9757_v8, 16 }
 0x3b0   : > { %v9749_v23 = vadd.f32 %v9665_v43, %v5427_v34  ;;  %v4155_v51 = vrot.slane %v4154_v50, 4  ;;  %v4577_v43 = vunpack.c.l.b16 %v4337_v5  ;;  %v7167_v46 = vld [vmem:[#allocation9 + $0x1e0] sm:$0xff]  ;;  %v4343_v50 = vrot.slane %v9698_v4, 5  ;;  %5756 = vmatpush.bf16.msra.mxu3 %v7159_v31  ;;  %v7166_v4 = vld [vmem:[#allocation9 + $0x1d8] sm:$0xff] }
 0x3b1   : > { %5845 = vmatpush.bf16.msra.mxu0 %v7167_v46  ;;  %v4175_v5 = vshll.u32 %v9757_v8, 16  ;;  %v9772_v30 = vrot.slane %v4181_v13, 5  ;;  %v9783_v31 = vld [vmem:[#allocation3 + $0xbc] sm:$0x1]  ;;  %v4174_v46 = vrot.slane %v4172_v37, 4  ;;  %v10493_v37 = vld [vmem:[#allocation45_spill] sm:$0xff] }
 0x3b2   : > { %10488 = vst [vmem:[#allocation50_spill] sm:$0xff] %v9749_v23  ;;  %v9751_v55 = vpop.f32.mrf.mxu1  ;;  %v4160_v22 = vsel %vm7728_vm11, %v4155_v51, %v4159_v12  ;;  %v9767_v63 = vpack.c.b16 %v4578_v41, %v4577_v43  ;;  %v7150_v41 = vld [vmem:[#allocation9 + $0x158] sm:$0xff] }
 0x3b3   : > { %v4515_v35 = vunpack.c.l.b16 %v4160_v22  ;;  %v7158_v12 = vld [vmem:[#allocation9 + $0x198] sm:$0xff]  ;;  %5668 = vmatpush.bf16.msra.mxu2 %v7150_v41  ;;  %v4177_v22 = vrot.slane %v4175_v5, 5  ;;  %v4191_v41 = vshll.u32 %v9783_v31, 16  ;;  %v5259_v5 = vadd.f32 %v9449_v28, %v10493_v37 }
 0x3b4   : > { %v9761_v33 = vpop.f32.mrf.mxu0  ;;  %10489 = vst [vmem:[#allocation52_spill] sm:$0xff] %v9767_v63  ;;  %5757 = vmatpush.bf16.msra.mxu3 %v7158_v12  ;;  %v7175_v12 = vld [vmem:[#allocation9 + $0x220] sm:$0xff] }
 0x3b5   : > { %v5428_v40 = vpop.f32.mrf.mxu3  ;;  %v9781_v0 = vpack.c.b16 %v4516_v16, %v4515_v35  ;;  %5846 = vmatpush.bf16.msra.mxu0 %v7166_v4  ;;  %v7165_v16 = vld [vmem:[#allocation9 + $0x1d0] sm:$0xff]  ;;  %v4346_v35 = vrot.slane %v9733_v11, 5  ;;  %v6629_v4 = vrot.slane %v9711_v17, 9  ;;  %5934 = vmatpush.bf16.msra.mxu1 %v7175_v12 }
 0x3b6   : > { %v5429_v34 = vadd.f32 %v5428_v40, %v5340_v38  ;;  %v5344_v38 = vpop.f32.mrf.mxu2  ;;  %v4187_v40 = vrot.slane %v4185_v59, 4  ;;  %v4345_v59 = vrot.slane %v4343_v50, 4 }
 0x3b7   : > { %v5345_v51 = vadd.f32 %v5344_v38, %v5256_v32  ;;  %5564 = vmatmul.bf16.gmra.mxu0 %v9510_v3  ;;  %10491 = vst [vmem:[#allocation53_spill] sm:$0xff] %v9781_v0  ;;  %v10492_v38 = vld [vmem:[#allocation37_spill] sm:$0xff] }
 0x3b8   : > { %v9777_v58 = vadd.f32 %v9690_v48, %v5429_v34  ;;  %v4188_v3 = vor.u32 %v4187_v40, %v9772_v30  ;;  %v7149_v48 = vld [vmem:[#allocation9 + $0x150] sm:$0xff]  ;;  %v7156_v40 = vld [vmem:[#allocation9 + $0x188] sm:$0xff] }
 0x3b9   : > { %v7157_v34 = vld [vmem:[#allocation9 + $0x190] sm:$0xff]  ;;  %5669 = vmatpush.bf16.msra.mxu2 %v7149_v48  ;;  %5847 = vmatpush.bf16.msra.mxu0 %v7165_v16  ;;  %v4344_v48 = vsel %vm8230_vm14, %v6629_v4, %v4343_v50 }
 0x3ba   : > { %5470 = vmatmul.bf16.gmra.mxu3 %v9767_v63  ;;  %10490 = vst [vmem:[#allocation24_spill] sm:$0xff] %v9777_v58  ;;  %v9779_v43 = vpop.f32.mrf.mxu1  ;;  %v4189_v11 = vrot.slane %v4188_v3, 4  ;;  %v7164_v58 = vld [vmem:[#allocation9 + $0x1c8] sm:$0xff]  ;;  %v7147_v3 = vld [vmem:[#allocation9 + $0x140] sm:$0xff] }
 0x3bb   : > { %5386 = vmatmul.bf16.gmra.mxu2 %v9781_v0  ;;  %5758 = vmatpush.bf16.msra.mxu3 %v7157_v34  ;;  %v4178_v0 = vor.u32 %v4177_v22, %v4174_v46  ;;  %v4193_v34 = vrot.slane %v4191_v41, 5  ;;  %v5261_v41 = vadd.f32 %v9449_v28, %v9479_v54 }
 0x3bc   : > { %v9789_v63 = vpop.f32.mrf.mxu0 }
 0x3bd   : > { %v5431_v13 = vpop.f32.mrf.mxu3  ;;  %5603 = vmatmul.bf16.gmra.mxu1 %v10492_v38  ;;  %v4194_v46 = vsel %vm7728_vm11, %v4189_v11, %v4193_v34  ;;  %5848 = vmatpush.bf16.msra.mxu0 %v7164_v58  ;;  %v4350_v58 = vrot.slane %v9746_v39, 5  ;;  %v10494_v34 = vld [vmem:[#allocation39_spill] sm:$0xff]  ;;  %v4353_v39 = vrot.slane %v9783_v31, 5 }
 0x3be   : > { %v5432_v32 = vadd.f32 %v5431_v13, %v5343_v29  ;;  %v7148_v29 = vld [vmem:[#allocation9 + $0x148] sm:$0xff]  ;;  %v4347_v13 = vsel %vm8230_vm14, %v4345_v59, %v4346_v35  ;;  %v5347_v36 = vpop.f32.mrf.mxu2  ;;  %v4179_v35 = vrot.slane %v4178_v0, 4  ;;  %v4518_v0 = vunpack.c.l.b16 %v4194_v46 }
 0x3bf   : > { %v5348_v49 = vadd.f32 %v5347_v36, %v5259_v5  ;;  %v4580_v17 = vunpack.c.l.b16 %v4347_v13  ;;  %5670 = vmatpush.bf16.msra.mxu2 %v7148_v29  ;;  %5759 = vmatpush.bf16.msra.mxu3 %v7156_v40  ;;  %v4579_v36 = vunpack.c.l.b16 %v4344_v48  ;;  %v9813_v5 = vld [vmem:[#allocation3 + $0xc0] sm:$0xff]  ;;  %v4352_v11 = vrot.slane %v4350_v58, 4 }
 0x3c0   : > { %v9798_v23 = vadd.f32 %v9713_v61, %v5432_v32  ;;  %v7155_v61 = vld [vmem:[#allocation9 + $0x180] sm:$0xff]  ;;  %v4184_v50 = vsel %vm7728_vm11, %v4179_v35, %v9772_v30 }
 0x3c1   : > { %v7163_v32 = vld [vmem:[#allocation9 + $0x1c0] sm:$0xff]  ;;  %v9811_v12 = vpack.c.b16 %v4580_v17, %v4579_v36  ;;  %v4517_v40 = vunpack.c.l.b16 %v4184_v50  ;;  %v4354_v35 = vsel %vm8230_vm14, %v4352_v11, %v4353_v39  ;;  %v10496_v11 = vld [vmem:[#allocation25_spill] sm:$0xff]  ;;  %v5269_v39 = vadd.f32 %v9449_v28, %v9568_v20 }
 0x3c2   : > { %v9800_v37 = vpop.f32.mrf.mxu1  ;;  %5849 = vmatpush.bf16.msra.mxu0 %v7163_v32  ;;  %v4582_v31 = vunpack.c.l.b16 %v4354_v35 }
 0x3c3   : > { %5671 = vmatpush.bf16.msra.mxu2 %v7147_v3  ;;  %5760 = vmatpush.bf16.msra.mxu3 %v7155_v61  ;;  %v9823_v4 = vpack.c.b16 %v4518_v0, %v4517_v40 }
 0x3c4   : > { %v5530_v16 = vpop.f32.mrf.mxu0 }
 0x3c5   : > { %v5433_v59 = vpop.f32.mrf.mxu3 }
 0x3c6   : > { %v5434_v22 = vadd.f32 %v5433_v59, %v5345_v51  ;;  %v5349_v51 = vpop.f32.mrf.mxu2  ;;  %v5264_v59 = vadd.f32 %v9449_v28, %v9506_v19 }
 0x3c7   : > { %v5350_v29 = vadd.f32 %v5349_v51, %v5261_v41  ;;  %5569 = vmatmul.bf16.gmra.mxu0 %v9813_v5 }
 0x3c8   : > { %v9819_v30 = vadd.f32 %v9738_v14, %v5434_v22  ;;  %v6630_v14 = vrot.slane %v9757_v8, 9  ;;  %v5266_v8 = vadd.f32 %v9449_v28, %v9532_v62  ;;  %v7174_v62 = vld [vmem:[#allocation9 + $0x218] sm:$0xff] }
 0x3c9   : > { %5935 = vmatpush.bf16.msra.mxu1 %v7174_v62 }
 0x3ca   : > { %5475 = vmatmul.bf16.gmra.mxu3 %v9811_v12  ;;  %v9821_v54 = vpop.f32.mrf.mxu1  ;;  %v4351_v3 = vsel %vm8230_vm14, %v6630_v14, %v4350_v58 }
 0x3cb   : > { %5391 = vmatmul.bf16.gmra.mxu2 %v9823_v4  ;;  %v4581_v50 = vunpack.c.l.b16 %v4351_v3 }
 0x3cc   : > { %v5532_v17 = vpop.f32.mrf.mxu0 }
 0x3cd   : > { %v5436_v13 = vpop.f32.mrf.mxu3  ;;  %5608 = vmatmul.bf16.gmra.mxu1 %v10494_v34  ;;  %v9842_v41 = vpack.c.b16 %v4582_v31, %v4581_v50 }
 0x3ce   : > { %v5437_v48 = vadd.f32 %v5436_v13, %v5348_v49  ;;  %v5352_v46 = vpop.f32.mrf.mxu2  ;;  %v10495_v13 = vld [vmem:[#allocation40_spill] sm:$0xff] }
 0x3cf   : > { %v5353_v22 = vadd.f32 %v5352_v46, %v5264_v59 }
 0x3d0   : > { %v9834_v36 = vadd.f32 %v9761_v33, %v5437_v48 }
 0x3d2   : > { %v9836_v49 = vpop.f32.mrf.mxu1 }
 0x3d4   : > { %v5535_v19 = vpop.f32.mrf.mxu0 }
 0x3d5   : > { %v5438_v61 = vpop.f32.mrf.mxu3 }
 0x3d6   : > { %v5439_v32 = vadd.f32 %v5438_v61, %v5350_v29  ;;  %v5354_v0 = vpop.f32.mrf.mxu2  ;;  %v7324_v61 = vld [vmem:[#allocation3 + $0x18] sm:$0xff] }
 0x3d7   : > { %v5355_v33 = vadd.f32 %v5354_v0, %v5266_v8  ;;  %5850 = vmatmul.bf16.vlgmr.msra.gmra.mxu0 %v9091_v56  ;;  %v10497_v0 = vld [vmem:[#allocation42_spill] sm:$0xff] }
 0x3d8   : > { %v9847_v51 = vadd.f32 %v9789_v63, %v5439_v32 }
 0x3da   : > { %5480 = vmatmul.bf16.gmra.mxu3 %v9842_v41  ;;  %v9849_v58 = vpop.f32.mrf.mxu1 }
 0x3db   : > { %5672 = vmatmul.bf16.vlgmr.msra.gmra.mxu2 %v10496_v11 }
 0x3dc   : > { %v5537_v48 = vpop.f32.mrf.mxu0 }
 0x3dd   : > { %v5441_v40 = vpop.f32.mrf.mxu3  ;;  %5613 = vmatmul.bf16.gmra.mxu1 %v10495_v13 }
 0x3de   : > { %v5442_v29 = vadd.f32 %v5441_v40, %v5353_v22  ;;  %v5357_v59 = vpop.f32.mrf.mxu2  ;;  %v5271_v22 = vadd.f32 %v9449_v28, %v9601_v57  ;;  %v10498_v40 = vld [vmem:[#allocation38_spill] sm:$0xff]  ;;  %v5274_v57 = vadd.f32 %v9449_v28, %v9633_v27 }
 0x3df   : > { %v5358_v14 = vadd.f32 %v5357_v59, %v5269_v39 }
 0x3e0   : > { %v9855_v56 = vadd.f32 %v5530_v16, %v5442_v29 }
 0x3e2   : > { %v9857_v63 = vpop.f32.mrf.mxu1 }
 0x3e4   : > { %v5540_v3 = vpop.f32.mrf.mxu0 }
 0x3e5   : > { %v5443_v35 = vpop.f32.mrf.mxu3 }
 0x3e6   : > { %v5444_v46 = vadd.f32 %v5443_v35, %v5355_v33  ;;  %v5359_v31 = vpop.f32.mrf.mxu2 }
 0x3e7   : > { %v5360_v32 = vadd.f32 %v5359_v31, %v5271_v22  ;;  %5855 = vmatmul.bf16.gmra.mxu0 %v9147_v53  ;;  %v7326_v22 = vld [vmem:[#allocation3 + $0x24] sm:$0xff] }
 0x3e8   : > { %v9862_v20 = vadd.f32 %v5532_v17, %v5444_v46 }
 0x3ea   : > { %5761 = vmatmul.bf16.vlgmr.msra.gmra.mxu3 %v7324_v61  ;;  %v9864_v50 = vpop.f32.mrf.mxu1 }
 0x3eb   : > { %5677 = vmatmul.bf16.gmra.mxu2 %v10498_v40 }
 0x3ec   : > { %v5542_v33 = vpop.f32.mrf.mxu0 }
 0x3ed   : > { %v5446_v16 = vpop.f32.mrf.mxu3  ;;  %5618 = vmatmul.bf16.gmra.mxu1 %v10497_v0 }
 0x3ee   : > { %v5447_v8 = vadd.f32 %v5446_v16, %v5358_v14  ;;  %v5362_v29 = vpop.f32.mrf.mxu2  ;;  %v9877_v14 = vld [vmem:[%s10277_s4] ss:$0 sm:$0xff]  ;;  %v10499_v16 = vld [vmem:[#allocation43_spill] sm:$0xff] }
 0x3ef   : > { %v5363_v11 = vadd.f32 %v5362_v29, %v5274_v57  ;;  %v5276_v35 = vadd.f32 %v9877_v14, %v9655_v52  ;;  %v7173_v57 = vld [vmem:[#allocation9 + $0x210] sm:$0xff]  ;;  %v5279_v29 = vadd.f32 %v9877_v14, %v9681_v18 }
 0x3f0   : > { %v9870_v62 = vadd.f32 %v5535_v19, %v5447_v8  ;;  %v10500_v8 = vld [vmem:[#allocation36_spill] sm:$0xff]  ;;  %5936 = vmatpush.bf16.msra.mxu1 %v7173_v57 }
 0x3f2   : > { %v9872_v39 = vpop.f32.mrf.mxu1 }
 0x3f4   : > { %v5545_v59 = vpop.f32.mrf.mxu0 }
 0x3f5   : > { %v5448_v53 = vpop.f32.mrf.mxu3 }
 0x3f6   : > { %v5449_v17 = vadd.f32 %v5448_v53, %v5360_v32  ;;  %v5364_v46 = vpop.f32.mrf.mxu2 }
 0x3f7   : > { %v5365_v28 = vadd.f32 %v5364_v46, %v5276_v35  ;;  %5860 = vmatmul.bf16.gmra.mxu0 %v9212_v45 }
 0x3f8   : > { %v9882_v27 = vadd.f32 %v5537_v48, %v5449_v17 }
 0x3fa   : > { %5766 = vmatmul.bf16.gmra.mxu3 %v7326_v22  ;;  %v5584_v19 = vpop.f32.mrf.mxu1  ;;  %v5281_v22 = vadd.f32 %v9877_v14, %v9703_v60  ;;  %v5284_v60 = vadd.f32 %v9877_v14, %v9729_v1 }
 0x3fb   : > { %v9885_v31 = vadd.f32 %v5584_v19, %v9537_v6  ;;  %5682 = vmatmul.bf16.gmra.mxu2 %v10500_v8 }
 0x3fc   : > { %v5547_v52 = vpop.f32.mrf.mxu0 }
 0x3fd   : > { %v5451_v61 = vpop.f32.mrf.mxu3  ;;  %5623 = vmatmul.bf16.gmra.mxu1 %v10499_v16 }
 0x3fe   : > { %v5452_v32 = vadd.f32 %v5451_v61, %v5363_v11  ;;  %v5367_v53 = vpop.f32.mrf.mxu2  ;;  %v7327_v61 = vld [vmem:[#allocation3 + $0x30] sm:$0xff] }
 0x3ff   : > { %v5368_v45 = vadd.f32 %v5367_v53, %v5279_v29 }
 0x400   : > { %v9891_v48 = vadd.f32 %v5540_v3, %v5452_v32 }
 0x402   : > { %v5586_v17 = vpop.f32.mrf.mxu1 }
 0x403   : > { %v9894_v6 = vadd.f32 %v5586_v17, %v9566_v10 }
 0x404   : > { %v5550_v46 = vpop.f32.mrf.mxu0 }
 0x405   : > { %v5453_v35 = vpop.f32.mrf.mxu3 }
 0x406   : > { %v5454_v11 = vadd.f32 %v5453_v35, %v5365_v28  ;;  %v5369_v19 = vpop.f32.mrf.mxu2  ;;  %v10501_v28 = vld [vmem:[#allocation27_spill] sm:$0xff] }
 0x407   : > { %v5370_v42 = vadd.f32 %v5369_v19, %v5281_v22  ;;  %5865 = vmatmul.bf16.gmra.mxu0 %v10492_v38 }
 0x408   : > { %v9899_v18 = vadd.f32 %v5542_v33, %v5454_v11 }
 0x40a   : > { %5771 = vmatmul.bf16.gmra.mxu3 %v7327_v61  ;;  %v5589_v3 = vpop.f32.mrf.mxu1  ;;  %v7328_v61 = vld [vmem:[#allocation3 + $0x3c] sm:$0xff] }
 0x40b   : > { %v9902_v32 = vadd.f32 %v5589_v3, %v9599_v2  ;;  %5687 = vmatmul.bf16.gmra.mxu2 %v10501_v28 }
 0x40c   : > { %v5552_v29 = vpop.f32.mrf.mxu0 }
 0x40d   : > { %v5456_v10 = vpop.f32.mrf.mxu3  ;;  %5628 = vmatmul.bf16.gmra.mxu1 %v9570_v9 }
 0x40e   : > { %v5457_v57 = vadd.f32 %v5456_v10, %v5368_v45  ;;  %v5372_v53 = vpop.f32.mrf.mxu2  ;;  %v5286_v45 = vadd.f32 %v9877_v14, %v9751_v55 }
 0x40f   : > { %v5373_v17 = vadd.f32 %v5372_v53, %v5284_v60  ;;  %v7172_v60 = vld [vmem:[#allocation9 + $0x208] sm:$0xff]  ;;  %v5289_v53 = vadd.f32 %v9877_v14, %v9779_v43 }
 0x410   : > { %v9908_v35 = vadd.f32 %v5545_v59, %v5457_v57  ;;  %5937 = vmatpush.bf16.msra.mxu1 %v7172_v60 }
 0x412   : > { %v5591_v38 = vpop.f32.mrf.mxu1 }
 0x413   : > { %v9911_v33 = vadd.f32 %v5591_v38, %v9631_v7 }
 0x414   : > { %v5555_v22 = vpop.f32.mrf.mxu0 }
 0x415   : > { %v5458_v2 = vpop.f32.mrf.mxu3 }
 0x416   : > { %v5459_v11 = vadd.f32 %v5458_v2, %v5370_v42  ;;  %v5374_v19 = vpop.f32.mrf.mxu2  ;;  %v10502_v42 = vld [vmem:[#allocation41_spill] sm:$0xff] }
 0x417   : > { %v5375_v3 = vadd.f32 %v5374_v19, %v5286_v45  ;;  %5870 = vmatmul.bf16.gmra.mxu0 %v10494_v34  ;;  %v5291_v19 = vadd.f32 %v9877_v14, %v9800_v37  ;;  %v5294_v37 = vadd.f32 %v9877_v14, %v9821_v54 }
 0x418   : > { %v9916_v1 = vadd.f32 %v5547_v52, %v5459_v11 }
 0x41a   : > { %5776 = vmatmul.bf16.gmra.mxu3 %v7328_v61  ;;  %v5594_v59 = vpop.f32.mrf.mxu1 }
 0x41b   : > { %v9919_v10 = vadd.f32 %v5594_v59, %v9653_v44  ;;  %5692 = vmatmul.bf16.gmra.mxu2 %v10502_v42  ;;  %v7329_v59 = vld [vmem:[#allocation3 + $0x48] sm:$0xff] }
 0x41c   : > { %v5557_v55 = vpop.f32.mrf.mxu0 }
 0x41d   : > { %v5461_v7 = vpop.f32.mrf.mxu3  ;;  %5633 = vmatmul.bf16.gmra.mxu1 %v9635_v21 }
 0x41e   : > { %v5462_v57 = vadd.f32 %v5461_v7, %v5373_v17  ;;  %v5377_v38 = vpop.f32.mrf.mxu2 }
 0x41f   : > { %v5378_v34 = vadd.f32 %v5377_v38, %v5289_v53 }
 0x420   : > { %v9925_v52 = vadd.f32 %v5550_v46, %v5462_v57 }
 0x422   : > { %v5596_v2 = vpop.f32.mrf.mxu1 }
 0x423   : > { %v9928_v44 = vadd.f32 %v5596_v2, %v9679_v15 }
 0x424   : > { %v5560_v45 = vpop.f32.mrf.mxu0 }
 0x425   : > { %v5463_v11 = vpop.f32.mrf.mxu3 }
 0x426   : > { %v5464_v17 = vadd.f32 %v5463_v11, %v5375_v3  ;;  %v5379_v61 = vpop.f32.mrf.mxu2  ;;  %v10503_v3 = vld [vmem:[#allocation15_spill] sm:$0xff] }
 0x427   : > { %v5380_v7 = vadd.f32 %v5379_v61, %v5291_v19  ;;  %5875 = vmatmul.bf16.gmra.mxu0 %v10495_v13  ;;  %v7330_v61 = vld [vmem:[#allocation3 + $0x54] sm:$0xff] }
 0x428   : > { %v9933_v43 = vadd.f32 %v5552_v29, %v5464_v17 }
 0x42a   : > { %5781 = vmatmul.bf16.gmra.mxu3 %v7329_v59  ;;  %v5599_v46 = vpop.f32.mrf.mxu1 }
 0x42b   : > { %v9936_v57 = vadd.f32 %v5599_v46, %v9701_v26  ;;  %5697 = vmatmul.bf16.gmra.mxu2 %v10503_v3 }
 0x42c   : > { %v5562_v38 = vpop.f32.mrf.mxu0 }
 0x42d   : > { %v5466_v15 = vpop.f32.mrf.mxu3  ;;  %5638 = vmatmul.bf16.gmra.mxu1 %v9683_v47 }
 0x42e   : > { %v5467_v60 = vadd.f32 %v5466_v15, %v5378_v34  ;;  %v5382_v53 = vpop.f32.mrf.mxu2  ;;  %v5296_v34 = vadd.f32 %v9877_v14, %v9836_v49  ;;  %v10504_v15 = vld [vmem:[#allocation50_spill] sm:$0xff] }
 0x42f   : > { %v5383_v2 = vadd.f32 %v5382_v53, %v5294_v37  ;;  %v10506_v53 = vld [vmem:[#allocation22_spill] sm:$0xff] }
 0x430   : > { %v9942_v11 = vadd.f32 %v5555_v22, %v5467_v60  ;;  %v7171_v49 = vld [vmem:[#allocation9 + $0x200] sm:$0xff] }
 0x431   : > { %5938 = vmatpush.bf16.msra.mxu1 %v7171_v49 }
 0x432   : > { %v5601_v13 = vpop.f32.mrf.mxu1 }
 0x433   : > { %v9945_v29 = vadd.f32 %v5601_v13, %v9727_v24  ;;  %v5299_v13 = vadd.f32 %v9877_v14, %v9849_v58 }
 0x434   : > { %v5565_v22 = vpop.f32.mrf.mxu0 }
 0x435   : > { %v5468_v26 = vpop.f32.mrf.mxu3 }
 0x436   : > { %v5469_v17 = vadd.f32 %v5468_v26, %v5380_v7  ;;  %v5384_v19 = vpop.f32.mrf.mxu2  ;;  %v10507_v7 = vld [vmem:[#allocation44_spill] sm:$0xff] }
 0x437   : > { %v5385_v59 = vadd.f32 %v5384_v19, %v5296_v34  ;;  %5880 = vmatmul.bf16.gmra.mxu0 %v10497_v0  ;;  %v10508_v34 = vld [vmem:[#allocation24_spill] sm:$0xff] }
 0x438   : > { %v9950_v54 = vadd.f32 %v5557_v55, %v5469_v17 }
 0x43a   : > { %5786 = vmatmul.bf16.gmra.mxu3 %v7330_v61  ;;  %v5604_v46 = vpop.f32.mrf.mxu1 }
 0x43b   : > { %v9953_v60 = vadd.f32 %v5604_v46, %v10504_v15  ;;  %5702 = vmatmul.bf16.gmra.mxu2 %v10507_v7  ;;  %v5301_v15 = vadd.f32 %v9877_v14, %v9857_v63  ;;  %v5304_v63 = vadd.f32 %v9877_v14, %v9864_v50  ;;  %v10515_v50 = vld [vmem:[#allocation18_spill] sm:$0xff] }
 0x43c   : > { %v5567_v46 = vpop.f32.mrf.mxu0 }
 0x43d   : > { %10505 = vst [vmem:[#allocation14_spill] sm:$0xff] %v9953_v60  ;;  %v5471_v24 = vpop.f32.mrf.mxu3  ;;  %5643 = vmatmul.bf16.gmra.mxu1 %v10506_v53  ;;  %v7331_v60 = vld [vmem:[#allocation3 + $0x60] sm:$0xff] }
 0x43e   : > { %v5472_v37 = vadd.f32 %v5471_v24, %v5383_v2  ;;  %v5387_v26 = vpop.f32.mrf.mxu2 }
 0x43f   : > { %v5388_v0 = vadd.f32 %v5387_v26, %v5299_v13  ;;  %v10511_v26 = vld [vmem:[#allocation53_spill] sm:$0xff] }
 0x440   : > { %v9959_v55 = vadd.f32 %v5560_v45, %v5472_v37 }
 0x442   : > { %v5606_v17 = vpop.f32.mrf.mxu1 }
 0x443   : > { %v9962_v19 = vadd.f32 %v5606_v17, %v10508_v34 }
 0x444   : > { %v5570_v17 = vpop.f32.mrf.mxu0 }
 0x445   : > { %10509 = vst [vmem:[#allocation28_spill] sm:$0xff] %v9962_v19  ;;  %v5473_v61 = vpop.f32.mrf.mxu3  ;;  %v4356_v19 = vshrl.u32 %v10515_v50, 16 }
 0x446   : > { %v5474_v2 = vadd.f32 %v5473_v61, %v5385_v59  ;;  %v5389_v24 = vpop.f32.mrf.mxu2  ;;  %v10512_v59 = vld [vmem:[#allocation16_spill] sm:$0xff] }
 0x447   : > { %v5390_v7 = vadd.f32 %v5389_v24, %v5301_v15  ;;  %5885 = vmatmul.bf16.gmra.mxu0 %v10499_v16 }
 0x448   : > { %v9967_v58 = vadd.f32 %v5562_v38, %v5474_v2  ;;  %v10514_v2 = vld [vmem:[#allocation48_spill] sm:$0xff] }
 0x449   : > { %v4365_v15 = vshll.u32 %v10514_v2, 16 }
 0x44a   : > { %5791 = vmatmul.bf16.gmra.mxu3 %v7331_v60  ;;  %v5609_v45 = vpop.f32.mrf.mxu1 }
 0x44b   : > { %v9970_v37 = vadd.f32 %v5609_v45, %v9798_v23  ;;  %5707 = vmatmul.bf16.gmra.mxu2 %v10512_v59  ;;  %v5306_v45 = vadd.f32 %v9877_v14, %v9872_v39  ;;  %v4358_v14 = vrot.slane %v4356_v19, 4 }
 0x44d   : > { %10510 = vst [vmem:[#allocation32_spill] sm:$0xff] %v9970_v37  ;;  %v5476_v49 = vpop.f32.mrf.mxu3  ;;  %5648 = vmatmul.bf16.gmra.mxu1 %v10511_v26 }
 0x44e   : > { %v5477_v13 = vadd.f32 %v5476_v49, %v5388_v0  ;;  %v5392_v60 = vpop.f32.mrf.mxu2  ;;  %v4369_v0 = vshrl.u32 %v10514_v2, 16  ;;  %v5572_v49 = vpop.f32.mrf.mxu0 }
 0x44f   : > { %v5393_v34 = vadd.f32 %v5392_v60, %v5304_v63  ;;  %v7332_v60 = vld [vmem:[#allocation3 + $0x6c] sm:$0xff] }
 0x450   : > { %v9976_v61 = vadd.f32 %v5565_v22, %v5477_v13  ;;  %v4359_v22 = vshll.u32 %v10515_v50, 16  ;;  %v4367_v13 = vrot.slane %v4365_v15, 5  ;;  %v4371_v63 = vrot.slane %v4369_v0, 4  ;;  %v10516_v15 = vld [vmem:[#allocation17_spill] sm:$0xff]  ;;  %v10517_v0 = vld [vmem:[#allocation46_spill] sm:$0xff] }
 0x451   : > { %v4375_v50 = vshll.u32 %v10517_v0, 16 }
 0x452   : > { %v5611_v16 = vpop.f32.mrf.mxu1 }
 0x453   : > { %v9979_v38 = vadd.f32 %v5611_v16, %v9819_v30 }
 0x455   : > { %10513 = vst [vmem:[#allocation19_spill] sm:$0xff] %v9979_v38  ;;  %v5478_v23 = vpop.f32.mrf.mxu3  ;;  %v4372_v38 = vor.u32 %v4371_v63, %v4367_v13 }
 0x456   : > { %v5479_v24 = vadd.f32 %v5478_v23, %v5390_v7  ;;  %v5394_v37 = vpop.f32.mrf.mxu2  ;;  %v4361_v23 = vrot.slane %v4359_v22, 5 }
 0x457   : > { %v5395_v30 = vadd.f32 %v5394_v37, %v5306_v45  ;;  %5890 = vmatmul.bf16.gmra.mxu0 %v9570_v9  ;;  %v4373_v9 = vrot.slane %v4372_v38, 4 }
 0x458   : > { %v9988_v16 = vadd.f32 %v5567_v46, %v5479_v24  ;;  %v4362_v45 = vor.u32 %v4361_v23, %v4358_v14 }
 0x45a   : > { %5796 = vmatmul.bf16.gmra.mxu3 %v7332_v60  ;;  %v5614_v2 = vpop.f32.mrf.mxu1  ;;  %v5851_v60 = vpop.f32.mrf.mxu0  ;;  %v4363_v22 = vrot.slane %v4362_v45, 4 }
 0x45b   : > { %v9991_v7 = vadd.f32 %v5614_v2, %v9834_v36  ;;  %5712 = vmatmul.bf16.gmra.mxu2 %v10516_v15  ;;  %v4377_v2 = vrot.slane %v4375_v50, 5 }
 0x45c   : > { %v4368_v14 = vsel %vm7728_vm11, %v4363_v22, %v4367_v13 }
 0x45d   : > { %v5481_v39 = vpop.f32.mrf.mxu3  ;;  %5653 = vmatmul.bf16.gmra.mxu1 %v9823_v4  ;;  %v4378_v63 = vsel %vm7728_vm11, %v4373_v9, %v4377_v2  ;;  %v10518_v9 = vld [vmem:[#allocation20_spill] sm:$0xff] }
 0x45e   : > { %v5482_v59 = vadd.f32 %v5481_v39, %v5393_v34  ;;  %v5673_v37 = vpop.f32.mrf.mxu2  ;;  %v4620_v38 = vunpack.c.l.b16 %v4378_v63 }
 0x45f   : > { %v5674_v46 = vadd.f32 %v5673_v37, %v9885_v31  ;;  %v7333_v31 = vld [vmem:[#allocation3 + $0x78] sm:$0xff] }
 0x460   : > { %v9997_v24 = vadd.f32 %v5570_v17, %v5482_v59  ;;  %v4619_v59 = vunpack.c.l.b16 %v4368_v14 }
 0x462   : > { %v5616_v36 = vpop.f32.mrf.mxu1  ;;  %v10013_v37 = vpack.c.b16 %v4620_v38, %v4619_v59  ;;  %v5853_v45 = vpop.f32.mrf.mxu0 }
 0x463   : > { %v10000_v19 = vadd.f32 %v5616_v36, %v9847_v51 }
 0x465   : > { %v5483_v34 = vpop.f32.mrf.mxu3 }
 0x466   : > { %v5484_v39 = vadd.f32 %v5483_v34, %v5395_v30  ;;  %v5675_v23 = vpop.f32.mrf.mxu2 }
 0x467   : > { %v5676_v17 = vadd.f32 %v5675_v23, %v9894_v6  ;;  %5895 = vmatmul.bf16.gmra.mxu0 %v9635_v21 }
 0x468   : > { %v10008_v51 = vadd.f32 %v5572_v49, %v5484_v39  ;;  %v7334_v39 = vld [vmem:[#allocation3 + $0x84] sm:$0xff] }
 0x46a   : > { %5801 = vmatmul.bf16.gmra.mxu3 %v7333_v31  ;;  %v5619_v0 = vpop.f32.mrf.mxu1  ;;  %v5856_v22 = vpop.f32.mrf.mxu0 }
 0x46b   : > { %v10011_v50 = vadd.f32 %v5619_v0, %v9855_v56  ;;  %5717 = vmatmul.bf16.gmra.mxu2 %v10518_v9 }
 0x46d   : > { %v5762_v30 = vpop.f32.mrf.mxu3  ;;  %5658 = vmatmul.bf16.gmra.mxu1 %v10013_v37 }
 0x46e   : > { %v5763_v13 = vadd.f32 %v5762_v30, %v5674_v46  ;;  %v5678_v36 = vpop.f32.mrf.mxu2 }
 0x46f   : > { %v5679_v6 = vadd.f32 %v5678_v36, %v9902_v32 }
 0x470   : > { %v10018_v2 = vadd.f32 %v5851_v60, %v5763_v13  ;;  %v7335_v13 = vld [vmem:[#allocation3 + $0x90] sm:$0xff] }
 0x472   : > { %v5621_v21 = vpop.f32.mrf.mxu1  ;;  %v5858_v31 = vpop.f32.mrf.mxu0 }
 0x473   : > { %v10021_v49 = vadd.f32 %v5621_v21, %v9862_v20  ;;  %v10519_v20 = vld [vmem:[#allocation51_spill] sm:$0xff] }
 0x475   : > { %v5764_v56 = vpop.f32.mrf.mxu3 }
 0x476   : > { %v5765_v34 = vadd.f32 %v5764_v56, %v5676_v17  ;;  %v5680_v63 = vpop.f32.mrf.mxu2 }
 0x477   : > { %v5681_v46 = vadd.f32 %v5680_v63, %v9911_v33  ;;  %5900 = vmatmul.bf16.gmra.mxu0 %v9683_v47 }
 0x478   : > { %v10025_v14 = vadd.f32 %v5853_v45, %v5765_v34 }
 0x47a   : > { %5806 = vmatmul.bf16.gmra.mxu3 %v7334_v39  ;;  %v5624_v38 = vpop.f32.mrf.mxu1 }
 0x47b   : > { %v10028_v32 = vadd.f32 %v5624_v38, %v9870_v62  ;;  %5722 = vmatmul.bf16.gmra.mxu2 %v10519_v20 }
 0x47d   : > { %v5767_v60 = vpop.f32.mrf.mxu3  ;;  %5939 = vmatmul.bf16.vlgmr.msra.gmra.mxu1 %v10498_v40 }
 0x47e   : > { %v5768_v23 = vadd.f32 %v5767_v60, %v5679_v6  ;;  %v5683_v59 = vpop.f32.mrf.mxu2  ;;  %v5861_v6 = vpop.f32.mrf.mxu0 }
 0x47f   : > { %v5684_v17 = vadd.f32 %v5683_v59, %v9919_v10 }
 0x480   : > { %v10033_v0 = vadd.f32 %v5856_v22, %v5768_v23  ;;  %v7336_v23 = vld [vmem:[#allocation3 + $0x9c] sm:$0xff] }
 0x482   : > { %v5626_v33 = vpop.f32.mrf.mxu1 }
 0x483   : > { %v10036_v47 = vadd.f32 %v5626_v33, %v9882_v27  ;;  %v10520_v27 = vld [vmem:[#allocation49_spill] sm:$0xff] }
 0x485   : > { %v5769_v30 = vpop.f32.mrf.mxu3 }
 0x486   : > { %v5770_v45 = vadd.f32 %v5769_v30, %v5681_v46  ;;  %v5685_v62 = vpop.f32.mrf.mxu2  ;;  %v5863_v46 = vpop.f32.mrf.mxu0 }
 0x487   : > { %v5686_v36 = vadd.f32 %v5685_v62, %v9928_v44  ;;  %5905 = vmatmul.bf16.gmra.mxu0 %v10506_v53 }
 0x488   : > { %v10040_v40 = vadd.f32 %v5858_v31, %v5770_v45 }
 0x48a   : > { %5811 = vmatmul.bf16.gmra.mxu3 %v7335_v13  ;;  %v5629_v21 = vpop.f32.mrf.mxu1 }
 0x48b   : > { %v10043_v10 = vadd.f32 %v5629_v21, %v9891_v48  ;;  %5727 = vmatmul.bf16.gmra.mxu2 %v10520_v27 }
 0x48d   : > { %v5772_v56 = vpop.f32.mrf.mxu3  ;;  %5944 = vmatmul.bf16.gmra.mxu1 %v10500_v8 }
 0x48e   : > { %v5773_v34 = vadd.f32 %v5772_v56, %v5684_v17  ;;  %v5688_v22 = vpop.f32.mrf.mxu2  ;;  %v5866_v30 = vpop.f32.mrf.mxu0 }
 0x48f   : > { %v5689_v63 = vadd.f32 %v5688_v22, %v9936_v57 }
 0x490   : > { %v10048_v39 = vadd.f32 %v5861_v6, %v5773_v34  ;;  %v7337_v6 = vld [vmem:[#allocation3 + $0xa8] sm:$0xff]  ;;  %v7338_v34 = vld [vmem:[#allocation3 + $0xb4] sm:$0xff] }
 0x492   : > { %v5631_v44 = vpop.f32.mrf.mxu1 }
 0x493   : > { %v10051_v53 = vadd.f32 %v5631_v44, %v9899_v18  ;;  %v10521_v18 = vld [vmem:[#allocation52_spill] sm:$0xff] }
 0x495   : > { %v5774_v38 = vpop.f32.mrf.mxu3 }
 0x496   : > { %v5775_v60 = vadd.f32 %v5774_v38, %v5686_v36  ;;  %v5690_v48 = vpop.f32.mrf.mxu2  ;;  %v5868_v36 = vpop.f32.mrf.mxu0 }
 0x497   : > { %v5691_v31 = vadd.f32 %v5690_v48, %v9945_v29  ;;  %5910 = vmatmul.bf16.gmra.mxu0 %v10511_v26 }
 0x498   : > { %v10055_v8 = vadd.f32 %v5863_v46, %v5775_v60 }
 0x49a   : > { %5816 = vmatmul.bf16.gmra.mxu3 %v7336_v23  ;;  %v5634_v59 = vpop.f32.mrf.mxu1 }
 0x49b   : > { %v10058_v57 = vadd.f32 %v5634_v59, %v9908_v35  ;;  %5732 = vmatmul.bf16.gmra.mxu2 %v10521_v18 }
 0x49d   : > { %v5777_v17 = vpop.f32.mrf.mxu3  ;;  %5949 = vmatmul.bf16.gmra.mxu1 %v10501_v28 }
 0x49e   : > { %v5778_v33 = vadd.f32 %v5777_v17, %v5689_v63  ;;  %v10088_v63 = vld [vmem:[#allocation3 + $0xd4] sm:$0x1] }
 0x4a0   : > { %v10062_v45 = vadd.f32 %v5866_v30, %v5778_v33 }
 0x4a2   : > { %v5636_v62 = vpop.f32.mrf.mxu1 }
 0x4a3   : > { %v10065_v29 = vadd.f32 %v5636_v62, %v9916_v1 }
 0x4a5   : > { %v5779_v26 = vpop.f32.mrf.mxu3 }
 0x4a6   : > { %v5780_v13 = vadd.f32 %v5779_v26, %v5691_v31 }
 0x4a7   : > { %5915 = vmatmul.bf16.gmra.mxu0 %v9823_v4 }
 0x4a8   : > { %v10068_v35 = vadd.f32 %v5868_v36, %v5780_v13 }
 0x4aa   : > { %5821 = vmatmul.bf16.gmra.mxu3 %v7337_v6  ;;  %v5639_v21 = vpop.f32.mrf.mxu1 }
 0x4ab   : > { %v10071_v28 = vadd.f32 %v5639_v21, %v9925_v52  ;;  %5737 = vmatmul.bf16.gmra.mxu2 %v9811_v12  ;;  %v10084_v52 = vld [vmem:[#allocation3 + $0xcc] sm:$0xf] }
 0x4ac   : > { %v4393_v44 = vshll.u32 %v10084_v52, 16 }
 0x4ad   : > { %5954 = vmatmul.bf16.gmra.mxu1 %v10502_v42  ;;  %v10086_v42 = vld [vmem:[#allocation3 + $0xd0] sm:$0xf] }
 0x4ae   : > { %v4403_v46 = vshrl.u32 %v10086_v42, 16 }
 0x4b0   : > { %v4405_v48 = vrot.slane %v4403_v46, 4  ;;  %v10524_v46 = vld [vmem:[#allocation16_spill] sm:$0xff] }
 0x4b2   : > { %v5641_v56 = vpop.f32.mrf.mxu1 }
 0x4b3   : > { %v10076_v1 = vadd.f32 %v5641_v56, %v9933_v43  ;;  %v4390_v43 = vshrl.u32 %v10084_v52, 16 }
 0x4b5   : > { %v4392_v38 = vrot.slane %v4390_v43, 4 }
 0x4b7   : > { %5920 = vmatmul.bf16.gmra.mxu0 %v10013_v37  ;;  %v4399_v37 = vshll.u32 %v10086_v42, 16 }
 0x4b9   : > { %v4401_v60 = vrot.slane %v4399_v37, 5 }
 0x4ba   : > { %5826 = vmatmul.bf16.gmra.mxu3 %v7338_v34  ;;  %v5644_v22 = vpop.f32.mrf.mxu1 }
 0x4bb   : > { %v10080_v4 = vadd.f32 %v5644_v22, %v9942_v11  ;;  %5742 = vmatmul.bf16.gmra.mxu2 %v9842_v41  ;;  %v4409_v11 = vshll.u32 %v10088_v63, 16  ;;  %v4406_v59 = vor.u32 %v4405_v48, %v4401_v60  ;;  %v10523_v22 = vld [vmem:[#allocation47_spill] sm:$0xff] }
 0x4bd   : > { %5959 = vmatmul.bf16.gmra.mxu1 %v10503_v3  ;;  %v4395_v3 = vrot.slane %v4393_v44, 5  ;;  %v4411_v17 = vrot.slane %v4409_v11, 5  ;;  %v4407_v62 = vrot.slane %v4406_v59, 4  ;;  %v5693_v59 = vpop.f32.mrf.mxu2 }
 0x4bf   : > { %v4396_v31 = vor.u32 %v4395_v3, %v4392_v38  ;;  %v4412_v13 = vsel %vm7728_vm11, %v4407_v62, %v4411_v17  ;;  %v5871_v62 = vpop.f32.mrf.mxu0 }
 0x4c0   : > { %v4632_v6 = vunpack.c.l.b16 %v4412_v13 }
 0x4c1   : > { %v4397_v30 = vrot.slane %v4396_v31, 4 }
 0x4c2   : > { %v5646_v23 = vpop.f32.mrf.mxu1 }
 0x4c3   : > { %v10096_v33 = vadd.f32 %v5646_v23, %v9950_v54  ;;  %v4402_v26 = vsel %vm7728_vm11, %v4397_v30, %v4401_v60  ;;  %v10522_v54 = vld [vmem:[#allocation44_spill] sm:$0xff]  ;;  %v7339_v23 = vld [vmem:[%s7674_s16] sm:$0xff] }
 0x4c4   : > { %v4631_v36 = vunpack.c.l.b16 %v4402_v26 }
 0x4c6   : > { %v4633_v21 = vpack.c.b16 %v4632_v6, %v4631_v36  ;;  %v7341_v36 = vld [vmem:[%s7674_s16 + $0x10] sm:$0xff] }
 0x4c8   : > { %5925 = vmatmul.bf16.gmra.mxu0 %v4633_v21 }
 0x4ca   : > { %5831 = vmatmul.bf16.gmra.mxu3 %v9813_v5  ;;  %v5649_v56 = vpop.f32.mrf.mxu1 }
 0x4cb   : > { %v10104_v34 = vadd.f32 %v5649_v56, %v9959_v55  ;;  %5747 = vmatmul.bf16.gmra.mxu2 %v10523_v22 }
 0x4cd   : > { %5964 = vmatmul.bf16.gmra.mxu1 %v10522_v54  ;;  %v5873_v54 = vpop.f32.mrf.mxu0 }
 0x4d2   : > { %v5651_v43 = vpop.f32.mrf.mxu1 }
 0x4d3   : > { %v10109_v44 = vadd.f32 %v5651_v43, %v9967_v58 }
 0x4da   : > { %5836 = vmatmul.bf16.gmra.mxu3 %v7106_v25  ;;  %v5654_v37 = vpop.f32.mrf.mxu1 }
 0x4db   : > { %v10112_v5 = vadd.f32 %v5654_v37, %v9976_v61  ;;  %v7342_v37 = vld [vmem:[%s7674_s16 + $0x18] sm:$0xff] }
 0x4dd   : > { %5969 = vmatmul.bf16.gmra.mxu1 %v10524_v46 }
 0x4e2   : > { %v5656_v55 = vpop.f32.mrf.mxu1 }
 0x4e3   : > { %v10116_v11 = vadd.f32 %v5656_v55, %v9988_v16 }
 0x4ea   : > { %v5659_v38 = vpop.f32.mrf.mxu1 }
 0x4eb   : > { %v10119_v3 = vadd.f32 %v5659_v38, %v9997_v24 }
 0x4ed   : > { %5974 = vmatmul.bf16.gmra.mxu1 %v10516_v15 }
 0x4f2   : > { %v5661_v58 = vpop.f32.mrf.mxu1 }
 0x4f3   : > { %v10123_v60 = vadd.f32 %v5661_v58, %v10008_v51  ;;  %v7340_v51 = vld [vmem:[%s7674_s16 + $0x8] sm:$0xff] }
 0x4fa   : > { %v5940_v61 = vpop.f32.mrf.mxu1 }
 0x4fb   : > { %v5941_v48 = vadd.f32 %v5940_v61, %v10018_v2  ;;  %v5782_v2 = vpop.f32.mrf.mxu3  ;;  %v7343_v61 = vld [vmem:[%s7674_s16 + $0x20] sm:$0xff] }
 0x4fd   : > { %v6020_v31 = vadd.f32 %v7339_v23, %v5941_v48  ;;  %5979 = vmatmul.bf16.gmra.mxu1 %v10518_v9  ;;  %v5695_v9 = vpop.f32.mrf.mxu2 }
 0x4ff   : > { %v6052_v16 = vmax.f32 %v6020_v31, 0.0 }
 0x501   : > { %6084 = vst [vmem:[%s10130_s27] sm:$0xff] %v6052_v16 }
 0x502   : > { %v5942_v15 = vpop.f32.mrf.mxu1 }
 0x503   : > { %v5943_v24 = vadd.f32 %v5942_v15, %v10025_v14  ;;  %v5784_v56 = vpop.f32.mrf.mxu3 }
 0x505   : > { %v6021_v17 = vadd.f32 %v7340_v51, %v5943_v24  ;;  %v5698_v25 = vpop.f32.mrf.mxu2  ;;  %v7344_v24 = vld [vmem:[%s7674_s16 + $0x28] sm:$0xff] }
 0x507   : > { %v6053_v30 = vmax.f32 %v6021_v17, 0.0 }
 0x509   : > { %6085 = vst [vmem:[%s10130_s27 + $0x8] sm:$0xff] %v6053_v30 }
 0x50a   : > { %v5945_v26 = vpop.f32.mrf.mxu1 }
 0x50b   : > { %v5946_v13 = vadd.f32 %v5945_v26, %v10033_v0  ;;  %v5787_v0 = vpop.f32.mrf.mxu3 }
 0x50d   : > { %v6022_v6 = vadd.f32 %v7341_v36, %v5946_v13  ;;  %5984 = vmatmul.bf16.gmra.mxu1 %v10519_v20  ;;  %v5876_v20 = vpop.f32.mrf.mxu0  ;;  %v5700_v23 = vpop.f32.mrf.mxu2  ;;  %v7345_v36 = vld [vmem:[%s7674_s16 + $0x30] sm:$0xff] }
 0x50f   : > { %v6054_v21 = vmax.f32 %v6022_v6, 0.0 }
 0x511   : > { %6086 = vst [vmem:[%s10130_s27 + $0x10] sm:$0xff] %v6054_v21 }
 0x512   : > { %v5947_v14 = vpop.f32.mrf.mxu1 }
 0x513   : > { %v5948_v43 = vadd.f32 %v5947_v14, %v10040_v40  ;;  %v5789_v15 = vpop.f32.mrf.mxu3 }
 0x515   : > { %v6023_v46 = vadd.f32 %v7342_v37, %v5948_v43  ;;  %v5878_v17 = vpop.f32.mrf.mxu0 }
 0x517   : > { %v6055_v55 = vmax.f32 %v6023_v46, 0.0 }
 0x519   : > { %6087 = vst [vmem:[%s10130_s27 + $0x18] sm:$0xff] %v6055_v55 }
 0x51a   : > { %v5950_v38 = vpop.f32.mrf.mxu1 }
 0x51b   : > { %v5951_v58 = vadd.f32 %v5950_v38, %v10048_v39  ;;  %v5703_v39 = vpop.f32.mrf.mxu2  ;;  %v5792_v6 = vpop.f32.mrf.mxu3 }
 0x51d   : > { %v6024_v48 = vadd.f32 %v7343_v61, %v5951_v58  ;;  %5989 = vmatmul.bf16.gmra.mxu1 %v10520_v27  ;;  %v5881_v43 = vpop.f32.mrf.mxu0  ;;  %v7346_v58 = vld [vmem:[%s7674_s16 + $0x38] sm:$0xff] }
 0x51f   : > { %v6056_v31 = vmax.f32 %v6024_v48, 0.0 }
 0x521   : > { %6088 = vst [vmem:[%s10130_s27 + $0x20] sm:$0xff] %v6056_v31  ;;  %v10526_v31 = vld [vmem:[#allocation28_spill] sm:$0xff] }
 0x522   : > { %v5952_v40 = vpop.f32.mrf.mxu1 }
 0x523   : > { %v5953_v16 = vadd.f32 %v5952_v40, %v10055_v8  ;;  %v10525_v8 = vld [vmem:[#allocation14_spill] sm:$0xff]  ;;  %v5705_v37 = vpop.f32.mrf.mxu2  ;;  %v5794_v48 = vpop.f32.mrf.mxu3  ;;  %v5696_v40 = vadd.f32 %v5695_v9, %v10526_v31 }
 0x524   : > { %v5694_v14 = vadd.f32 %v5693_v59, %v10525_v8 }
 0x525   : > { %v6025_v51 = vadd.f32 %v7344_v24, %v5953_v16  ;;  %v5883_v24 = vpop.f32.mrf.mxu0 }
 0x526   : > { %v5783_v38 = vadd.f32 %v5782_v2, %v5694_v14  ;;  %v10527_v2 = vld [vmem:[#allocation32_spill] sm:$0xff] }
 0x527   : > { %v6057_v30 = vmax.f32 %v6025_v51, 0.0 }
 0x529   : > { %6089 = vst [vmem:[%s10130_s27 + $0x28] sm:$0xff] %v6057_v30  ;;  %v5785_v30 = vadd.f32 %v5784_v56, %v5696_v40  ;;  %v7349_v40 = vld [vmem:[%s7674_s16 + $0x50] sm:$0xff] }
 0x52a   : > { %v5955_v26 = vpop.f32.mrf.mxu1 }
 0x52b   : > { %v5956_v13 = vadd.f32 %v5955_v26, %v10062_v45  ;;  %v5708_v51 = vpop.f32.mrf.mxu2  ;;  %v7347_v26 = vld [vmem:[%s7674_s16 + $0x40] sm:$0xff] }
 0x52d   : > { %v6026_v27 = vadd.f32 %v7345_v36, %v5956_v13  ;;  %5994 = vmatmul.bf16.gmra.mxu1 %v10521_v18  ;;  %v5872_v18 = vadd.f32 %v5871_v62, %v5783_v38  ;;  %v5699_v36 = vadd.f32 %v5698_v25, %v10527_v2  ;;  %v5886_v14 = vpop.f32.mrf.mxu0 }
 0x52f   : > { %v6058_v21 = vmax.f32 %v6026_v27, 0.0  ;;  %v5874_v27 = vadd.f32 %v5873_v54, %v5785_v30  ;;  %v5788_v8 = vadd.f32 %v5787_v0, %v5699_v36  ;;  %v5704_v30 = vadd.f32 %v5703_v39, %v9991_v7 }
 0x530   : > { %v4418_v7 = vrot.slane %v10086_v42, 5 }
 0x531   : > { %6090 = vst [vmem:[%s10130_s27 + $0x30] sm:$0xff] %v6058_v21  ;;  %v5797_v21 = vpop.f32.mrf.mxu3 }
 0x532   : > { %v5957_v46 = vpop.f32.mrf.mxu1 }
 0x533   : > { %v5958_v55 = vadd.f32 %v5957_v46, %v10068_v35  ;;  %v7348_v46 = vld [vmem:[%s7674_s16 + $0x48] sm:$0xff]  ;;  %v5710_v38 = vpop.f32.mrf.mxu2 }
 0x535   : > { %v6027_v61 = vadd.f32 %v7346_v58, %v5958_v55  ;;  %v10528_v58 = vld [vmem:[#allocation19_spill] sm:$0xff]  ;;  %v5888_v0 = vpop.f32.mrf.mxu0 }
 0x537   : > { %v6059_v45 = vmax.f32 %v6027_v61, 0.0  ;;  %v5701_v61 = vadd.f32 %v5700_v23, %v10528_v58 }
 0x539   : > { %6091 = vst [vmem:[%s10130_s27 + $0x38] sm:$0xff] %v6059_v45  ;;  %v5799_v31 = vpop.f32.mrf.mxu3  ;;  %v5790_v54 = vadd.f32 %v5789_v15, %v5701_v61 }
 0x53a   : > { %v5960_v16 = vpop.f32.mrf.mxu1 }
 0x53b   : > { %v5961_v59 = vadd.f32 %v5960_v16, %v5872_v18 }
 0x53d   : > { %v6028_v13 = vadd.f32 %v7347_v26, %v5961_v59  ;;  %5999 = vmatmul.bf16.gmra.mxu1 %v9811_v12  ;;  %v5877_v12 = vadd.f32 %v5876_v20, %v5788_v8  ;;  %v5713_v59 = vpop.f32.mrf.mxu2  ;;  %v5879_v26 = vadd.f32 %v5878_v17, %v5790_v54 }
 0x53f   : > { %v6060_v35 = vmax.f32 %v6028_v13, 0.0  ;;  %v5793_v13 = vadd.f32 %v5792_v6, %v5704_v30  ;;  %v6632_v6 = vrot.slane %v10084_v52, 9 }
 0x541   : > { %6092 = vst [vmem:[%s10130_s27 + $0x40] sm:$0xff] %v6060_v35  ;;  %v7350_v35 = vld [vmem:[%s7674_s16 + $0x58] sm:$0xff]  ;;  %v5802_v36 = vpop.f32.mrf.mxu3 }
 0x542   : > { %v5962_v9 = vpop.f32.mrf.mxu1 }
 0x543   : > { %v5963_v62 = vadd.f32 %v5962_v9, %v5874_v27  ;;  %v5706_v27 = vadd.f32 %v5705_v37, %v10000_v19  ;;  %v5891_v9 = vpop.f32.mrf.mxu0  ;;  %v4421_v19 = vrot.slane %v10088_v63, 5  ;;  %v7352_v63 = vld [vmem:[%s7674_s16 + $0x68] sm:$0xff] }
 0x545   : > { %v6029_v55 = vadd.f32 %v7348_v46, %v5963_v62  ;;  %v5715_v62 = vpop.f32.mrf.mxu2  ;;  %v5795_v17 = vadd.f32 %v5794_v48, %v5706_v27  ;;  %v7351_v46 = vld [vmem:[%s7674_s16 + $0x60] sm:$0xff]  ;;  %v4419_v48 = vsel %vm8230_vm14, %v6632_v6, %v4418_v7 }
 0x546   : > { %v5716_v6 = vadd.f32 %v5715_v62, %v10036_v47 }
 0x547   : > { %v6061_v56 = vmax.f32 %v6029_v55, 0.0  ;;  %v5884_v61 = vadd.f32 %v5883_v24, %v5795_v17  ;;  %v5711_v24 = vadd.f32 %v5710_v38, %v10021_v49 }
 0x549   : > { %6093 = vst [vmem:[%s10130_s27 + $0x48] sm:$0xff] %v6061_v56  ;;  %v4420_v56 = vrot.slane %v4418_v7, 4  ;;  %v5804_v58 = vpop.f32.mrf.mxu3 }
 0x54a   : > { %v5965_v45 = vpop.f32.mrf.mxu1 }
 0x54b   : > { %v5966_v25 = vadd.f32 %v5965_v45, %v5877_v12  ;;  %v5893_v45 = vpop.f32.mrf.mxu0 }
 0x54d   : > { %v6030_v18 = vadd.f32 %v7349_v40, %v5966_v25  ;;  %6004 = vmatmul.bf16.gmra.mxu1 %v9842_v41  ;;  %v5882_v41 = vadd.f32 %v5881_v43, %v5793_v13  ;;  %v5709_v43 = vadd.f32 %v5708_v51, %v10011_v50  ;;  %v5718_v52 = vpop.f32.mrf.mxu2  ;;  %v5800_v13 = vadd.f32 %v5799_v31, %v5711_v24 }
 0x54f   : > { %v6062_v16 = vmax.f32 %v6030_v18, 0.0  ;;  %v5798_v54 = vadd.f32 %v5797_v21, %v5709_v43  ;;  %v4635_v18 = vunpack.c.l.b16 %v4419_v48 }
 0x551   : > { %6094 = vst [vmem:[%s10130_s27 + $0x50] sm:$0xff] %v6062_v16  ;;  %v5887_v51 = vadd.f32 %v5886_v14, %v5798_v54 }
 0x552   : > { %v5967_v23 = vpop.f32.mrf.mxu1 }
 0x553   : > { %v5968_v20 = vadd.f32 %v5967_v23, %v5879_v26  ;;  %v5807_v26 = vpop.f32.mrf.mxu3 }
 0x555   : > { %v6031_v2 = vadd.f32 %v7350_v35, %v5968_v20  ;;  %v5896_v35 = vpop.f32.mrf.mxu0  ;;  %v5720_v21 = vpop.f32.mrf.mxu2 }
 0x557   : > { %v6063_v15 = vmax.f32 %v6031_v2, 0.0  ;;  %v7353_v2 = vld [vmem:[%s7674_s16 + $0x70] sm:$0xff] }
 0x559   : > { %6095 = vst [vmem:[%s10130_s27 + $0x58] sm:$0xff] %v6063_v15 }
 0x55a   : > { %v5970_v8 = vpop.f32.mrf.mxu1 }
 0x55b   : > { %v5971_v39 = vadd.f32 %v5970_v8, %v5882_v41  ;;  %v5714_v41 = vadd.f32 %v5713_v59, %v10028_v32  ;;  %v5889_v8 = vadd.f32 %v5888_v0, %v5800_v13  ;;  %v5809_v38 = vpop.f32.mrf.mxu3  ;;  %v5805_v59 = vadd.f32 %v5804_v58, %v5716_v6  ;;  %v7355_v0 = vld [vmem:[%s7674_s16 + $0x80] sm:$0xff] }
 0x55d   : > { %v6032_v55 = vadd.f32 %v7351_v46, %v5971_v39  ;;  %6009 = vmatmul.bf16.gmra.mxu1 %v10523_v22  ;;  %v4422_v22 = vsel %vm8230_vm14, %v4420_v56, %v4421_v19  ;;  %v5803_v7 = vadd.f32 %v5802_v36, %v5714_v41  ;;  %v7354_v39 = vld [vmem:[%s7674_s16 + $0x78] sm:$0xff]  ;;  %v5898_v31 = vpop.f32.mrf.mxu0  ;;  %v5719_v36 = vadd.f32 %v5718_v52, %v10043_v10 }
 0x55e   : > { %v4636_v16 = vunpack.c.l.b16 %v4422_v22  ;;  %v5894_v12 = vadd.f32 %v5893_v45, %v5805_v59 }
 0x55f   : > { %v6064_v37 = vmax.f32 %v6032_v55, 0.0  ;;  %v5723_v55 = vpop.f32.mrf.mxu2  ;;  %v5892_v56 = vadd.f32 %v5891_v9, %v5803_v7  ;;  %v5808_v62 = vadd.f32 %v5807_v26, %v5719_v36  ;;  %v7356_v9 = vld [vmem:[%s7674_s16 + $0x88] sm:$0xff]  ;;  %v7359_v7 = vld [vmem:[%s7674_s16 + $0xa0] sm:$0xff] }
 0x560   : > { %v4637_v30 = vpack.c.b16 %v4636_v16, %v4635_v18 }
 0x561   : > { %6096 = vst [vmem:[%s10130_s27 + $0x60] sm:$0xff] %v6064_v37 }
 0x562   : > { %v5972_v42 = vpop.f32.mrf.mxu1 }
 0x563   : > { %v5973_v25 = vadd.f32 %v5972_v42, %v5884_v61  ;;  %v5812_v43 = vpop.f32.mrf.mxu3 }
 0x565   : > { %v6033_v40 = vadd.f32 %v7352_v63, %v5973_v25  ;;  %v5901_v42 = vpop.f32.mrf.mxu0  ;;  %v5721_v63 = vadd.f32 %v5720_v21, %v10051_v53 }
 0x567   : > { %v6065_v50 = vmax.f32 %v6033_v40, 0.0  ;;  %v5725_v48 = vpop.f32.mrf.mxu2  ;;  %v5897_v40 = vadd.f32 %v5896_v35, %v5808_v62  ;;  %v5810_v45 = vadd.f32 %v5809_v38, %v5721_v63 }
 0x568   : > { %v5726_v41 = vadd.f32 %v5725_v48, %v10065_v29 }
 0x569   : > { %6097 = vst [vmem:[%s10130_s27 + $0x68] sm:$0xff] %v6065_v50  ;;  %v7357_v50 = vld [vmem:[%s7674_s16 + $0x90] sm:$0xff]  ;;  %v5899_v26 = vadd.f32 %v5898_v31, %v5810_v45 }
 0x56a   : > { %v5975_v23 = vpop.f32.mrf.mxu1 }
 0x56b   : > { %v5976_v20 = vadd.f32 %v5975_v23, %v5887_v51  ;;  %v5814_v58 = vpop.f32.mrf.mxu3 }
 0x56c   : > { %v5815_v38 = vadd.f32 %v5814_v58, %v5726_v41  ;;  %v7364_v41 = vld [vmem:[%s7674_s16 + $0xc8] sm:$0xff] }
 0x56d   : > { %v6034_v15 = vadd.f32 %v7353_v2, %v5976_v20  ;;  %6014 = vmatmul.bf16.gmra.mxu1 %v4637_v30  ;;  %v5903_v10 = vpop.f32.mrf.mxu0  ;;  %v5724_v30 = vadd.f32 %v5723_v55, %v10058_v57  ;;  %v7358_v2 = vld [vmem:[%s7674_s16 + $0x98] sm:$0xff] }
 0x56e   : > { %v5904_v6 = vadd.f32 %v5903_v10, %v5815_v38  ;;  %v7362_v10 = vld [vmem:[%s7674_s16 + $0xb8] sm:$0xff] }
 0x56f   : > { %v6066_v27 = vmax.f32 %v6034_v15, 0.0  ;;  %v5728_v16 = vpop.f32.mrf.mxu2  ;;  %v5813_v13 = vadd.f32 %v5812_v43, %v5724_v30 }
 0x570   : > { %v5729_v55 = vadd.f32 %v5728_v16, %v10071_v28 }
 0x571   : > { %6098 = vst [vmem:[%s10130_s27 + $0x70] sm:$0xff] %v6066_v27 }
 0x572   : > { %v5977_v49 = vpop.f32.mrf.mxu1 }
 0x573   : > { %v5978_v14 = vadd.f32 %v5977_v49, %v5889_v8  ;;  %v5817_v23 = vpop.f32.mrf.mxu3  ;;  %v5902_v8 = vadd.f32 %v5901_v42, %v5813_v13 }
 0x575   : > { %v6035_v17 = vadd.f32 %v7354_v39, %v5978_v14  ;;  %v5906_v35 = vpop.f32.mrf.mxu0 }
 0x577   : > { %v6067_v46 = vmax.f32 %v6035_v17, 0.0  ;;  %v5730_v21 = vpop.f32.mrf.mxu2 }
 0x578   : > { %v5731_v43 = vadd.f32 %v5730_v21, %v10076_v1 }
 0x579   : > { %6099 = vst [vmem:[%s10130_s27 + $0x78] sm:$0xff] %v6067_v46 }
 0x57a   : > { %v5980_v19 = vpop.f32.mrf.mxu1 }
 0x57b   : > { %v5981_v32 = vadd.f32 %v5980_v19, %v5892_v56  ;;  %v5819_v14 = vpop.f32.mrf.mxu3  ;;  %v5818_v19 = vadd.f32 %v5817_v23, %v5729_v55  ;;  %v7363_v23 = vld [vmem:[%s7674_s16 + $0xc0] sm:$0xff] }
 0x57c   : > { %v5820_v48 = vadd.f32 %v5819_v14, %v5731_v43 }
 0x57d   : > { %v6036_v37 = vadd.f32 %v7355_v0, %v5981_v32  ;;  %v5908_v17 = vpop.f32.mrf.mxu0  ;;  %v7360_v32 = vld [vmem:[%s7674_s16 + $0xa8] sm:$0xff]  ;;  %v5907_v36 = vadd.f32 %v5906_v35, %v5818_v19 }
 0x57f   : > { %v6068_v61 = vmax.f32 %v6036_v37, 0.0  ;;  %v5733_v46 = vpop.f32.mrf.mxu2 }
 0x581   : > { %6100 = vst [vmem:[%s10130_s27 + $0x80] sm:$0xff] %v6068_v61 }
 0x582   : > { %v5982_v22 = vpop.f32.mrf.mxu1 }
 0x583   : > { %v5983_v47 = vadd.f32 %v5982_v22, %v5894_v12  ;;  %v5822_v0 = vpop.f32.mrf.mxu3  ;;  %v7361_v22 = vld [vmem:[%s7674_s16 + $0xb0] sm:$0xff] }
 0x585   : > { %v6037_v25 = vadd.f32 %v7356_v9, %v5983_v47  ;;  %v5911_v61 = vpop.f32.mrf.mxu0 }
 0x587   : > { %v6069_v54 = vmax.f32 %v6037_v25, 0.0  ;;  %v5735_v42 = vpop.f32.mrf.mxu2  ;;  %v5734_v25 = vadd.f32 %v5733_v46, %v10080_v4 }
 0x588   : > { %v5736_v45 = vadd.f32 %v5735_v42, %v10096_v33 }
 0x589   : > { %6101 = vst [vmem:[%s10130_s27 + $0x88] sm:$0xff] %v6069_v54  ;;  %v5909_v54 = vadd.f32 %v5908_v17, %v5820_v48 }
 0x58a   : > { %v5985_v18 = vpop.f32.mrf.mxu1 }
 0x58b   : > { %v5986_v52 = vadd.f32 %v5985_v18, %v5897_v40  ;;  %v5824_v9 = vpop.f32.mrf.mxu3  ;;  %v5823_v18 = vadd.f32 %v5822_v0, %v5734_v25 }
 0x58c   : > { %v5825_v30 = vadd.f32 %v5824_v9, %v5736_v45 }
 0x58d   : > { %v6038_v24 = vadd.f32 %v7357_v50, %v5986_v52  ;;  %v5913_v1 = vpop.f32.mrf.mxu0  ;;  %v5912_v50 = vadd.f32 %v5911_v61, %v5823_v18 }
 0x58f   : > { %v6070_v51 = vmax.f32 %v6038_v24, 0.0  ;;  %v5738_v40 = vpop.f32.mrf.mxu2 }
 0x590   : > { %v5739_v35 = vadd.f32 %v5738_v40, %v10104_v34 }
 0x591   : > { %6102 = vst [vmem:[%s10130_s27 + $0x90] sm:$0xff] %v6070_v51 }
 0x592   : > { %v5987_v20 = vpop.f32.mrf.mxu1 }
 0x593   : > { %v5988_v53 = vadd.f32 %v5987_v20, %v5899_v26  ;;  %v5827_v24 = vpop.f32.mrf.mxu3 }
 0x595   : > { %v6039_v15 = vadd.f32 %v7358_v2, %v5988_v53  ;;  %v5916_v26 = vpop.f32.mrf.mxu0  ;;  %v5914_v2 = vadd.f32 %v5913_v1, %v5825_v30 }
 0x597   : > { %v6071_v27 = vmax.f32 %v6039_v15, 0.0  ;;  %v5740_v53 = vpop.f32.mrf.mxu2 }
 0x598   : > { %v5741_v38 = vadd.f32 %v5740_v53, %v10109_v44 }
 0x599   : > { %6103 = vst [vmem:[%s10130_s27 + $0x98] sm:$0xff] %v6071_v27  ;;  %v5828_v27 = vadd.f32 %v5827_v24, %v5739_v35 }
 0x59a   : > { %v5990_v49 = vpop.f32.mrf.mxu1 }
 0x59b   : > { %v5991_v57 = vadd.f32 %v5990_v49, %v5902_v8  ;;  %v5829_v21 = vpop.f32.mrf.mxu3 }
 0x59c   : > { %v5830_v17 = vadd.f32 %v5829_v21, %v5741_v38 }
 0x59d   : > { %v6040_v39 = vadd.f32 %v7359_v7, %v5991_v57  ;;  %v5918_v49 = vpop.f32.mrf.mxu0  ;;  %v5917_v7 = vadd.f32 %v5916_v26, %v5828_v27  ;;  %v7369_v26 = vld [vmem:[%s7674_s16 + $0xf0] sm:$0xff] }
 0x59e   : > { %v5919_v19 = vadd.f32 %v5918_v49, %v5830_v17 }
 0x59f   : > { %v6072_v31 = vmax.f32 %v6040_v39, 0.0  ;;  %v5743_v14 = vpop.f32.mrf.mxu2 }
 0x5a1   : > { %6104 = vst [vmem:[%s10130_s27 + $0xa0] sm:$0xff] %v6072_v31  ;;  %v7365_v31 = vld [vmem:[%s7674_s16 + $0xd0] sm:$0xff] }
 0x5a2   : > { %v5992_v56 = vpop.f32.mrf.mxu1 }
 0x5a3   : > { %v5993_v29 = vadd.f32 %v5992_v56, %v5904_v6  ;;  %v5832_v55 = vpop.f32.mrf.mxu3 }
 0x5a5   : > { %v6041_v59 = vadd.f32 %v7360_v32, %v5993_v29  ;;  %v5921_v56 = vpop.f32.mrf.mxu0  ;;  %v5744_v29 = vadd.f32 %v5743_v14, %v10112_v5 }
 0x5a7   : > { %v6073_v37 = vmax.f32 %v6041_v59, 0.0  ;;  %v5745_v32 = vpop.f32.mrf.mxu2  ;;  %v5833_v0 = vadd.f32 %v5832_v55, %v5744_v29 }
 0x5a8   : > { %v5746_v42 = vadd.f32 %v5745_v32, %v10116_v11 }
 0x5a9   : > { %6105 = vst [vmem:[%s10130_s27 + $0xa8] sm:$0xff] %v6073_v37  ;;  %v7366_v37 = vld [vmem:[%s7674_s16 + $0xd8] sm:$0xff] }
 0x5aa   : > { %v5995_v12 = vpop.f32.mrf.mxu1 }
 0x5ab   : > { %v5996_v28 = vadd.f32 %v5995_v12, %v5907_v36  ;;  %v5834_v36 = vpop.f32.mrf.mxu3  ;;  %v5922_v12 = vadd.f32 %v5921_v56, %v5833_v0 }
 0x5ad   : > { %v6042_v47 = vadd.f32 %v7361_v22, %v5996_v28  ;;  %v5923_v5 = vpop.f32.mrf.mxu0 }
 0x5af   : > { %v6074_v62 = vmax.f32 %v6042_v47, 0.0  ;;  %v5748_v22 = vpop.f32.mrf.mxu2  ;;  %v5835_v47 = vadd.f32 %v5834_v36, %v5746_v42 }
 0x5b1   : > { %6106 = vst [vmem:[%s10130_s27 + $0xb0] sm:$0xff] %v6074_v62  ;;  %v7367_v62 = vld [vmem:[%s7674_s16 + $0xe0] sm:$0xff]  ;;  %v5924_v1 = vadd.f32 %v5923_v5, %v5835_v47 }
 0x5b2   : > { %v5997_v58 = vpop.f32.mrf.mxu1 }
 0x5b3   : > { %v5998_v63 = vadd.f32 %v5997_v58, %v5909_v54  ;;  %v5837_v54 = vpop.f32.mrf.mxu3  ;;  %v5749_v58 = vadd.f32 %v5748_v22, %v10119_v3 }
 0x5b5   : > { %v6043_v52 = vadd.f32 %v7362_v10, %v5998_v63  ;;  %v5926_v40 = vpop.f32.mrf.mxu0  ;;  %v5838_v18 = vadd.f32 %v5837_v54, %v5749_v58  ;;  %v7368_v10 = vld [vmem:[%s7674_s16 + $0xe8] sm:$0xff] }
 0x5b7   : > { %v6075_v16 = vmax.f32 %v6043_v52, 0.0 }
 0x5b9   : > { %6107 = vst [vmem:[%s10130_s27 + $0xb8] sm:$0xff] %v6075_v16  ;;  %v5750_v16 = vpop.f32.mrf.mxu2 }
 0x5ba   : > { %v6000_v51 = vpop.f32.mrf.mxu1  ;;  %v5751_v24 = vadd.f32 %v5750_v16, %v10123_v60 }
 0x5bb   : > { %v6001_v4 = vadd.f32 %v6000_v51, %v5912_v50  ;;  %v5927_v50 = vadd.f32 %v5926_v40, %v5838_v18  ;;  %v5839_v51 = vpop.f32.mrf.mxu3 }
 0x5bc   : > { %v5840_v30 = vadd.f32 %v5839_v51, %v5751_v24 }
 0x5bd   : > { %v6044_v20 = vadd.f32 %v7363_v23, %v6001_v4 }
 0x5bf   : > { %v6076_v13 = vmax.f32 %v6044_v20, 0.0  ;;  %v5928_v20 = vpop.f32.mrf.mxu0 }
 0x5c1   : > { %6108 = vst [vmem:[%s10130_s27 + $0xc0] sm:$0xff] %v6076_v13  ;;  %v5929_v13 = vadd.f32 %v5928_v20, %v5840_v30 }
 0x5c2   : > { %v6002_v15 = vpop.f32.mrf.mxu1 }
 0x5c3   : > { %v6003_v33 = vadd.f32 %v6002_v15, %v5914_v2  ;;  %v7370_v2 = vld [vmem:[%s7674_s16 + $0xf8] sm:$0xff] }
 0x5c5   : > { %v6045_v8 = vadd.f32 %v7364_v41, %v6003_v33 }
 0x5c7   : > { %v6077_v57 = vmax.f32 %v6045_v8, 0.0 }
 0x5c9   : > { %6109 = vst [vmem:[%s10130_s27 + $0xc8] sm:$0xff] %v6077_v57 }
 0x5ca   : > { %v6005_v39 = vpop.f32.mrf.mxu1 }
 0x5cb   : > { %v6006_v34 = vadd.f32 %v6005_v39, %v5917_v7 }
 0x5cd   : > { %v6046_v46 = vadd.f32 %v7365_v31, %v6006_v34 }
 0x5cf   : > { %v6078_v6 = vmax.f32 %v6046_v46, 0.0 }
 0x5d1   : > { %6110 = vst [vmem:[%s10130_s27 + $0xd0] sm:$0xff] %v6078_v6 }
 0x5d2   : > { %v6007_v59 = vpop.f32.mrf.mxu1 }
 0x5d3   : > { %v6008_v44 = vadd.f32 %v6007_v59, %v5919_v19 }
 0x5d5   : > { %v6047_v43 = vadd.f32 %v7366_v37, %v6008_v44 }
 0x5d7   : > { %v6079_v61 = vmax.f32 %v6047_v43, 0.0 }
 0x5d9   : > { %6111 = vst [vmem:[%s10130_s27 + $0xd8] sm:$0xff] %v6079_v61 }
 0x5da   : > { %v6010_v28 = vpop.f32.mrf.mxu1 }
 0x5db   : > { %v6011_v48 = vadd.f32 %v6010_v28, %v5922_v12 }
 0x5dd   : > { %v6048_v9 = vadd.f32 %v7367_v62, %v6011_v48 }
 0x5df   : > { %v6080_v25 = vmax.f32 %v6048_v9, 0.0 }
 0x5e1   : > { %6112 = vst [vmem:[%s10130_s27 + $0xe0] sm:$0xff] %v6080_v25 }
 0x5e2   : > { %v6012_v63 = vpop.f32.mrf.mxu1 }
 0x5e3   : > { %v6013_v11 = vadd.f32 %v6012_v63, %v5924_v1 }
 0x5e5   : > { %v6049_v52 = vadd.f32 %v7368_v10, %v6013_v11 }
 0x5e7   : > { %v6081_v45 = vmax.f32 %v6049_v52, 0.0 }
 0x5e9   : > { %6113 = vst [vmem:[%s10130_s27 + $0xe8] sm:$0xff] %v6081_v45 }
 0x5ea   : > { %v6015_v3 = vpop.f32.mrf.mxu1 }
 0x5eb   : > { %v6016_v4 = vadd.f32 %v6015_v3, %v5927_v50 }
 0x5ed   : > { %v6050_v23 = vadd.f32 %v7369_v26, %v6016_v4 }
 0x5ef   : > { %v6082_v53 = vmax.f32 %v6050_v23, 0.0 }
 0x5f1   : > { %6114 = vst [vmem:[%s10130_s27 + $0xf0] sm:$0xff] %v6082_v53 }
 0x5f2   : > { %v6017_v60 = vpop.f32.mrf.mxu1 }
 0x5f3   : > { %v6018_v35 = vadd.f32 %v6017_v60, %v5929_v13 }
 0x5f5   : > { %v6051_v15 = vadd.f32 %v7370_v2, %v6018_v35 }
 0x5f7   : > { %v6083_v33 = vmax.f32 %v6051_v15, 0.0 }
 0x5f9   : > { %6115 = vst [vmem:[%s10130_s27 + $0xf8] sm:$0xff] %v6083_v33 }
 0x5fa   : > { %7488 = shalt.err (!%p7485_p10)
}
 0x5fb   : > { %s7540_s8 = smov 128   ;;  %s7541_s16 = smov 8  }
 0x5fc   : > { %7206 = dma.vmem_to_hbm [thread:$0]  (%p7638_p3), %s6130_s7, 4096, %s6132_s13, %s6117_s22, %s7540_s8, %s7540_s8, %s7541_s16  }
 0x5fd PF: > { %s6146_s27 = sand.u32 1, %s7519_s18   ;;  %p10530_p12 = scmp.ge.s32.totalorder %s7531_s21, 2 }
 0x5fe   : > { %s6147_s28 = scalar_lea.sflag [#allocation6], %s6146_s27 }
 0x5ff   : > { %p7220_p13 = pnand %p10530_p12, %p7607_p6 }
 0x601   : > { %p7221_p0 = pneg %p7220_p13 }
 0x603   : > { %7514 = dma.done.wait (%p7221_p0), %s6147_s28, 4096  }
 0x604   : > { %7516 = vsyncadd (%p7221_p0), %s6147_s28, 4294963200  ;;  %p19_p5 = scmp.ge.s32.totalorder %s7628_s14, 4   ;;  %s10531_s18 = smov %s7523_s19 }
 0x605   : > { %s10532_s19 = smov %s7527_s20  ;;  %s10533_s20 = smov %s7644_s23 }
 0x606   : > { %s10534_s21 = smov %s7628_s14  ;;  %21 = sbr.rel (!%p19_p5) target bundleno = 6 (0x6), region = 97 }
 0x60b   :  { %6153 = vsyncpa [#allocation5], 1 }
 0x60c   :  { %6155 = vsyncpa [#allocation5 + $0x1], 1 }
 0x60d   :  { %6156 = vsyncpa [#allocation8], 1 }
 0x60e   :  { %6157 = vsyncpa [#allocation6], 1 }
 0x60f   :  { %6159 = vsyncpa [#allocation6 + $0x1], 1 }

</bundles_post_ra>
